<compile_context>
chip_gen: v7x
topology: tpu7x:2x2x1
jax: 0.10.0
libtpu: 0.0.40
codegen_flags: <defaults>
</compile_context>

<pallas_src>
import jax
import jax.numpy as jnp
from jax.experimental import pallas as pl
from jax.experimental.pallas import tpu as pltpu

# ----------------------------- model config ---------------------------------
HIDDEN = 128          # lxmert-base uses 768; scaled down, lane-aligned (128)
HEADS = 4
HEAD_DIM = HIDDEN // HEADS
INTER = 256           # lxmert-base uses 3072
VOCAB = 100
MAX_POS = 32
FEAT_DIM = 64         # lxmert-base uses 2048
POS_DIM = 4
L_LAYERS = 2          # lxmert-base: 9
R_LAYERS = 1          # lxmert-base: 5
X_LAYERS = 1          # lxmert-base: 5
NUM_CLASSES = 2
LN_EPS = 1e-12

BATCH = 2
SEQ_LEN = 8           # text tokens
NUM_REGIONS = 8       # visual regions (== SEQ_LEN so modalities can be stacked)


# --------------------------- in-kernel helpers -------------------------------
def _ln(x, g, b, eps=LN_EPS):
    """LayerNorm over the last axis; x:(M,H), g/b:(1,H); all f32."""
    mean = jnp.mean(x, axis=-1, keepdims=True)
    var = jnp.mean((x - mean) ** 2, axis=-1, keepdims=True)
    return (x - mean) * jax.lax.rsqrt(var + eps) * g + b


def _mm(x, w):
    """Matmul on the MXU with bf16 operands and f32 accumulation."""
    return jnp.dot(x.astype(jnp.bfloat16), w.astype(jnp.bfloat16),
                   preferred_element_type=jnp.float32)


def _attention(q, k, v, wo, n_batch, sq, sk):
    """Multi-head attention on flattened slabs with Wo fused per head.

    q: (n_batch*sq, H) f32, k/v: (n_batch*sk, H) f32, wo: (H, H) bf16.
    Returns the already-projected attention output (n_batch*sq, H) f32
    (sum_h softmax(q_h k_h^T) v_h @ Wo[h]); no lane concat of head contexts.
    """
    scale = 1.0 / float(HEAD_DIM) ** 0.5
    q3 = q.reshape(n_batch, sq, HIDDEN)
    k3 = k.reshape(n_batch, sk, HIDDEN)
    v3 = v.reshape(n_batch, sk, HIDDEN)
    out = None
    for h in range(HEADS):
        sl = slice(h * HEAD_DIM, (h + 1) * HEAD_DIM)
        s = jnp.einsum('bqd,bkd->bqk', q3[:, :, sl], k3[:, :, sl],
                       preferred_element_type=jnp.float32) * scale
        s = s - jnp.max(s, axis=-1, keepdims=True)
        p = jnp.exp(s)
        p = p / jnp.sum(p, axis=-1, keepdims=True)        # exact reciprocal
        ctx = jnp.einsum('bqk,bkd->bqd', p, v3[:, :, sl],
                         preferred_element_type=jnp.float32)
        oh = jnp.dot(ctx.reshape(n_batch * sq, HEAD_DIM).astype(jnp.bfloat16),
                     wo[sl, :], preferred_element_type=jnp.float32)
        out = oh if out is None else out + oh
    return out


# -------------------- fused multi-layer encoder stack ------------------------
def _make_encoder_stack_kernel(n_batch, seq):
    def kernel(counts_ref, x_ref, wqkv_ref, bqkv_ref, wo_ref, bo_ref,
               g1_ref, b1_ref, wi_ref, bi_ref, wo2_ref, bo2_ref,
               g2_ref, b2_ref, o_ref, acc_ref):
        m = pl.program_id(0)            # modality / stack index ('parallel')
        l = pl.program_id(1)            # layer index            ('arbitrary')
        n_layers = counts_ref[m]        # active layers for this stack (SMEM)

        @pl.when(l == 0)
        def _init():
            acc_ref[...] = x_ref[0].astype(jnp.float32)

        @pl.when(l < n_layers)
        def _layer():
            x = acc_ref[...]                                     # (M, H) f32
            qkv = _mm(x, wqkv_ref[0, 0]) + bqkv_ref[0, 0]        # (M, 3H)
            q = qkv[:, :HIDDEN]
            k = qkv[:, HIDDEN:2 * HIDDEN]
            v = qkv[:, 2 * HIDDEN:]
            attn = _attention(q, k, v, wo_ref[0, 0], n_batch, seq, seq)
            x1 = _ln(attn + bo_ref[0, 0] + x, g1_ref[0, 0], b1_ref[0, 0])
            # TODO(synk): HF LXMERT uses the exact erf GELU; tanh approx here.
            hid = jax.nn.gelu(_mm(x1, wi_ref[0, 0]) + bi_ref[0, 0],
                              approximate=True)
            ffn = _mm(hid, wo2_ref[0, 0]) + bo2_ref[0, 0]
            y = _ln(ffn + x1, g2_ref[0, 0], b2_ref[0, 0])
            acc_ref[...] = y
            o_ref[0] = y.astype(o_ref.dtype)
        # Padded layer slots (l >= n_layers) do nothing; the last valid write
        # stays resident in the output block until it is flushed.
    return kernel


def encoder_stack(x, p, counts, n_batch, seq):
    """Run a whole encoder stack in one pallas_call.

    x: (n_stack, n_batch*seq, H) bf16 activations (batch folded into M).
    p: per-layer weights stacked as (n_stack, lmax, ...), bf16 matmul weights.
    counts: (n_stack,) int32, number of active layers per stack.
    """
    n_stack, M, H = x.shape
    lmax = p["wqkv"].shape[1]

    def xmap(m, l, counts_ref):
        return (m, 0, 0)

    def wmap(m, l, counts_ref):
        return (m, l, 0, 0)

    def wspec(shape):
        return pl.BlockSpec((1, 1) + shape, wmap)

    return pl.pallas_call(
        _make_encoder_stack_kernel(n_batch, seq),
        out_shape=jax.ShapeDtypeStruct((n_stack, M, H), jnp.bfloat16),
        grid_spec=pltpu.PrefetchScalarGridSpec(
            num_scalar_prefetch=1,
            grid=(n_stack, lmax),
            in_specs=[
                pl.BlockSpec((1, M, H), xmap),
                wspec((HIDDEN, 3 * HIDDEN)), wspec((1, 3 * HIDDEN)),
                wspec((HIDDEN, HIDDEN)), wspec((1, HIDDEN)),
                wspec((1, HIDDEN)), wspec((1, HIDDEN)),
                wspec((HIDDEN, INTER)), wspec((1, INTER)),
                wspec((INTER, HIDDEN)), wspec((1, HIDDEN)),
                wspec((1, HIDDEN)), wspec((1, HIDDEN)),
            ],
            out_specs=pl.BlockSpec((1, M, H), xmap),
            scratch_shapes=[pltpu.VMEM((M, H), jnp.float32)],
        ),
        compiler_params=pltpu.CompilerParams(
            dimension_semantics=("parallel", "arbitrary")),
    )(counts, x, p["wqkv"], p["bqkv"], p["wo"], p["bo"], p["g1"], p["b1"],
      p["wi"], p["bi"], p["wo2"], p["bo2"], p["g2"], p["b2"])


# ------------------- bidirectional cross attention (1 step) ------------------
def _make_cross_kernel(n_pair, sq, sk):
    def kernel(xq_ref, xkv_ref, wq_ref, bq_ref, wkv_ref, bkv_ref,
               wo_ref, bo_ref, g_ref, b_ref, o_ref):
        xq = xq_ref[...].astype(jnp.float32)                     # (n*sq, H)
        q = _mm(xq, wq_ref[...]) + bq_ref[...]
        kv = _mm(xkv_ref[...], wkv_ref[...]) + bkv_ref[...]      # (n*sk, 2H)
        k = kv[:, :HIDDEN]
        v = kv[:, HIDDEN:]
        ctx = _attention(q, k, v, wo_ref[...], n_pair, sq, sk)
        o_ref[...] = _ln(ctx + bo_ref[...] + xq,
                         g_ref[...], b_ref[...]).astype(o_ref.dtype)
    return kernel


def cross_attention(xq, xkv, p, n_pair, sq, sk):
    """xq: (n_pair*sq, H) bf16, xkv: (n_pair*sk, H) bf16; shared weights."""
    Mq, H = xq.shape
    Mk = xkv.shape[0]

    def full(shape):
        return pl.BlockSpec(shape, lambda i: (0,) * len(shape))

    return pl.pallas_call(
        _make_cross_kernel(n_pair, sq, sk),
        out_shape=jax.ShapeDtypeStruct((Mq, H), jnp.bfloat16),
        grid=(1,),
        in_specs=[full((Mq, H)), full((Mk, H)),
                  full((HIDDEN, HIDDEN)), full((1, HIDDEN)),
                  full((HIDDEN, 2 * HIDDEN)), full((1, 2 * HIDDEN)),
                  full((HIDDEN, HIDDEN)), full((1, HIDDEN)),
                  full((1, HIDDEN)), full((1, HIDDEN))],
        out_specs=full((Mq, H)),
    )(xq, xkv, p["wq"], p["bq"], p["wkv"], p["bkv"],
      p["wo"], p["bo"], p["g"], p["b"])


# --------------------------- visual feature fusion ---------------------------
def _visual_feat_kernel(feats_ref, boxes_ref, wf_ref, bf_ref, gf_ref, bfln_ref,
                        wb_ref, bb_ref, gb_ref, bbln_ref, o_ref):
    x = _ln(_mm(feats_ref[...], wf_ref[...]) + bf_ref[...],
            gf_ref[...], bfln_ref[...])
    y = _ln(_mm(boxes_ref[...], wb_ref[...]) + bb_ref[...],
            gb_ref[...], bbln_ref[...])
    o_ref[...] = ((x + y) * 0.5).astype(o_ref.dtype)


def visual_feats_fwd(p, feats, boxes):
    """feats: (B, R, F), boxes: (B, R, 4) -> (B*R, H) bf16."""
    B, R, F = feats.shape
    M = B * R
    f2 = feats.reshape(M, F)
    b2 = boxes.reshape(M, POS_DIM)

    def full(shape):
        return pl.BlockSpec(shape, lambda i: (0,) * len(shape))

    return pl.pallas_call(
        _visual_feat_kernel,
        out_shape=jax.ShapeDtypeStruct((M, HIDDEN), jnp.bfloat16),
        grid=(1,),
        in_specs=[full((M, F)), full((M, POS_DIM)),
                  full((F, HIDDEN)), full((1, HIDDEN)),
                  full((1, HIDDEN)), full((1, HIDDEN)),
                  full((POS_DIM, HIDDEN)), full((1, HIDDEN)),
                  full((1, HIDDEN)), full((1, HIDDEN))],
        out_specs=full((M, HIDDEN)),
    )(f2, b2, p["wf"], p["bf"], p["gf"], p["bfln"],
      p["wb"], p["bb"], p["gb"], p["bbln"])


# ------------------------------- forward pass --------------------------------
def lxmert_meme_forward(params, image_feats, visual_pos, input_ids):
    B, L = input_ids.shape
    R = image_feats.shape[1]
    emb = params["emb"]

    # Embeddings (gather + add + LayerNorm) stay in plain JAX: a 16x128 LN is
    # cheaper than a pallas_call dispatch (review item #5).
    e = (emb["word"][input_ids] + emb["pos"][jnp.arange(L)][None]
         + emb["type"][0][None, None])
    mean = jnp.mean(e, axis=-1, keepdims=True)
    var = jnp.mean((e - mean) ** 2, axis=-1, keepdims=True)
    lang = (e - mean) * jax.lax.rsqrt(var + LN_EPS) * emb["ln_g"] + emb["ln_b"]
    lang = lang.astype(jnp.bfloat16).reshape(B * L, HIDDEN)          # (BL, H)

    visn = visual_feats_fwd(params["visn"], image_feats, visual_pos)  # (BR, H)

    # Single-modality encoders: both stacks (language: 2 layers, visual: 1
    # layer) in ONE fused call; batch folded into M; layer axis kept resident
    # in VMEM scratch; per-layer weights streamed by BlockSpec.
    # TODO(synk): stacking the modalities assumes SEQ_LEN == NUM_REGIONS; with
    # L != R, run two encoder_stack calls instead.
    x = jnp.stack([lang, visn], axis=0)                               # (2, BL, H)
    x = encoder_stack(x, params["lr_stack"], params["lr_counts"], B, L)
    lang, visn = x[0], x[1]

    # Cross-modality layers: bidirectional shared-weight cross attention in a
    # single grid step, then per-modality self-attn + FFN via the fused
    # encoder-stack kernel (modality stack = 2 -> parallel axis for v7x).
    for xp in params["x_layers"]:
        xq = jnp.concatenate([lang, visn], axis=0)                    # (2BL, H)
        xkv = jnp.concatenate([visn, lang], axis=0)
        att = cross_attention(xq, xkv, xp["cross"], 2 * B, L, R)
        both = jnp.stack([att[:B * L], att[B * L:]], axis=0)          # (2, BL, H)
        both = encoder_stack(both, xp["selfffn"], xp["selfffn_counts"], B, L)
        lang, visn = both[0], both[1]

    # Pooler (tanh on CLS) + 2-class head: plain JAX (2-lane output is not
    # worth a Pallas launch).
    lang = lang.reshape(B, L, HIDDEN).astype(jnp.float32)
    pooled = jnp.tanh(lang[:, 0, :] @ params["pooler"]["w"]
                      + params["pooler"]["b"])
    return pooled @ params["fc"]["w"] + params["fc"]["b"]


# ------------------------------ parameter init -------------------------------
def init_params(key):
    keys = iter(jax.random.split(key, 64))

    def w32(shape, scale=0.02):
        return jax.random.normal(next(keys), shape, jnp.float32) * scale

    def wb16(shape, scale=0.02):
        # matmul weights stored as bf16 MXU operands (pre-cast once at init)
        return w32(shape, scale).astype(jnp.bfloat16)

    def stack_params(n_stack, lmax, counts):
        """Encoder-layer weights stacked (n_stack, lmax, ...); padded layer
        slots (beyond counts[i]) are zeros and are skipped inside the kernel."""
        def weight(shape):
            w = jnp.zeros((n_stack, lmax) + shape, jnp.bfloat16)
            for si, c in enumerate(counts):
                for li in range(c):
                    w = w.at[si, li].set(wb16(shape))
            return w

        def cvec(shape, value=0.0):
            return jnp.full((n_stack, lmax) + shape, value, jnp.float32)

        return {
            "wqkv": weight((HIDDEN, 3 * HIDDEN)),
            "bqkv": cvec((1, 3 * HIDDEN)),
            "wo":   weight((HIDDEN, HIDDEN)),
            "bo":   cvec((1, HIDDEN)),
            "g1":   cvec((1, HIDDEN), 1.0),
            "b1":   cvec((1, HIDDEN)),
            "wi":   weight((HIDDEN, INTER)),
            "bi":   cvec((1, INTER)),
            "wo2":  weight((INTER, HIDDEN)),
            "bo2":  cvec((1, HIDDEN)),
            "g2":   cvec((1, HIDDEN), 1.0),
            "b2":   cvec((1, HIDDEN)),
        }

    def cross_params():
        return {
            "wq":  wb16((HIDDEN, HIDDEN)),
            "bq":  jnp.zeros((1, HIDDEN), jnp.float32),
            "wkv": wb16((HIDDEN, 2 * HIDDEN)),
            "bkv": jnp.zeros((1, 2 * HIDDEN), jnp.float32),
            "wo":  wb16((HIDDEN, HIDDEN)),
            "bo":  jnp.zeros((1, HIDDEN), jnp.float32),
            "g":   jnp.ones((1, HIDDEN), jnp.float32),
            "b":   jnp.zeros((1, HIDDEN), jnp.float32),
        }

    return {
        "emb": {"word": w32((VOCAB, HIDDEN)), "pos": w32((MAX_POS, HIDDEN)),
                "type": w32((2, HIDDEN)),
                "ln_g": jnp.ones((1, HIDDEN), jnp.float32),
                "ln_b": jnp.zeros((1, HIDDEN), jnp.float32)},
        "visn": {"wf": wb16((FEAT_DIM, HIDDEN)),
                 "bf": jnp.zeros((1, HIDDEN), jnp.float32),
                 "gf": jnp.ones((1, HIDDEN), jnp.float32),
                 "bfln": jnp.zeros((1, HIDDEN), jnp.float32),
                 "wb": wb16((POS_DIM, HIDDEN)),
                 "bb": jnp.zeros((1, HIDDEN), jnp.float32),
                 "gb": jnp.ones((1, HIDDEN), jnp.float32),
                 "bbln": jnp.zeros((1, HIDDEN), jnp.float32)},
        "lr_stack": stack_params(2, max(L_LAYERS, R_LAYERS),
                                 (L_LAYERS, R_LAYERS)),
        "lr_counts": jnp.array([L_LAYERS, R_LAYERS], jnp.int32),
        "x_layers": [{"cross": cross_params(),
                      "selfffn": stack_params(2, 1, (1, 1)),
                      "selfffn_counts": jnp.array([1, 1], jnp.int32)}
                     for _ in range(X_LAYERS)],
        "pooler": {"w": w32((HIDDEN, HIDDEN)),
                   "b": jnp.zeros((HIDDEN,), jnp.float32)},
        "fc": {"w": w32((HIDDEN, NUM_CLASSES)),
               "b": jnp.zeros((NUM_CLASSES,), jnp.float32)},
    }


# ----------------------------------- main ------------------------------------
if __name__ == "__main__":
    root = jax.random.PRNGKey(0)
    k_param, k_img, k_txt = jax.random.split(root, 3)

    params = init_params(k_param)

    # image -> visual_feats (B, R, FEAT_DIM), as LxmertModel(visual_feats=image)
    image = jax.random.normal(k_img, (BATCH, NUM_REGIONS, FEAT_DIM), jnp.float32)
    # text['input_ids'] is (B, 1, L) and the module does .squeeze(1)
    text_input_ids = jax.random.randint(k_txt, (BATCH, 1, SEQ_LEN), 0, VOCAB,
                                        jnp.int32)
    input_ids = jnp.squeeze(text_input_ids, axis=1)
    # TODO(synk): the reference forward omits visual_pos (required by
    # LxmertModel); zeros are supplied for the box-position branch.
    visual_pos = jnp.zeros((BATCH, NUM_REGIONS, POS_DIM), jnp.float32)

    fwd = jax.jit(lxmert_meme_forward)
    logits = fwd(params, image, visual_pos, input_ids)
    jax.block_until_ready(logits)
    assert logits.shape == (BATCH, NUM_CLASSES) and logits.dtype == jnp.float32
    print("KERNEL_OK")
</pallas_src>

<mosaic_0001>
module attributes {stable_mosaic.version = 11 : i64} {
  func.func @_visual_feat_kernel(%arg0: i32, %arg1: memref<16x64xf32, #tpu.memory_space<vmem>>, %arg2: memref<16x4xf32, #tpu.memory_space<vmem>>, %arg3: memref<64x128xbf16, #tpu.memory_space<vmem>>, %arg4: memref<1x128xf32, #tpu.memory_space<vmem>>, %arg5: memref<1x128xf32, #tpu.memory_space<vmem>>, %arg6: memref<1x128xf32, #tpu.memory_space<vmem>>, %arg7: memref<4x128xbf16, #tpu.memory_space<vmem>>, %arg8: memref<1x128xf32, #tpu.memory_space<vmem>>, %arg9: memref<1x128xf32, #tpu.memory_space<vmem>>, %arg10: memref<1x128xf32, #tpu.memory_space<vmem>>, %arg11: memref<16x128xbf16, #tpu.memory_space<vmem>>) attributes {dimension_semantics = [#tpu.dimension_semantics<arbitrary>], iteration_bounds = array<i64: 1>, scalar_prefetch = 0 : i64, scratch_operands = 0 : i64, tpu.core_type = #tpu.core_type<tc>, window_params = [{pipeline_mode = #tpu.pipeline_mode<synchronous>, transform_indices = @transform_0, window_bounds = array<i64: 16, 64>}, {pipeline_mode = #tpu.pipeline_mode<synchronous>, transform_indices = @transform_1, window_bounds = array<i64: 16, 4>}, {pipeline_mode = #tpu.pipeline_mode<synchronous>, transform_indices = @transform_2, window_bounds = array<i64: 64, 128>}, {pipeline_mode = #tpu.pipeline_mode<synchronous>, transform_indices = @transform_3, window_bounds = array<i64: 1, 128>}, {pipeline_mode = #tpu.pipeline_mode<synchronous>, transform_indices = @transform_4, window_bounds = array<i64: 1, 128>}, {pipeline_mode = #tpu.pipeline_mode<synchronous>, transform_indices = @transform_5, window_bounds = array<i64: 1, 128>}, {pipeline_mode = #tpu.pipeline_mode<synchronous>, transform_indices = @transform_6, window_bounds = array<i64: 4, 128>}, {pipeline_mode = #tpu.pipeline_mode<synchronous>, transform_indices = @transform_7, window_bounds = array<i64: 1, 128>}, {pipeline_mode = #tpu.pipeline_mode<synchronous>, transform_indices = @transform_8, window_bounds = array<i64: 1, 128>}, {pipeline_mode = #tpu.pipeline_mode<synchronous>, transform_indices = @transform_9, window_bounds = array<i64: 1, 128>}, {pipeline_mode = #tpu.pipeline_mode<synchronous>, transform_indices = @transform_10, window_bounds = array<i64: 16, 128>}]} {
    %c0 = arith.constant 0 : index
    %c0_0 = arith.constant 0 : index
    %0 = vector.load %arg1[%c0, %c0_0] : memref<16x64xf32, #tpu.memory_space<vmem>>, vector<16x64xf32>
    %c0_1 = arith.constant 0 : index
    %c0_2 = arith.constant 0 : index
    %1 = vector.load %arg3[%c0_1, %c0_2] : memref<64x128xbf16, #tpu.memory_space<vmem>>, vector<64x128xbf16>
    %2 = arith.truncf %0 : vector<16x64xf32> to vector<16x64xbf16>
    %cst = arith.constant dense<0.000000e+00> : vector<16x128xf32>
    %3 = tpu.matmul %2, %1, %cst {dimension_numbers = #tpu.dot_dimension_numbers<[1], [0], [0], [1], [0, 0, 1, 1], [], []>} : vector<16x64xbf16>, vector<64x128xbf16>, vector<16x128xf32> -> vector<16x128xf32>
    %c0_3 = arith.constant 0 : index
    %c0_4 = arith.constant 0 : index
    %4 = vector.load %arg4[%c0_3, %c0_4] : memref<1x128xf32, #tpu.memory_space<vmem>>, vector<1x128xf32>
    %5 = vector.broadcast %4 : vector<1x128xf32> to vector<16x128xf32>
    %6 = arith.addf %3, %5 : vector<16x128xf32>
    %c0_5 = arith.constant 0 : index
    %c0_6 = arith.constant 0 : index
    %7 = vector.load %arg5[%c0_5, %c0_6] : memref<1x128xf32, #tpu.memory_space<vmem>>, vector<1x128xf32>
    %c0_7 = arith.constant 0 : index
    %c0_8 = arith.constant 0 : index
    %8 = vector.load %arg6[%c0_7, %c0_8] : memref<1x128xf32, #tpu.memory_space<vmem>>, vector<1x128xf32>
    %cst_9 = arith.constant dense<0.000000e+00> : vector<16xf32>
    %9 = vector.multi_reduction <add>, %6, %cst_9 [1] : vector<16x128xf32> to vector<16xf32>
    %10 = vector.shape_cast %9 : vector<16xf32> to vector<16x1xf32>
    %cst_10 = arith.constant 1.280000e+02 : f32
    %11 = vector.broadcast %cst_10 : f32 to vector<16x1xf32>
    %12 = arith.divf %10, %11 : vector<16x1xf32>
    %13 = vector.broadcast %12 : vector<16x1xf32> to vector<16x128xf32>
    %14 = arith.subf %6, %13 : vector<16x128xf32>
    %15 = arith.mulf %14, %14 : vector<16x128xf32>
    %cst_11 = arith.constant dense<0.000000e+00> : vector<16xf32>
    %16 = vector.multi_reduction <add>, %15, %cst_11 [1] : vector<16x128xf32> to vector<16xf32>
    %17 = vector.shape_cast %16 : vector<16xf32> to vector<16x1xf32>
    %cst_12 = arith.constant 1.280000e+02 : f32
    %18 = vector.broadcast %cst_12 : f32 to vector<16x1xf32>
    %19 = arith.divf %17, %18 : vector<16x1xf32>
    %20 = vector.broadcast %12 : vector<16x1xf32> to vector<16x128xf32>
    %21 = arith.subf %6, %20 : vector<16x128xf32>
    %cst_13 = arith.constant 9.99999996E-13 : f32
    %22 = vector.broadcast %cst_13 : f32 to vector<16x1xf32>
    %23 = arith.addf %19, %22 : vector<16x1xf32>
    %24 = math.rsqrt %23 : vector<16x1xf32>
    %25 = vector.broadcast %24 : vector<16x1xf32> to vector<16x128xf32>
    %26 = arith.mulf %21, %25 : vector<16x128xf32>
    %27 = vector.broadcast %7 : vector<1x128xf32> to vector<16x128xf32>
    %28 = arith.mulf %26, %27 : vector<16x128xf32>
    %29 = vector.broadcast %8 : vector<1x128xf32> to vector<16x128xf32>
    %30 = arith.addf %28, %29 : vector<16x128xf32>
    %c0_14 = arith.constant 0 : index
    %c0_15 = arith.constant 0 : index
    %31 = vector.load %arg2[%c0_14, %c0_15] : memref<16x4xf32, #tpu.memory_space<vmem>>, vector<16x4xf32>
    %c0_16 = arith.constant 0 : index
    %c0_17 = arith.constant 0 : index
    %32 = vector.load %arg7[%c0_16, %c0_17] : memref<4x128xbf16, #tpu.memory_space<vmem>>, vector<4x128xbf16>
    %33 = arith.truncf %31 : vector<16x4xf32> to vector<16x4xbf16>
    %cst_18 = arith.constant dense<0.000000e+00> : vector<16x128xf32>
    %34 = tpu.matmul %33, %32, %cst_18 {dimension_numbers = #tpu.dot_dimension_numbers<[1], [0], [0], [1], [0, 0, 1, 1], [], []>} : vector<16x4xbf16>, vector<4x128xbf16>, vector<16x128xf32> -> vector<16x128xf32>
    %c0_19 = arith.constant 0 : index
    %c0_20 = arith.constant 0 : index
    %35 = vector.load %arg8[%c0_19, %c0_20] : memref<1x128xf32, #tpu.memory_space<vmem>>, vector<1x128xf32>
    %36 = vector.broadcast %35 : vector<1x128xf32> to vector<16x128xf32>
    %37 = arith.addf %34, %36 : vector<16x128xf32>
    %c0_21 = arith.constant 0 : index
    %c0_22 = arith.constant 0 : index
    %38 = vector.load %arg9[%c0_21, %c0_22] : memref<1x128xf32, #tpu.memory_space<vmem>>, vector<1x128xf32>
    %c0_23 = arith.constant 0 : index
    %c0_24 = arith.constant 0 : index
    %39 = vector.load %arg10[%c0_23, %c0_24] : memref<1x128xf32, #tpu.memory_space<vmem>>, vector<1x128xf32>
    %cst_25 = arith.constant dense<0.000000e+00> : vector<16xf32>
    %40 = vector.multi_reduction <add>, %37, %cst_25 [1] : vector<16x128xf32> to vector<16xf32>
    %41 = vector.shape_cast %40 : vector<16xf32> to vector<16x1xf32>
    %cst_26 = arith.constant 1.280000e+02 : f32
    %42 = vector.broadcast %cst_26 : f32 to vector<16x1xf32>
    %43 = arith.divf %41, %42 : vector<16x1xf32>
    %44 = vector.broadcast %43 : vector<16x1xf32> to vector<16x128xf32>
    %45 = arith.subf %37, %44 : vector<16x128xf32>
    %46 = arith.mulf %45, %45 : vector<16x128xf32>
    %cst_27 = arith.constant dense<0.000000e+00> : vector<16xf32>
    %47 = vector.multi_reduction <add>, %46, %cst_27 [1] : vector<16x128xf32> to vector<16xf32>
    %48 = vector.shape_cast %47 : vector<16xf32> to vector<16x1xf32>
    %cst_28 = arith.constant 1.280000e+02 : f32
    %49 = vector.broadcast %cst_28 : f32 to vector<16x1xf32>
    %50 = arith.divf %48, %49 : vector<16x1xf32>
    %51 = vector.broadcast %43 : vector<16x1xf32> to vector<16x128xf32>
    %52 = arith.subf %37, %51 : vector<16x128xf32>
    %cst_29 = arith.constant 9.99999996E-13 : f32
    %53 = vector.broadcast %cst_29 : f32 to vector<16x1xf32>
    %54 = arith.addf %50, %53 : vector<16x1xf32>
    %55 = math.rsqrt %54 : vector<16x1xf32>
    %56 = vector.broadcast %55 : vector<16x1xf32> to vector<16x128xf32>
    %57 = arith.mulf %52, %56 : vector<16x128xf32>
    %58 = vector.broadcast %38 : vector<1x128xf32> to vector<16x128xf32>
    %59 = arith.mulf %57, %58 : vector<16x128xf32>
    %60 = vector.broadcast %39 : vector<1x128xf32> to vector<16x128xf32>
    %61 = arith.addf %59, %60 : vector<16x128xf32>
    %62 = arith.addf %30, %61 : vector<16x128xf32>
    %cst_30 = arith.constant 5.000000e-01 : f32
    %63 = vector.broadcast %cst_30 : f32 to vector<16x128xf32>
    %64 = arith.mulf %62, %63 : vector<16x128xf32>
    %65 = arith.truncf %64 : vector<16x128xf32> to vector<16x128xbf16>
    %c0_31 = arith.constant 0 : index
    %c0_32 = arith.constant 0 : index
    %66 = vector.load %arg11[%c0_31, %c0_32] : memref<16x128xbf16, #tpu.memory_space<vmem>>, vector<16x128xbf16>
    tpu.vector_store %arg11[%c0_31, %c0_32], %65 {strides = array<i32>} : memref<16x128xbf16, #tpu.memory_space<vmem>>, vector<16x128xbf16>,
    return
  }
  func.func @transform_0(%arg0: i32) -> (i32, i32) {
    %c0_i32 = arith.constant 0 : i32
    %c0_i32_0 = arith.constant 0 : i32
    %c0_i32_1 = arith.constant 0 : i32
    return %c0_i32, %c0_i32_0 : i32, i32
  }
  func.func @transform_1(%arg0: i32) -> (i32, i32) {
    %c0_i32 = arith.constant 0 : i32
    %c0_i32_0 = arith.constant 0 : i32
    %c0_i32_1 = arith.constant 0 : i32
    return %c0_i32, %c0_i32_0 : i32, i32
  }
  func.func @transform_2(%arg0: i32) -> (i32, i32) {
    %c0_i32 = arith.constant 0 : i32
    %c0_i32_0 = arith.constant 0 : i32
    %c0_i32_1 = arith.constant 0 : i32
    return %c0_i32, %c0_i32_0 : i32, i32
  }
  func.func @transform_3(%arg0: i32) -> (i32, i32) {
    %c0_i32 = arith.constant 0 : i32
    %c0_i32_0 = arith.constant 0 : i32
    %c0_i32_1 = arith.constant 0 : i32
    return %c0_i32, %c0_i32_0 : i32, i32
  }
  func.func @transform_4(%arg0: i32) -> (i32, i32) {
    %c0_i32 = arith.constant 0 : i32
    %c0_i32_0 = arith.constant 0 : i32
    %c0_i32_1 = arith.constant 0 : i32
    return %c0_i32, %c0_i32_0 : i32, i32
  }
  func.func @transform_5(%arg0: i32) -> (i32, i32) {
    %c0_i32 = arith.constant 0 : i32
    %c0_i32_0 = arith.constant 0 : i32
    %c0_i32_1 = arith.constant 0 : i32
    return %c0_i32, %c0_i32_0 : i32, i32
  }
  func.func @transform_6(%arg0: i32) -> (i32, i32) {
    %c0_i32 = arith.constant 0 : i32
    %c0_i32_0 = arith.constant 0 : i32
    %c0_i32_1 = arith.constant 0 : i32
    return %c0_i32, %c0_i32_0 : i32, i32
  }
  func.func @transform_7(%arg0: i32) -> (i32, i32) {
    %c0_i32 = arith.constant 0 : i32
    %c0_i32_0 = arith.constant 0 : i32
    %c0_i32_1 = arith.constant 0 : i32
    return %c0_i32, %c0_i32_0 : i32, i32
  }
  func.func @transform_8(%arg0: i32) -> (i32, i32) {
    %c0_i32 = arith.constant 0 : i32
    %c0_i32_0 = arith.constant 0 : i32
    %c0_i32_1 = arith.constant 0 : i32
    return %c0_i32, %c0_i32_0 : i32, i32
  }
  func.func @transform_9(%arg0: i32) -> (i32, i32) {
    %c0_i32 = arith.constant 0 : i32
    %c0_i32_0 = arith.constant 0 : i32
    %c0_i32_1 = arith.constant 0 : i32
    return %c0_i32, %c0_i32_0 : i32, i32
  }
  func.func @transform_10(%arg0: i32) -> (i32, i32) {
    %c0_i32 = arith.constant 0 : i32
    %c0_i32_0 = arith.constant 0 : i32
    %c0_i32_1 = arith.constant 0 : i32
    return %c0_i32, %c0_i32_0 : i32, i32
  }
}

module attributes {stable_mosaic.version = 11 : i64} {
  func.func @kernel(%arg0: i32, %arg1: i32, %arg2: memref<2xi32, #tpu.memory_space<smem>>, %arg3: memref<1x16x128xbf16, #tpu.memory_space<vmem>>, %arg4: memref<1x1x128x384xbf16, #tpu.memory_space<vmem>>, %arg5: memref<1x1x1x384xf32, #tpu.memory_space<vmem>>, %arg6: memref<1x1x128x128xbf16, #tpu.memory_space<vmem>>, %arg7: memref<1x1x1x128xf32, #tpu.memory_space<vmem>>, %arg8: memref<1x1x1x128xf32, #tpu.memory_space<vmem>>, %arg9: memref<1x1x1x128xf32, #tpu.memory_space<vmem>>, %arg10: memref<1x1x128x256xbf16, #tpu.memory_space<vmem>>, %arg11: memref<1x1x1x256xf32, #tpu.memory_space<vmem>>, %arg12: memref<1x1x256x128xbf16, #tpu.memory_space<vmem>>, %arg13: memref<1x1x1x128xf32, #tpu.memory_space<vmem>>, %arg14: memref<1x1x1x128xf32, #tpu.memory_space<vmem>>, %arg15: memref<1x1x1x128xf32, #tpu.memory_space<vmem>>, %arg16: memref<1x16x128xbf16, #tpu.memory_space<vmem>>, %arg17: memref<16x128xf32, #tpu.memory_space<vmem>>) attributes {dimension_semantics = [#tpu.dimension_semantics<parallel>, #tpu.dimension_semantics<arbitrary>], iteration_bounds = array<i64: 2, 2>, scalar_prefetch = 1 : i64, scratch_operands = 1 : i64, tpu.core_type = #tpu.core_type<tc>, window_params = [{transform_indices = @transform_0, window_bounds = array<i64: 1, 16, 128>}, {transform_indices = @transform_1, window_bounds = array<i64: 1, 1, 128, 384>}, {transform_indices = @transform_2, window_bounds = array<i64: 1, 1, 1, 384>}, {transform_indices = @transform_3, window_bounds = array<i64: 1, 1, 128, 128>}, {transform_indices = @transform_4, window_bounds = array<i64: 1, 1, 1, 128>}, {transform_indices = @transform_5, window_bounds = array<i64: 1, 1, 1, 128>}, {transform_indices = @transform_6, window_bounds = array<i64: 1, 1, 1, 128>}, {transform_indices = @transform_7, window_bounds = array<i64: 1, 1, 128, 256>}, {transform_indices = @transform_8, window_bounds = array<i64: 1, 1, 1, 256>}, {transform_indices = @transform_9, window_bounds = array<i64: 1, 1, 256, 128>}, {transform_indices = @transform_10, window_bounds = array<i64: 1, 1, 1, 128>}, {transform_indices = @transform_11, window_bounds = array<i64: 1, 1, 1, 128>}, {transform_indices = @transform_12, window_bounds = array<i64: 1, 1, 1, 128>}, {transform_indices = @transform_13, window_bounds = array<i64: 1, 16, 128>}]} {
    %0 = arith.index_cast %arg0 : i32 to index
    %1 = memref.load %arg2[%0] : memref<2xi32, #tpu.memory_space<smem>>
    %c0_i32 = arith.constant 0 : i32
    %2 = arith.cmpi eq, %arg1, %c0_i32 : i32
    %3 = arith.extui %2 : i1 to i32
    %c0_i32_0 = arith.constant 0 : i32
    %4 = arith.cmpi ne, %3, %c0_i32_0 : i32
    scf.if %4 {
      %c0 = arith.constant 0 : index
      %c0_2 = arith.constant 0 : index
      %c0_3 = arith.constant 0 : index
      %8 = vector.load %arg3[%c0, %c0_2, %c0_3] : memref<1x16x128xbf16, #tpu.memory_space<vmem>>, vector<1x16x128xbf16>
      %9 = vector.shape_cast %8 : vector<1x16x128xbf16> to vector<16x128xbf16>
      %10 = arith.extf %9 : vector<16x128xbf16> to vector<16x128xf32>
      %c0_4 = arith.constant 0 : index
      %c0_5 = arith.constant 0 : index
      %11 = vector.load %arg17[%c0_4, %c0_5] : memref<16x128xf32, #tpu.memory_space<vmem>>, vector<16x128xf32>
      tpu.vector_store %arg17[%c0_4, %c0_5], %10 {strides = array<i32>} : memref<16x128xf32, #tpu.memory_space<vmem>>, vector<16x128xf32>,
    } else {
    }
    %5 = arith.cmpi slt, %arg1, %1 : i32
    %6 = arith.extui %5 : i1 to i32
    %c0_i32_1 = arith.constant 0 : i32
    %7 = arith.cmpi ne, %6, %c0_i32_1 : i32
    scf.if %7 {
      %c0 = arith.constant 0 : index
      %c0_2 = arith.constant 0 : index
      %8 = vector.load %arg17[%c0, %c0_2] : memref<16x128xf32, #tpu.memory_space<vmem>>, vector<16x128xf32>
      %c0_3 = arith.constant 0 : index
      %c0_4 = arith.constant 0 : index
      %c0_5 = arith.constant 0 : index
      %c0_6 = arith.constant 0 : index
      %9 = vector.load %arg4[%c0_3, %c0_4, %c0_5, %c0_6] : memref<1x1x128x384xbf16, #tpu.memory_space<vmem>>, vector<1x1x128x384xbf16>
      %10 = vector.shape_cast %9 : vector<1x1x128x384xbf16> to vector<128x384xbf16>
      %11 = arith.truncf %8 : vector<16x128xf32> to vector<16x128xbf16>
      %cst = arith.constant dense<0.000000e+00> : vector<16x384xf32>
      %12 = tpu.matmul %11, %10, %cst {dimension_numbers = #tpu.dot_dimension_numbers<[1], [0], [0], [1], [0, 0, 1, 1], [], []>} : vector<16x128xbf16>, vector<128x384xbf16>, vector<16x384xf32> -> vector<16x384xf32>
      %c0_7 = arith.constant 0 : index
      %c0_8 = arith.constant 0 : index
      %c0_9 = arith.constant 0 : index
      %c0_10 = arith.constant 0 : index
      %13 = vector.load %arg5[%c0_7, %c0_8, %c0_9, %c0_10] : memref<1x1x1x384xf32, #tpu.memory_space<vmem>>, vector<1x1x1x384xf32>
      %14 = vector.shape_cast %13 : vector<1x1x1x384xf32> to vector<1x384xf32>
      %15 = vector.broadcast %14 : vector<1x384xf32> to vector<16x384xf32>
      %16 = arith.addf %12, %15 : vector<16x384xf32>
      %17 = vector.extract_strided_slice %16 {offsets = [0, 0], sizes = [16, 128], strides = [1, 1]} : vector<16x384xf32> to vector<16x128xf32>
      %18 = vector.extract_strided_slice %16 {offsets = [0, 128], sizes = [16, 128], strides = [1, 1]} : vector<16x384xf32> to vector<16x128xf32>
      %19 = vector.extract_strided_slice %16 {offsets = [0, 256], sizes = [16, 128], strides = [1, 1]} : vector<16x384xf32> to vector<16x128xf32>
      %c0_11 = arith.constant 0 : index
      %c0_12 = arith.constant 0 : index
      %c0_13 = arith.constant 0 : index
      %c0_14 = arith.constant 0 : index
      %20 = vector.load %arg6[%c0_11, %c0_12, %c0_13, %c0_14] : memref<1x1x128x128xbf16, #tpu.memory_space<vmem>>, vector<1x1x128x128xbf16>
      %21 = vector.shape_cast %20 : vector<1x1x128x128xbf16> to vector<128x128xbf16>
      %22 = vector.shape_cast %17 : vector<16x128xf32> to vector<2x8x128xf32>
      %23 = vector.shape_cast %18 : vector<16x128xf32> to vector<2x8x128xf32>
      %24 = vector.shape_cast %19 : vector<16x128xf32> to vector<2x8x128xf32>
      %25 = vector.extract_strided_slice %22 {offsets = [0, 0, 0], sizes = [2, 8, 32], strides = [1, 1, 1]} : vector<2x8x128xf32> to vector<2x8x32xf32>
      %26 = vector.extract_strided_slice %23 {offsets = [0, 0, 0], sizes = [2, 8, 32], strides = [1, 1, 1]} : vector<2x8x128xf32> to vector<2x8x32xf32>
      "tpu.trace_start"() <{level = 10 : i32, message = "bqd,bkd->bqk"}> : () -> ()
      %cst_15 = arith.constant dense<0.000000e+00> : vector<2x8x8xf32>
      %27 = tpu.matmul %25, %26, %cst_15 {dimension_numbers = #tpu.dot_dimension_numbers<[2], [2], [1], [1], [0, 0, 0, 1, 1, 1], [0], [0]>} : vector<2x8x32xf32>, vector<2x8x32xf32>, vector<2x8x8xf32> -> vector<2x8x8xf32>
      "tpu.trace_stop"() : () -> ()
      %cst_16 = arith.constant 0.176776692 : f32
      %28 = vector.broadcast %cst_16 : f32 to vector<2x8x8xf32>
      %29 = arith.mulf %27, %28 : vector<2x8x8xf32>
      %cst_17 = arith.constant dense<0xFF800000> : vector<2x8xf32>
      %30 = vector.multi_reduction <maximumf>, %29, %cst_17 [2] : vector<2x8x8xf32> to vector<2x8xf32>
      %31 = vector.shape_cast %30 : vector<2x8xf32> to vector<2x8x1xf32>
      %32 = vector.broadcast %31 : vector<2x8x1xf32> to vector<2x8x8xf32>
      %33 = arith.subf %29, %32 : vector<2x8x8xf32>
      %34 = math.exp %33 : vector<2x8x8xf32>
      %cst_18 = arith.constant dense<0.000000e+00> : vector<2x8xf32>
      %35 = vector.multi_reduction <add>, %34, %cst_18 [2] : vector<2x8x8xf32> to vector<2x8xf32>
      %36 = vector.shape_cast %35 : vector<2x8xf32> to vector<2x8x1xf32>
      %37 = vector.broadcast %36 : vector<2x8x1xf32> to vector<2x8x8xf32>
      %38 = arith.divf %34, %37 : vector<2x8x8xf32>
      %39 = vector.extract_strided_slice %24 {offsets = [0, 0, 0], sizes = [2, 8, 32], strides = [1, 1, 1]} : vector<2x8x128xf32> to vector<2x8x32xf32>
      "tpu.trace_start"() <{level = 10 : i32, message = "bqk,bkd->bqd"}> : () -> ()
      %cst_19 = arith.constant dense<0.000000e+00> : vector<2x8x32xf32>
      %40 = tpu.matmul %38, %39, %cst_19 {dimension_numbers = #tpu.dot_dimension_numbers<[2], [1], [1], [2], [0, 0, 0, 1, 1, 2], [0], [0]>} : vector<2x8x8xf32>, vector<2x8x32xf32>, vector<2x8x32xf32> -> vector<2x8x32xf32>
      "tpu.trace_stop"() : () -> ()
      %41 = vector.shape_cast %40 : vector<2x8x32xf32> to vector<16x32xf32>
      %42 = arith.truncf %41 : vector<16x32xf32> to vector<16x32xbf16>
      %43 = vector.extract_strided_slice %21 {offsets = [0, 0], sizes = [32, 128], strides = [1, 1]} : vector<128x128xbf16> to vector<32x128xbf16>
      %cst_20 = arith.constant dense<0.000000e+00> : vector<16x128xf32>
      %44 = tpu.matmul %42, %43, %cst_20 {dimension_numbers = #tpu.dot_dimension_numbers<[1], [0], [0], [1], [0, 0, 1, 1], [], []>} : vector<16x32xbf16>, vector<32x128xbf16>, vector<16x128xf32> -> vector<16x128xf32>
      %45 = vector.extract_strided_slice %22 {offsets = [0, 0, 32], sizes = [2, 8, 32], strides = [1, 1, 1]} : vector<2x8x128xf32> to vector<2x8x32xf32>
      %46 = vector.extract_strided_slice %23 {offsets = [0, 0, 32], sizes = [2, 8, 32], strides = [1, 1, 1]} : vector<2x8x128xf32> to vector<2x8x32xf32>
      "tpu.trace_start"() <{level = 10 : i32, message = "bqd,bkd->bqk"}> : () -> ()
      %cst_21 = arith.constant dense<0.000000e+00> : vector<2x8x8xf32>
      %47 = tpu.matmul %45, %46, %cst_21 {dimension_numbers = #tpu.dot_dimension_numbers<[2], [2], [1], [1], [0, 0, 0, 1, 1, 1], [0], [0]>} : vector<2x8x32xf32>, vector<2x8x32xf32>, vector<2x8x8xf32> -> vector<2x8x8xf32>
      "tpu.trace_stop"() : () -> ()
      %cst_22 = arith.constant 0.176776692 : f32
      %48 = vector.broadcast %cst_22 : f32 to vector<2x8x8xf32>
      %49 = arith.mulf %47, %48 : vector<2x8x8xf32>
      %cst_23 = arith.constant dense<0xFF800000> : vector<2x8xf32>
      %50 = vector.multi_reduction <maximumf>, %49, %cst_23 [2] : vector<2x8x8xf32> to vector<2x8xf32>
      %51 = vector.shape_cast %50 : vector<2x8xf32> to vector<2x8x1xf32>
      %52 = vector.broadcast %51 : vector<2x8x1xf32> to vector<2x8x8xf32>
      %53 = arith.subf %49, %52 : vector<2x8x8xf32>
      %54 = math.exp %53 : vector<2x8x8xf32>
      %cst_24 = arith.constant dense<0.000000e+00> : vector<2x8xf32>
      %55 = vector.multi_reduction <add>, %54, %cst_24 [2] : vector<2x8x8xf32> to vector<2x8xf32>
      %56 = vector.shape_cast %55 : vector<2x8xf32> to vector<2x8x1xf32>
      %57 = vector.broadcast %56 : vector<2x8x1xf32> to vector<2x8x8xf32>
      %58 = arith.divf %54, %57 : vector<2x8x8xf32>
      %59 = vector.extract_strided_slice %24 {offsets = [0, 0, 32], sizes = [2, 8, 32], strides = [1, 1, 1]} : vector<2x8x128xf32> to vector<2x8x32xf32>
      "tpu.trace_start"() <{level = 10 : i32, message = "bqk,bkd->bqd"}> : () -> ()
      %cst_25 = arith.constant dense<0.000000e+00> : vector<2x8x32xf32>
      %60 = tpu.matmul %58, %59, %cst_25 {dimension_numbers = #tpu.dot_dimension_numbers<[2], [1], [1], [2], [0, 0, 0, 1, 1, 2], [0], [0]>} : vector<2x8x8xf32>, vector<2x8x32xf32>, vector<2x8x32xf32> -> vector<2x8x32xf32>
      "tpu.trace_stop"() : () -> ()
      %61 = vector.shape_cast %60 : vector<2x8x32xf32> to vector<16x32xf32>
      %62 = arith.truncf %61 : vector<16x32xf32> to vector<16x32xbf16>
      %63 = vector.extract_strided_slice %21 {offsets = [32, 0], sizes = [32, 128], strides = [1, 1]} : vector<128x128xbf16> to vector<32x128xbf16>
      %cst_26 = arith.constant dense<0.000000e+00> : vector<16x128xf32>
      %64 = tpu.matmul %62, %63, %cst_26 {dimension_numbers = #tpu.dot_dimension_numbers<[1], [0], [0], [1], [0, 0, 1, 1], [], []>} : vector<16x32xbf16>, vector<32x128xbf16>, vector<16x128xf32> -> vector<16x128xf32>
      %65 = arith.addf %44, %64 : vector<16x128xf32>
      %66 = vector.extract_strided_slice %22 {offsets = [0, 0, 64], sizes = [2, 8, 32], strides = [1, 1, 1]} : vector<2x8x128xf32> to vector<2x8x32xf32>
      %67 = vector.extract_strided_slice %23 {offsets = [0, 0, 64], sizes = [2, 8, 32], strides = [1, 1, 1]} : vector<2x8x128xf32> to vector<2x8x32xf32>
      "tpu.trace_start"() <{level = 10 : i32, message = "bqd,bkd->bqk"}> : () -> ()
      %cst_27 = arith.constant dense<0.000000e+00> : vector<2x8x8xf32>
      %68 = tpu.matmul %66, %67, %cst_27 {dimension_numbers = #tpu.dot_dimension_numbers<[2], [2], [1], [1], [0, 0, 0, 1, 1, 1], [0], [0]>} : vector<2x8x32xf32>, vector<2x8x32xf32>, vector<2x8x8xf32> -> vector<2x8x8xf32>
      "tpu.trace_stop"() : () -> ()
      %cst_28 = arith.constant 0.176776692 : f32
      %69 = vector.broadcast %cst_28 : f32 to vector<2x8x8xf32>
      %70 = arith.mulf %68, %69 : vector<2x8x8xf32>
      %cst_29 = arith.constant dense<0xFF800000> : vector<2x8xf32>
      %71 = vector.multi_reduction <maximumf>, %70, %cst_29 [2] : vector<2x8x8xf32> to vector<2x8xf32>
      %72 = vector.shape_cast %71 : vector<2x8xf32> to vector<2x8x1xf32>
      %73 = vector.broadcast %72 : vector<2x8x1xf32> to vector<2x8x8xf32>
      %74 = arith.subf %70, %73 : vector<2x8x8xf32>
      %75 = math.exp %74 : vector<2x8x8xf32>
      %cst_30 = arith.constant dense<0.000000e+00> : vector<2x8xf32>
      %76 = vector.multi_reduction <add>, %75, %cst_30 [2] : vector<2x8x8xf32> to vector<2x8xf32>
      %77 = vector.shape_cast %76 : vector<2x8xf32> to vector<2x8x1xf32>
      %78 = vector.broadcast %77 : vector<2x8x1xf32> to vector<2x8x8xf32>
      %79 = arith.divf %75, %78 : vector<2x8x8xf32>
      %80 = vector.extract_strided_slice %24 {offsets = [0, 0, 64], sizes = [2, 8, 32], strides = [1, 1, 1]} : vector<2x8x128xf32> to vector<2x8x32xf32>
      "tpu.trace_start"() <{level = 10 : i32, message = "bqk,bkd->bqd"}> : () -> ()
      %cst_31 = arith.constant dense<0.000000e+00> : vector<2x8x32xf32>
      %81 = tpu.matmul %79, %80, %cst_31 {dimension_numbers = #tpu.dot_dimension_numbers<[2], [1], [1], [2], [0, 0, 0, 1, 1, 2], [0], [0]>} : vector<2x8x8xf32>, vector<2x8x32xf32>, vector<2x8x32xf32> -> vector<2x8x32xf32>
      "tpu.trace_stop"() : () -> ()
      %82 = vector.shape_cast %81 : vector<2x8x32xf32> to vector<16x32xf32>
      %83 = arith.truncf %82 : vector<16x32xf32> to vector<16x32xbf16>
      %84 = vector.extract_strided_slice %21 {offsets = [64, 0], sizes = [32, 128], strides = [1, 1]} : vector<128x128xbf16> to vector<32x128xbf16>
      %cst_32 = arith.constant dense<0.000000e+00> : vector<16x128xf32>
      %85 = tpu.matmul %83, %84, %cst_32 {dimension_numbers = #tpu.dot_dimension_numbers<[1], [0], [0], [1], [0, 0, 1, 1], [], []>} : vector<16x32xbf16>, vector<32x128xbf16>, vector<16x128xf32> -> vector<16x128xf32>
      %86 = arith.addf %65, %85 : vector<16x128xf32>
      %87 = vector.extract_strided_slice %22 {offsets = [0, 0, 96], sizes = [2, 8, 32], strides = [1, 1, 1]} : vector<2x8x128xf32> to vector<2x8x32xf32>
      %88 = vector.extract_strided_slice %23 {offsets = [0, 0, 96], sizes = [2, 8, 32], strides = [1, 1, 1]} : vector<2x8x128xf32> to vector<2x8x32xf32>
      "tpu.trace_start"() <{level = 10 : i32, message = "bqd,bkd->bqk"}> : () -> ()
      %cst_33 = arith.constant dense<0.000000e+00> : vector<2x8x8xf32>
      %89 = tpu.matmul %87, %88, %cst_33 {dimension_numbers = #tpu.dot_dimension_numbers<[2], [2], [1], [1], [0, 0, 0, 1, 1, 1], [0], [0]>} : vector<2x8x32xf32>, vector<2x8x32xf32>, vector<2x8x8xf32> -> vector<2x8x8xf32>
      "tpu.trace_stop"() : () -> ()
      %cst_34 = arith.constant 0.176776692 : f32
      %90 = vector.broadcast %cst_34 : f32 to vector<2x8x8xf32>
      %91 = arith.mulf %89, %90 : vector<2x8x8xf32>
      %cst_35 = arith.constant dense<0xFF800000> : vector<2x8xf32>
      %92 = vector.multi_reduction <maximumf>, %91, %cst_35 [2] : vector<2x8x8xf32> to vector<2x8xf32>
      %93 = vector.shape_cast %92 : vector<2x8xf32> to vector<2x8x1xf32>
      %94 = vector.broadcast %93 : vector<2x8x1xf32> to vector<2x8x8xf32>
      %95 = arith.subf %91, %94 : vector<2x8x8xf32>
      %96 = math.exp %95 : vector<2x8x8xf32>
      %cst_36 = arith.constant dense<0.000000e+00> : vector<2x8xf32>
      %97 = vector.multi_reduction <add>, %96, %cst_36 [2] : vector<2x8x8xf32> to vector<2x8xf32>
      %98 = vector.shape_cast %97 : vector<2x8xf32> to vector<2x8x1xf32>
      %99 = vector.broadcast %98 : vector<2x8x1xf32> to vector<2x8x8xf32>
      %100 = arith.divf %96, %99 : vector<2x8x8xf32>
      %101 = vector.extract_strided_slice %24 {offsets = [0, 0, 96], sizes = [2, 8, 32], strides = [1, 1, 1]} : vector<2x8x128xf32> to vector<2x8x32xf32>
      "tpu.trace_start"() <{level = 10 : i32, message = "bqk,bkd->bqd"}> : () -> ()
      %cst_37 = arith.constant dense<0.000000e+00> : vector<2x8x32xf32>
      %102 = tpu.matmul %100, %101, %cst_37 {dimension_numbers = #tpu.dot_dimension_numbers<[2], [1], [1], [2], [0, 0, 0, 1, 1, 2], [0], [0]>} : vector<2x8x8xf32>, vector<2x8x32xf32>, vector<2x8x32xf32> -> vector<2x8x32xf32>
      "tpu.trace_stop"() : () -> ()
      %103 = vector.shape_cast %102 : vector<2x8x32xf32> to vector<16x32xf32>
      %104 = arith.truncf %103 : vector<16x32xf32> to vector<16x32xbf16>
      %105 = vector.extract_strided_slice %21 {offsets = [96, 0], sizes = [32, 128], strides = [1, 1]} : vector<128x128xbf16> to vector<32x128xbf16>
      %cst_38 = arith.constant dense<0.000000e+00> : vector<16x128xf32>
      %106 = tpu.matmul %104, %105, %cst_38 {dimension_numbers = #tpu.dot_dimension_numbers<[1], [0], [0], [1], [0, 0, 1, 1], [], []>} : vector<16x32xbf16>, vector<32x128xbf16>, vector<16x128xf32> -> vector<16x128xf32>
      %107 = arith.addf %86, %106 : vector<16x128xf32>
      %c0_39 = arith.constant 0 : index
      %c0_40 = arith.constant 0 : index
      %c0_41 = arith.constant 0 : index
      %c0_42 = arith.constant 0 : index
      %108 = vector.load %arg7[%c0_39, %c0_40, %c0_41, %c0_42] : memref<1x1x1x128xf32, #tpu.memory_space<vmem>>, vector<1x1x1x128xf32>
      %109 = vector.shape_cast %108 : vector<1x1x1x128xf32> to vector<1x128xf32>
      %110 = vector.broadcast %109 : vector<1x128xf32> to vector<16x128xf32>
      %111 = arith.addf %107, %110 : vector<16x128xf32>
      %112 = arith.addf %111, %8 : vector<16x128xf32>
      %c0_43 = arith.constant 0 : index
      %c0_44 = arith.constant 0 : index
      %c0_45 = arith.constant 0 : index
      %c0_46 = arith.constant 0 : index
      %113 = vector.load %arg8[%c0_43, %c0_44, %c0_45, %c0_46] : memref<1x1x1x128xf32, #tpu.memory_space<vmem>>, vector<1x1x1x128xf32>
      %114 = vector.shape_cast %113 : vector<1x1x1x128xf32> to vector<1x128xf32>
      %c0_47 = arith.constant 0 : index
      %c0_48 = arith.constant 0 : index
      %c0_49 = arith.constant 0 : index
      %c0_50 = arith.constant 0 : index
      %115 = vector.load %arg9[%c0_47, %c0_48, %c0_49, %c0_50] : memref<1x1x1x128xf32, #tpu.memory_space<vmem>>, vector<1x1x1x128xf32>
      %116 = vector.shape_cast %115 : vector<1x1x1x128xf32> to vector<1x128xf32>
      %cst_51 = arith.constant dense<0.000000e+00> : vector<16xf32>
      %117 = vector.multi_reduction <add>, %112, %cst_51 [1] : vector<16x128xf32> to vector<16xf32>
      %118 = vector.shape_cast %117 : vector<16xf32> to vector<16x1xf32>
      %cst_52 = arith.constant 1.280000e+02 : f32
      %119 = vector.broadcast %cst_52 : f32 to vector<16x1xf32>
      %120 = arith.divf %118, %119 : vector<16x1xf32>
      %121 = vector.broadcast %120 : vector<16x1xf32> to vector<16x128xf32>
      %122 = arith.subf %112, %121 : vector<16x128xf32>
      %123 = arith.mulf %122, %122 : vector<16x128xf32>
      %cst_53 = arith.constant dense<0.000000e+00> : vector<16xf32>
      %124 = vector.multi_reduction <add>, %123, %cst_53 [1] : vector<16x128xf32> to vector<16xf32>
      %125 = vector.shape_cast %124 : vector<16xf32> to vector<16x1xf32>
      %cst_54 = arith.constant 1.280000e+02 : f32
      %126 = vector.broadcast %cst_54 : f32 to vector<16x1xf32>
      %127 = arith.divf %125, %126 : vector<16x1xf32>
      %128 = vector.broadcast %120 : vector<16x1xf32> to vector<16x128xf32>
      %129 = arith.subf %112, %128 : vector<16x128xf32>
      %cst_55 = arith.constant 9.99999996E-13 : f32
      %130 = vector.broadcast %cst_55 : f32 to vector<16x1xf32>
      %131 = arith.addf %127, %130 : vector<16x1xf32>
      %132 = math.rsqrt %131 : vector<16x1xf32>
      %133 = vector.broadcast %132 : vector<16x1xf32> to vector<16x128xf32>
      %134 = arith.mulf %129, %133 : vector<16x128xf32>
      %135 = vector.broadcast %114 : vector<1x128xf32> to vector<16x128xf32>
      %136 = arith.mulf %134, %135 : vector<16x128xf32>
      %137 = vector.broadcast %116 : vector<1x128xf32> to vector<16x128xf32>
      %138 = arith.addf %136, %137 : vector<16x128xf32>
      %c0_56 = arith.constant 0 : index
      %c0_57 = arith.constant 0 : index
      %c0_58 = arith.constant 0 : index
      %c0_59 = arith.constant 0 : index
      %139 = vector.load %arg10[%c0_56, %c0_57, %c0_58, %c0_59] : memref<1x1x128x256xbf16, #tpu.memory_space<vmem>>, vector<1x1x128x256xbf16>
      %140 = vector.shape_cast %139 : vector<1x1x128x256xbf16> to vector<128x256xbf16>
      %141 = arith.truncf %138 : vector<16x128xf32> to vector<16x128xbf16>
      %cst_60 = arith.constant dense<0.000000e+00> : vector<16x256xf32>
      %142 = tpu.matmul %141, %140, %cst_60 {dimension_numbers = #tpu.dot_dimension_numbers<[1], [0], [0], [1], [0, 0, 1, 1], [], []>} : vector<16x128xbf16>, vector<128x256xbf16>, vector<16x256xf32> -> vector<16x256xf32>
      %c0_61 = arith.constant 0 : index
      %c0_62 = arith.constant 0 : index
      %c0_63 = arith.constant 0 : index
      %c0_64 = arith.constant 0 : index
      %143 = vector.load %arg11[%c0_61, %c0_62, %c0_63, %c0_64] : memref<1x1x1x256xf32, #tpu.memory_space<vmem>>, vector<1x1x1x256xf32>
      %144 = vector.shape_cast %143 : vector<1x1x1x256xf32> to vector<1x256xf32>
      %145 = vector.broadcast %144 : vector<1x256xf32> to vector<16x256xf32>
      %146 = arith.addf %142, %145 : vector<16x256xf32>
      %147 = arith.mulf %146, %146 : vector<16x256xf32>
      %148 = arith.mulf %146, %147 : vector<16x256xf32>
      %cst_65 = arith.constant 4.471500e-02 : f32
      %149 = vector.broadcast %cst_65 : f32 to vector<16x256xf32>
      %150 = arith.mulf %149, %148 : vector<16x256xf32>
      %151 = arith.addf %146, %150 : vector<16x256xf32>
      %cst_66 = arith.constant 0.797884583 : f32
      %152 = vector.broadcast %cst_66 : f32 to vector<16x256xf32>
      %153 = arith.mulf %152, %151 : vector<16x256xf32>
      %154 = math.tanh %153 : vector<16x256xf32>
      %cst_67 = arith.constant 1.000000e+00 : f32
      %155 = vector.broadcast %cst_67 : f32 to vector<16x256xf32>
      %156 = arith.addf %155, %154 : vector<16x256xf32>
      %cst_68 = arith.constant 5.000000e-01 : f32
      %157 = vector.broadcast %cst_68 : f32 to vector<16x256xf32>
      %158 = arith.mulf %157, %156 : vector<16x256xf32>
      %159 = arith.mulf %146, %158 : vector<16x256xf32>
      %c0_69 = arith.constant 0 : index
      %c0_70 = arith.constant 0 : index
      %c0_71 = arith.constant 0 : index
      %c0_72 = arith.constant 0 : index
      %160 = vector.load %arg12[%c0_69, %c0_70, %c0_71, %c0_72] : memref<1x1x256x128xbf16, #tpu.memory_space<vmem>>, vector<1x1x256x128xbf16>
      %161 = vector.shape_cast %160 : vector<1x1x256x128xbf16> to vector<256x128xbf16>
      %162 = arith.truncf %159 : vector<16x256xf32> to vector<16x256xbf16>
      %cst_73 = arith.constant dense<0.000000e+00> : vector<16x128xf32>
      %163 = tpu.matmul %162, %161, %cst_73 {dimension_numbers = #tpu.dot_dimension_numbers<[1], [0], [0], [1], [0, 0, 1, 1], [], []>} : vector<16x256xbf16>, vector<256x128xbf16>, vector<16x128xf32> -> vector<16x128xf32>
      %c0_74 = arith.constant 0 : index
      %c0_75 = arith.constant 0 : index
      %c0_76 = arith.constant 0 : index
      %c0_77 = arith.constant 0 : index
      %164 = vector.load %arg13[%c0_74, %c0_75, %c0_76, %c0_77] : memref<1x1x1x128xf32, #tpu.memory_space<vmem>>, vector<1x1x1x128xf32>
      %165 = vector.shape_cast %164 : vector<1x1x1x128xf32> to vector<1x128xf32>
      %166 = vector.broadcast %165 : vector<1x128xf32> to vector<16x128xf32>
      %167 = arith.addf %163, %166 : vector<16x128xf32>
      %168 = arith.addf %167, %138 : vector<16x128xf32>
      %c0_78 = arith.constant 0 : index
      %c0_79 = arith.constant 0 : index
      %c0_80 = arith.constant 0 : index
      %c0_81 = arith.constant 0 : index
      %169 = vector.load %arg14[%c0_78, %c0_79, %c0_80, %c0_81] : memref<1x1x1x128xf32, #tpu.memory_space<vmem>>, vector<1x1x1x128xf32>
      %170 = vector.shape_cast %169 : vector<1x1x1x128xf32> to vector<1x128xf32>
      %c0_82 = arith.constant 0 : index
      %c0_83 = arith.constant 0 : index
      %c0_84 = arith.constant 0 : index
      %c0_85 = arith.constant 0 : index
      %171 = vector.load %arg15[%c0_82, %c0_83, %c0_84, %c0_85] : memref<1x1x1x128xf32, #tpu.memory_space<vmem>>, vector<1x1x1x128xf32>
      %172 = vector.shape_cast %171 : vector<1x1x1x128xf32> to vector<1x128xf32>
      %cst_86 = arith.constant dense<0.000000e+00> : vector<16xf32>
      %173 = vector.multi_reduction <add>, %168, %cst_86 [1] : vector<16x128xf32> to vector<16xf32>
      %174 = vector.shape_cast %173 : vector<16xf32> to vector<16x1xf32>
      %cst_87 = arith.constant 1.280000e+02 : f32
      %175 = vector.broadcast %cst_87 : f32 to vector<16x1xf32>
      %176 = arith.divf %174, %175 : vector<16x1xf32>
      %177 = vector.broadcast %176 : vector<16x1xf32> to vector<16x128xf32>
      %178 = arith.subf %168, %177 : vector<16x128xf32>
      %179 = arith.mulf %178, %178 : vector<16x128xf32>
      %cst_88 = arith.constant dense<0.000000e+00> : vector<16xf32>
      %180 = vector.multi_reduction <add>, %179, %cst_88 [1] : vector<16x128xf32> to vector<16xf32>
      %181 = vector.shape_cast %180 : vector<16xf32> to vector<16x1xf32>
      %cst_89 = arith.constant 1.280000e+02 : f32
      %182 = vector.broadcast %cst_89 : f32 to vector<16x1xf32>
      %183 = arith.divf %181, %182 : vector<16x1xf32>
      %184 = vector.broadcast %176 : vector<16x1xf32> to vector<16x128xf32>
      %185 = arith.subf %168, %184 : vector<16x128xf32>
      %cst_90 = arith.constant 9.99999996E-13 : f32
      %186 = vector.broadcast %cst_90 : f32 to vector<16x1xf32>
      %187 = arith.addf %183, %186 : vector<16x1xf32>
      %188 = math.rsqrt %187 : vector<16x1xf32>
      %189 = vector.broadcast %188 : vector<16x1xf32> to vector<16x128xf32>
      %190 = arith.mulf %185, %189 : vector<16x128xf32>
      %191 = vector.broadcast %170 : vector<1x128xf32> to vector<16x128xf32>
      %192 = arith.mulf %190, %191 : vector<16x128xf32>
      %193 = vector.broadcast %172 : vector<1x128xf32> to vector<16x128xf32>
      %194 = arith.addf %192, %193 : vector<16x128xf32>
      %c0_91 = arith.constant 0 : index
      %c0_92 = arith.constant 0 : index
      %195 = vector.load %arg17[%c0_91, %c0_92] : memref<16x128xf32, #tpu.memory_space<vmem>>, vector<16x128xf32>
      tpu.vector_store %arg17[%c0_91, %c0_92], %194 {strides = array<i32>} : memref<16x128xf32, #tpu.memory_space<vmem>>, vector<16x128xf32>,
      %196 = arith.truncf %194 : vector<16x128xf32> to vector<16x128xbf16>
      %c0_93 = arith.constant 0 : index
      %c0_94 = arith.constant 0 : index
      %c0_95 = arith.constant 0 : index
      %197 = vector.load %arg16[%c0_93, %c0_94, %c0_95] : memref<1x16x128xbf16, #tpu.memory_space<vmem>>, vector<1x16x128xbf16>
      %198 = vector.shape_cast %197 : vector<1x16x128xbf16> to vector<16x128xbf16>
      %199 = vector.shape_cast %196 : vector<16x128xbf16> to vector<1x16x128xbf16>
      tpu.vector_store %arg16[%c0_93, %c0_94, %c0_95], %199 {strides = array<i32>} : memref<1x16x128xbf16, #tpu.memory_space<vmem>>, vector<1x16x128xbf16>,
    } else {
    }
    return
  }
  func.func @transform_0(%arg0: i32, %arg1: i32, %arg2: memref<2xi32, #tpu.memory_space<smem>>) -> (i32, i32, i32) {
    %c0_i32 = arith.constant 0 : i32
    %c0_i32_0 = arith.constant 0 : i32
    %c0_i32_1 = arith.constant 0 : i32
    return %arg0, %c0_i32, %c0_i32_0 : i32, i32, i32
  }
  func.func @transform_1(%arg0: i32, %arg1: i32, %arg2: memref<2xi32, #tpu.memory_space<smem>>) -> (i32, i32, i32, i32) {
    %c0_i32 = arith.constant 0 : i32
    %c0_i32_0 = arith.constant 0 : i32
    %c0_i32_1 = arith.constant 0 : i32
    return %arg0, %arg1, %c0_i32, %c0_i32_0 : i32, i32, i32, i32
  }
  func.func @transform_2(%arg0: i32, %arg1: i32, %arg2: memref<2xi32, #tpu.memory_space<smem>>) -> (i32, i32, i32, i32) {
    %c0_i32 = arith.constant 0 : i32
    %c0_i32_0 = arith.constant 0 : i32
    %c0_i32_1 = arith.constant 0 : i32
    return %arg0, %arg1, %c0_i32, %c0_i32_0 : i32, i32, i32, i32
  }
  func.func @transform_3(%arg0: i32, %arg1: i32, %arg2: memref<2xi32, #tpu.memory_space<smem>>) -> (i32, i32, i32, i32) {
    %c0_i32 = arith.constant 0 : i32
    %c0_i32_0 = arith.constant 0 : i32
    %c0_i32_1 = arith.constant 0 : i32
    return %arg0, %arg1, %c0_i32, %c0_i32_0 : i32, i32, i32, i32
  }
  func.func @transform_4(%arg0: i32, %arg1: i32, %arg2: memref<2xi32, #tpu.memory_space<smem>>) -> (i32, i32, i32, i32) {
    %c0_i32 = arith.constant 0 : i32
    %c0_i32_0 = arith.constant 0 : i32
    %c0_i32_1 = arith.constant 0 : i32
    return %arg0, %arg1, %c0_i32, %c0_i32_0 : i32, i32, i32, i32
  }
  func.func @transform_5(%arg0: i32, %arg1: i32, %arg2: memref<2xi32, #tpu.memory_space<smem>>) -> (i32, i32, i32, i32) {
    %c0_i32 = arith.constant 0 : i32
    %c0_i32_0 = arith.constant 0 : i32
    %c0_i32_1 = arith.constant 0 : i32
    return %arg0, %arg1, %c0_i32, %c0_i32_0 : i32, i32, i32, i32
  }
  func.func @transform_6(%arg0: i32, %arg1: i32, %arg2: memref<2xi32, #tpu.memory_space<smem>>) -> (i32, i32, i32, i32) {
    %c0_i32 = arith.constant 0 : i32
    %c0_i32_0 = arith.constant 0 : i32
    %c0_i32_1 = arith.constant 0 : i32
    return %arg0, %arg1, %c0_i32, %c0_i32_0 : i32, i32, i32, i32
  }
  func.func @transform_7(%arg0: i32, %arg1: i32, %arg2: memref<2xi32, #tpu.memory_space<smem>>) -> (i32, i32, i32, i32) {
    %c0_i32 = arith.constant 0 : i32
    %c0_i32_0 = arith.constant 0 : i32
    %c0_i32_1 = arith.constant 0 : i32
    return %arg0, %arg1, %c0_i32, %c0_i32_0 : i32, i32, i32, i32
  }
  func.func @transform_8(%arg0: i32, %arg1: i32, %arg2: memref<2xi32, #tpu.memory_space<smem>>) -> (i32, i32, i32, i32) {
    %c0_i32 = arith.constant 0 : i32
    %c0_i32_0 = arith.constant 0 : i32
    %c0_i32_1 = arith.constant 0 : i32
    return %arg0, %arg1, %c0_i32, %c0_i32_0 : i32, i32, i32, i32
  }
  func.func @transform_9(%arg0: i32, %arg1: i32, %arg2: memref<2xi32, #tpu.memory_space<smem>>) -> (i32, i32, i32, i32) {
    %c0_i32 = arith.constant 0 : i32
    %c0_i32_0 = arith.constant 0 : i32
    %c0_i32_1 = arith.constant 0 : i32
    return %arg0, %arg1, %c0_i32, %c0_i32_0 : i32, i32, i32, i32
  }
  func.func @transform_10(%arg0: i32, %arg1: i32, %arg2: memref<2xi32, #tpu.memory_space<smem>>) -> (i32, i32, i32, i32) {
    %c0_i32 = arith.constant 0 : i32
    %c0_i32_0 = arith.constant 0 : i32
    %c0_i32_1 = arith.constant 0 : i32
    return %arg0, %arg1, %c0_i32, %c0_i32_0 : i32, i32, i32, i32
  }
  func.func @transform_11(%arg0: i32, %arg1: i32, %arg2: memref<2xi32, #tpu.memory_space<smem>>) -> (i32, i32, i32, i32) {
    %c0_i32 = arith.constant 0 : i32
    %c0_i32_0 = arith.constant 0 : i32
    %c0_i32_1 = arith.constant 0 : i32
    return %arg0, %arg1, %c0_i32, %c0_i32_0 : i32, i32, i32, i32
  }
  func.func @transform_12(%arg0: i32, %arg1: i32, %arg2: memref<2xi32, #tpu.memory_space<smem>>) -> (i32, i32, i32, i32) {
    %c0_i32 = arith.constant 0 : i32
    %c0_i32_0 = arith.constant 0 : i32
    %c0_i32_1 = arith.constant 0 : i32
    return %arg0, %arg1, %c0_i32, %c0_i32_0 : i32, i32, i32, i32
  }
  func.func @transform_13(%arg0: i32, %arg1: i32, %arg2: memref<2xi32, #tpu.memory_space<smem>>) -> (i32, i32, i32) {
    %c0_i32 = arith.constant 0 : i32
    %c0_i32_0 = arith.constant 0 : i32
    %c0_i32_1 = arith.constant 0 : i32
    return %arg0, %c0_i32, %c0_i32_0 : i32, i32, i32
  }
}

module attributes {stable_mosaic.version = 11 : i64} {
  func.func @kernel(%arg0: i32, %arg1: memref<32x128xbf16, #tpu.memory_space<vmem>>, %arg2: memref<32x128xbf16, #tpu.memory_space<vmem>>, %arg3: memref<128x128xbf16, #tpu.memory_space<vmem>>, %arg4: memref<1x128xf32, #tpu.memory_space<vmem>>, %arg5: memref<128x256xbf16, #tpu.memory_space<vmem>>, %arg6: memref<1x256xf32, #tpu.memory_space<vmem>>, %arg7: memref<128x128xbf16, #tpu.memory_space<vmem>>, %arg8: memref<1x128xf32, #tpu.memory_space<vmem>>, %arg9: memref<1x128xf32, #tpu.memory_space<vmem>>, %arg10: memref<1x128xf32, #tpu.memory_space<vmem>>, %arg11: memref<32x128xbf16, #tpu.memory_space<vmem>>) attributes {dimension_semantics = [#tpu.dimension_semantics<arbitrary>], iteration_bounds = array<i64: 1>, scalar_prefetch = 0 : i64, scratch_operands = 0 : i64, tpu.core_type = #tpu.core_type<tc>, window_params = [{pipeline_mode = #tpu.pipeline_mode<synchronous>, transform_indices = @transform_0, window_bounds = array<i64: 32, 128>}, {pipeline_mode = #tpu.pipeline_mode<synchronous>, transform_indices = @transform_1, window_bounds = array<i64: 32, 128>}, {pipeline_mode = #tpu.pipeline_mode<synchronous>, transform_indices = @transform_2, window_bounds = array<i64: 128, 128>}, {pipeline_mode = #tpu.pipeline_mode<synchronous>, transform_indices = @transform_3, window_bounds = array<i64: 1, 128>}, {pipeline_mode = #tpu.pipeline_mode<synchronous>, transform_indices = @transform_4, window_bounds = array<i64: 128, 256>}, {pipeline_mode = #tpu.pipeline_mode<synchronous>, transform_indices = @transform_5, window_bounds = array<i64: 1, 256>}, {pipeline_mode = #tpu.pipeline_mode<synchronous>, transform_indices = @transform_6, window_bounds = array<i64: 128, 128>}, {pipeline_mode = #tpu.pipeline_mode<synchronous>, transform_indices = @transform_7, window_bounds = array<i64: 1, 128>}, {pipeline_mode = #tpu.pipeline_mode<synchronous>, transform_indices = @transform_8, window_bounds = array<i64: 1, 128>}, {pipeline_mode = #tpu.pipeline_mode<synchronous>, transform_indices = @transform_9, window_bounds = array<i64: 1, 128>}, {pipeline_mode = #tpu.pipeline_mode<synchronous>, transform_indices = @transform_10, window_bounds = array<i64: 32, 128>}]} {
    %c0 = arith.constant 0 : index
    %c0_0 = arith.constant 0 : index
    %0 = vector.load %arg1[%c0, %c0_0] : memref<32x128xbf16, #tpu.memory_space<vmem>>, vector<32x128xbf16>
    %1 = arith.extf %0 : vector<32x128xbf16> to vector<32x128xf32>
    %c0_1 = arith.constant 0 : index
    %c0_2 = arith.constant 0 : index
    %2 = vector.load %arg3[%c0_1, %c0_2] : memref<128x128xbf16, #tpu.memory_space<vmem>>, vector<128x128xbf16>
    %3 = arith.truncf %1 : vector<32x128xf32> to vector<32x128xbf16>
    %cst = arith.constant dense<0.000000e+00> : vector<32x128xf32>
    %4 = tpu.matmul %3, %2, %cst {dimension_numbers = #tpu.dot_dimension_numbers<[1], [0], [0], [1], [0, 0, 1, 1], [], []>} : vector<32x128xbf16>, vector<128x128xbf16>, vector<32x128xf32> -> vector<32x128xf32>
    %c0_3 = arith.constant 0 : index
    %c0_4 = arith.constant 0 : index
    %5 = vector.load %arg4[%c0_3, %c0_4] : memref<1x128xf32, #tpu.memory_space<vmem>>, vector<1x128xf32>
    %6 = vector.broadcast %5 : vector<1x128xf32> to vector<32x128xf32>
    %7 = arith.addf %4, %6 : vector<32x128xf32>
    %c0_5 = arith.constant 0 : index
    %c0_6 = arith.constant 0 : index
    %8 = vector.load %arg2[%c0_5, %c0_6] : memref<32x128xbf16, #tpu.memory_space<vmem>>, vector<32x128xbf16>
    %c0_7 = arith.constant 0 : index
    %c0_8 = arith.constant 0 : index
    %9 = vector.load %arg5[%c0_7, %c0_8] : memref<128x256xbf16, #tpu.memory_space<vmem>>, vector<128x256xbf16>
    %cst_9 = arith.constant dense<0.000000e+00> : vector<32x256xf32>
    %10 = tpu.matmul %8, %9, %cst_9 {dimension_numbers = #tpu.dot_dimension_numbers<[1], [0], [0], [1], [0, 0, 1, 1], [], []>} : vector<32x128xbf16>, vector<128x256xbf16>, vector<32x256xf32> -> vector<32x256xf32>
    %c0_10 = arith.constant 0 : index
    %c0_11 = arith.constant 0 : index
    %11 = vector.load %arg6[%c0_10, %c0_11] : memref<1x256xf32, #tpu.memory_space<vmem>>, vector<1x256xf32>
    %12 = vector.broadcast %11 : vector<1x256xf32> to vector<32x256xf32>
    %13 = arith.addf %10, %12 : vector<32x256xf32>
    %14 = vector.extract_strided_slice %13 {offsets = [0, 0], sizes = [32, 128], strides = [1, 1]} : vector<32x256xf32> to vector<32x128xf32>
    %15 = vector.extract_strided_slice %13 {offsets = [0, 128], sizes = [32, 128], strides = [1, 1]} : vector<32x256xf32> to vector<32x128xf32>
    %c0_12 = arith.constant 0 : index
    %c0_13 = arith.constant 0 : index
    %16 = vector.load %arg7[%c0_12, %c0_13] : memref<128x128xbf16, #tpu.memory_space<vmem>>, vector<128x128xbf16>
    %17 = vector.shape_cast %7 : vector<32x128xf32> to vector<4x8x128xf32>
    %18 = vector.shape_cast %14 : vector<32x128xf32> to vector<4x8x128xf32>
    %19 = vector.shape_cast %15 : vector<32x128xf32> to vector<4x8x128xf32>
    %20 = vector.extract_strided_slice %17 {offsets = [0, 0, 0], sizes = [4, 8, 32], strides = [1, 1, 1]} : vector<4x8x128xf32> to vector<4x8x32xf32>
    %21 = vector.extract_strided_slice %18 {offsets = [0, 0, 0], sizes = [4, 8, 32], strides = [1, 1, 1]} : vector<4x8x128xf32> to vector<4x8x32xf32>
    "tpu.trace_start"() <{level = 10 : i32, message = "bqd,bkd->bqk"}> : () -> ()
    %cst_14 = arith.constant dense<0.000000e+00> : vector<4x8x8xf32>
    %22 = tpu.matmul %20, %21, %cst_14 {dimension_numbers = #tpu.dot_dimension_numbers<[2], [2], [1], [1], [0, 0, 0, 1, 1, 1], [0], [0]>} : vector<4x8x32xf32>, vector<4x8x32xf32>, vector<4x8x8xf32> -> vector<4x8x8xf32>
    "tpu.trace_stop"() : () -> ()
    %cst_15 = arith.constant 0.176776692 : f32
    %23 = vector.broadcast %cst_15 : f32 to vector<4x8x8xf32>
    %24 = arith.mulf %22, %23 : vector<4x8x8xf32>
    %cst_16 = arith.constant dense<0xFF800000> : vector<4x8xf32>
    %25 = vector.multi_reduction <maximumf>, %24, %cst_16 [2] : vector<4x8x8xf32> to vector<4x8xf32>
    %26 = vector.shape_cast %25 : vector<4x8xf32> to vector<4x8x1xf32>
    %27 = vector.broadcast %26 : vector<4x8x1xf32> to vector<4x8x8xf32>
    %28 = arith.subf %24, %27 : vector<4x8x8xf32>
    %29 = math.exp %28 : vector<4x8x8xf32>
    %cst_17 = arith.constant dense<0.000000e+00> : vector<4x8xf32>
    %30 = vector.multi_reduction <add>, %29, %cst_17 [2] : vector<4x8x8xf32> to vector<4x8xf32>
    %31 = vector.shape_cast %30 : vector<4x8xf32> to vector<4x8x1xf32>
    %32 = vector.broadcast %31 : vector<4x8x1xf32> to vector<4x8x8xf32>
    %33 = arith.divf %29, %32 : vector<4x8x8xf32>
    %34 = vector.extract_strided_slice %19 {offsets = [0, 0, 0], sizes = [4, 8, 32], strides = [1, 1, 1]} : vector<4x8x128xf32> to vector<4x8x32xf32>
    "tpu.trace_start"() <{level = 10 : i32, message = "bqk,bkd->bqd"}> : () -> ()
    %cst_18 = arith.constant dense<0.000000e+00> : vector<4x8x32xf32>
    %35 = tpu.matmul %33, %34, %cst_18 {dimension_numbers = #tpu.dot_dimension_numbers<[2], [1], [1], [2], [0, 0, 0, 1, 1, 2], [0], [0]>} : vector<4x8x8xf32>, vector<4x8x32xf32>, vector<4x8x32xf32> -> vector<4x8x32xf32>
    "tpu.trace_stop"() : () -> ()
    %36 = vector.shape_cast %35 : vector<4x8x32xf32> to vector<32x32xf32>
    %37 = arith.truncf %36 : vector<32x32xf32> to vector<32x32xbf16>
    %38 = vector.extract_strided_slice %16 {offsets = [0, 0], sizes = [32, 128], strides = [1, 1]} : vector<128x128xbf16> to vector<32x128xbf16>
    %cst_19 = arith.constant dense<0.000000e+00> : vector<32x128xf32>
    %39 = tpu.matmul %37, %38, %cst_19 {dimension_numbers = #tpu.dot_dimension_numbers<[1], [0], [0], [1], [0, 0, 1, 1], [], []>} : vector<32x32xbf16>, vector<32x128xbf16>, vector<32x128xf32> -> vector<32x128xf32>
    %40 = vector.extract_strided_slice %17 {offsets = [0, 0, 32], sizes = [4, 8, 32], strides = [1, 1, 1]} : vector<4x8x128xf32> to vector<4x8x32xf32>
    %41 = vector.extract_strided_slice %18 {offsets = [0, 0, 32], sizes = [4, 8, 32], strides = [1, 1, 1]} : vector<4x8x128xf32> to vector<4x8x32xf32>
    "tpu.trace_start"() <{level = 10 : i32, message = "bqd,bkd->bqk"}> : () -> ()
    %cst_20 = arith.constant dense<0.000000e+00> : vector<4x8x8xf32>
    %42 = tpu.matmul %40, %41, %cst_20 {dimension_numbers = #tpu.dot_dimension_numbers<[2], [2], [1], [1], [0, 0, 0, 1, 1, 1], [0], [0]>} : vector<4x8x32xf32>, vector<4x8x32xf32>, vector<4x8x8xf32> -> vector<4x8x8xf32>
    "tpu.trace_stop"() : () -> ()
    %cst_21 = arith.constant 0.176776692 : f32
    %43 = vector.broadcast %cst_21 : f32 to vector<4x8x8xf32>
    %44 = arith.mulf %42, %43 : vector<4x8x8xf32>
    %cst_22 = arith.constant dense<0xFF800000> : vector<4x8xf32>
    %45 = vector.multi_reduction <maximumf>, %44, %cst_22 [2] : vector<4x8x8xf32> to vector<4x8xf32>
    %46 = vector.shape_cast %45 : vector<4x8xf32> to vector<4x8x1xf32>
    %47 = vector.broadcast %46 : vector<4x8x1xf32> to vector<4x8x8xf32>
    %48 = arith.subf %44, %47 : vector<4x8x8xf32>
    %49 = math.exp %48 : vector<4x8x8xf32>
    %cst_23 = arith.constant dense<0.000000e+00> : vector<4x8xf32>
    %50 = vector.multi_reduction <add>, %49, %cst_23 [2] : vector<4x8x8xf32> to vector<4x8xf32>
    %51 = vector.shape_cast %50 : vector<4x8xf32> to vector<4x8x1xf32>
    %52 = vector.broadcast %51 : vector<4x8x1xf32> to vector<4x8x8xf32>
    %53 = arith.divf %49, %52 : vector<4x8x8xf32>
    %54 = vector.extract_strided_slice %19 {offsets = [0, 0, 32], sizes = [4, 8, 32], strides = [1, 1, 1]} : vector<4x8x128xf32> to vector<4x8x32xf32>
    "tpu.trace_start"() <{level = 10 : i32, message = "bqk,bkd->bqd"}> : () -> ()
    %cst_24 = arith.constant dense<0.000000e+00> : vector<4x8x32xf32>
    %55 = tpu.matmul %53, %54, %cst_24 {dimension_numbers = #tpu.dot_dimension_numbers<[2], [1], [1], [2], [0, 0, 0, 1, 1, 2], [0], [0]>} : vector<4x8x8xf32>, vector<4x8x32xf32>, vector<4x8x32xf32> -> vector<4x8x32xf32>
    "tpu.trace_stop"() : () -> ()
    %56 = vector.shape_cast %55 : vector<4x8x32xf32> to vector<32x32xf32>
    %57 = arith.truncf %56 : vector<32x32xf32> to vector<32x32xbf16>
    %58 = vector.extract_strided_slice %16 {offsets = [32, 0], sizes = [32, 128], strides = [1, 1]} : vector<128x128xbf16> to vector<32x128xbf16>
    %cst_25 = arith.constant dense<0.000000e+00> : vector<32x128xf32>
    %59 = tpu.matmul %57, %58, %cst_25 {dimension_numbers = #tpu.dot_dimension_numbers<[1], [0], [0], [1], [0, 0, 1, 1], [], []>} : vector<32x32xbf16>, vector<32x128xbf16>, vector<32x128xf32> -> vector<32x128xf32>
    %60 = arith.addf %39, %59 : vector<32x128xf32>
    %61 = vector.extract_strided_slice %17 {offsets = [0, 0, 64], sizes = [4, 8, 32], strides = [1, 1, 1]} : vector<4x8x128xf32> to vector<4x8x32xf32>
    %62 = vector.extract_strided_slice %18 {offsets = [0, 0, 64], sizes = [4, 8, 32], strides = [1, 1, 1]} : vector<4x8x128xf32> to vector<4x8x32xf32>
    "tpu.trace_start"() <{level = 10 : i32, message = "bqd,bkd->bqk"}> : () -> ()
    %cst_26 = arith.constant dense<0.000000e+00> : vector<4x8x8xf32>
    %63 = tpu.matmul %61, %62, %cst_26 {dimension_numbers = #tpu.dot_dimension_numbers<[2], [2], [1], [1], [0, 0, 0, 1, 1, 1], [0], [0]>} : vector<4x8x32xf32>, vector<4x8x32xf32>, vector<4x8x8xf32> -> vector<4x8x8xf32>
    "tpu.trace_stop"() : () -> ()
    %cst_27 = arith.constant 0.176776692 : f32
    %64 = vector.broadcast %cst_27 : f32 to vector<4x8x8xf32>
    %65 = arith.mulf %63, %64 : vector<4x8x8xf32>
    %cst_28 = arith.constant dense<0xFF800000> : vector<4x8xf32>
    %66 = vector.multi_reduction <maximumf>, %65, %cst_28 [2] : vector<4x8x8xf32> to vector<4x8xf32>
    %67 = vector.shape_cast %66 : vector<4x8xf32> to vector<4x8x1xf32>
    %68 = vector.broadcast %67 : vector<4x8x1xf32> to vector<4x8x8xf32>
    %69 = arith.subf %65, %68 : vector<4x8x8xf32>
    %70 = math.exp %69 : vector<4x8x8xf32>
    %cst_29 = arith.constant dense<0.000000e+00> : vector<4x8xf32>
    %71 = vector.multi_reduction <add>, %70, %cst_29 [2] : vector<4x8x8xf32> to vector<4x8xf32>
    %72 = vector.shape_cast %71 : vector<4x8xf32> to vector<4x8x1xf32>
    %73 = vector.broadcast %72 : vector<4x8x1xf32> to vector<4x8x8xf32>
    %74 = arith.divf %70, %73 : vector<4x8x8xf32>
    %75 = vector.extract_strided_slice %19 {offsets = [0, 0, 64], sizes = [4, 8, 32], strides = [1, 1, 1]} : vector<4x8x128xf32> to vector<4x8x32xf32>
    "tpu.trace_start"() <{level = 10 : i32, message = "bqk,bkd->bqd"}> : () -> ()
    %cst_30 = arith.constant dense<0.000000e+00> : vector<4x8x32xf32>
    %76 = tpu.matmul %74, %75, %cst_30 {dimension_numbers = #tpu.dot_dimension_numbers<[2], [1], [1], [2], [0, 0, 0, 1, 1, 2], [0], [0]>} : vector<4x8x8xf32>, vector<4x8x32xf32>, vector<4x8x32xf32> -> vector<4x8x32xf32>
    "tpu.trace_stop"() : () -> ()
    %77 = vector.shape_cast %76 : vector<4x8x32xf32> to vector<32x32xf32>
    %78 = arith.truncf %77 : vector<32x32xf32> to vector<32x32xbf16>
    %79 = vector.extract_strided_slice %16 {offsets = [64, 0], sizes = [32, 128], strides = [1, 1]} : vector<128x128xbf16> to vector<32x128xbf16>
    %cst_31 = arith.constant dense<0.000000e+00> : vector<32x128xf32>
    %80 = tpu.matmul %78, %79, %cst_31 {dimension_numbers = #tpu.dot_dimension_numbers<[1], [0], [0], [1], [0, 0, 1, 1], [], []>} : vector<32x32xbf16>, vector<32x128xbf16>, vector<32x128xf32> -> vector<32x128xf32>
    %81 = arith.addf %60, %80 : vector<32x128xf32>
    %82 = vector.extract_strided_slice %17 {offsets = [0, 0, 96], sizes = [4, 8, 32], strides = [1, 1, 1]} : vector<4x8x128xf32> to vector<4x8x32xf32>
    %83 = vector.extract_strided_slice %18 {offsets = [0, 0, 96], sizes = [4, 8, 32], strides = [1, 1, 1]} : vector<4x8x128xf32> to vector<4x8x32xf32>
    "tpu.trace_start"() <{level = 10 : i32, message = "bqd,bkd->bqk"}> : () -> ()
    %cst_32 = arith.constant dense<0.000000e+00> : vector<4x8x8xf32>
    %84 = tpu.matmul %82, %83, %cst_32 {dimension_numbers = #tpu.dot_dimension_numbers<[2], [2], [1], [1], [0, 0, 0, 1, 1, 1], [0], [0]>} : vector<4x8x32xf32>, vector<4x8x32xf32>, vector<4x8x8xf32> -> vector<4x8x8xf32>
    "tpu.trace_stop"() : () -> ()
    %cst_33 = arith.constant 0.176776692 : f32
    %85 = vector.broadcast %cst_33 : f32 to vector<4x8x8xf32>
    %86 = arith.mulf %84, %85 : vector<4x8x8xf32>
    %cst_34 = arith.constant dense<0xFF800000> : vector<4x8xf32>
    %87 = vector.multi_reduction <maximumf>, %86, %cst_34 [2] : vector<4x8x8xf32> to vector<4x8xf32>
    %88 = vector.shape_cast %87 : vector<4x8xf32> to vector<4x8x1xf32>
    %89 = vector.broadcast %88 : vector<4x8x1xf32> to vector<4x8x8xf32>
    %90 = arith.subf %86, %89 : vector<4x8x8xf32>
    %91 = math.exp %90 : vector<4x8x8xf32>
    %cst_35 = arith.constant dense<0.000000e+00> : vector<4x8xf32>
    %92 = vector.multi_reduction <add>, %91, %cst_35 [2] : vector<4x8x8xf32> to vector<4x8xf32>
    %93 = vector.shape_cast %92 : vector<4x8xf32> to vector<4x8x1xf32>
    %94 = vector.broadcast %93 : vector<4x8x1xf32> to vector<4x8x8xf32>
    %95 = arith.divf %91, %94 : vector<4x8x8xf32>
    %96 = vector.extract_strided_slice %19 {offsets = [0, 0, 96], sizes = [4, 8, 32], strides = [1, 1, 1]} : vector<4x8x128xf32> to vector<4x8x32xf32>
    "tpu.trace_start"() <{level = 10 : i32, message = "bqk,bkd->bqd"}> : () -> ()
    %cst_36 = arith.constant dense<0.000000e+00> : vector<4x8x32xf32>
    %97 = tpu.matmul %95, %96, %cst_36 {dimension_numbers = #tpu.dot_dimension_numbers<[2], [1], [1], [2], [0, 0, 0, 1, 1, 2], [0], [0]>} : vector<4x8x8xf32>, vector<4x8x32xf32>, vector<4x8x32xf32> -> vector<4x8x32xf32>
    "tpu.trace_stop"() : () -> ()
    %98 = vector.shape_cast %97 : vector<4x8x32xf32> to vector<32x32xf32>
    %99 = arith.truncf %98 : vector<32x32xf32> to vector<32x32xbf16>
    %100 = vector.extract_strided_slice %16 {offsets = [96, 0], sizes = [32, 128], strides = [1, 1]} : vector<128x128xbf16> to vector<32x128xbf16>
    %cst_37 = arith.constant dense<0.000000e+00> : vector<32x128xf32>
    %101 = tpu.matmul %99, %100, %cst_37 {dimension_numbers = #tpu.dot_dimension_numbers<[1], [0], [0], [1], [0, 0, 1, 1], [], []>} : vector<32x32xbf16>, vector<32x128xbf16>, vector<32x128xf32> -> vector<32x128xf32>
    %102 = arith.addf %81, %101 : vector<32x128xf32>
    %c0_38 = arith.constant 0 : index
    %c0_39 = arith.constant 0 : index
    %103 = vector.load %arg8[%c0_38, %c0_39] : memref<1x128xf32, #tpu.memory_space<vmem>>, vector<1x128xf32>
    %104 = vector.broadcast %103 : vector<1x128xf32> to vector<32x128xf32>
    %105 = arith.addf %102, %104 : vector<32x128xf32>
    %106 = arith.addf %105, %1 : vector<32x128xf32>
    %c0_40 = arith.constant 0 : index
    %c0_41 = arith.constant 0 : index
    %107 = vector.load %arg9[%c0_40, %c0_41] : memref<1x128xf32, #tpu.memory_space<vmem>>, vector<1x128xf32>
    %c0_42 = arith.constant 0 : index
    %c0_43 = arith.constant 0 : index
    %108 = vector.load %arg10[%c0_42, %c0_43] : memref<1x128xf32, #tpu.memory_space<vmem>>, vector<1x128xf32>
    %cst_44 = arith.constant dense<0.000000e+00> : vector<32xf32>
    %109 = vector.multi_reduction <add>, %106, %cst_44 [1] : vector<32x128xf32> to vector<32xf32>
    %110 = vector.shape_cast %109 : vector<32xf32> to vector<32x1xf32>
    %cst_45 = arith.constant 1.280000e+02 : f32
    %111 = vector.broadcast %cst_45 : f32 to vector<32x1xf32>
    %112 = arith.divf %110, %111 : vector<32x1xf32>
    %113 = vector.broadcast %112 : vector<32x1xf32> to vector<32x128xf32>
    %114 = arith.subf %106, %113 : vector<32x128xf32>
    %115 = arith.mulf %114, %114 : vector<32x128xf32>
    %cst_46 = arith.constant dense<0.000000e+00> : vector<32xf32>
    %116 = vector.multi_reduction <add>, %115, %cst_46 [1] : vector<32x128xf32> to vector<32xf32>
    %117 = vector.shape_cast %116 : vector<32xf32> to vector<32x1xf32>
    %cst_47 = arith.constant 1.280000e+02 : f32
    %118 = vector.broadcast %cst_47 : f32 to vector<32x1xf32>
    %119 = arith.divf %117, %118 : vector<32x1xf32>
    %120 = vector.broadcast %112 : vector<32x1xf32> to vector<32x128xf32>
    %121 = arith.subf %106, %120 : vector<32x128xf32>
    %cst_48 = arith.constant 9.99999996E-13 : f32
    %122 = vector.broadcast %cst_48 : f32 to vector<32x1xf32>
    %123 = arith.addf %119, %122 : vector<32x1xf32>
    %124 = math.rsqrt %123 : vector<32x1xf32>
    %125 = vector.broadcast %124 : vector<32x1xf32> to vector<32x128xf32>
    %126 = arith.mulf %121, %125 : vector<32x128xf32>
    %127 = vector.broadcast %107 : vector<1x128xf32> to vector<32x128xf32>
    %128 = arith.mulf %126, %127 : vector<32x128xf32>
    %129 = vector.broadcast %108 : vector<1x128xf32> to vector<32x128xf32>
    %130 = arith.addf %128, %129 : vector<32x128xf32>
    %131 = arith.truncf %130 : vector<32x128xf32> to vector<32x128xbf16>
    %c0_49 = arith.constant 0 : index
    %c0_50 = arith.constant 0 : index
    %132 = vector.load %arg11[%c0_49, %c0_50] : memref<32x128xbf16, #tpu.memory_space<vmem>>, vector<32x128xbf16>
    tpu.vector_store %arg11[%c0_49, %c0_50], %131 {strides = array<i32>} : memref<32x128xbf16, #tpu.memory_space<vmem>>, vector<32x128xbf16>,
    return
  }
  func.func @transform_0(%arg0: i32) -> (i32, i32) {
    %c0_i32 = arith.constant 0 : i32
    %c0_i32_0 = arith.constant 0 : i32
    %c0_i32_1 = arith.constant 0 : i32
    return %c0_i32, %c0_i32_0 : i32, i32
  }
  func.func @transform_1(%arg0: i32) -> (i32, i32) {
    %c0_i32 = arith.constant 0 : i32
    %c0_i32_0 = arith.constant 0 : i32
    %c0_i32_1 = arith.constant 0 : i32
    return %c0_i32, %c0_i32_0 : i32, i32
  }
  func.func @transform_2(%arg0: i32) -> (i32, i32) {
    %c0_i32 = arith.constant 0 : i32
    %c0_i32_0 = arith.constant 0 : i32
    %c0_i32_1 = arith.constant 0 : i32
    return %c0_i32, %c0_i32_0 : i32, i32
  }
  func.func @transform_3(%arg0: i32) -> (i32, i32) {
    %c0_i32 = arith.constant 0 : i32
    %c0_i32_0 = arith.constant 0 : i32
    %c0_i32_1 = arith.constant 0 : i32
    return %c0_i32, %c0_i32_0 : i32, i32
  }
  func.func @transform_4(%arg0: i32) -> (i32, i32) {
    %c0_i32 = arith.constant 0 : i32
    %c0_i32_0 = arith.constant 0 : i32
    %c0_i32_1 = arith.constant 0 : i32
    return %c0_i32, %c0_i32_0 : i32, i32
  }
  func.func @transform_5(%arg0: i32) -> (i32, i32) {
    %c0_i32 = arith.constant 0 : i32
    %c0_i32_0 = arith.constant 0 : i32
    %c0_i32_1 = arith.constant 0 : i32
    return %c0_i32, %c0_i32_0 : i32, i32
  }
  func.func @transform_6(%arg0: i32) -> (i32, i32) {
    %c0_i32 = arith.constant 0 : i32
    %c0_i32_0 = arith.constant 0 : i32
    %c0_i32_1 = arith.constant 0 : i32
    return %c0_i32, %c0_i32_0 : i32, i32
  }
  func.func @transform_7(%arg0: i32) -> (i32, i32) {
    %c0_i32 = arith.constant 0 : i32
    %c0_i32_0 = arith.constant 0 : i32
    %c0_i32_1 = arith.constant 0 : i32
    return %c0_i32, %c0_i32_0 : i32, i32
  }
  func.func @transform_8(%arg0: i32) -> (i32, i32) {
    %c0_i32 = arith.constant 0 : i32
    %c0_i32_0 = arith.constant 0 : i32
    %c0_i32_1 = arith.constant 0 : i32
    return %c0_i32, %c0_i32_0 : i32, i32
  }
  func.func @transform_9(%arg0: i32) -> (i32, i32) {
    %c0_i32 = arith.constant 0 : i32
    %c0_i32_0 = arith.constant 0 : i32
    %c0_i32_1 = arith.constant 0 : i32
    return %c0_i32, %c0_i32_0 : i32, i32
  }
  func.func @transform_10(%arg0: i32) -> (i32, i32) {
    %c0_i32 = arith.constant 0 : i32
    %c0_i32_0 = arith.constant 0 : i32
    %c0_i32_1 = arith.constant 0 : i32
    return %c0_i32, %c0_i32_0 : i32, i32
  }
}

module attributes {stable_mosaic.version = 11 : i64} {
  func.func @kernel(%arg0: i32, %arg1: i32, %arg2: memref<2xi32, #tpu.memory_space<smem>>, %arg3: memref<1x16x128xbf16, #tpu.memory_space<vmem>>, %arg4: memref<1x1x128x384xbf16, #tpu.memory_space<vmem>>, %arg5: memref<1x1x1x384xf32, #tpu.memory_space<vmem>>, %arg6: memref<1x1x128x128xbf16, #tpu.memory_space<vmem>>, %arg7: memref<1x1x1x128xf32, #tpu.memory_space<vmem>>, %arg8: memref<1x1x1x128xf32, #tpu.memory_space<vmem>>, %arg9: memref<1x1x1x128xf32, #tpu.memory_space<vmem>>, %arg10: memref<1x1x128x256xbf16, #tpu.memory_space<vmem>>, %arg11: memref<1x1x1x256xf32, #tpu.memory_space<vmem>>, %arg12: memref<1x1x256x128xbf16, #tpu.memory_space<vmem>>, %arg13: memref<1x1x1x128xf32, #tpu.memory_space<vmem>>, %arg14: memref<1x1x1x128xf32, #tpu.memory_space<vmem>>, %arg15: memref<1x1x1x128xf32, #tpu.memory_space<vmem>>, %arg16: memref<1x16x128xbf16, #tpu.memory_space<vmem>>, %arg17: memref<16x128xf32, #tpu.memory_space<vmem>>) attributes {dimension_semantics = [#tpu.dimension_semantics<parallel>, #tpu.dimension_semantics<arbitrary>], iteration_bounds = array<i64: 2, 1>, scalar_prefetch = 1 : i64, scratch_operands = 1 : i64, tpu.core_type = #tpu.core_type<tc>, window_params = [{transform_indices = @transform_0, window_bounds = array<i64: 1, 16, 128>}, {transform_indices = @transform_1, window_bounds = array<i64: 1, 1, 128, 384>}, {transform_indices = @transform_2, window_bounds = array<i64: 1, 1, 1, 384>}, {transform_indices = @transform_3, window_bounds = array<i64: 1, 1, 128, 128>}, {transform_indices = @transform_4, window_bounds = array<i64: 1, 1, 1, 128>}, {transform_indices = @transform_5, window_bounds = array<i64: 1, 1, 1, 128>}, {transform_indices = @transform_6, window_bounds = array<i64: 1, 1, 1, 128>}, {transform_indices = @transform_7, window_bounds = array<i64: 1, 1, 128, 256>}, {transform_indices = @transform_8, window_bounds = array<i64: 1, 1, 1, 256>}, {transform_indices = @transform_9, window_bounds = array<i64: 1, 1, 256, 128>}, {transform_indices = @transform_10, window_bounds = array<i64: 1, 1, 1, 128>}, {transform_indices = @transform_11, window_bounds = array<i64: 1, 1, 1, 128>}, {transform_indices = @transform_12, window_bounds = array<i64: 1, 1, 1, 128>}, {transform_indices = @transform_13, window_bounds = array<i64: 1, 16, 128>}]} {
    %0 = arith.index_cast %arg0 : i32 to index
    %1 = memref.load %arg2[%0] : memref<2xi32, #tpu.memory_space<smem>>
    %c0_i32 = arith.constant 0 : i32
    %2 = arith.cmpi eq, %arg1, %c0_i32 : i32
    %3 = arith.extui %2 : i1 to i32
    %c0_i32_0 = arith.constant 0 : i32
    %4 = arith.cmpi ne, %3, %c0_i32_0 : i32
    scf.if %4 {
      %c0 = arith.constant 0 : index
      %c0_2 = arith.constant 0 : index
      %c0_3 = arith.constant 0 : index
      %8 = vector.load %arg3[%c0, %c0_2, %c0_3] : memref<1x16x128xbf16, #tpu.memory_space<vmem>>, vector<1x16x128xbf16>
      %9 = vector.shape_cast %8 : vector<1x16x128xbf16> to vector<16x128xbf16>
      %10 = arith.extf %9 : vector<16x128xbf16> to vector<16x128xf32>
      %c0_4 = arith.constant 0 : index
      %c0_5 = arith.constant 0 : index
      %11 = vector.load %arg17[%c0_4, %c0_5] : memref<16x128xf32, #tpu.memory_space<vmem>>, vector<16x128xf32>
      tpu.vector_store %arg17[%c0_4, %c0_5], %10 {strides = array<i32>} : memref<16x128xf32, #tpu.memory_space<vmem>>, vector<16x128xf32>,
    } else {
    }
    %5 = arith.cmpi slt, %arg1, %1 : i32
    %6 = arith.extui %5 : i1 to i32
    %c0_i32_1 = arith.constant 0 : i32
    %7 = arith.cmpi ne, %6, %c0_i32_1 : i32
    scf.if %7 {
      %c0 = arith.constant 0 : index
      %c0_2 = arith.constant 0 : index
      %8 = vector.load %arg17[%c0, %c0_2] : memref<16x128xf32, #tpu.memory_space<vmem>>, vector<16x128xf32>
      %c0_3 = arith.constant 0 : index
      %c0_4 = arith.constant 0 : index
      %c0_5 = arith.constant 0 : index
      %c0_6 = arith.constant 0 : index
      %9 = vector.load %arg4[%c0_3, %c0_4, %c0_5, %c0_6] : memref<1x1x128x384xbf16, #tpu.memory_space<vmem>>, vector<1x1x128x384xbf16>
      %10 = vector.shape_cast %9 : vector<1x1x128x384xbf16> to vector<128x384xbf16>
      %11 = arith.truncf %8 : vector<16x128xf32> to vector<16x128xbf16>
      %cst = arith.constant dense<0.000000e+00> : vector<16x384xf32>
      %12 = tpu.matmul %11, %10, %cst {dimension_numbers = #tpu.dot_dimension_numbers<[1], [0], [0], [1], [0, 0, 1, 1], [], []>} : vector<16x128xbf16>, vector<128x384xbf16>, vector<16x384xf32> -> vector<16x384xf32>
      %c0_7 = arith.constant 0 : index
      %c0_8 = arith.constant 0 : index
      %c0_9 = arith.constant 0 : index
      %c0_10 = arith.constant 0 : index
      %13 = vector.load %arg5[%c0_7, %c0_8, %c0_9, %c0_10] : memref<1x1x1x384xf32, #tpu.memory_space<vmem>>, vector<1x1x1x384xf32>
      %14 = vector.shape_cast %13 : vector<1x1x1x384xf32> to vector<1x384xf32>
      %15 = vector.broadcast %14 : vector<1x384xf32> to vector<16x384xf32>
      %16 = arith.addf %12, %15 : vector<16x384xf32>
      %17 = vector.extract_strided_slice %16 {offsets = [0, 0], sizes = [16, 128], strides = [1, 1]} : vector<16x384xf32> to vector<16x128xf32>
      %18 = vector.extract_strided_slice %16 {offsets = [0, 128], sizes = [16, 128], strides = [1, 1]} : vector<16x384xf32> to vector<16x128xf32>
      %19 = vector.extract_strided_slice %16 {offsets = [0, 256], sizes = [16, 128], strides = [1, 1]} : vector<16x384xf32> to vector<16x128xf32>
      %c0_11 = arith.constant 0 : index
      %c0_12 = arith.constant 0 : index
      %c0_13 = arith.constant 0 : index
      %c0_14 = arith.constant 0 : index
      %20 = vector.load %arg6[%c0_11, %c0_12, %c0_13, %c0_14] : memref<1x1x128x128xbf16, #tpu.memory_space<vmem>>, vector<1x1x128x128xbf16>
      %21 = vector.shape_cast %20 : vector<1x1x128x128xbf16> to vector<128x128xbf16>
      %22 = vector.shape_cast %17 : vector<16x128xf32> to vector<2x8x128xf32>
      %23 = vector.shape_cast %18 : vector<16x128xf32> to vector<2x8x128xf32>
      %24 = vector.shape_cast %19 : vector<16x128xf32> to vector<2x8x128xf32>
      %25 = vector.extract_strided_slice %22 {offsets = [0, 0, 0], sizes = [2, 8, 32], strides = [1, 1, 1]} : vector<2x8x128xf32> to vector<2x8x32xf32>
      %26 = vector.extract_strided_slice %23 {offsets = [0, 0, 0], sizes = [2, 8, 32], strides = [1, 1, 1]} : vector<2x8x128xf32> to vector<2x8x32xf32>
      "tpu.trace_start"() <{level = 10 : i32, message = "bqd,bkd->bqk"}> : () -> ()
      %cst_15 = arith.constant dense<0.000000e+00> : vector<2x8x8xf32>
      %27 = tpu.matmul %25, %26, %cst_15 {dimension_numbers = #tpu.dot_dimension_numbers<[2], [2], [1], [1], [0, 0, 0, 1, 1, 1], [0], [0]>} : vector<2x8x32xf32>, vector<2x8x32xf32>, vector<2x8x8xf32> -> vector<2x8x8xf32>
      "tpu.trace_stop"() : () -> ()
      %cst_16 = arith.constant 0.176776692 : f32
      %28 = vector.broadcast %cst_16 : f32 to vector<2x8x8xf32>
      %29 = arith.mulf %27, %28 : vector<2x8x8xf32>
      %cst_17 = arith.constant dense<0xFF800000> : vector<2x8xf32>
      %30 = vector.multi_reduction <maximumf>, %29, %cst_17 [2] : vector<2x8x8xf32> to vector<2x8xf32>
      %31 = vector.shape_cast %30 : vector<2x8xf32> to vector<2x8x1xf32>
      %32 = vector.broadcast %31 : vector<2x8x1xf32> to vector<2x8x8xf32>
      %33 = arith.subf %29, %32 : vector<2x8x8xf32>
      %34 = math.exp %33 : vector<2x8x8xf32>
      %cst_18 = arith.constant dense<0.000000e+00> : vector<2x8xf32>
      %35 = vector.multi_reduction <add>, %34, %cst_18 [2] : vector<2x8x8xf32> to vector<2x8xf32>
      %36 = vector.shape_cast %35 : vector<2x8xf32> to vector<2x8x1xf32>
      %37 = vector.broadcast %36 : vector<2x8x1xf32> to vector<2x8x8xf32>
      %38 = arith.divf %34, %37 : vector<2x8x8xf32>
      %39 = vector.extract_strided_slice %24 {offsets = [0, 0, 0], sizes = [2, 8, 32], strides = [1, 1, 1]} : vector<2x8x128xf32> to vector<2x8x32xf32>
      "tpu.trace_start"() <{level = 10 : i32, message = "bqk,bkd->bqd"}> : () -> ()
      %cst_19 = arith.constant dense<0.000000e+00> : vector<2x8x32xf32>
      %40 = tpu.matmul %38, %39, %cst_19 {dimension_numbers = #tpu.dot_dimension_numbers<[2], [1], [1], [2], [0, 0, 0, 1, 1, 2], [0], [0]>} : vector<2x8x8xf32>, vector<2x8x32xf32>, vector<2x8x32xf32> -> vector<2x8x32xf32>
      "tpu.trace_stop"() : () -> ()
      %41 = vector.shape_cast %40 : vector<2x8x32xf32> to vector<16x32xf32>
      %42 = arith.truncf %41 : vector<16x32xf32> to vector<16x32xbf16>
      %43 = vector.extract_strided_slice %21 {offsets = [0, 0], sizes = [32, 128], strides = [1, 1]} : vector<128x128xbf16> to vector<32x128xbf16>
      %cst_20 = arith.constant dense<0.000000e+00> : vector<16x128xf32>
      %44 = tpu.matmul %42, %43, %cst_20 {dimension_numbers = #tpu.dot_dimension_numbers<[1], [0], [0], [1], [0, 0, 1, 1], [], []>} : vector<16x32xbf16>, vector<32x128xbf16>, vector<16x128xf32> -> vector<16x128xf32>
      %45 = vector.extract_strided_slice %22 {offsets = [0, 0, 32], sizes = [2, 8, 32], strides = [1, 1, 1]} : vector<2x8x128xf32> to vector<2x8x32xf32>
      %46 = vector.extract_strided_slice %23 {offsets = [0, 0, 32], sizes = [2, 8, 32], strides = [1, 1, 1]} : vector<2x8x128xf32> to vector<2x8x32xf32>
      "tpu.trace_start"() <{level = 10 : i32, message = "bqd,bkd->bqk"}> : () -> ()
      %cst_21 = arith.constant dense<0.000000e+00> : vector<2x8x8xf32>
      %47 = tpu.matmul %45, %46, %cst_21 {dimension_numbers = #tpu.dot_dimension_numbers<[2], [2], [1], [1], [0, 0, 0, 1, 1, 1], [0], [0]>} : vector<2x8x32xf32>, vector<2x8x32xf32>, vector<2x8x8xf32> -> vector<2x8x8xf32>
      "tpu.trace_stop"() : () -> ()
      %cst_22 = arith.constant 0.176776692 : f32
      %48 = vector.broadcast %cst_22 : f32 to vector<2x8x8xf32>
      %49 = arith.mulf %47, %48 : vector<2x8x8xf32>
      %cst_23 = arith.constant dense<0xFF800000> : vector<2x8xf32>
      %50 = vector.multi_reduction <maximumf>, %49, %cst_23 [2] : vector<2x8x8xf32> to vector<2x8xf32>
      %51 = vector.shape_cast %50 : vector<2x8xf32> to vector<2x8x1xf32>
      %52 = vector.broadcast %51 : vector<2x8x1xf32> to vector<2x8x8xf32>
      %53 = arith.subf %49, %52 : vector<2x8x8xf32>
      %54 = math.exp %53 : vector<2x8x8xf32>
      %cst_24 = arith.constant dense<0.000000e+00> : vector<2x8xf32>
      %55 = vector.multi_reduction <add>, %54, %cst_24 [2] : vector<2x8x8xf32> to vector<2x8xf32>
      %56 = vector.shape_cast %55 : vector<2x8xf32> to vector<2x8x1xf32>
      %57 = vector.broadcast %56 : vector<2x8x1xf32> to vector<2x8x8xf32>
      %58 = arith.divf %54, %57 : vector<2x8x8xf32>
      %59 = vector.extract_strided_slice %24 {offsets = [0, 0, 32], sizes = [2, 8, 32], strides = [1, 1, 1]} : vector<2x8x128xf32> to vector<2x8x32xf32>
      "tpu.trace_start"() <{level = 10 : i32, message = "bqk,bkd->bqd"}> : () -> ()
      %cst_25 = arith.constant dense<0.000000e+00> : vector<2x8x32xf32>
      %60 = tpu.matmul %58, %59, %cst_25 {dimension_numbers = #tpu.dot_dimension_numbers<[2], [1], [1], [2], [0, 0, 0, 1, 1, 2], [0], [0]>} : vector<2x8x8xf32>, vector<2x8x32xf32>, vector<2x8x32xf32> -> vector<2x8x32xf32>
      "tpu.trace_stop"() : () -> ()
      %61 = vector.shape_cast %60 : vector<2x8x32xf32> to vector<16x32xf32>
      %62 = arith.truncf %61 : vector<16x32xf32> to vector<16x32xbf16>
      %63 = vector.extract_strided_slice %21 {offsets = [32, 0], sizes = [32, 128], strides = [1, 1]} : vector<128x128xbf16> to vector<32x128xbf16>
      %cst_26 = arith.constant dense<0.000000e+00> : vector<16x128xf32>
      %64 = tpu.matmul %62, %63, %cst_26 {dimension_numbers = #tpu.dot_dimension_numbers<[1], [0], [0], [1], [0, 0, 1, 1], [], []>} : vector<16x32xbf16>, vector<32x128xbf16>, vector<16x128xf32> -> vector<16x128xf32>
      %65 = arith.addf %44, %64 : vector<16x128xf32>
      %66 = vector.extract_strided_slice %22 {offsets = [0, 0, 64], sizes = [2, 8, 32], strides = [1, 1, 1]} : vector<2x8x128xf32> to vector<2x8x32xf32>
      %67 = vector.extract_strided_slice %23 {offsets = [0, 0, 64], sizes = [2, 8, 32], strides = [1, 1, 1]} : vector<2x8x128xf32> to vector<2x8x32xf32>
      "tpu.trace_start"() <{level = 10 : i32, message = "bqd,bkd->bqk"}> : () -> ()
      %cst_27 = arith.constant dense<0.000000e+00> : vector<2x8x8xf32>
      %68 = tpu.matmul %66, %67, %cst_27 {dimension_numbers = #tpu.dot_dimension_numbers<[2], [2], [1], [1], [0, 0, 0, 1, 1, 1], [0], [0]>} : vector<2x8x32xf32>, vector<2x8x32xf32>, vector<2x8x8xf32> -> vector<2x8x8xf32>
      "tpu.trace_stop"() : () -> ()
      %cst_28 = arith.constant 0.176776692 : f32
      %69 = vector.broadcast %cst_28 : f32 to vector<2x8x8xf32>
      %70 = arith.mulf %68, %69 : vector<2x8x8xf32>
      %cst_29 = arith.constant dense<0xFF800000> : vector<2x8xf32>
      %71 = vector.multi_reduction <maximumf>, %70, %cst_29 [2] : vector<2x8x8xf32> to vector<2x8xf32>
      %72 = vector.shape_cast %71 : vector<2x8xf32> to vector<2x8x1xf32>
      %73 = vector.broadcast %72 : vector<2x8x1xf32> to vector<2x8x8xf32>
      %74 = arith.subf %70, %73 : vector<2x8x8xf32>
      %75 = math.exp %74 : vector<2x8x8xf32>
      %cst_30 = arith.constant dense<0.000000e+00> : vector<2x8xf32>
      %76 = vector.multi_reduction <add>, %75, %cst_30 [2] : vector<2x8x8xf32> to vector<2x8xf32>
      %77 = vector.shape_cast %76 : vector<2x8xf32> to vector<2x8x1xf32>
      %78 = vector.broadcast %77 : vector<2x8x1xf32> to vector<2x8x8xf32>
      %79 = arith.divf %75, %78 : vector<2x8x8xf32>
      %80 = vector.extract_strided_slice %24 {offsets = [0, 0, 64], sizes = [2, 8, 32], strides = [1, 1, 1]} : vector<2x8x128xf32> to vector<2x8x32xf32>
      "tpu.trace_start"() <{level = 10 : i32, message = "bqk,bkd->bqd"}> : () -> ()
      %cst_31 = arith.constant dense<0.000000e+00> : vector<2x8x32xf32>
      %81 = tpu.matmul %79, %80, %cst_31 {dimension_numbers = #tpu.dot_dimension_numbers<[2], [1], [1], [2], [0, 0, 0, 1, 1, 2], [0], [0]>} : vector<2x8x8xf32>, vector<2x8x32xf32>, vector<2x8x32xf32> -> vector<2x8x32xf32>
      "tpu.trace_stop"() : () -> ()
      %82 = vector.shape_cast %81 : vector<2x8x32xf32> to vector<16x32xf32>
      %83 = arith.truncf %82 : vector<16x32xf32> to vector<16x32xbf16>
      %84 = vector.extract_strided_slice %21 {offsets = [64, 0], sizes = [32, 128], strides = [1, 1]} : vector<128x128xbf16> to vector<32x128xbf16>
      %cst_32 = arith.constant dense<0.000000e+00> : vector<16x128xf32>
      %85 = tpu.matmul %83, %84, %cst_32 {dimension_numbers = #tpu.dot_dimension_numbers<[1], [0], [0], [1], [0, 0, 1, 1], [], []>} : vector<16x32xbf16>, vector<32x128xbf16>, vector<16x128xf32> -> vector<16x128xf32>
      %86 = arith.addf %65, %85 : vector<16x128xf32>
      %87 = vector.extract_strided_slice %22 {offsets = [0, 0, 96], sizes = [2, 8, 32], strides = [1, 1, 1]} : vector<2x8x128xf32> to vector<2x8x32xf32>
      %88 = vector.extract_strided_slice %23 {offsets = [0, 0, 96], sizes = [2, 8, 32], strides = [1, 1, 1]} : vector<2x8x128xf32> to vector<2x8x32xf32>
      "tpu.trace_start"() <{level = 10 : i32, message = "bqd,bkd->bqk"}> : () -> ()
      %cst_33 = arith.constant dense<0.000000e+00> : vector<2x8x8xf32>
      %89 = tpu.matmul %87, %88, %cst_33 {dimension_numbers = #tpu.dot_dimension_numbers<[2], [2], [1], [1], [0, 0, 0, 1, 1, 1], [0], [0]>} : vector<2x8x32xf32>, vector<2x8x32xf32>, vector<2x8x8xf32> -> vector<2x8x8xf32>
      "tpu.trace_stop"() : () -> ()
      %cst_34 = arith.constant 0.176776692 : f32
      %90 = vector.broadcast %cst_34 : f32 to vector<2x8x8xf32>
      %91 = arith.mulf %89, %90 : vector<2x8x8xf32>
      %cst_35 = arith.constant dense<0xFF800000> : vector<2x8xf32>
      %92 = vector.multi_reduction <maximumf>, %91, %cst_35 [2] : vector<2x8x8xf32> to vector<2x8xf32>
      %93 = vector.shape_cast %92 : vector<2x8xf32> to vector<2x8x1xf32>
      %94 = vector.broadcast %93 : vector<2x8x1xf32> to vector<2x8x8xf32>
      %95 = arith.subf %91, %94 : vector<2x8x8xf32>
      %96 = math.exp %95 : vector<2x8x8xf32>
      %cst_36 = arith.constant dense<0.000000e+00> : vector<2x8xf32>
      %97 = vector.multi_reduction <add>, %96, %cst_36 [2] : vector<2x8x8xf32> to vector<2x8xf32>
      %98 = vector.shape_cast %97 : vector<2x8xf32> to vector<2x8x1xf32>
      %99 = vector.broadcast %98 : vector<2x8x1xf32> to vector<2x8x8xf32>
      %100 = arith.divf %96, %99 : vector<2x8x8xf32>
      %101 = vector.extract_strided_slice %24 {offsets = [0, 0, 96], sizes = [2, 8, 32], strides = [1, 1, 1]} : vector<2x8x128xf32> to vector<2x8x32xf32>
      "tpu.trace_start"() <{level = 10 : i32, message = "bqk,bkd->bqd"}> : () -> ()
      %cst_37 = arith.constant dense<0.000000e+00> : vector<2x8x32xf32>
      %102 = tpu.matmul %100, %101, %cst_37 {dimension_numbers = #tpu.dot_dimension_numbers<[2], [1], [1], [2], [0, 0, 0, 1, 1, 2], [0], [0]>} : vector<2x8x8xf32>, vector<2x8x32xf32>, vector<2x8x32xf32> -> vector<2x8x32xf32>
      "tpu.trace_stop"() : () -> ()
      %103 = vector.shape_cast %102 : vector<2x8x32xf32> to vector<16x32xf32>
      %104 = arith.truncf %103 : vector<16x32xf32> to vector<16x32xbf16>
      %105 = vector.extract_strided_slice %21 {offsets = [96, 0], sizes = [32, 128], strides = [1, 1]} : vector<128x128xbf16> to vector<32x128xbf16>
      %cst_38 = arith.constant dense<0.000000e+00> : vector<16x128xf32>
      %106 = tpu.matmul %104, %105, %cst_38 {dimension_numbers = #tpu.dot_dimension_numbers<[1], [0], [0], [1], [0, 0, 1, 1], [], []>} : vector<16x32xbf16>, vector<32x128xbf16>, vector<16x128xf32> -> vector<16x128xf32>
      %107 = arith.addf %86, %106 : vector<16x128xf32>
      %c0_39 = arith.constant 0 : index
      %c0_40 = arith.constant 0 : index
      %c0_41 = arith.constant 0 : index
      %c0_42 = arith.constant 0 : index
      %108 = vector.load %arg7[%c0_39, %c0_40, %c0_41, %c0_42] : memref<1x1x1x128xf32, #tpu.memory_space<vmem>>, vector<1x1x1x128xf32>
      %109 = vector.shape_cast %108 : vector<1x1x1x128xf32> to vector<1x128xf32>
      %110 = vector.broadcast %109 : vector<1x128xf32> to vector<16x128xf32>
      %111 = arith.addf %107, %110 : vector<16x128xf32>
      %112 = arith.addf %111, %8 : vector<16x128xf32>
      %c0_43 = arith.constant 0 : index
      %c0_44 = arith.constant 0 : index
      %c0_45 = arith.constant 0 : index
      %c0_46 = arith.constant 0 : index
      %113 = vector.load %arg8[%c0_43, %c0_44, %c0_45, %c0_46] : memref<1x1x1x128xf32, #tpu.memory_space<vmem>>, vector<1x1x1x128xf32>
      %114 = vector.shape_cast %113 : vector<1x1x1x128xf32> to vector<1x128xf32>
      %c0_47 = arith.constant 0 : index
      %c0_48 = arith.constant 0 : index
      %c0_49 = arith.constant 0 : index
      %c0_50 = arith.constant 0 : index
      %115 = vector.load %arg9[%c0_47, %c0_48, %c0_49, %c0_50] : memref<1x1x1x128xf32, #tpu.memory_space<vmem>>, vector<1x1x1x128xf32>
      %116 = vector.shape_cast %115 : vector<1x1x1x128xf32> to vector<1x128xf32>
      %cst_51 = arith.constant dense<0.000000e+00> : vector<16xf32>
      %117 = vector.multi_reduction <add>, %112, %cst_51 [1] : vector<16x128xf32> to vector<16xf32>
      %118 = vector.shape_cast %117 : vector<16xf32> to vector<16x1xf32>
      %cst_52 = arith.constant 1.280000e+02 : f32
      %119 = vector.broadcast %cst_52 : f32 to vector<16x1xf32>
      %120 = arith.divf %118, %119 : vector<16x1xf32>
      %121 = vector.broadcast %120 : vector<16x1xf32> to vector<16x128xf32>
      %122 = arith.subf %112, %121 : vector<16x128xf32>
      %123 = arith.mulf %122, %122 : vector<16x128xf32>
      %cst_53 = arith.constant dense<0.000000e+00> : vector<16xf32>
      %124 = vector.multi_reduction <add>, %123, %cst_53 [1] : vector<16x128xf32> to vector<16xf32>
      %125 = vector.shape_cast %124 : vector<16xf32> to vector<16x1xf32>
      %cst_54 = arith.constant 1.280000e+02 : f32
      %126 = vector.broadcast %cst_54 : f32 to vector<16x1xf32>
      %127 = arith.divf %125, %126 : vector<16x1xf32>
      %128 = vector.broadcast %120 : vector<16x1xf32> to vector<16x128xf32>
      %129 = arith.subf %112, %128 : vector<16x128xf32>
      %cst_55 = arith.constant 9.99999996E-13 : f32
      %130 = vector.broadcast %cst_55 : f32 to vector<16x1xf32>
      %131 = arith.addf %127, %130 : vector<16x1xf32>
      %132 = math.rsqrt %131 : vector<16x1xf32>
      %133 = vector.broadcast %132 : vector<16x1xf32> to vector<16x128xf32>
      %134 = arith.mulf %129, %133 : vector<16x128xf32>
      %135 = vector.broadcast %114 : vector<1x128xf32> to vector<16x128xf32>
      %136 = arith.mulf %134, %135 : vector<16x128xf32>
      %137 = vector.broadcast %116 : vector<1x128xf32> to vector<16x128xf32>
      %138 = arith.addf %136, %137 : vector<16x128xf32>
      %c0_56 = arith.constant 0 : index
      %c0_57 = arith.constant 0 : index
      %c0_58 = arith.constant 0 : index
      %c0_59 = arith.constant 0 : index
      %139 = vector.load %arg10[%c0_56, %c0_57, %c0_58, %c0_59] : memref<1x1x128x256xbf16, #tpu.memory_space<vmem>>, vector<1x1x128x256xbf16>
      %140 = vector.shape_cast %139 : vector<1x1x128x256xbf16> to vector<128x256xbf16>
      %141 = arith.truncf %138 : vector<16x128xf32> to vector<16x128xbf16>
      %cst_60 = arith.constant dense<0.000000e+00> : vector<16x256xf32>
      %142 = tpu.matmul %141, %140, %cst_60 {dimension_numbers = #tpu.dot_dimension_numbers<[1], [0], [0], [1], [0, 0, 1, 1], [], []>} : vector<16x128xbf16>, vector<128x256xbf16>, vector<16x256xf32> -> vector<16x256xf32>
      %c0_61 = arith.constant 0 : index
      %c0_62 = arith.constant 0 : index
      %c0_63 = arith.constant 0 : index
      %c0_64 = arith.constant 0 : index
      %143 = vector.load %arg11[%c0_61, %c0_62, %c0_63, %c0_64] : memref<1x1x1x256xf32, #tpu.memory_space<vmem>>, vector<1x1x1x256xf32>
      %144 = vector.shape_cast %143 : vector<1x1x1x256xf32> to vector<1x256xf32>
      %145 = vector.broadcast %144 : vector<1x256xf32> to vector<16x256xf32>
      %146 = arith.addf %142, %145 : vector<16x256xf32>
      %147 = arith.mulf %146, %146 : vector<16x256xf32>
      %148 = arith.mulf %146, %147 : vector<16x256xf32>
      %cst_65 = arith.constant 4.471500e-02 : f32
      %149 = vector.broadcast %cst_65 : f32 to vector<16x256xf32>
      %150 = arith.mulf %149, %148 : vector<16x256xf32>
      %151 = arith.addf %146, %150 : vector<16x256xf32>
      %cst_66 = arith.constant 0.797884583 : f32
      %152 = vector.broadcast %cst_66 : f32 to vector<16x256xf32>
      %153 = arith.mulf %152, %151 : vector<16x256xf32>
      %154 = math.tanh %153 : vector<16x256xf32>
      %cst_67 = arith.constant 1.000000e+00 : f32
      %155 = vector.broadcast %cst_67 : f32 to vector<16x256xf32>
      %156 = arith.addf %155, %154 : vector<16x256xf32>
      %cst_68 = arith.constant 5.000000e-01 : f32
      %157 = vector.broadcast %cst_68 : f32 to vector<16x256xf32>
      %158 = arith.mulf %157, %156 : vector<16x256xf32>
      %159 = arith.mulf %146, %158 : vector<16x256xf32>
      %c0_69 = arith.constant 0 : index
      %c0_70 = arith.constant 0 : index
      %c0_71 = arith.constant 0 : index
      %c0_72 = arith.constant 0 : index
      %160 = vector.load %arg12[%c0_69, %c0_70, %c0_71, %c0_72] : memref<1x1x256x128xbf16, #tpu.memory_space<vmem>>, vector<1x1x256x128xbf16>
      %161 = vector.shape_cast %160 : vector<1x1x256x128xbf16> to vector<256x128xbf16>
      %162 = arith.truncf %159 : vector<16x256xf32> to vector<16x256xbf16>
      %cst_73 = arith.constant dense<0.000000e+00> : vector<16x128xf32>
      %163 = tpu.matmul %162, %161, %cst_73 {dimension_numbers = #tpu.dot_dimension_numbers<[1], [0], [0], [1], [0, 0, 1, 1], [], []>} : vector<16x256xbf16>, vector<256x128xbf16>, vector<16x128xf32> -> vector<16x128xf32>
      %c0_74 = arith.constant 0 : index
      %c0_75 = arith.constant 0 : index
      %c0_76 = arith.constant 0 : index
      %c0_77 = arith.constant 0 : index
      %164 = vector.load %arg13[%c0_74, %c0_75, %c0_76, %c0_77] : memref<1x1x1x128xf32, #tpu.memory_space<vmem>>, vector<1x1x1x128xf32>
      %165 = vector.shape_cast %164 : vector<1x1x1x128xf32> to vector<1x128xf32>
      %166 = vector.broadcast %165 : vector<1x128xf32> to vector<16x128xf32>
      %167 = arith.addf %163, %166 : vector<16x128xf32>
      %168 = arith.addf %167, %138 : vector<16x128xf32>
      %c0_78 = arith.constant 0 : index
      %c0_79 = arith.constant 0 : index
      %c0_80 = arith.constant 0 : index
      %c0_81 = arith.constant 0 : index
      %169 = vector.load %arg14[%c0_78, %c0_79, %c0_80, %c0_81] : memref<1x1x1x128xf32, #tpu.memory_space<vmem>>, vector<1x1x1x128xf32>
      %170 = vector.shape_cast %169 : vector<1x1x1x128xf32> to vector<1x128xf32>
      %c0_82 = arith.constant 0 : index
      %c0_83 = arith.constant 0 : index
      %c0_84 = arith.constant 0 : index
      %c0_85 = arith.constant 0 : index
      %171 = vector.load %arg15[%c0_82, %c0_83, %c0_84, %c0_85] : memref<1x1x1x128xf32, #tpu.memory_space<vmem>>, vector<1x1x1x128xf32>
      %172 = vector.shape_cast %171 : vector<1x1x1x128xf32> to vector<1x128xf32>
      %cst_86 = arith.constant dense<0.000000e+00> : vector<16xf32>
      %173 = vector.multi_reduction <add>, %168, %cst_86 [1] : vector<16x128xf32> to vector<16xf32>
      %174 = vector.shape_cast %173 : vector<16xf32> to vector<16x1xf32>
      %cst_87 = arith.constant 1.280000e+02 : f32
      %175 = vector.broadcast %cst_87 : f32 to vector<16x1xf32>
      %176 = arith.divf %174, %175 : vector<16x1xf32>
      %177 = vector.broadcast %176 : vector<16x1xf32> to vector<16x128xf32>
      %178 = arith.subf %168, %177 : vector<16x128xf32>
      %179 = arith.mulf %178, %178 : vector<16x128xf32>
      %cst_88 = arith.constant dense<0.000000e+00> : vector<16xf32>
      %180 = vector.multi_reduction <add>, %179, %cst_88 [1] : vector<16x128xf32> to vector<16xf32>
      %181 = vector.shape_cast %180 : vector<16xf32> to vector<16x1xf32>
      %cst_89 = arith.constant 1.280000e+02 : f32
      %182 = vector.broadcast %cst_89 : f32 to vector<16x1xf32>
      %183 = arith.divf %181, %182 : vector<16x1xf32>
      %184 = vector.broadcast %176 : vector<16x1xf32> to vector<16x128xf32>
      %185 = arith.subf %168, %184 : vector<16x128xf32>
      %cst_90 = arith.constant 9.99999996E-13 : f32
      %186 = vector.broadcast %cst_90 : f32 to vector<16x1xf32>
      %187 = arith.addf %183, %186 : vector<16x1xf32>
      %188 = math.rsqrt %187 : vector<16x1xf32>
      %189 = vector.broadcast %188 : vector<16x1xf32> to vector<16x128xf32>
      %190 = arith.mulf %185, %189 : vector<16x128xf32>
      %191 = vector.broadcast %170 : vector<1x128xf32> to vector<16x128xf32>
      %192 = arith.mulf %190, %191 : vector<16x128xf32>
      %193 = vector.broadcast %172 : vector<1x128xf32> to vector<16x128xf32>
      %194 = arith.addf %192, %193 : vector<16x128xf32>
      %c0_91 = arith.constant 0 : index
      %c0_92 = arith.constant 0 : index
      %195 = vector.load %arg17[%c0_91, %c0_92] : memref<16x128xf32, #tpu.memory_space<vmem>>, vector<16x128xf32>
      tpu.vector_store %arg17[%c0_91, %c0_92], %194 {strides = array<i32>} : memref<16x128xf32, #tpu.memory_space<vmem>>, vector<16x128xf32>,
      %196 = arith.truncf %194 : vector<16x128xf32> to vector<16x128xbf16>
      %c0_93 = arith.constant 0 : index
      %c0_94 = arith.constant 0 : index
      %c0_95 = arith.constant 0 : index
      %197 = vector.load %arg16[%c0_93, %c0_94, %c0_95] : memref<1x16x128xbf16, #tpu.memory_space<vmem>>, vector<1x16x128xbf16>
      %198 = vector.shape_cast %197 : vector<1x16x128xbf16> to vector<16x128xbf16>
      %199 = vector.shape_cast %196 : vector<16x128xbf16> to vector<1x16x128xbf16>
      tpu.vector_store %arg16[%c0_93, %c0_94, %c0_95], %199 {strides = array<i32>} : memref<1x16x128xbf16, #tpu.memory_space<vmem>>, vector<1x16x128xbf16>,
    } else {
    }
    return
  }
  func.func @transform_0(%arg0: i32, %arg1: i32, %arg2: memref<2xi32, #tpu.memory_space<smem>>) -> (i32, i32, i32) {
    %c0_i32 = arith.constant 0 : i32
    %c0_i32_0 = arith.constant 0 : i32
    %c0_i32_1 = arith.constant 0 : i32
    return %arg0, %c0_i32, %c0_i32_0 : i32, i32, i32
  }
  func.func @transform_1(%arg0: i32, %arg1: i32, %arg2: memref<2xi32, #tpu.memory_space<smem>>) -> (i32, i32, i32, i32) {
    %c0_i32 = arith.constant 0 : i32
    %c0_i32_0 = arith.constant 0 : i32
    %c0_i32_1 = arith.constant 0 : i32
    return %arg0, %arg1, %c0_i32, %c0_i32_0 : i32, i32, i32, i32
  }
  func.func @transform_2(%arg0: i32, %arg1: i32, %arg2: memref<2xi32, #tpu.memory_space<smem>>) -> (i32, i32, i32, i32) {
    %c0_i32 = arith.constant 0 : i32
    %c0_i32_0 = arith.constant 0 : i32
    %c0_i32_1 = arith.constant 0 : i32
    return %arg0, %arg1, %c0_i32, %c0_i32_0 : i32, i32, i32, i32
  }
  func.func @transform_3(%arg0: i32, %arg1: i32, %arg2: memref<2xi32, #tpu.memory_space<smem>>) -> (i32, i32, i32, i32) {
    %c0_i32 = arith.constant 0 : i32
    %c0_i32_0 = arith.constant 0 : i32
    %c0_i32_1 = arith.constant 0 : i32
    return %arg0, %arg1, %c0_i32, %c0_i32_0 : i32, i32, i32, i32
  }
  func.func @transform_4(%arg0: i32, %arg1: i32, %arg2: memref<2xi32, #tpu.memory_space<smem>>) -> (i32, i32, i32, i32) {
    %c0_i32 = arith.constant 0 : i32
    %c0_i32_0 = arith.constant 0 : i32
    %c0_i32_1 = arith.constant 0 : i32
    return %arg0, %arg1, %c0_i32, %c0_i32_0 : i32, i32, i32, i32
  }
  func.func @transform_5(%arg0: i32, %arg1: i32, %arg2: memref<2xi32, #tpu.memory_space<smem>>) -> (i32, i32, i32, i32) {
    %c0_i32 = arith.constant 0 : i32
    %c0_i32_0 = arith.constant 0 : i32
    %c0_i32_1 = arith.constant 0 : i32
    return %arg0, %arg1, %c0_i32, %c0_i32_0 : i32, i32, i32, i32
  }
  func.func @transform_6(%arg0: i32, %arg1: i32, %arg2: memref<2xi32, #tpu.memory_space<smem>>) -> (i32, i32, i32, i32) {
    %c0_i32 = arith.constant 0 : i32
    %c0_i32_0 = arith.constant 0 : i32
    %c0_i32_1 = arith.constant 0 : i32
    return %arg0, %arg1, %c0_i32, %c0_i32_0 : i32, i32, i32, i32
  }
  func.func @transform_7(%arg0: i32, %arg1: i32, %arg2: memref<2xi32, #tpu.memory_space<smem>>) -> (i32, i32, i32, i32) {
    %c0_i32 = arith.constant 0 : i32
    %c0_i32_0 = arith.constant 0 : i32
    %c0_i32_1 = arith.constant 0 : i32
    return %arg0, %arg1, %c0_i32, %c0_i32_0 : i32, i32, i32, i32
  }
  func.func @transform_8(%arg0: i32, %arg1: i32, %arg2: memref<2xi32, #tpu.memory_space<smem>>) -> (i32, i32, i32, i32) {
    %c0_i32 = arith.constant 0 : i32
    %c0_i32_0 = arith.constant 0 : i32
    %c0_i32_1 = arith.constant 0 : i32
    return %arg0, %arg1, %c0_i32, %c0_i32_0 : i32, i32, i32, i32
  }
  func.func @transform_9(%arg0: i32, %arg1: i32, %arg2: memref<2xi32, #tpu.memory_space<smem>>) -> (i32, i32, i32, i32) {
    %c0_i32 = arith.constant 0 : i32
    %c0_i32_0 = arith.constant 0 : i32
    %c0_i32_1 = arith.constant 0 : i32
    return %arg0, %arg1, %c0_i32, %c0_i32_0 : i32, i32, i32, i32
  }
  func.func @transform_10(%arg0: i32, %arg1: i32, %arg2: memref<2xi32, #tpu.memory_space<smem>>) -> (i32, i32, i32, i32) {
    %c0_i32 = arith.constant 0 : i32
    %c0_i32_0 = arith.constant 0 : i32
    %c0_i32_1 = arith.constant 0 : i32
    return %arg0, %arg1, %c0_i32, %c0_i32_0 : i32, i32, i32, i32
  }
  func.func @transform_11(%arg0: i32, %arg1: i32, %arg2: memref<2xi32, #tpu.memory_space<smem>>) -> (i32, i32, i32, i32) {
    %c0_i32 = arith.constant 0 : i32
    %c0_i32_0 = arith.constant 0 : i32
    %c0_i32_1 = arith.constant 0 : i32
    return %arg0, %arg1, %c0_i32, %c0_i32_0 : i32, i32, i32, i32
  }
  func.func @transform_12(%arg0: i32, %arg1: i32, %arg2: memref<2xi32, #tpu.memory_space<smem>>) -> (i32, i32, i32, i32) {
    %c0_i32 = arith.constant 0 : i32
    %c0_i32_0 = arith.constant 0 : i32
    %c0_i32_1 = arith.constant 0 : i32
    return %arg0, %arg1, %c0_i32, %c0_i32_0 : i32, i32, i32, i32
  }
  func.func @transform_13(%arg0: i32, %arg1: i32, %arg2: memref<2xi32, #tpu.memory_space<smem>>) -> (i32, i32, i32) {
    %c0_i32 = arith.constant 0 : i32
    %c0_i32_0 = arith.constant 0 : i32
    %c0_i32_1 = arith.constant 0 : i32
    return %arg0, %c0_i32, %c0_i32_0 : i32, i32, i32
  }
}

</mosaic_0001>

<bundles_post_ra>
// kernel: lxmert_meme_forward.4
= control target key start
LH: loop header
LB: loop body
LE: loop exit
PB: predicated region body
PF: predicated region fallthrough
CT: control target
= control target key end

     0   :  { %15 = vsyncpa [#allocation3], 0  ;;  %s380_s13 = smov [#allocation2]   ;;  %s495_s0 = inlined_call_operand.vmem [shape: f32[16,64], index: 0, kind: input, shape index: {}]   ;;  %s496_s1 = inlined_call_operand.vmem [shape: f32[16,4], index: 1, kind: input, shape index: {}]   ;;  %s497_s2 = inlined_call_operand.vmem [shape: bf16[64,128], index: 2, kind: input, shape index: {}]   ;;  %s498_s3 = inlined_call_operand.vmem [shape: f32[1,128], index: 3, kind: input, shape index: {}]   ;;  %s499_s4 = inlined_call_operand.vmem [shape: f32[1,128], index: 4, kind: input, shape index: {}]   ;;  %s500_s5 = inlined_call_operand.vmem [shape: f32[1,128], index: 5, kind: input, shape index: {}]   ;;  %s501_s6 = inlined_call_operand.vmem [shape: bf16[4,128], index: 6, kind: input, shape index: {}]   ;;  %s502_s7 = inlined_call_operand.hbm [shape: f32[1,128], index: 7, kind: input, shape index: {}]   ;;  %s503_s8 = inlined_call_operand.vmem [shape: f32[1,128], index: 8, kind: input, shape index: {}]   ;;  %s504_s9 = inlined_call_operand.vmem [shape: f32[1,128], index: 9, kind: input, shape index: {}]   ;;  %s505_s10 = inlined_call_operand.vmem [shape: bf16[16,128], index: 10, kind: output, shape index: {}]  }
   0x1   :  { %s36_s14 = sshll.u32 %s380_s13, 4  ;;  %s356_s17 = scalar_lea.hbm %s502_s7, 16  ;;  %s37_s14 = int_to_ptr.vmem [resolvable:$true] %s36_s14 }
   0x2   :  { %p357_p0 = scmp.ne.s32.totalorder %s502_s7, %s356_s17  ;;  %p360_p1 = scmp.lt.u32.totalorder %s356_s17, %s502_s7 }
   0x4   :  { %p362_p2 = pnand %p360_p1, %p357_p0 }
   0x6   :  { %365 = shalt.err (!%p362_p2)
}
   0x7   :  { %s366_s22 = scalar_lea.vmem %s37_s14, 16  ;;  %s370_s23 = scalar_lea.vmem %s37_s14, 32 }
   0x8   :  { %p367_p3 = scmp.ne.s32.totalorder %s37_s14, %s366_s22  ;;  %p371_p4 = scmp.lt.s32.totalorder %s37_s14, %s37_s14 }
   0x9   :  { %p372_p5 = scmp.lt.s32.totalorder %s370_s23, %s366_s22 }
   0xb   :  { %p373_p6 = por %p372_p5, %p371_p4 }
   0xd   :  { %p374_p7 = pnand %p373_p6, %p367_p3 }
   0xf   :  { %377 = shalt.err (!%p374_p7)
}
  0x10   :  { %39 = dma.hbm_to_vmem [thread:$0]  %s502_s7, 16, %s37_s14, [#allocation3]  }
  0x11   :  { %378 = dma.done.wait [#allocation3], 16  }
  0x12   :  { %379 = vsyncadd [#allocation3], 4294967280  ;;  %v381_v0 = vmov 0.0   ;;  %vm382_vm0 = vmmov 0   ;;  %vm191_vm1 = vcmask 1041408   ;;  %v344_v3 = vld [vmem:[%s497_s2] sm:$0xff]  }
  0x13   :  { %335 = vmatprep.subr.bf16.mxu1 %v381_v0  ;;  %323 = vmatprep.subr.bf16.mxu0 %v381_v0  ;;  %v178_v1 = vld [vmem:[%s501_s6] sm:$0x3]  ;;  %v177_v5 = vld [vmem:[%s496_s1 + $0x8] sm:$0xff]  ;;  %vm187_vm2 = vcmask 31744   ;;  %v346_v8 = vld [vmem:[%s497_s2 + $0x10] sm:$0xff]   ;;  %vm90_vm3 = vcmask 523264  }
  0x14   :  { %337 = vmatprep.mubr.msk.bf16.mxu1 %vm382_vm0, %v381_v0  ;;  %331 = vmatprep.mubr.msk.bf16.mxu0 %vm382_vm0, %v381_v0  ;;  %v193_v2 = vsel %vm191_vm1, %v178_v1, 0  ;;  %v176_v4 = vld [vmem:[%s496_s1] sm:$0xff]  ;;  %v345_v7 = vld [vmem:[%s497_s2 + $0x8] sm:$0xff]   ;;  %v347_v9 = vld [vmem:[%s497_s2 + $0x18] sm:$0xff]  }
  0x15   :  { %336 = vmatpush3.bf16.msra.mxu1 %v193_v2  ;;  %v179_v6 = vpack.c.bf16 %v177_v5, %v176_v4  ;;  %324 = vmatpush3.bf16.msra.mxu0 %v344_v3  ;;  %v48_v10 = vld [vmem:[%s495_s0] sm:$0xff]  ;;  %v49_v11 = vld [vmem:[%s495_s0 + $0x8] sm:$0xff] }
  0x16   :  { %325 = vmatprep.subr.bf16.mxu0 %v381_v0  ;;  %v58_v12 = vpack.c.bf16 %v49_v11, %v48_v10  ;;  %v303_v13 = vld [vmem:[#allocation2] ss:$0 sm:$0xff] }
  0x17   :  { %v295_v20 = vld [vmem:[%s498_s3] ss:$0 sm:$0xff] }
  0x18   :  { %338 = vmatmul.mubr.msk.bf16.vlgmr.msra.gmra.mrb[0].mxu1 %vm187_vm2, %v179_v6  ;;  %v301_v58 = vld [vmem:[%s499_s4] ss:$0 sm:$0xff] }
  0x19   :  { %326 = vmatpush3.bf16.msra.mxu0 %v345_v7  ;;  %v305_v61 = vld [vmem:[%s503_s8] ss:$0 sm:$0xff] }
  0x1a   :  { %327 = vmatprep.subr.bf16.mxu0 %v381_v0  ;;  %v302_v2 = vld [vmem:[%s500_s5] ss:$0 sm:$0xff] }
  0x1d   :  { %328 = vmatpush3.bf16.msra.mxu0 %v346_v8 }
  0x1e   :  { %329 = vmatprep.subr.bf16.mxu0 %v381_v0  ;;  %v306_v0 = vld [vmem:[%s504_s9] ss:$0 sm:$0xff] }
  0x21   :  { %330 = vmatpush3.bf16.msra.mxu0 %v347_v9 }
  0x24   :  { %332 = vmatmul.mubr.msk.bf16.vlgmr.msra.gmra.mrb[0].mxu0 %vm90_vm3, %v58_v12 }
  0xeb   :  { %v229_v14 = vpop.f32.mrb[0].mxu1 }
  0xec   :  { %v230_v15 = vadd.f32 %v303_v13, %v229_v14  ;;  %v339_v16 = vpop.f32.mrb[1].mxu1 }
  0xed   :  { %v232_v17 = vpop.f32.mrb[2].mxu1 }
  0xee   :  { %238 = vadd.xlane.f32.xlu1 %v230_v15  ;;  %v233_v18 = vadd.f32 %v303_v13, %v232_v17  ;;  %v340_v19 = vpop.f32.mrb[3].mxu1 }
  0xf2   :  { %240 = vadd.xlane.f32.xlu1 %v233_v18 }
  0xf7   :  { %v128_v21 = vpop.f32.mrb[0].mxu0 }
  0xf8   :  { %v129_v22 = vadd.f32 %v295_v20, %v128_v21  ;;  %v333_v23 = vpop.f32.mrb[1].mxu0 }
  0xf9   :  { %v131_v24 = vpop.f32.mrb[2].mxu0 }
  0xfa   :  { %137 = vadd.xlane.f32.xlu0 %v129_v22  ;;  %v334_v25 = vpop.f32.mrb[3].mxu0  ;;  %v132_v26 = vadd.f32 %v295_v20, %v131_v24 }
  0xfe   :  { %139 = vadd.xlane.f32.xlu0 %v132_v26 }
 0x17b   :  { %v239_v27 = vpop.xlane.xlu1 %238 }
 0x17c   :  { %v242_v29 = vmul.f32 0.0078125, %v239_v27 }
 0x17e   :  { %v244_v34 = vsub.f32 %v230_v15, %v242_v29 }
 0x17f   :  { %v241_v31 = vpop.xlane.xlu1 %240 }
 0x180   :  { %v243_v35 = vmul.f32 0.0078125, %v241_v31  ;;  %v246_v40 = vmul.f32 %v244_v34, %v244_v34 }
 0x182   :  { %v245_v39 = vsub.f32 %v233_v18, %v243_v35 }
 0x184   :  { %v247_v42 = vmul.f32 %v245_v39, %v245_v39 }
 0x187   :  { %v138_v28 = vpop.xlane.xlu0 %137 }
 0x188   :  { %v142_v30 = vmul.f32 0.0078125, %v138_v28 }
 0x18a   :  { %v144_v32 = vsub.f32 %v129_v22, %v142_v30 }
 0x18b   :  { %v140_v33 = vpop.xlane.xlu0 %139 }
 0x18c   :  { %v143_v36 = vmul.f32 0.0078125, %v140_v33  ;;  %v146_v37 = vmul.f32 %v144_v32, %v144_v32 }
 0x18e   :  { %v145_v38 = vsub.f32 %v132_v26, %v143_v36  ;;  %148 = vadd.xlane.f32.xlu0 %v146_v37 }
 0x190   :  { %v147_v41 = vmul.f32 %v145_v38, %v145_v38 }
 0x192   :  { %248 = vadd.xlane.f32.xlu0 %v246_v40  ;;  %150 = vadd.xlane.f32.xlu1 %v147_v41 }
 0x196   :  { %250 = vadd.xlane.f32.xlu1 %v247_v42 }
 0x21b   :  { %v149_v43 = vpop.xlane.xlu0 %148 }
 0x21c   :  { %v152_v44 = vmul.f32 0.0078125, %v149_v43 }
 0x21e   :  { %v154_v45 = vadd.f32 1e-12, %v152_v44 }
 0x21f   :  { %v151_v46 = vpop.xlane.xlu1 %150  ;;  %v249_v47 = vpop.xlane.xlu0 %248 }
 0x220   :  { %348 = vrsqrt.f32 %v154_v45  ;;  %v153_v48 = vmul.f32 0.0078125, %v151_v46  ;;  %v252_v49 = vmul.f32 0.0078125, %v249_v47 }
 0x222   :  { %v155_v50 = vadd.f32 1e-12, %v153_v48  ;;  %v254_v51 = vadd.f32 1e-12, %v252_v49 }
 0x223   :  { %v251_v52 = vpop.xlane.xlu1 %250 }
 0x224   :  { %350 = vrsqrt.f32 %v155_v50  ;;  %v253_v53 = vmul.f32 0.0078125, %v251_v52 }
 0x225   :  { %352 = vrsqrt.f32 %v254_v51 }
 0x226   :  { %v255_v54 = vadd.f32 1e-12, %v253_v53 }
 0x228   :  { %354 = vrsqrt.f32 %v255_v54 }
 0x22a   :  { %v349_v55 = vpop.eup %348 }
 0x22b   :  { %v158_v56 = vmul.f32 %v349_v55, %v144_v32 }
 0x22d   :  { %v166_v63 = vmul.f32 %v301_v58, %v158_v56 }
 0x22e   :  { %v351_v57 = vpop.eup %350 }
 0x22f   :  { %v353_v59 = vpop.eup %352  ;;  %v159_v60 = vmul.f32 %v351_v57, %v145_v38  ;;  %v174_v7 = vadd.f32 %v302_v2, %v166_v63 }
 0x230   :  { %v258_v62 = vmul.f32 %v353_v59, %v244_v34 }
 0x231   :  { %v167_v4 = vmul.f32 %v301_v58, %v159_v60 }
 0x232   :  { %v355_v1 = vpop.eup %354  ;;  %v266_v3 = vmul.f32 %v305_v61, %v258_v62 }
 0x233   :  { %v259_v5 = vmul.f32 %v355_v1, %v245_v39  ;;  %v175_v9 = vadd.f32 %v302_v2, %v167_v4 }
 0x234   :  { %v274_v6 = vadd.f32 %v306_v0, %v266_v3 }
 0x235   :  { %v267_v8 = vmul.f32 %v305_v61, %v259_v5 }
 0x236   :  { %v276_v10 = vadd.f32 %v274_v6, %v174_v7 }
 0x237   :  { %v275_v11 = vadd.f32 %v306_v0, %v267_v8 }
 0x238   :  { %v278_v13 = vmul.f32 0.5, %v276_v10 }
 0x239   :  { %v277_v12 = vadd.f32 %v275_v11, %v175_v9 }
 0x23b   :  { %v279_v14 = vmul.f32 0.5, %v277_v12 }
 0x23d   :  { %v314_v15 = vpack.c.bf16 %v279_v14, %v278_v13 }
 0x23f   :  { %315 = vst [vmem:[%s505_s10] sm:$0xff] %v314_v15  }
 0x240   :  { %294 = vsyncpa [#allocation3], 1 }

// kernel: lxmert_meme_forward.5
= control target key start
LH: loop header
LB: loop body
LE: loop exit
PB: predicated region body
PF: predicated region fallthrough
CT: control target
= control target key end

     0   :  { %s5400_s0 = inlined_call_operand.hbm [shape: s32[2], index: 0, kind: input, shape index: {}]   ;;  %s5401_s1 = inlined_call_operand.vmem [shape: bf16[2,16,128], index: 1, kind: input, shape index: {}]   ;;  %s5402_s2 = inlined_call_operand.hbm [shape: bf16[2,2,128,384], index: 2, kind: input, shape index: {}]   ;;  %s5403_s3 = inlined_call_operand.vmem [shape: f32[2,2,1,384], index: 3, kind: input, shape index: {}]   ;;  %s5404_s4 = inlined_call_operand.hbm [shape: bf16[2,2,128,128], index: 4, kind: input, shape index: {}]   ;;  %s5405_s5 = inlined_call_operand.hbm [shape: f32[2,2,1,128], index: 5, kind: input, shape index: {}]   ;;  %s5406_s6 = inlined_call_operand.hbm [shape: f32[2,2,1,128], index: 6, kind: input, shape index: {}]   ;;  %s5407_s7 = inlined_call_operand.hbm [shape: f32[2,2,1,128], index: 7, kind: input, shape index: {}]   ;;  %s5408_s8 = inlined_call_operand.vmem [shape: bf16[2,2,128,256], index: 8, kind: input, shape index: {}]   ;;  %s5409_s9 = inlined_call_operand.vmem [shape: f32[2,2,1,256], index: 9, kind: input, shape index: {}]   ;;  %s5410_s10 = inlined_call_operand.hbm [shape: bf16[2,2,256,128], index: 10, kind: input, shape index: {}]   ;;  %s5411_s11 = inlined_call_operand.hbm [shape: f32[2,2,1,128], index: 11, kind: input, shape index: {}]   ;;  %s5412_s12 = inlined_call_operand.hbm [shape: f32[2,2,1,128], index: 12, kind: input, shape index: {}]   ;;  %s5413_s13 = inlined_call_operand.hbm [shape: f32[2,2,1,128], index: 13, kind: input, shape index: {}]   ;;  %s5414_s14 = inlined_call_operand.vmem [shape: bf16[2,16,128], index: 14, kind: output, shape index: {}]  }
   0x1   :  { %5435 = sst [smem:[#allocation35_spill]] %s5401_s1  ;;  %s4163_s15 = scalar_lea.hbm %s5400_s0, 16 }
   0x2   :  { %5436 = sst [smem:[#allocation36_spill]] %s5402_s2  ;;  %p4164_p0 = scmp.ne.s32.totalorder %s5400_s0, %s4163_s15 }
   0x3   :  { %5437 = sst [smem:[#allocation37_spill]] %s5403_s3  ;;  %p4167_p1 = scmp.lt.u32.totalorder %s4163_s15, %s5400_s0 }
   0x4   :  { %5438 = sst [smem:[#allocation38_spill]] %s5404_s4 }
   0x5   :  { %5439 = sst [smem:[#allocation39_spill]] %s5405_s5  ;;  %p4169_p2 = pnand %p4167_p1, %p4164_p0 }
   0x6   :  { %5440 = sst [smem:[#allocation40_spill]] %s5406_s6 }
   0x7   :  { %5441 = sst [smem:[#allocation41_spill]] %s5407_s7 }
   0x8   :  { %5442 = sst [smem:[#allocation42_spill]] %s5408_s8 }
   0x9   :  { %5443 = sst [smem:[#allocation43_spill]] %s5409_s9 }
   0xa   :  { %5444 = sst [smem:[#allocation44_spill]] %s5410_s10 }
   0xb   :  { %5445 = sst [smem:[#allocation45_spill]] %s5411_s11 }
   0xc   :  { %5446 = sst [smem:[#allocation46_spill]] %s5412_s12 }
   0xd   :  { %5447 = sst [smem:[#allocation47_spill]] %s5413_s13 }
   0xe   :  { %5448 = sst [smem:[#allocation48_spill]] %s5414_s14 }
   0xf   :  { %4172 = shalt.err (!%p4169_p2)  }
  0x10   :  { %s4529_s20 = smov [#allocation4]  }
  0x11   :  { %20 = dma.hbm_to_smem %s5400_s0, 16, %s4529_s20, [#allocation3] }
  0x12   :  { %4475 = dma.done.wait [#allocation3], 16 }
  0x13   :  { %4476 = vsyncadd [#allocation3], 4294967280 }
  0x14   :  { %22 = sfence }
  0x15   :  { %23 = vsyncpa [#allocation6], 0 }
  0x16   :  { %25 = vsyncpa [#allocation6 + $0x1], 0 }
  0x17   :  { %26 = vsyncpa [#allocation8], 0 }
  0x18   :  { %28 = vsyncpa [#allocation8 + $0x1], 0 }
  0x19   :  { %29 = vsyncpa [#allocation11], 0 }
  0x1a   :  { %31 = vsyncpa [#allocation11 + $0x1], 0 }
  0x1b   :  { %32 = vsyncpa [#allocation14], 0 }
  0x1c   :  { %34 = vsyncpa [#allocation14 + $0x1], 0 }
  0x1d   :  { %35 = vsyncpa [#allocation17], 0 }
  0x1e   :  { %37 = vsyncpa [#allocation17 + $0x1], 0  ;;  %s4636_s23 = smov 0   ;;  %s4638_s24 = smov 0  }
  0x1f   :  { %s4640_s25 = smov 0   ;;  %s4642_s0 = smov 0  }
  0x20   :  { %s4644_s26 = smov 0   ;;  %s4646_s27 = smov 0  }
  0x21   :  { %s4648_s28 = smov 0   ;;  %s4650_s29 = smov 0  }
  0x22 LB: > { %5449 = sst [smem:[#allocation25_spill]] %s4503_s24  ;;  %s5416_s30 = sadd.s32 4294967295, %s4527_s29   ;;  %s4527_s29 = sphi %s4650_s29, %s43_s29   ;;  %s4523_s28 = sphi %s4648_s28, %s5511_s28   ;;  %s4519_s27 = sphi %s4646_s27, %s5510_s27   ;;  %s4515_s26 = sphi %s4644_s26, %s5509_s26   ;;  %s4511_s0 = sphi %s4642_s0, %s5508_s0   ;;  %s4507_s25 = sphi %s4640_s25, %s5507_s25   ;;  %s4503_s24 = sphi %s4638_s24, %s5506_s24   ;;  %s4499_s23 = sphi %s4636_s23, %s5505_s23  }
  0x23   : > { %5450 = sst [smem:[#allocation26_spill]] %s4507_s25  ;;  %s52_s15 = sadd.s32 1, %s4519_s27 }
  0x24   : > { %5451 = sst [smem:[#allocation27_spill]] %s4511_s0  ;;  %p53_p3 = scmp.ge.s32.totalorder %s52_s15, 2 }
  0x25   : > { %5452 = sst [smem:[#allocation28_spill]] %s4515_s26  ;;  %s55_s16 = sadd.s32 1, %s4523_s28 }
  0x26   : > { %5453 = sst [smem:[#allocation29_spill]] %s4519_s27  ;;  %s90_s17 = sadd.s32 1, %s4507_s25 }
  0x27   : > { %5454 = sst [smem:[#allocation30_spill]] %s4523_s28  ;;  %p97_p4 = scmp.ne.s32.totalorder %s4507_s25, %s4503_s24 }
  0x28   : > { %5455 = sst [smem:[#allocation31_spill]] %s4527_s29  ;;  %s5513_s15 = smov (%p53_p3, %s52_s15), 0 }
  0x29   : > { %5456 = sst [smem:[#allocation32_spill]] %s5513_s15  ;;  %s5515_s16 = smov (!%p53_p3, %s55_s16), %s4523_s28 }
  0x2a   : > { %s86_s18 = ssub.s32 %s4519_s27, %s5513_s15  ;;  %p98_p5 = scmp.eq.s32.totalorder %s4527_s29, 0 }
  0x2b   : > { %p57_p6 = scmp.ge.s32.totalorder %s5515_s16, 2  ;;  %p103_p7 = scmp.ne.s32.totalorder %s4503_s24, %s4499_s23 }
  0x2c   : > { %p99_p8 = por %p98_p5, %p97_p4  ;;  %p104_p9 = scmp.eq.s32.totalorder %s5416_s30, 0 }
  0x2d   : > { %s5517_s16 = smov (%p57_p6, %s5515_s16), 0  ;;  %p3959_p11 = scmp.lt.s32.totalorder %s4527_s29, 4 }
  0x2e   : > { %5457 = sst [smem:[#allocation33_spill]] %s5517_s16  ;;  %p4691_p10 = por %p104_p9, %p103_p7 }
  0x2f   : > { %s85_s20 = ssub.s32 %s4523_s28, %s5517_s16  ;;  %s4699_s22 = sand.u32 1, %s4507_s25  }
  0x30   : > { %s5458_s19 = scalar_select %p4691_p10, 1, 0 }
  0x31   : > { %s87_s21 = sor.u32 %s86_s18, %s85_s20  ;;  %p4701_p13 = pnand %p3959_p11, %p99_p8 }
  0x32   : > { %p88_p12 = scmp.eq.s32.totalorder %s87_s21, 0  ;;  %s4706_s23 = sand.u32 1, %s4527_s29  }
  0x33   : > { %s5459_s15 = scalar_select %p4701_p13, 1, 0 }
  0x34   : > { %s3551_s30 = sshll.u32 %s4699_s22, 6  ;;  %s3552_s14 = sshll.u32 %s4519_s27, 4 }
  0x35   : > { %s4710_s9 = scalar_select %p88_p12, %s4507_s25, %s90_s17  }
  0x36   : > { %s3553_s8 = sshll.u32 %s4523_s28, 5  ;;  %s507_s16 = scalar_lea.vmem [#allocation7], %s3551_s30 }
  0x37   : > { %5460 = sst [smem:[#allocation34_spill]] %s4710_s9  ;;  %s516_s3 = sshll.u32 %s507_s16, 4  ;;  %s4714_s3 = int_to_ptr.vmem [resolvable:$true] %s516_s3 }
  0x38   : > { %s513_s18 = sadd.s32 %s3553_s8, %s3552_s14  ;;  %s5461_s4 = sld [smem:[#allocation38_spill]] }
  0x39   : > { %s3554_s20 = sshll.u32 %s513_s18, 6  ;;  %s5421_s26 = scalar_lea.sflag [#allocation8], %s4706_s23 }
  0x3a   : > { %p4726_p1 = pneg %p4701_p13 }
  0x3e   : > { %s4719_s0 = scalar_lea.hbm %s5461_s4, %s3554_s20  ;;  %s4178_s14 = scalar_lea.hbm %s5461_s4, 4096 }
  0x3f   : > { %s4173_s17 = scalar_lea.hbm %s4719_s0, 1024  ;;  %p4179_p4 = scmp.lt.u32.totalorder %s4719_s0, %s5461_s4 }
  0x40   : > { %p4174_p0 = scmp.ne.s32.totalorder %s4719_s0, %s4173_s17  ;;  %p4180_p5 = scmp.lt.u32.totalorder %s4178_s14, %s4173_s17 }
  0x41   : > { %p4182_p7 = scmp.lt.u32.totalorder %s4173_s17, %s4719_s0 }
  0x42   : > { %p4176_p2 = pnand %p4726_p1, %p4174_p0  ;;  %p4181_p6 = por %p4180_p5, %p4179_p4 }
  0x44   : > { %p4177_p3 = pneg %p4176_p2  ;;  %p4183_p8 = por %p4182_p7, %p4181_p6 }
  0x46   : > { %p4184_p9 = pnand %p4183_p8, %p4177_p3 }
  0x48   : > { %4187 = shalt.err (!%p4184_p9)
}
  0x49   : > { %s4188_s20 = scalar_lea.vmem %s4714_s3, 1024  ;;  %s4530_s21 = smov [#allocation7]  }
  0x4a   : > { %p4189_p11 = scmp.ne.s32.totalorder %s4714_s3, %s4188_s20  ;;  %s4193_s8 = sshll.u32 %s4530_s21, 4  ;;  %s4194_s8 = int_to_ptr.vmem [resolvable:$false] %s4193_s8 }
  0x4b   : > { %s4195_s1 = scalar_lea.vmem %s4194_s8, 2048  ;;  %p4196_p2 = scmp.lt.s32.totalorder %s4714_s3, %s4194_s8 }
  0x4c   : > { %p4191_p12 = pnand %p4189_p11, %p4726_p1  ;;  %p4197_p10 = scmp.lt.s32.totalorder %s4195_s1, %s4188_s20 }
  0x4e   : > { %p4192_p0 = pneg %p4191_p12  ;;  %p4198_p4 = por %p4197_p10, %p4196_p2 }
  0x50   : > { %p4199_p5 = pnand %p4198_p4, %p4192_p0 }
  0x52   : > { %4202 = shalt.err (!%p4199_p5)
}
  0x53   : > { %s5422_s17 = smov 64   ;;  %s5423_s14 = smov 4  }
  0x54   : > { %3937 = dma.hbm_to_vmem [thread:$0]  (!%p4701_p13), %s4719_s0, 1024, %s4714_s3, %s5421_s26, %s5422_s17, %s5422_s17, %s5423_s14  }
  0x55   : > { %p3571_p10 = scmp.ge.s32.totalorder %s4527_s29, 1  ;;  %p684_p3 = scmp.lt.s32.totalorder %s4527_s29, 5 }
  0x56   : > { %s3555_s16 = sshll.u32 %s4523_s28, 1  ;;  %s5464_s6 = sld [smem:[#allocation40_spill]] }
  0x57   : > { %p4757_p6 = pnand %p3571_p10, %p684_p3  ;;  %s534_s20 = sadd.s32 %s4519_s27, %s3555_s16 }
  0x58   : > { %s4762_s21 = sshll.u32 %s534_s20, 4  ;;  %s548_s3 = scalar_lea.vmem [#allocation10], %s4699_s22 }
  0x59   : > { %s5463_s18 = scalar_select %p4757_p6, 1, 0 }
  0x5a   : > { %s557_s0 = sshll.u32 %s548_s3, 4  ;;  %s558_s0 = int_to_ptr.vmem [resolvable:$true] %s557_s0 }
  0x5c   : > { %s4768_s4 = scalar_lea.hbm %s5464_s6, %s4762_s21  ;;  %s4208_s14 = scalar_lea.hbm %s5464_s6, 64 }
  0x5d   : > { %s4203_s17 = scalar_lea.hbm %s4768_s4, 16  ;;  %p4209_p11 = scmp.lt.u32.totalorder %s4768_s4, %s5464_s6 }
  0x5e   : > { %p4204_p7 = scmp.ne.s32.totalorder %s4768_s4, %s4203_s17  ;;  %p4210_p12 = scmp.lt.u32.totalorder %s4208_s14, %s4203_s17 }
  0x5f   : > { %p4212_p2 = scmp.lt.u32.totalorder %s4203_s17, %s4768_s4 }
  0x60   : > { %p4206_p8 = pnand %p4204_p7, %p4726_p1  ;;  %p4211_p0 = por %p4210_p12, %p4209_p11 }
  0x62   : > { %p4207_p9 = pneg %p4206_p8  ;;  %p4213_p4 = por %p4212_p2, %p4211_p0 }
  0x64   : > { %p4214_p5 = pnand %p4213_p4, %p4207_p9 }
  0x66   : > { %4217 = shalt.err (!%p4214_p5)
}
  0x67   : > { %s4218_s3 = scalar_lea.vmem %s558_s0, 16  ;;  %s4533_s26 = smov [#allocation10]  }
  0x68   : > { %p4219_p10 = scmp.ne.s32.totalorder %s558_s0, %s4218_s3  ;;  %s4223_s9 = sshll.u32 %s4533_s26, 4  ;;  %s4224_s9 = int_to_ptr.vmem [resolvable:$false] %s4223_s9 }
  0x69   : > { %s4225_s16 = scalar_lea.vmem %s4224_s9, 32  ;;  %p4226_p8 = scmp.lt.s32.totalorder %s558_s0, %s4224_s9 }
  0x6a   : > { %p4221_p3 = pnand %p4219_p10, %p4726_p1  ;;  %p4227_p6 = scmp.lt.s32.totalorder %s4225_s16, %s4218_s3 }
  0x6c   : > { %p4222_p7 = pneg %p4221_p3  ;;  %p4228_p13 = por %p4227_p6, %p4226_p8 }
  0x6e   : > { %p4229_p11 = pnand %p4228_p13, %p4222_p7 }
  0x70   : > { %4232 = shalt.err (!%p4229_p11)
}
  0x71   : > { %p5465_p12 = scmp.ne.s32.totalorder %s5459_s15, 0  ;;  %s5466_s17 = scalar_lea.sflag [#allocation11], %s4706_s23 }
  0x72   : > { %s3561_s14 = sshll.u32 %s4699_s22, 7  ;;  %s3562_s26 = sshll.u32 %s4519_s27, 5 }
  0x73   : > { %3943 = dma.hbm_to_vmem [thread:$0]  (!%p5465_p12), %s4768_s4, 16, %s558_s0, %s5466_s17  }
  0x74   : > { %s3563_s20 = sshll.u32 %s4523_s28, 6  ;;  %s610_s9 = scalar_lea.vmem [#allocation13], %s3561_s14 }
  0x75   : > { %s616_s8 = sadd.s32 %s3563_s20, %s3562_s26  ;;  %s619_s1 = sshll.u32 %s610_s9, 4  ;;  %s4794_s1 = int_to_ptr.vmem [resolvable:$true] %s619_s1 }
  0x76   : > { %s3564_s3 = sshll.u32 %s616_s8, 6  ;;  %s5467_s10 = sld [smem:[#allocation44_spill]] }
  0x77   : > { %s5429_s29 = scalar_lea.sflag [#allocation14], %s4706_s23 }
  0x7c   : > { %s4799_s25 = scalar_lea.hbm %s5467_s10, %s3564_s3  ;;  %s4238_s14 = scalar_lea.hbm %s5467_s10, 8192 }
  0x7d   : > { %s4233_s4 = scalar_lea.hbm %s4799_s25, 2048  ;;  %p4239_p0 = scmp.lt.u32.totalorder %s4799_s25, %s5467_s10 }
  0x7e   : > { %p4234_p13 = scmp.ne.s32.totalorder %s4799_s25, %s4233_s4  ;;  %p4240_p2 = scmp.lt.u32.totalorder %s4238_s14, %s4233_s4 }
  0x7f   : > { %p4242_p5 = scmp.lt.u32.totalorder %s4233_s4, %s4799_s25 }
  0x80   : > { %p4236_p6 = pnand %p4234_p13, %p4726_p1  ;;  %p4241_p4 = por %p4240_p2, %p4239_p0 }
  0x82   : > { %p4237_p9 = pneg %p4236_p6  ;;  %p4243_p10 = por %p4242_p5, %p4241_p4 }
  0x84   : > { %p4244_p3 = pnand %p4243_p10, %p4237_p9 }
  0x86   : > { %4247 = shalt.err (!%p4244_p3)
}
  0x87   : > { %s4248_s6 = scalar_lea.vmem %s4794_s1, 2048  ;;  %s4534_s8 = smov [#allocation13]  }
  0x88   : > { %p4249_p7 = scmp.ne.s32.totalorder %s4794_s1, %s4248_s6  ;;  %s4253_s9 = sshll.u32 %s4534_s8, 4  ;;  %s4254_s9 = int_to_ptr.vmem [resolvable:$false] %s4253_s9 }
  0x89   : > { %s4255_s3 = scalar_lea.vmem %s4254_s9, 4096  ;;  %p4256_p13 = scmp.lt.s32.totalorder %s4794_s1, %s4254_s9 }
  0x8a   : > { %p4251_p8 = pnand %p4249_p7, %p4726_p1  ;;  %p4257_p6 = scmp.lt.s32.totalorder %s4255_s3, %s4248_s6 }
  0x8c   : > { %p4252_p11 = pneg %p4251_p8  ;;  %p4258_p0 = por %p4257_p6, %p4256_p13 }
  0x8e   : > { %p4259_p2 = pnand %p4258_p0, %p4252_p11 }
  0x90   : > { %4262 = shalt.err (!%p4259_p2)
}
  0x91   : > { %s5468_s16 = smov 4   ;;  %s5469_s4 = smov 64  }
  0x92   : > { %3949 = dma.hbm_to_vmem [thread:$0]  (!%p5465_p12), %s4799_s25, 2048, %s4794_s1, %s5429_s29, %s5469_s4, %s5469_s4, %s5468_s16  }
  0x93   : > { %s5470_s12 = sld [smem:[#allocation46_spill]]  ;;  %s651_s26 = scalar_lea.vmem [#allocation16], %s4699_s22 }
  0x94   : > { %s660_s20 = sshll.u32 %s651_s26, 4  ;;  %s5430_s6 = scalar_lea.sflag [#allocation17], %s4706_s23  ;;  %s661_s20 = int_to_ptr.vmem [resolvable:$true] %s660_s20 }
  0x99   : > { %s4832_s14 = scalar_lea.hbm %s5470_s12, %s4762_s21  ;;  %s4268_s1 = scalar_lea.hbm %s5470_s12, 64 }
  0x9a   : > { %s4263_s8 = scalar_lea.hbm %s4832_s14, 16  ;;  %p4269_p10 = scmp.lt.u32.totalorder %s4832_s14, %s5470_s12 }
  0x9b   : > { %p4264_p9 = scmp.ne.s32.totalorder %s4832_s14, %s4263_s8  ;;  %p4270_p3 = scmp.lt.u32.totalorder %s4268_s1, %s4263_s8 }
  0x9c   : > { %p4272_p8 = scmp.lt.u32.totalorder %s4263_s8, %s4832_s14 }
  0x9d   : > { %p4266_p4 = pnand %p4264_p9, %p4726_p1  ;;  %p4271_p7 = por %p4270_p3, %p4269_p10 }
  0x9f   : > { %p4267_p5 = pneg %p4266_p4  ;;  %p4273_p11 = por %p4272_p8, %p4271_p7 }
  0xa1   : > { %p4274_p13 = pnand %p4273_p11, %p4267_p5 }
  0xa3   : > { %4277 = shalt.err (!%p4274_p13)
}
  0xa4   : > { %s4278_s4 = scalar_lea.vmem %s661_s20, 16  ;;  %s4535_s0 = smov [#allocation16]  }
  0xa5   : > { %p4279_p6 = scmp.ne.s32.totalorder %s661_s20, %s4278_s4  ;;  %s4283_s17 = sshll.u32 %s4535_s0, 4  ;;  %s4284_s17 = int_to_ptr.vmem [resolvable:$false] %s4283_s17 }
  0xa6   : > { %s4285_s26 = scalar_lea.vmem %s4284_s17, 32  ;;  %p4286_p9 = scmp.lt.s32.totalorder %s661_s20, %s4284_s17 }
  0xa7   : > { %p4281_p0 = pnand %p4279_p6, %p4726_p1  ;;  %p4287_p4 = scmp.lt.s32.totalorder %s4285_s26, %s4278_s4 }
  0xa9   : > { %p4282_p2 = pneg %p4281_p0  ;;  %p4288_p12 = por %p4287_p4, %p4286_p9 }
  0xab   : > { %p4289_p3 = pnand %p4288_p12, %p4282_p2 }
  0xad   : > { %4292 = shalt.err (!%p4289_p3)
}
  0xae   : > { %p5471_p10 = scmp.ne.s32.totalorder %s5459_s15, 0  ;;  %s3907_s8 = smul.u32 192, %s4699_s22 }
  0xaf   : > { %s3908_s9 = smul.u32 48, %s4519_s27  ;;  %s5472_s2 = sld [smem:[#allocation36_spill]] }
  0xb0   : > { %3955 = dma.hbm_to_vmem [thread:$0]  (!%p5471_p10), %s4832_s14, 16, %s661_s20, %s5430_s6  }
  0xb1   : > { %s3909_s25 = smul.u32 96, %s4523_s28  ;;  %s473_s1 = scalar_lea.vmem [#allocation5], %s3907_s8 }
  0xb2   : > { %s482_s3 = sshll.u32 %s473_s1, 4  ;;  %s5473_s5 = sld [smem:[#allocation39_spill]]  ;;  %s4858_s3 = int_to_ptr.vmem [resolvable:$true] %s482_s3 }
  0xb3   : > { %s479_s16 = sadd.s32 %s3909_s25, %s3908_s9  ;;  %s470_s20 = scalar_lea.sflag [#allocation6], %s4699_s22 }
  0xb4   : > { %s3550_s4 = sshll.u32 %s479_s16, 6 }
  0xb5   : > { %s4863_s26 = scalar_lea.hbm %s5472_s2, %s3550_s4  ;;  %s4298_s1 = scalar_lea.hbm %s5472_s2, 12288 }
  0xb6   : > { %s4293_s8 = scalar_lea.hbm %s4863_s26, 3072  ;;  %p4299_p8 = scmp.lt.u32.totalorder %s4863_s26, %s5472_s2 }
  0xb7   : > { %p4294_p12 = scmp.ne.s32.totalorder %s4863_s26, %s4293_s8  ;;  %p4300_p11 = scmp.lt.u32.totalorder %s4298_s1, %s4293_s8 }
  0xb8   : > { %s4869_s14 = scalar_lea.hbm %s5473_s5, %s4762_s21  ;;  %p4302_p6 = scmp.lt.u32.totalorder %s4293_s8, %s4863_s26 }
  0xb9   : > { %p4296_p5 = pnand %p4294_p12, %p4726_p1  ;;  %p4301_p13 = por %p4300_p11, %p4299_p8 }
  0xbb   : > { %p4297_p7 = pneg %p4296_p5  ;;  %p4303_p0 = por %p4302_p6, %p4301_p13 }
  0xbd   : > { %p4304_p2 = pnand %p4303_p0, %p4297_p7 }
  0xbf   : > { %4307 = shalt.err (!%p4304_p2)
}
  0xc0   : > { %s4308_s10 = scalar_lea.vmem %s4858_s3, 3072  ;;  %s4536_s29 = smov [#allocation5]  }
  0xc1   : > { %p4309_p9 = scmp.ne.s32.totalorder %s4858_s3, %s4308_s10  ;;  %s4313_s0 = sshll.u32 %s4536_s29, 4  ;;  %s4314_s0 = int_to_ptr.vmem [resolvable:$false] %s4313_s0 }
  0xc2   : > { %s4315_s17 = scalar_lea.vmem %s4314_s0, 6144  ;;  %p4316_p12 = scmp.lt.s32.totalorder %s4858_s3, %s4314_s0 }
  0xc3   : > { %p4311_p4 = pnand %p4309_p9, %p4726_p1  ;;  %p4317_p5 = scmp.lt.s32.totalorder %s4315_s17, %s4308_s10 }
  0xc5   : > { %p4312_p3 = pneg %p4311_p4  ;;  %p4318_p8 = por %p4317_p5, %p4316_p12 }
  0xc7   : > { %p4319_p11 = pnand %p4318_p8, %p4312_p3 }
  0xc9   : > { %4322 = shalt.err (!%p4319_p11)
}
  0xca   : > { %s4537_s8 = smov 192   ;;  %s4538_s9 = smov 12  }
  0xcb   : > { %3934 = dma.hbm_to_vmem [thread:$0]  (!%p5471_p10), %s4863_s26, 3072, %s4858_s3, %s470_s20, %s4537_s8, %s4537_s8, %s4538_s9  }
  0xcc   : > { %s529_s25 = scalar_lea.vmem [#allocation9], %s4699_s22  ;;  %s5474_s7 = sld [smem:[#allocation41_spill]] }
  0xcd   : > { %s538_s1 = sshll.u32 %s529_s25, 4  ;;  %s4323_s29 = scalar_lea.hbm %s4869_s14, 16  ;;  %s539_s1 = int_to_ptr.vmem [resolvable:$true] %s538_s1 }
  0xce   : > { %p4324_p7 = scmp.ne.s32.totalorder %s4869_s14, %s4323_s29  ;;  %s4328_s6 = scalar_lea.hbm %s5473_s5, 64 }
  0xcf   : > { %p4329_p0 = scmp.lt.u32.totalorder %s4869_s14, %s5473_s5  ;;  %p4330_p2 = scmp.lt.u32.totalorder %s4328_s6, %s4323_s29 }
  0xd0   : > { %p4326_p13 = pnand %p4324_p7, %p4726_p1  ;;  %p4332_p4 = scmp.lt.u32.totalorder %s4323_s29, %s4869_s14 }
  0xd1   : > { %p4331_p9 = por %p4330_p2, %p4329_p0 }
  0xd2   : > { %s4900_s10 = scalar_lea.hbm %s5474_s7, %s4762_s21  ;;  %p4327_p6 = pneg %p4326_p13 }
  0xd3   : > { %p4333_p3 = por %p4332_p4, %p4331_p9 }
  0xd5   : > { %p4334_p12 = pnand %p4333_p3, %p4327_p6 }
  0xd7   : > { %4337 = shalt.err (!%p4334_p12)
}
  0xd8   : > { %s4338_s3 = scalar_lea.vmem %s539_s1, 16  ;;  %s4539_s26 = smov [#allocation9]  }
  0xd9   : > { %p4339_p5 = scmp.ne.s32.totalorder %s539_s1, %s4338_s3  ;;  %s4343_s20 = sshll.u32 %s4539_s26, 4  ;;  %s4344_s20 = int_to_ptr.vmem [resolvable:$false] %s4343_s20 }
  0xda   : > { %s4345_s8 = scalar_lea.vmem %s4344_s20, 32  ;;  %p4346_p7 = scmp.lt.s32.totalorder %s539_s1, %s4344_s20 }
  0xdb   : > { %p4341_p8 = pnand %p4339_p5, %p4726_p1  ;;  %p4347_p13 = scmp.lt.s32.totalorder %s4345_s8, %s4338_s3 }
  0xdd   : > { %p4342_p11 = pneg %p4341_p8  ;;  %p4348_p10 = por %p4347_p13, %p4346_p7 }
  0xdf   : > { %p4349_p0 = pnand %p4348_p10, %p4342_p11 }
  0xe1   : > { %4352 = shalt.err (!%p4349_p0)
}
  0xe2   : > { %p5475_p2 = scmp.ne.s32.totalorder %s5459_s15, 0  ;;  %s5476_s2 = scalar_lea.sflag [#allocation8], %s4706_s23 }
  0xe3   : > { %s567_s12 = scalar_lea.vmem [#allocation12], %s4699_s22  ;;  %s5477_s11 = sld [smem:[#allocation45_spill]] }
  0xe4   : > { %3940 = dma.hbm_to_vmem [thread:$0]  (!%p5475_p2), %s4869_s14, 16, %s539_s1, %s5476_s2  }
  0xe5   : > { %s576_s6 = sshll.u32 %s567_s12, 4  ;;  %s4353_s4 = scalar_lea.hbm %s4900_s10, 16  ;;  %s577_s6 = int_to_ptr.vmem [resolvable:$true] %s576_s6 }
  0xe6   : > { %p4354_p10 = scmp.ne.s32.totalorder %s4900_s10, %s4353_s4  ;;  %s4358_s17 = scalar_lea.hbm %s5474_s7, 64 }
  0xe7   : > { %p4359_p4 = scmp.lt.u32.totalorder %s4900_s10, %s5474_s7  ;;  %p4360_p3 = scmp.lt.u32.totalorder %s4358_s17, %s4353_s4 }
  0xe8   : > { %p4356_p6 = pnand %p4354_p10, %p4726_p1  ;;  %p4362_p5 = scmp.lt.u32.totalorder %s4353_s4, %s4900_s10 }
  0xe9   : > { %s4926_s16 = scalar_lea.hbm %s5477_s11, %s4762_s21  ;;  %p4361_p12 = por %p4360_p3, %p4359_p4 }
  0xea   : > { %p4357_p9 = pneg %p4356_p6 }
  0xeb   : > { %p4363_p8 = por %p4362_p5, %p4361_p12 }
  0xed   : > { %p4364_p11 = pnand %p4363_p8, %p4357_p9 }
  0xef   : > { %4367 = shalt.err (!%p4364_p11)
}
  0xf0   : > { %s4368_s14 = scalar_lea.vmem %s577_s6, 16  ;;  %s4540_s1 = smov [#allocation12]  }
  0xf1   : > { %p4369_p7 = scmp.ne.s32.totalorder %s577_s6, %s4368_s14  ;;  %s4373_s20 = sshll.u32 %s4540_s1, 4  ;;  %s4374_s20 = int_to_ptr.vmem [resolvable:$false] %s4373_s20 }
  0xf2   : > { %s4375_s8 = scalar_lea.vmem %s4374_s20, 32  ;;  %p4376_p10 = scmp.lt.s32.totalorder %s577_s6, %s4374_s20 }
  0xf3   : > { %p4371_p13 = pnand %p4369_p7, %p4726_p1  ;;  %p4377_p6 = scmp.lt.s32.totalorder %s4375_s8, %s4368_s14 }
  0xf5   : > { %p4372_p0 = pneg %p4371_p13  ;;  %p4378_p2 = por %p4377_p6, %p4376_p10 }
  0xf7   : > { %p4379_p3 = pnand %p4378_p2, %p4372_p0 }
  0xf9   : > { %4382 = shalt.err (!%p4379_p3)
}
  0xfa   : > { %p5478_p4 = scmp.ne.s32.totalorder %s5459_s15, 0  ;;  %s5479_s2 = scalar_lea.sflag [#allocation11], %s4706_s23 }
  0xfb   : > { %s632_s12 = scalar_lea.vmem [#allocation15], %s4699_s22  ;;  %s5480_s13 = sld [smem:[#allocation47_spill]] }
  0xfc   : > { %3946 = dma.hbm_to_vmem [thread:$0]  (!%p5478_p4), %s4900_s10, 16, %s577_s6, %s5479_s2  }
  0xfd   : > { %s641_s9 = sshll.u32 %s632_s12, 4  ;;  %s4383_s0 = scalar_lea.hbm %s4926_s16, 16  ;;  %s642_s9 = int_to_ptr.vmem [resolvable:$true] %s641_s9 }
  0xfe   : > { %p4384_p2 = scmp.ne.s32.totalorder %s4926_s16, %s4383_s0  ;;  %s4388_s26 = scalar_lea.hbm %s5477_s11, 64 }
  0xff   : > { %p4389_p5 = scmp.lt.u32.totalorder %s4926_s16, %s5477_s11  ;;  %p4390_p8 = scmp.lt.u32.totalorder %s4388_s26, %s4383_s0 }
 0x100   : > { %p4386_p9 = pnand %p4384_p2, %p4726_p1  ;;  %p4392_p7 = scmp.lt.u32.totalorder %s4383_s0, %s4926_s16 }
 0x101   : > { %s4952_s29 = scalar_lea.hbm %s5480_s13, %s4762_s21  ;;  %p4391_p11 = por %p4390_p8, %p4389_p5 }
 0x102   : > { %p4387_p12 = pneg %p4386_p9 }
 0x103   : > { %p4393_p13 = por %p4392_p7, %p4391_p11 }
 0x105   : > { %p4394_p0 = pnand %p4393_p13, %p4387_p12 }
 0x107   : > { %4397 = shalt.err (!%p4394_p0)
}
 0x108   : > { %s4398_s21 = scalar_lea.vmem %s642_s9, 16  ;;  %s4541_s10 = smov [#allocation15]  }
 0x109   : > { %p4399_p10 = scmp.ne.s32.totalorder %s642_s9, %s4398_s21  ;;  %s4403_s6 = sshll.u32 %s4541_s10, 4  ;;  %s4404_s6 = int_to_ptr.vmem [resolvable:$false] %s4403_s6 }
 0x10a   : > { %s4405_s20 = scalar_lea.vmem %s4404_s6, 32  ;;  %p4406_p2 = scmp.lt.s32.totalorder %s642_s9, %s4404_s6 }
 0x10b   : > { %p4401_p6 = pnand %p4399_p10, %p4726_p1  ;;  %p4407_p9 = scmp.lt.s32.totalorder %s4405_s20, %s4398_s21 }
 0x10d   : > { %p4402_p3 = pneg %p4401_p6  ;;  %p4408_p4 = por %p4407_p9, %p4406_p2 }
 0x10f   : > { %p4409_p5 = pnand %p4408_p4, %p4402_p3 }
 0x111   : > { %4412 = shalt.err (!%p4409_p5)
}
 0x112   : > { %p5481_p8 = scmp.ne.s32.totalorder %s5459_s15, 0  ;;  %s5482_s8 = scalar_lea.sflag [#allocation14], %s4706_s23 }
 0x113   : > { %s670_s2 = scalar_lea.vmem [#allocation18], %s4699_s22  ;;  %s4413_s25 = scalar_lea.hbm %s4952_s29, 16 }
 0x114   : > { %3952 = dma.hbm_to_vmem [thread:$0]  (!%p5481_p8), %s4926_s16, 16, %s642_s9, %s5482_s8  }
 0x115   : > { %s679_s12 = sshll.u32 %s670_s2, 4  ;;  %p4414_p12 = scmp.ne.s32.totalorder %s4952_s29, %s4413_s25  ;;  %s680_s12 = int_to_ptr.vmem [resolvable:$true] %s679_s12 }
 0x116   : > { %s4418_s17 = scalar_lea.hbm %s5480_s13, 64  ;;  %p4419_p7 = scmp.lt.u32.totalorder %s4952_s29, %s5480_s13 }
 0x117   : > { %p4416_p4 = pnand %p4414_p12, %p4726_p1  ;;  %p4420_p13 = scmp.lt.u32.totalorder %s4418_s17, %s4413_s25 }
 0x118   : > { %p4422_p10 = scmp.lt.u32.totalorder %s4413_s25, %s4952_s29 }
 0x119   : > { %p4417_p11 = pneg %p4416_p4  ;;  %p4421_p0 = por %p4420_p13, %p4419_p7 }
 0x11b   : > { %p4423_p6 = por %p4422_p10, %p4421_p0 }
 0x11d   : > { %p4424_p3 = pnand %p4423_p6, %p4417_p11 }
 0x11f   : > { %4427 = shalt.err (!%p4424_p3)
}
 0x120   : > { %s4428_s22 = scalar_lea.vmem %s680_s12, 16  ;;  %s4542_s16 = smov [#allocation18]  }
 0x121   : > { %p4429_p2 = scmp.ne.s32.totalorder %s680_s12, %s4428_s22  ;;  %s4433_s9 = sshll.u32 %s4542_s16, 4  ;;  %s4434_s9 = int_to_ptr.vmem [resolvable:$false] %s4433_s9 }
 0x122   : > { %s4435_s14 = scalar_lea.vmem %s4434_s9, 32  ;;  %p4436_p12 = scmp.lt.s32.totalorder %s680_s12, %s4434_s9 }
 0x123   : > { %p4431_p9 = pnand %p4429_p2, %p4726_p1  ;;  %p4437_p4 = scmp.lt.s32.totalorder %s4435_s14, %s4428_s22 }
 0x125   : > { %p4432_p5 = pneg %p4431_p9  ;;  %p4438_p8 = por %p4437_p4, %p4436_p12 }
 0x127   : > { %p4439_p7 = pnand %p4438_p8, %p4432_p5 }
 0x129   : > { %4442 = shalt.err (!%p4439_p7)
}
 0x12a   : > { %p5483_p13 = scmp.ne.s32.totalorder %s5459_s15, 0  ;;  %s5484_s1 = scalar_lea.sflag [#allocation17], %s4706_s23 }
 0x12b   : > { %p5485_p11 = scmp.ne.s32.totalorder %s5463_s18, 0 }
 0x12c   : > { %3958 = dma.hbm_to_vmem [thread:$0]  (!%p5483_p13), %s4952_s29, 16, %s680_s12, %s5484_s1  }
 0x12d   : > { %688 = sbr.rel (%p5485_p11) target bundleno = 4287 (0x10bf), region = 72  ;;  %s4996_s30 = sand.u32 (!%p5485_p11), 1, %s4503_s24  }
 0x12e   : > { %s3910_s21 = smul.u32 (!%p5485_p11), 192, %s4996_s30  ;;  %s691_s10 = scalar_lea.sflag (!%p5485_p11), [#allocation6], %s4996_s30 }
 0x12f   : > { %p5486_p1 = scmp.ne.s32.totalorder (!%p5485_p11), %s5458_s19, 0 }
 0x130   : > { %s5000_s6 = scalar_lea.vmem (!%p5485_p11), [#allocation5], %s3910_s21 }
 0x134   : > { %4478 = dma.done.wait (%p5486_p1), %s691_s10, 3072  }
 0x135   : > { %4480 = vsyncadd (%p5486_p1), %s691_s10, 4294964224  ;;  %s5487_s15 = sld [smem:[#allocation31_spill]]  ;;  %s3572_s29 = sshll.u32 %s4996_s30, 6 }
 0x136   : > { %s5009_s8 = scalar_lea.vmem [#allocation7], %s3572_s29 }
 0x13b   : > { %s5488_s23 = sadd.s32 4294967295, %s5487_s15  }
 0x13c   : > { %s699_s18 = sand.u32 1, %s5488_s23  }
 0x13d   : > { %s700_s20 = scalar_lea.sflag [#allocation8], %s699_s18 }
 0x13e   : > { %4482 = dma.done.wait (%p5486_p1), %s700_s20, 1040  }
 0x13f   : > { %4484 = vsyncadd (%p5486_p1), %s700_s20, 4294966256  ;;  %s717_s12 = scalar_lea.sflag [#allocation11], %s699_s18 }
 0x140   : > { %4486 = dma.done.wait (%p5486_p1), %s717_s12, 32  }
 0x141   : > { %4488 = vsyncadd (%p5486_p1), %s717_s12, 4294967264  ;;  %s3573_s4 = sshll.u32 %s4996_s30, 7  ;;  %s733_s17 = scalar_lea.sflag [#allocation14], %s699_s18 }
 0x142   : > { %s5023_s3 = scalar_lea.vmem [#allocation13], %s3573_s4 }
 0x143   : > { %4490 = dma.done.wait (%p5486_p1), %s733_s17, 2064  }
 0x144   : > { %4492 = vsyncadd (%p5486_p1), %s733_s17, 4294965232  ;;  %s750_s22 = scalar_lea.sflag [#allocation17], %s699_s18 }
 0x145   : > { %4494 = dma.done.wait (%p5486_p1), %s750_s22, 32  }
 0x146   : > { %4496 = vsyncadd (%p5486_p1), %s750_s22, 4294967264  ;;  %s5489_s9 = sld [smem:[#allocation28_spill]]  ;;  %s5490_s14 = sld [smem:[#allocation27_spill]] }
 0x147   : > { %s5491_s29 = sld [smem:[#allocation35_spill]]  ;;  %s5492_s0 = sld [smem:[#allocation37_spill]] }
 0x148   : > { %s5493_s11 = sld [smem:[#allocation42_spill]]  ;;  %s5494_s27 = sld [smem:[#allocation48_spill]] }
 0x149   : > { %s5495_s26 = sld [smem:[#allocation43_spill]]  ;;  %s760_s16 = scalar_lea.vmem [#allocation18], %s4996_s30 }
 0x14c   : > { %p867_p8 = scmp.lt.s32.totalorder %s5489_s9, 1  ;;  %s5037_s1 = sld [smem:[#allocation4 + %s5489_s9]] }
 0x14d   : > { %p874_p0 = scmp.lt.s32.totalorder %s5490_s14, 1  ;;  %p3583_p10 = scmp.ne.s32.totalorder %s5490_s14, 0 }
 0x14e   : > { %s5519_s9 = smov (!%p867_p8, %s5489_s9), 1 }
 0x14f   : > { %s875_s21 = scalar_select %p874_p0, %s5490_s14, 1 }
 0x150   : > { %s3687_s10 = sshll.u32 %s5519_s9, 3  ;;  %s3912_s15 = smul.u32 6, %s5519_s9 }
 0x151   : > { %s871_s20 = scalar_lea.vmem %s5491_s29, %s3687_s10  ;;  %s3911_s19 = smul.u32 3, %s875_s21 }
 0x152   : > { %s3576_s12 = sshll.u32 %s875_s21, 5  ;;  %s3577_s4 = sshll.u32 %s5519_s9, 6  ;;  %v3692_v0 = vld [vmem:[%s871_s20] sm:$0xff] (!%p3583_p10)  }
 0x153   : > { %s5045_s17 = sadd.s32 %s3912_s15, %s3911_s19  ;;  %s886_s22 = sadd.s32 %s3577_s4, %s3576_s12  ;;  %v3693_v1 = vunpack.c.l.bf16 (!%p3583_p10), %v3692_v0  ;;  %v3694_v2 = vunpack.c.h.bf16 (!%p3583_p10), %v3692_v0 }
 0x154   : > { %s879_s25 = scalar_lea.vmem %s5492_s0, %s5045_s17  ;;  %s3578_s2 = sshll.u32 %s886_s22, 2 }
 0x155   : > { %s5054_s13 = scalar_lea.vmem %s5493_s11, %s3578_s2  ;;  %s3579_s28 = sshll.u32 %s875_s21, 1  ;;  %912 = vst [vmem:[#allocation2] sm:$0xff] (!%p3583_p10), %v3693_v1  ;;  %913 = vst [vmem:[#allocation2 + $0x8] sm:$0xff] (!%p3583_p10), %v3694_v2 }
 0x156   : > { %s3580_s23 = sshll.u32 %s5519_s9, 2  ;;  %s5059_s24 = scalar_lea.vmem %s5494_s27, %s3687_s10 }
 0x157   : > { %s5061_s15 = sadd.s32 %s3580_s23, %s3579_s28  ;;  %907 = sbr.rel (%p3583_p10) target bundleno = 350 (0x15e), region = 112 }
 0x158   : > { %s896_s0 = scalar_lea.vmem %s5495_s26, %s5061_s15 }
 0x15e PF: > { %s5496_s5 = sld [smem:[#allocation27_spill]] }
 0x164   : > { %p3584_p6 = scmp.ge.s32.totalorder %s5496_s5, %s5037_s1 }
 0x165   : > { %v4035_v3 = vld [vmem:[%s5000_s6 + $0x4] ss:$12 sps:$4 sm:$0xff] (!%p3584_p6)   ;;  %v4037_v4 = vld [vmem:[%s5000_s6] ss:$12 sps:$4 sm:$0xff] (!%p3584_p6)   ;;  %v4543_v5 = vmov (!%p3584_p6), 0   ;;  %v4544_v6 = vmov (!%p3584_p6), 0.0   ;;  %v955_v32 = vlaneseq (!%p3584_p6) }
 0x166   : > { %917 = sbr.rel (%p3584_p6) target bundleno = 4287 (0x10bf), region = 116  ;;  %1130 = vmatprep.mubr.bf16.mxu0 (!%p3584_p6), %v4543_v5  ;;  %3775 = vmatprep.subr.bf16.mxu1 (!%p3584_p6), %v4544_v6  ;;  %v4038_v7 = vld [vmem:[%s5000_s6 + $0x1c] ss:$12 sps:$4 sm:$0xff] (!%p3584_p6)   ;;  %vm4545_vm0 = vmmov (!%p3584_p6), 0   ;;  %v4040_v8 = vld [vmem:[%s5000_s6 + $0x18] ss:$12 sps:$4 sm:$0xff] (!%p3584_p6)  }
 0x167   : > { %1098 = vmatprep.subr.bf16.mxu0 (!%p3584_p6), %v4035_v3  ;;  %3791 = vmatprep.mubr.msk.bf16.mxu1 (!%p3584_p6), %vm4545_vm0, %v4544_v6  ;;  %v4041_v9 = vld [vmem:[%s5000_s6 + $0x34] ss:$12 sps:$4 sm:$0xff] (!%p3584_p6)   ;;  %v4043_v10 = vld [vmem:[%s5000_s6 + $0x30] ss:$12 sps:$4 sm:$0xff] (!%p3584_p6)   ;;  %v4044_v11 = vld [vmem:[%s5000_s6 + $0x4c] ss:$12 sps:$4 sm:$0xff] (!%p3584_p6)  }
 0x168   : > { %1099 = vmatpush1.bf16.msra.mxu0 (!%p3584_p6), %v4037_v4  ;;  %v4046_v12 = vld [vmem:[%s5000_s6 + $0x48] ss:$12 sps:$4 sm:$0xff] (!%p3584_p6)   ;;  %v4047_v13 = vld [vmem:[%s5000_s6 + $0x64] ss:$12 sps:$4 sm:$0xff] (!%p3584_p6)   ;;  %v4060_v15 = vld [vmem:[%s5000_s6 + $0x20] ss:$12 sps:$4 sm:$0xff] (!%p3584_p6)  }
 0x169   : > { %1100 = vmatprep.subr.bf16.mxu0 (!%p3584_p6), %v4038_v7  ;;  %v4059_v14 = vld [vmem:[%s5000_s6 + $0x8] ss:$12 sps:$4 sm:$0xff] (!%p3584_p6)   ;;  %v4049_v16 = vld [vmem:[%s5000_s6 + $0x60] ss:$12 sps:$4 sm:$0xff] (!%p3584_p6)   ;;  %v4061_v18 = vld [vmem:[%s5000_s6 + $0x38] ss:$12 sps:$4 sm:$0xff] (!%p3584_p6)  }
 0x16a   : > { %3776 = vmatpush3.bf16.msra.mxu1 (!%p3584_p6), %v4059_v14  ;;  %v4050_v17 = vld [vmem:[%s5000_s6 + $0x7c] ss:$12 sps:$4 sm:$0xff] (!%p3584_p6)   ;;  %v4052_v19 = vld [vmem:[%s5000_s6 + $0x78] ss:$12 sps:$4 sm:$0xff] (!%p3584_p6)   ;;  %v4053_v20 = vld [vmem:[%s5000_s6 + $0x94] ss:$12 sps:$4 sm:$0xff] (!%p3584_p6)  }
 0x16b   : > { %3777 = vmatprep.subr.bf16.mxu1 (!%p3584_p6), %v4544_v6  ;;  %v4062_v21 = vld [vmem:[%s5000_s6 + $0x50] ss:$12 sps:$4 sm:$0xff] (!%p3584_p6)   ;;  %v4056_v23 = vld [vmem:[%s5000_s6 + $0xac] ss:$12 sps:$4 sm:$0xff] (!%p3584_p6)   ;;  %v4063_v24 = vld [vmem:[%s5000_s6 + $0x68] ss:$12 sps:$4 sm:$0xff] (!%p3584_p6)  }
 0x16c   : > { %1101 = vmatpush1.bf16.msra.mxu0 (!%p3584_p6), %v4040_v8  ;;  %v4055_v22 = vld [vmem:[%s5000_s6 + $0x90] ss:$12 sps:$4 sm:$0xff] (!%p3584_p6)   ;;  %v4058_v25 = vld [vmem:[%s5000_s6 + $0xa8] ss:$12 sps:$4 sm:$0xff] (!%p3584_p6)   ;;  %v4064_v28 = vld [vmem:[%s5000_s6 + $0x80] ss:$12 sps:$4 sm:$0xff] (!%p3584_p6)  }
 0x16d   : > { %1102 = vmatprep.subr.bf16.mxu0 %v4041_v9  ;;  %v5099_v26 = vld [vmem:[#allocation2] sm:$0xff]  ;;  %v5101_v27 = vld [vmem:[#allocation2 + $0x8] sm:$0xff]  ;;  %v5118_v33 = vshrl.u32 %v955_v32, 7  ;;  %vm1198_vm1 = vcmask 261120   ;;  %s4546_s28 = smov 96   ;;  %vm1353_vm2 = vcmask 64512  }
 0x16e   : > { %3778 = vmatpush3.bf16.msra.mxu1 %v4060_v15  ;;  %v952_v29 = vpack.c.bf16 %v5101_v27, %v5099_v26  ;;  %v4065_v30 = vld [vmem:[%s5000_s6 + $0x98] ss:$12 sps:$4 sm:$0xff]   ;;  %v4066_v31 = vld [vmem:[%s5000_s6 + $0xb0] ss:$12 sps:$4 sm:$0xff]   ;;  %s4547_s6 = smov 64   ;;  %s4548_s2 = smov 32  }
 0x16f   : > { %3779 = vmatprep.subr.bf16.mxu1 %v4544_v6  ;;  %v961_v34 = vsub.s32 1, %v5118_v33  ;;  %v953_v35 = vld [vmem:[%s879_s25] sm:$0x7]  ;;  %v957_v36 = vsub.s32 0, %v5118_v33  ;;  %v965_v45 = vsub.s32 2, %v5118_v33  ;;  %s5499_s25 = scalar_lea.vmem [#allocation10], %s4996_s30 }
 0x170   : > { %1103 = vmatpush1.bf16.msra.mxu0 %v4043_v10  ;;  %s5503_s21 = scalar_lea.vmem [#allocation16], %s4996_s30 }
 0x171   : > { %1104 = vmatprep.subr.bf16.mxu0 %v4044_v11  ;;  %v962_v37 = vrot.slane %v953_v35, %v961_v34  ;;  %v958_v39 = vrot.slane %v953_v35, %v957_v36  ;;  %v966_v48 = vrot.slane %v953_v35, %v965_v45 }
 0x172   : > { %3780 = vmatpush3.bf16.msra.mxu1 %v4061_v18 }
 0x173   : > { %3781 = vmatprep.subr.bf16.mxu1 %v4544_v6 }
 0x174   : > { %1105 = vmatpush1.bf16.msra.mxu0 %v4046_v12 }
 0x175   : > { %1106 = vmatprep.subr.bf16.mxu0 %v4047_v13 }
 0x176   : > { %3782 = vmatpush3.bf16.msra.mxu1 %v4062_v21 }
 0x177   : > { %3783 = vmatprep.subr.bf16.mxu1 %v4544_v6 }
 0x178   : > { %1107 = vmatpush1.bf16.msra.mxu0 %v4049_v16 }
 0x179   : > { %1108 = vmatprep.subr.bf16.mxu0 %v4050_v17 }
 0x17a   : > { %3784 = vmatpush3.bf16.msra.mxu1 %v4063_v24 }
 0x17b   : > { %3785 = vmatprep.subr.bf16.mxu1 %v4544_v6 }
 0x17c   : > { %1109 = vmatpush1.bf16.msra.mxu0 %v4052_v19 }
 0x17d   : > { %1110 = vmatprep.subr.bf16.mxu0 %v4053_v20 }
 0x17e   : > { %3786 = vmatpush3.bf16.msra.mxu1 %v4064_v28 }
 0x17f   : > { %3787 = vmatprep.subr.bf16.mxu1 %v4544_v6 }
 0x180   : > { %1111 = vmatpush1.bf16.msra.mxu0 %v4055_v22 }
 0x181   : > { %1112 = vmatprep.subr.bf16.mxu0 %v4056_v23 }
 0x182   : > { %3788 = vmatpush3.bf16.msra.mxu1 %v4065_v30 }
 0x183   : > { %3789 = vmatprep.subr.bf16.mxu1 %v4544_v6 }
 0x184   : > { %1113 = vmatpush1.bf16.msra.mxu0 %v4058_v25 }
 0x185   : > { %3795 = vmatprep.subr.mxu0 %v4544_v6 }
 0x186   : > { %3790 = vmatpush3.bf16.msra.mxu1 %v4066_v31 }
 0x187   : > { %1131 = vmatmul.mubr.bf16.vlgmr.msra.gmra.mrb[0].mxu0 %v952_v29  ;;  %3800 = vmatprep.subr.mxu1 %v4544_v6 }
 0x188   : > { %3797 = vmatprep.mubr.msk.f32.mxu0 %vm4545_vm0, %v4544_v6 }
 0x189   : > { %3792 = vmatmul.mubr.bf16.vlgmr.msra.gmra.mrb[0].mxu1 %v952_v29 }
 0x18a   : > { %3802 = vmatprep.mubr.msk.f32.mxu1 %vm4545_vm0, %v4544_v6 }
 0x25a   : > { %v1132_v38 = vpop.f32.mrb[0].mxu0 }
 0x25b   : > { %v1134_v40 = vpop.f32.mrb[1].mxu0  ;;  %v5138_v46 = vadd.f32 %v1132_v38, %v958_v39 }
 0x25c   : > { %v5131_v41 = vadd.f32 %v1134_v40, %v962_v37  ;;  %v1136_v42 = vpop.f32.mrb[2].mxu0  ;;  %v1175_v49 = vpop.f32.mrb[0].mxu1 }
 0x25d   : > { %v1138_v43 = vpop.f32.mrb[3].mxu0  ;;  %v5145_v47 = vadd.f32 %v1136_v42, %v958_v39  ;;  %v5158_v50 = vadd.f32 %v1175_v49, %v966_v48  ;;  %v3793_v51 = vpop.f32.mrb[1].mxu1 }
 0x25e   : > { %v5133_v44 = vadd.f32 %v1138_v43, %v962_v37  ;;  %3796 = vmatpush3.xpose.msk.msra.mxu0 %vm1198_vm1, %v5131_v41  ;;  %v1178_v52 = vpop.f32.mrb[2].mxu1 }
 0x25f   : > { %3805 = vmatprep.subr.mxu0 %v4544_v6  ;;  %v5160_v53 = vadd.f32 %v1178_v52, %v966_v48  ;;  %v3794_v54 = vpop.f32.mrb[3].mxu1 }
 0x260   : > { %1603 = vrot.lane.b32.xlu1 %v5133_v44, %s4546_s28  ;;  %3801 = vmatpush3.xpose.msk.msra.mxu1 %vm1198_vm1, %v5133_v44 }
 0x261   : > { %3798 = vmatmul.mubr.msk.f32.vlgmr.msra.gmra.mrb[4].mxu0 %vm1198_vm1, %v5138_v46  ;;  %3810 = vmatprep.subr.mxu1 %v4544_v6 }
 0x262   : > { %3807 = vmatprep.mubr.msk.f32.mxu0 %vm4545_vm0, %v4544_v6  ;;  %3806 = vmatpush3.msra.mxu0 %v5158_v50 }
 0x263   : > { %3803 = vmatmul.mubr.msk.f32.vlgmr.msra.gmra.mrb[4].mxu1 %vm1198_vm1, %v5145_v47  ;;  %3815 = vmatprep.subr.mxu0 %v4544_v6 }
 0x264   : > { %1523 = vrot.lane.b32.xlu1 %v5138_v46, %s4546_s28  ;;  %3812 = vmatprep.mubr.msk.f32.mxu1 %vm4545_vm0, %v4544_v6 }
 0x265   : > { %3811 = vmatpush3.msra.mxu1 %v5160_v53 }
 0x266   : > { %3820 = vmatprep.subr.mxu1 %v4544_v6 }
 0x2d2   : > { %v1604_v11 = vpop.permute.xlu1 %1603 }
 0x2d6   : > { %v1524_v12 = vpop.permute.xlu1 %1523 }
 0x334   : > { %v1271_v55 = vpop.f32.mrb[4].mxu0 }
 0x335   : > { %v1351_v56 = vmul.f32 0.17677669, %v1271_v55  ;;  %v3799_v57 = vpop.f32.mrb[5].mxu0 }
 0x336   : > { %v1347_v58 = vpop.f32.mrb[4].mxu1 }
 0x337   : > { %v1352_v59 = vmul.f32 0.17677669, %v1347_v58  ;;  %v3804_v60 = vpop.f32.mrb[5].mxu1  ;;  %v1354_v61 = vsel %vm1353_vm2, %v1351_v56, -inf }
 0x338   : > { %1355 = vmax.xlane.f32.xlu0 %v1354_v61  ;;  %v4069_v60 = vld [vmem:[%s5009_s8 + $0x10] sm:$0xff]  }
 0x339   : > { %v1357_v62 = vsel %vm1353_vm2, %v1352_v59, -inf }
 0x33c   : > { %1358 = vmax.xlane.f32.xlu0 %v1357_v62 }
 0x352   : > { %1525 = vrot.lane.b32.xlu0 %v5131_v41, %s4546_s28 }
 0x3c5   : > { %v1356_v63 = vpop.xlane.xlu0 %1355 }
 0x3c6   : > { %v1360_v0 = vsub.f32 %v1351_v56, %v1356_v63  ;;  %v4067_v63 = vld [vmem:[%s5009_s8] sm:$0xff]  }
 0x3c8   : > { %v1362_v1 = vmul.f32 1.442695, %v1360_v0  ;;  %v4070_v0 = vld [vmem:[%s5009_s8 + $0x18] sm:$0xff]  }
 0x3c9   : > { %v1359_v2 = vpop.xlane.xlu0 %1358 }
 0x3ca   : > { %4115 = vpow2.f32 %v1362_v1  ;;  %v1361_v3 = vsub.f32 %v1352_v59, %v1359_v2  ;;  %v4068_v1 = vld [vmem:[%s5009_s8 + $0x8] sm:$0xff]  }
 0x3cc   : > { %v1364_v4 = vmul.f32 1.442695, %v1361_v3 }
 0x3cd   : > { %v1526_v17 = vpop.permute.xlu0 %1525 }
 0x3ce   : > { %4117 = vpow2.f32 %v1364_v4 }
 0x3d4   : > { %v4116_v7 = vpop.eup %4115 }
 0x3d5   : > { %v1366_v8 = vsel %vm1353_vm2, %v4116_v7, 0.0 }
 0x3d6   : > { %1367 = vadd.xlane.f32.xlu1 %v1366_v8 }
 0x3d8   : > { %v4118_v9 = vpop.eup %4117 }
 0x3d9   : > { %v1369_v10 = vsel %vm1353_vm2, %v4118_v9, 0.0 }
 0x3da   : > { %1370 = vadd.xlane.f32.xlu1 %v1369_v10 }
 0x3eb   : > { %1601 = vrot.lane.b32.xlu1 %v5145_v47, %s4546_s28 }
 0x463   : > { %v1368_v13 = vpop.xlane.xlu1 %1367 }
 0x464   : > { %4119 = vrcp.f32 %v1368_v13 }
 0x467   : > { %v1371_v14 = vpop.xlane.xlu1 %1370 }
 0x468   : > { %4121 = vrcp.f32 %v1371_v14 }
 0x46b   : > { %v1602_v20 = vpop.permute.xlu1 %1601 }
 0x46e   : > { %v4120_v15 = vpop.eup %4119 }
 0x46f   : > { %v1373_v16 = vmul.f32 %v4120_v15, %v4116_v7 }
 0x471   : > { %3808 = vmatmul.mubr.msk.f32.vlgmr.msra.gmra.mrb[6].mxu0 %vm1353_vm2, %v1373_v16 }
 0x472   : > { %v4122_v18 = vpop.eup %4121  ;;  %3816 = vmatpush3.xpose.msk.msra.mxu0 %vm1198_vm1, %v1526_v17  ;;  %3817 = vmatprep.mubr.msk.f32.mxu0 %vm4545_vm0, %v4544_v6 }
 0x473   : > { %v1375_v19 = vmul.f32 %v4122_v18, %v4118_v9  ;;  %3825 = vmatprep.subr.mxu0 %v4544_v6 }
 0x475   : > { %3813 = vmatmul.mubr.msk.f32.vlgmr.msra.gmra.mrb[6].mxu1 %vm1353_vm2, %v1375_v19  ;;  %3818 = vmatmul.mubr.msk.f32.vlgmr.msra.gmra.mrb[8].mxu0 %vm1198_vm1, %v1524_v12 }
 0x476   : > { %3821 = vmatpush3.xpose.msk.msra.mxu1 %vm1198_vm1, %v1604_v11  ;;  %3822 = vmatprep.mubr.msk.f32.mxu1 %vm4545_vm0, %v4544_v6 }
 0x477   : > { %3830 = vmatprep.subr.mxu1 %v4544_v6  ;;  %3827 = vmatprep.mubr.msk.f32.mxu0 %vm4545_vm0, %v4544_v6 }
 0x479   : > { %3823 = vmatmul.mubr.msk.f32.vlgmr.msra.gmra.mrb[8].mxu1 %vm1198_vm1, %v1602_v20 }
 0x47a   : > { %3832 = vmatprep.mubr.msk.f32.mxu1 %vm4545_vm0, %v4544_v6 }
 0x544   : > { %v5190_v21 = vpop.f32.mrb[6].mxu0 }
 0x545   : > { %v3809_v22 = vpop.f32.mrb[7].mxu0 }
 0x548   : > { %v5192_v23 = vpop.f32.mrb[6].mxu1  ;;  %v1597_v24 = vpop.f32.mrb[8].mxu0 }
 0x549   : > { %v1522_v25 = vpack.c.bf16 %v5192_v23, %v5190_v21  ;;  %v1679_v28 = vmul.f32 0.17677669, %v1597_v24  ;;  %v3814_v29 = vpop.f32.mrb[7].mxu1  ;;  %v3819_v30 = vpop.f32.mrb[9].mxu0 }
 0x54b   : > { %v1681_v31 = vsel %vm1353_vm2, %v1679_v28, -inf }
 0x54c   : > { %v1675_v32 = vpop.f32.mrb[8].mxu1  ;;  %1682 = vmax.xlane.f32.xlu0 %v1681_v31 }
 0x54d   : > { %v1680_v35 = vmul.f32 0.17677669, %v1675_v32  ;;  %v3824_v37 = vpop.f32.mrb[9].mxu1 }
 0x54f   : > { %v1684_v38 = vsel %vm1353_vm2, %v1680_v35, -inf }
 0x550   : > { %1685 = vmax.xlane.f32.xlu1 %v1684_v38 }
 0x561   : > { %1781 = vrot.lane.b32.xlu1 %v5160_v53, %s4546_s28 }
 0x565   : > { %2050 = vrot.lane.b32.xlu1 %v5133_v44, %s4547_s6 }
 0x569   : > { %2048 = vrot.lane.b32.xlu1 %v5145_v47, %s4547_s6 }
 0x56d   : > { %1970 = vrot.lane.b32.xlu1 %v5138_v46, %s4547_s6 }
 0x571   : > { %2363 = vrot.lane.b32.xlu1 %v5131_v41, %s4548_s2 }
 0x5d9   : > { %v1683_v39 = vpop.xlane.xlu0 %1682 }
 0x5da   : > { %v1687_v40 = vsub.f32 %v1679_v28, %v1683_v39 }
 0x5dc   : > { %v1689_v42 = vmul.f32 1.442695, %v1687_v40 }
 0x5dd   : > { %v1686_v43 = vpop.xlane.xlu1 %1685 }
 0x5de   : > { %4123 = vpow2.f32 %v1689_v42  ;;  %v1688_v45 = vsub.f32 %v1680_v35, %v1686_v43 }
 0x5e0   : > { %v1691_v48 = vmul.f32 1.442695, %v1688_v45 }
 0x5e1   : > { %v1782_v49 = vpop.permute.xlu1 %1781 }
 0x5e2   : > { %4125 = vpow2.f32 %v1691_v48  ;;  %3831 = vmatpush3.msra.mxu1 %v1782_v49 }
 0x5e3   : > { %3843 = vmatprep.subr.bf16.mxu1 %v4544_v6 }
 0x5e5   : > { %v2051_v2 = vpop.permute.xlu1 %2050 }
 0x5e8   : > { %v4124_v51 = vpop.eup %4123 }
 0x5e9   : > { %v1693_v52 = vsel %vm1353_vm2, %v4124_v51, 0.0  ;;  %v2049_v3 = vpop.permute.xlu1 %2048 }
 0x5ea   : > { %1694 = vadd.xlane.f32.xlu0 %v1693_v52 }
 0x5ec   : > { %v4126_v54 = vpop.eup %4125 }
 0x5ed   : > { %v1696_v55 = vsel %vm1353_vm2, %v4126_v54, 0.0  ;;  %v1971_v14 = vpop.permute.xlu1 %1970 }
 0x5ee   : > { %1697 = vadd.xlane.f32.xlu0 %v1696_v55 }
 0x5f1   : > { %v2364_v40 = vpop.permute.xlu1 %2363 }
 0x604   : > { %1704 = vrot.lane.b32.xlu0 %v5158_v50, %s4546_s28 }
 0x608   : > { %1972 = vrot.lane.b32.xlu0 %v5131_v41, %s4547_s6 }
 0x677   : > { %v1695_v56 = vpop.xlane.xlu0 %1694 }
 0x678   : > { %4127 = vrcp.f32 %v1695_v56 }
 0x67b   : > { %v1698_v57 = vpop.xlane.xlu0 %1697 }
 0x67c   : > { %4129 = vrcp.f32 %v1698_v57 }
 0x67f   : > { %v1705_v58 = vpop.permute.xlu0 %1704 }
 0x680   : > { %3826 = vmatpush3.msra.mxu0 %v1705_v58 }
 0x681   : > { %3835 = vmatprep.subr.bf16.mxu0 %v4544_v6 }
 0x682   : > { %v4128_v59 = vpop.eup %4127 }
 0x683   : > { %v1700_v61 = vmul.f32 %v4128_v59, %v4124_v51  ;;  %v1973_v11 = vpop.permute.xlu0 %1972 }
 0x685   : > { %3828 = vmatmul.mubr.msk.f32.vlgmr.msra.gmra.mrb[10].mxu0 %vm1353_vm2, %v1700_v61 }
 0x686   : > { %v4130_v62 = vpop.eup %4129  ;;  %3836 = vmatpush3.bf16.msra.mxu0 %v4069_v60  ;;  %3839 = vmatprep.mubr.msk.bf16.mxu0 %vm4545_vm0, %v4544_v6 }
 0x687   : > { %v1702_v41 = vmul.f32 %v4130_v62, %v4126_v54  ;;  %3837 = vmatprep.subr.bf16.mxu0 %v4544_v6 }
 0x689   : > { %3833 = vmatmul.mubr.msk.f32.vlgmr.msra.gmra.mrb[10].mxu1 %vm1353_vm2, %v1702_v41 }
 0x68a   : > { %3844 = vmatpush3.bf16.msra.mxu1 %v4067_v63  ;;  %3847 = vmatprep.mubr.msk.bf16.mxu1 %vm4545_vm0, %v4544_v6 }
 0x68b   : > { %3845 = vmatprep.subr.bf16.mxu1 %v4544_v6  ;;  %3838 = vmatpush3.bf16.msra.mxu0 %v4070_v0 }
 0x68c   : > { %3851 = vmatprep.subr.mxu0 %v4544_v6 }
 0x68e   : > { %3846 = vmatpush3.bf16.msra.mxu1 %v4068_v1 }
 0x68f   : > { %3856 = vmatprep.subr.mxu1 %v4544_v6 }
 0x691   : > { %3848 = vmatmul.mubr.msk.bf16.vlgmr.msra.gmra.mrb[12].mxu1 %vm1198_vm1, %v1522_v25 }
 0x692   : > { %3858 = vmatprep.mubr.msk.f32.mxu1 %vm4545_vm0, %v4544_v6 }
 0x697   : > { %3857 = vmatpush3.xpose.msk.msra.mxu1 %vm1198_vm1, %v2051_v2 }
 0x698   : > { %3866 = vmatprep.subr.mxu1 %v4544_v6 }
 0x69a   : > { %3859 = vmatmul.mubr.msk.f32.vlgmr.msra.gmra.mrb[16].mxu1 %vm1198_vm1, %v2049_v3 }
 0x69b   : > { %3868 = vmatprep.mubr.msk.f32.mxu1 %vm4545_vm0, %v4544_v6 }
 0x758   : > { %v1776_v4 = vpop.f32.mrb[10].mxu0 }
 0x759   : > { %v3829_v7 = vpop.f32.mrb[11].mxu0 }
 0x75a   : > { %v4071_v7 = vld [vmem:[%s5009_s8 + $0x20] sm:$0xff]  }
 0x75c   : > { %v1853_v8 = vpop.f32.mrb[10].mxu1 }
 0x75d   : > { %v1857_v9 = vpack.c.bf16 %v1853_v8, %v1776_v4  ;;  %v3834_v10 = vpop.f32.mrb[11].mxu1  ;;  %v4072_v8 = vld [vmem:[%s5009_s8 + $0x28] sm:$0xff]  }
 0x75f   : > { %3840 = vmatmul.mubr.msk.bf16.vlgmr.msra.gmra.mrb[12].mxu0 %vm1198_vm1, %v1857_v9 }
 0x760   : > { %3852 = vmatpush3.xpose.msk.msra.mxu0 %vm1198_vm1, %v1973_v11  ;;  %3853 = vmatprep.mubr.msk.f32.mxu0 %vm4545_vm0, %v4544_v6 }
 0x761   : > { %3861 = vmatprep.subr.mxu0 %v4544_v6 }
 0x764   : > { %v1963_v12 = vpop.f32.mrb[12].mxu1 }
 0x765   : > { %v3849_v13 = vpop.f32.mrb[13].mxu1 }
 0x766   : > { %v1966_v15 = vpop.f32.mrb[14].mxu1 }
 0x767   : > { %v3850_v16 = vpop.f32.mrb[15].mxu1  ;;  %3854 = vmatmul.mubr.msk.f32.vlgmr.msra.gmra.mrb[16].mxu0 %vm1198_vm1, %v1971_v14 }
 0x768   : > { %3863 = vmatprep.mubr.msk.f32.mxu0 %vm4545_vm0, %v4544_v6 }
 0x76d   : > { %v2122_v17 = vpop.f32.mrb[16].mxu1 }
 0x76e   : > { %v2127_v18 = vmul.f32 0.17677669, %v2122_v17  ;;  %v3860_v19 = vpop.f32.mrb[17].mxu1 }
 0x770   : > { %v2131_v20 = vsel %vm1353_vm2, %v2127_v18, -inf }
 0x771   : > { %2132 = vmax.xlane.f32.xlu0 %v2131_v20 }
 0x787   : > { %2226 = vrot.lane.b32.xlu0 %v5160_v53, %s4547_s6 }
 0x78b   : > { %2361 = vrot.lane.b32.xlu0 %v5138_v46, %s4548_s2 }
 0x78f   : > { %2439 = vrot.lane.b32.xlu0 %v5145_v47, %s4548_s2 }
 0x7fe   : > { %v2133_v21 = vpop.xlane.xlu0 %2132 }
 0x7ff   : > { %v2135_v22 = vsub.f32 %v2127_v18, %v2133_v21 }
 0x801   : > { %v2138_v23 = vmul.f32 1.442695, %v2135_v22 }
 0x802   : > { %v2227_v24 = vpop.permute.xlu0 %2226 }
 0x803   : > { %4131 = vpow2.f32 %v2138_v23  ;;  %3867 = vmatpush3.msra.mxu1 %v2227_v24 }
 0x804   : > { %3879 = vmatprep.subr.mxu1 %v4544_v6 }
 0x80d   : > { %v4132_v25 = vpop.eup %4131 }
 0x80e   : > { %v2143_v28 = vsel %vm1353_vm2, %v4132_v25, 0.0 }
 0x80f   : > { %2144 = vadd.xlane.f32.xlu1 %v2143_v28 }
 0x820   : > { %2441 = vrot.lane.b32.xlu1 %v5133_v44, %s4548_s2  ;;  %v2362_v44 = vpop.permute.xlu0 %2361 }
 0x824   : > { %v2440_v49 = vpop.permute.xlu0 %2439 }
 0x832   : > { %v1907_v29 = vpop.f32.mrb[12].mxu0 }
 0x833   : > { %v5260_v46 = vadd.f32 %v1963_v12, %v1907_v29  ;;  %v3841_v30 = vpop.f32.mrb[13].mxu0 }
 0x834   : > { %v1910_v47 = vpop.f32.mrb[14].mxu0 }
 0x835   : > { %v5262_v31 = vadd.f32 %v1966_v15, %v1910_v47  ;;  %v3842_v32 = vpop.f32.mrb[15].mxu0  ;;  %v4073_v47 = vld [vmem:[%s5009_s8 + $0x30] sm:$0xff]  }
 0x836   : > { %v4074_v32 = vld [vmem:[%s5009_s8 + $0x38] sm:$0xff]   ;;  %s5498_s8 = scalar_lea.vmem [#allocation9], %s4996_s30 }
 0x83a   : > { %v2044_v35 = vpop.f32.mrb[16].mxu0 }
 0x83b   : > { %v3855_v37 = vpop.f32.mrb[17].mxu0  ;;  %v2126_v38 = vmul.f32 0.17677669, %v2044_v35 }
 0x83d   : > { %v2128_v39 = vsel %vm1353_vm2, %v2126_v38, -inf }
 0x844   : > { %2129 = vmax.xlane.f32.xlu1 %v2128_v39 }
 0x89c   : > { %v2145_v42 = vpop.xlane.xlu1 %2144 }
 0x89d   : > { %4133 = vrcp.f32 %v2145_v42 }
 0x8a0   : > { %v2442_v48 = vpop.permute.xlu1 %2441 }
 0x8a7   : > { %v4134_v43 = vpop.eup %4133 }
 0x8a8   : > { %v2149_v45 = vmul.f32 %v4134_v43, %v4132_v25 }
 0x8aa   : > { %3869 = vmatmul.mubr.msk.f32.vlgmr.msra.gmra.mrb[18].mxu1 %vm1353_vm2, %v2149_v45 }
 0x8ab   : > { %3880 = vmatpush3.xpose.msk.msra.mxu1 %vm1198_vm1, %v2364_v40  ;;  %3881 = vmatprep.mubr.msk.f32.mxu1 %vm4545_vm0, %v4544_v6 }
 0x8ac   : > { %3884 = vmatprep.subr.mxu1 %v4544_v6 }
 0x8ae   : > { %3882 = vmatmul.mubr.msk.f32.vlgmr.msra.gmra.mrb[20].mxu1 %vm1198_vm1, %v2362_v44 }
 0x8af   : > { %3885 = vmatpush3.xpose.msk.msra.mxu1 %vm1198_vm1, %v2442_v48  ;;  %3886 = vmatprep.mubr.msk.f32.mxu1 %vm4545_vm0, %v4544_v6 }
 0x8b0   : > { %3889 = vmatprep.subr.mxu1 %v4544_v6 }
 0x8b2   : > { %3887 = vmatmul.mubr.msk.f32.vlgmr.msra.gmra.mrb[22].mxu1 %vm1198_vm1, %v2440_v49  ;;  %v3645_v49 = vld [vmem:[%s5498_s8] ss:$0 sm:$0xff] }
 0x8b3   : > { %3891 = vmatprep.mubr.msk.f32.mxu1 %vm4545_vm0, %v4544_v6 }
 0x8d1   : > { %v2130_v51 = vpop.xlane.xlu1 %2129 }
 0x8d2   : > { %v2134_v52 = vsub.f32 %v2126_v38, %v2130_v51 }
 0x8d4   : > { %v2136_v54 = vmul.f32 1.442695, %v2134_v52 }
 0x8d6   : > { %4135 = vpow2.f32 %v2136_v54 }
 0x8e0   : > { %v4136_v55 = vpop.eup %4135 }
 0x8e1   : > { %v2140_v56 = vsel %vm1353_vm2, %v4136_v55, 0.0 }
 0x8e2   : > { %2141 = vadd.xlane.f32.xlu0 %v2140_v56 }
 0x8f8   : > { %2150 = vrot.lane.b32.xlu0 %v5158_v50, %s4547_s6 }
 0x8fc   : > { %2617 = vrot.lane.b32.xlu0 %v5160_v53, %s4548_s2 }
 0x96f   : > { %v2142_v57 = vpop.xlane.xlu0 %2141 }
 0x970   : > { %4137 = vrcp.f32 %v2142_v57 }
 0x973   : > { %v2151_v58 = vpop.permute.xlu0 %2150 }
 0x974   : > { %3862 = vmatpush3.msra.mxu0 %v2151_v58 }
 0x975   : > { %3871 = vmatprep.subr.bf16.mxu0 %v4544_v6 }
 0x977   : > { %v2618_v22 = vpop.permute.xlu0 %2617 }
 0x97a   : > { %v4138_v59 = vpop.eup %4137 }
 0x97b   : > { %v2147_v60 = vmul.f32 %v4138_v59, %v4136_v55  ;;  %v4075_v59 = vld [vmem:[%s5054_s13] ss:$8 sps:$4 sm:$0xff]  }
 0x97d   : > { %3864 = vmatmul.mubr.msk.f32.vlgmr.msra.gmra.mrb[18].mxu0 %vm1353_vm2, %v2147_v60  ;;  %v2298_v61 = vpop.f32.mrb[18].mxu1  ;;  %v4077_v60 = vld [vmem:[%s5054_s13 + $0x4] ss:$8 sps:$4 sm:$0xff]  }
 0x97e   : > { %v3870_v62 = vpop.f32.mrb[19].mxu1  ;;  %3875 = vmatprep.mubr.msk.bf16.mxu0 %vm4545_vm0, %v4544_v6  ;;  %3872 = vmatpush3.bf16.msra.mxu0 %v4071_v7  ;;  %v4086_v7 = vld [vmem:[%s5054_s13 + $0x34] ss:$8 sps:$4 sm:$0xff]  }
 0x97f   : > { %3873 = vmatprep.subr.bf16.mxu0 %v4544_v6  ;;  %v4078_v62 = vld [vmem:[%s5054_s13 + $0x10] ss:$8 sps:$4 sm:$0xff]  }
 0x981   : > { %v2435_v63 = vpop.f32.mrb[20].mxu1 }
 0x982   : > { %v2517_v41 = vmul.f32 0.17677669, %v2435_v63  ;;  %v3883_v53 = vpop.f32.mrb[21].mxu1  ;;  %3874 = vmatpush3.bf16.msra.mxu0 %v4072_v8  ;;  %v4084_v8 = vld [vmem:[%s5054_s13 + $0x30] ss:$8 sps:$4 sm:$0xff]  }
 0x983   : > { %3894 = vmatprep.subr.mxu0 %v4544_v6 }
 0x984   : > { %v2519_v0 = vsel %vm1353_vm2, %v2517_v41, -inf }
 0x985   : > { %v2513_v1 = vpop.f32.mrb[22].mxu1  ;;  %2520 = vmax.xlane.f32.xlu1 %v2519_v0 }
 0x986   : > { %v2518_v2 = vmul.f32 0.17677669, %v2513_v1  ;;  %v3888_v3 = vpop.f32.mrb[23].mxu1 }
 0x987   : > { %v4083_v3 = vld [vmem:[%s5054_s13 + $0x24] ss:$8 sps:$4 sm:$0xff]  }
 0x988   : > { %v2522_v4 = vsel %vm1353_vm2, %v2518_v2, -inf }
 0x989   : > { %2523 = vmax.xlane.f32.xlu1 %v2522_v4  ;;  %v4081_v4 = vld [vmem:[%s5054_s13 + $0x20] ss:$8 sps:$4 sm:$0xff]  }
 0xa12   : > { %v2521_v9 = vpop.xlane.xlu1 %2520 }
 0xa13   : > { %v2525_v10 = vsub.f32 %v2517_v41, %v2521_v9  ;;  %v4089_v9 = vld [vmem:[%s5054_s13 + $0x44] ss:$8 sps:$4 sm:$0xff]  }
 0xa15   : > { %v2527_v11 = vmul.f32 1.442695, %v2525_v10  ;;  %v4087_v10 = vld [vmem:[%s5054_s13 + $0x40] ss:$8 sps:$4 sm:$0xff]  }
 0xa16   : > { %v2524_v12 = vpop.xlane.xlu1 %2523 }
 0xa17   : > { %4139 = vpow2.f32 %v2527_v11  ;;  %v2526_v13 = vsub.f32 %v2518_v2, %v2524_v12  ;;  %v4092_v11 = vld [vmem:[%s5054_s13 + $0x54] ss:$8 sps:$4 sm:$0xff]   ;;  %v4090_v12 = vld [vmem:[%s5054_s13 + $0x50] ss:$8 sps:$4 sm:$0xff]  }
 0xa19   : > { %v2529_v14 = vmul.f32 1.442695, %v2526_v13  ;;  %v4095_v13 = vld [vmem:[%s5054_s13 + $0x64] ss:$8 sps:$4 sm:$0xff]  }
 0xa1b   : > { %4141 = vpow2.f32 %v2529_v14  ;;  %v4093_v14 = vld [vmem:[%s5054_s13 + $0x60] ss:$8 sps:$4 sm:$0xff]  }
 0xa21   : > { %v4140_v15 = vpop.eup %4139 }
 0xa22   : > { %v2531_v16 = vsel %vm1353_vm2, %v4140_v15, 0.0 }
 0xa23   : > { %2532 = vadd.xlane.f32.xlu1 %v2531_v16  ;;  %v4096_v16 = vld [vmem:[%s5054_s13 + $0x70] ss:$8 sps:$4 sm:$0xff]  }
 0xa25   : > { %v4142_v17 = vpop.eup %4141 }
 0xa26   : > { %v2534_v18 = vsel %vm1353_vm2, %v4142_v17, 0.0 }
 0xa27   : > { %2535 = vadd.xlane.f32.xlu1 %v2534_v18 }
 0xa38   : > { %2541 = vrot.lane.b32.xlu1 %v5158_v50, %s4548_s2 }
 0xa50   : > { %v2222_v19 = vpop.f32.mrb[18].mxu0 }
 0xa51   : > { %v2302_v20 = vpack.c.bf16 %v2298_v61, %v2222_v19  ;;  %v3865_v21 = vpop.f32.mrb[19].mxu0  ;;  %v4080_v61 = vld [vmem:[%s5054_s13 + $0x14] ss:$8 sps:$4 sm:$0xff]  }
 0xa53   : > { %3876 = vmatmul.mubr.msk.bf16.vlgmr.msra.gmra.mrb[20].mxu0 %vm1198_vm1, %v2302_v20 }
 0xa54   : > { %3895 = vmatpush3.msra.mxu0 %v2618_v22  ;;  %3896 = vmatprep.mubr.msk.f32.mxu0 %vm4545_vm0, %v4544_v6 }
 0xa55   : > { %2913 = vmatprep.subr.bf16.mxu0 %v4077_v60 }
 0xab0   : > { %v2533_v23 = vpop.xlane.xlu1 %2532 }
 0xab1   : > { %4143 = vrcp.f32 %v2533_v23 }
 0xab4   : > { %v2536_v24 = vpop.xlane.xlu1 %2535 }
 0xab5   : > { %4145 = vrcp.f32 %v2536_v24 }
 0xab8   : > { %v2542_v25 = vpop.permute.xlu1 %2541 }
 0xab9   : > { %3890 = vmatpush3.msra.mxu1 %v2542_v25  ;;  %v3646_v25 = vld [vmem:[%s5499_s25] ss:$0 sm:$0xff] }
 0xaba   : > { %3899 = vmatprep.subr.bf16.mxu1 %v4544_v6 }
 0xabb   : > { %v4144_v50 = vpop.eup %4143 }
 0xabc   : > { %v2538_v28 = vmul.f32 %v4144_v50, %v4140_v15  ;;  %v4098_v15 = vld [vmem:[%s5054_s13 + $0x74] ss:$8 sps:$4 sm:$0xff]   ;;  %s5500_s13 = scalar_lea.vmem [#allocation12], %s4996_s30 }
 0xabe   : > { %3892 = vmatmul.mubr.msk.f32.vlgmr.msra.gmra.mrb[24].mxu1 %vm1353_vm2, %v2538_v28 }
 0xabf   : > { %v4146_v29 = vpop.eup %4145  ;;  %3903 = vmatprep.mubr.msk.bf16.mxu1 %vm4545_vm0, %v4544_v6  ;;  %3900 = vmatpush3.bf16.msra.mxu1 %v4073_v47 }
 0xac0   : > { %v2540_v30 = vmul.f32 %v4146_v29, %v4142_v17  ;;  %3901 = vmatprep.subr.bf16.mxu1 %v4544_v6 }
 0xac2   : > { %3897 = vmatmul.mubr.msk.f32.vlgmr.msra.gmra.mrb[24].mxu0 %vm1353_vm2, %v2540_v30  ;;  %v3647_v30 = vld [vmem:[%s5500_s13] ss:$0 sm:$0xff] }
 0xac3   : > { %2945 = vmatprep.mubr.bf16.mxu0 %v4543_v5  ;;  %3902 = vmatpush3.bf16.msra.mxu1 %v4074_v32 }
 0xac4   : > { %2914 = vmatpush1.bf16.msra.mxu0 %v4075_v59 }
 0xac5   : > { %2915 = vmatprep.subr.bf16.mxu0 %v4080_v61 }
 0xac8   : > { %2916 = vmatpush1.bf16.msra.mxu0 %v4078_v62 }
 0xac9   : > { %2917 = vmatprep.subr.bf16.mxu0 %v4083_v3 }
 0xacc   : > { %2918 = vmatpush1.bf16.msra.mxu0 %v4081_v4 }
 0xacd   : > { %2919 = vmatprep.subr.bf16.mxu0 %v4086_v7 }
 0xad0   : > { %2920 = vmatpush1.bf16.msra.mxu0 %v4084_v8 }
 0xad1   : > { %2921 = vmatprep.subr.bf16.mxu0 %v4089_v9 }
 0xad4   : > { %2922 = vmatpush1.bf16.msra.mxu0 %v4087_v10 }
 0xad5   : > { %2923 = vmatprep.subr.bf16.mxu0 %v4092_v11 }
 0xad8   : > { %2924 = vmatpush1.bf16.msra.mxu0 %v4090_v12 }
 0xad9   : > { %2925 = vmatprep.subr.bf16.mxu0 %v4095_v13 }
 0xadc   : > { %2926 = vmatpush1.bf16.msra.mxu0 %v4093_v14 }
 0xadd   : > { %2927 = vmatprep.subr.bf16.mxu0 %v4098_v15 }
 0xae0   : > { %2928 = vmatpush1.bf16.msra.mxu0 %v4096_v16 }
 0xb26   : > { %v2352_v35 = vpop.f32.mrb[20].mxu0 }
 0xb27   : > { %v2359_v37 = vadd.f32 %v2352_v35, %v5260_v46  ;;  %v3877_v38 = vpop.f32.mrb[21].mxu0 }
 0xb28   : > { %v2355_v39 = vpop.f32.mrb[22].mxu0  ;;  %v4099_v38 = vld [vmem:[%s5023_s3 + $0x40] sm:$0xff]  }
 0xb29   : > { %v2360_v40 = vadd.f32 %v2355_v39, %v5262_v31  ;;  %v3878_v42 = vpop.f32.mrb[23].mxu0  ;;  %v4100_v39 = vld [vmem:[%s5023_s3] sm:$0xff]   ;;  %3753 = vmatprep.subr.bf16.mxu1 %v4099_v38 }
 0xb2a   : > { %v4102_v42 = vld [vmem:[%s5023_s3 + $0x8] sm:$0xff]  }
 0xb91   : > { %v2613_v43 = vpop.f32.mrb[24].mxu1 }
 0xb92   : > { %v3893_v45 = vpop.f32.mrb[25].mxu1 }
 0xb93   : > { %v4104_v45 = vld [vmem:[%s5023_s3 + $0x10] sm:$0xff]  }
 0xb95   : > { %v2689_v44 = vpop.f32.mrb[24].mxu0 }
 0xb96   : > { %v2693_v48 = vpack.c.bf16 %v2689_v44, %v2613_v43  ;;  %v3898_v5 = vpop.f32.mrb[25].mxu0  ;;  %v4103_v43 = vld [vmem:[%s5023_s3 + $0x50] sm:$0xff]   ;;  %v4105_v44 = vld [vmem:[%s5023_s3 + $0x58] sm:$0xff]  }
 0xb97   : > { %v4107_v5 = vld [vmem:[%s5023_s3 + $0x60] sm:$0xff]  }
 0xb98   : > { %3904 = vmatmul.mubr.msk.bf16.vlgmr.msra.gmra.mrb[28].mxu1 %vm1198_vm1, %v2693_v48  ;;  %v4106_v48 = vld [vmem:[%s5023_s3 + $0x18] sm:$0xff]  }
 0xb99   : > { %3754 = vmatpush3.bf16.msra.mxu1 %v4100_v39 }
 0xc6b   : > { %v2743_v6 = vpop.f32.mrb[28].mxu1 }
 0xc6c   : > { %v2750_v51 = vadd.f32 %v2743_v6, %v2359_v37  ;;  %v3905_v46 = vpop.f32.mrb[29].mxu1  ;;  %v4108_v6 = vld [vmem:[%s5023_s3 + $0x20] sm:$0xff]  }
 0xc6d   : > { %v2746_v52 = vpop.f32.mrb[30].mxu1  ;;  %v4111_v46 = vld [vmem:[%s5023_s3 + $0x70] sm:$0xff]  }
 0xc6e   : > { %v2759_v54 = vadd.f32 %v3645_v49, %v2750_v51  ;;  %v2751_v31 = vadd.f32 %v2746_v52, %v2360_v40  ;;  %v3906_v55 = vpop.f32.mrb[31].mxu1  ;;  %v4101_v40 = vld [vmem:[%s5023_s3 + $0x48] sm:$0xff]   ;;  %v4112_v52 = vld [vmem:[%s5023_s3 + $0x30] sm:$0xff]  }
 0xc6f   : > { %3755 = vmatprep.subr.bf16.mxu1 %v4101_v40  ;;  %v4110_v51 = vld [vmem:[%s5023_s3 + $0x28] sm:$0xff]  }
 0xc70   : > { %v2760_v56 = vadd.f32 %v3645_v49, %v2751_v31  ;;  %v2761_v57 = vadd.f32 %v2759_v54, %v5099_v26  ;;  %3756 = vmatpush3.bf16.msra.mxu1 %v4102_v42  ;;  %v4109_v49 = vld [vmem:[%s5023_s3 + $0x68] sm:$0xff]   ;;  %v4113_v54 = vld [vmem:[%s5023_s3 + $0x78] sm:$0xff]  }
 0xc71   : > { %3757 = vmatprep.subr.bf16.mxu1 %v4103_v43  ;;  %v4114_v31 = vld [vmem:[%s5023_s3 + $0x38] sm:$0xff]   ;;  %v2821_v55 = vld [vmem:[%s896_s0] sm:$0x3]  ;;  %s5502_s3 = scalar_lea.vmem [#allocation15], %s4996_s30 }
 0xc72   : > { %2765 = vadd.xlane.f32.xlu0 %v2761_v57  ;;  %v2762_v58 = vadd.f32 %v2760_v56, %v5101_v27  ;;  %v2826_v56 = vrot.slane %v2821_v55, %v957_v36  ;;  %v3664_v43 = vld [vmem:[%s5502_s3] ss:$0 sm:$0xff] }
 0xc74   : > { %2767 = vadd.xlane.f32.xlu1 %v2762_v58  ;;  %3758 = vmatpush3.bf16.msra.mxu1 %v4104_v45 }
 0xc75   : > { %3759 = vmatprep.subr.bf16.mxu1 %v4105_v44 }
 0xc78   : > { %3760 = vmatpush3.bf16.msra.mxu1 %v4106_v48 }
 0xc79   : > { %3761 = vmatprep.subr.bf16.mxu1 %v4107_v5 }
 0xc7c   : > { %3762 = vmatpush3.bf16.msra.mxu1 %v4108_v6 }
 0xc7d   : > { %3763 = vmatprep.subr.bf16.mxu1 %v4109_v49 }
 0xc80   : > { %3764 = vmatpush3.bf16.msra.mxu1 %v4110_v51 }
 0xc81   : > { %3765 = vmatprep.subr.bf16.mxu1 %v4111_v46 }
 0xc84   : > { %3766 = vmatpush3.bf16.msra.mxu1 %v4112_v52 }
 0xc85   : > { %3767 = vmatprep.subr.bf16.mxu1 %v4113_v54 }
 0xc88   : > { %3768 = vmatpush3.bf16.msra.mxu1 %v4114_v31 }
 0xcff   : > { %v2766_v63 = vpop.xlane.xlu0 %2765 }
 0xd00   : > { %v2770_v41 = vmul.f32 0.0078125, %v2766_v63 }
 0xd01   : > { %v2768_v53 = vpop.xlane.xlu1 %2767 }
 0xd02   : > { %v2772_v26 = vsub.f32 %v2761_v57, %v2770_v41  ;;  %v2771_v27 = vmul.f32 0.0078125, %v2768_v53  ;;  %v2830_v57 = vrot.slane %v2821_v55, %v961_v34 }
 0xd04   : > { %v2773_v0 = vsub.f32 %v2762_v58, %v2771_v27  ;;  %v2774_v1 = vmul.f32 %v2772_v26, %v2772_v26 }
 0xd06   : > { %2776 = vadd.xlane.f32.xlu0 %v2774_v1  ;;  %v2775_v2 = vmul.f32 %v2773_v0, %v2773_v0 }
 0xd0a   : > { %2778 = vadd.xlane.f32.xlu0 %v2775_v2 }
 0xd93   : > { %v2777_v17 = vpop.xlane.xlu0 %2776 }
 0xd94   : > { %v2780_v18 = vmul.f32 0.0078125, %v2777_v17 }
 0xd96   : > { %v2782_v19 = vadd.f32 1e-12, %v2780_v18 }
 0xd97   : > { %v2779_v20 = vpop.xlane.xlu0 %2778 }
 0xd98   : > { %4147 = vrsqrt.f32 %v2782_v19  ;;  %v2781_v21 = vmul.f32 0.0078125, %v2779_v20 }
 0xd9a   : > { %v2783_v22 = vadd.f32 1e-12, %v2781_v21 }
 0xd9c   : > { %4149 = vrsqrt.f32 %v2783_v22 }
 0xda2   : > { %v4148_v23 = vpop.eup %4147 }
 0xda3   : > { %v2786_v24 = vmul.f32 %v4148_v23, %v2772_v26 }
 0xda5   : > { %v2794_v29 = vmul.f32 %v3646_v25, %v2786_v24 }
 0xda6   : > { %v4150_v50 = vpop.eup %4149 }
 0xda7   : > { %v2787_v28 = vmul.f32 %v4150_v50, %v2773_v0  ;;  %v5336_v32 = vadd.f32 %v3647_v30, %v2794_v29 }
 0xda9   : > { %v2795_v47 = vmul.f32 %v3646_v25, %v2787_v28 }
 0xdab   : > { %v5338_v35 = vadd.f32 %v3647_v30, %v2795_v47 }
 0xdad   : > { %v2820_v37 = vpack.c.bf16 %v5338_v35, %v5336_v32 }
 0xdaf   : > { %2946 = vmatmul.mubr.bf16.vlgmr.msra.gmra.mrb[28].mxu0 %v2820_v37 }
 0xe82   : > { %v2947_v58 = vpop.f32.mrb[28].mxu0 }
 0xe83   : > { %v2948_v59 = vadd.f32 %v2947_v58, %v2826_v56  ;;  %v2949_v60 = vpop.f32.mrb[29].mxu0 }
 0xe84   : > { %v2950_v61 = vadd.f32 %v2949_v60, %v2830_v57  ;;  %v2951_v62 = vpop.f32.mrb[30].mxu0 }
 0xe85   : > { %v2956_v63 = vmul.f32 %v2948_v59, %v2948_v59  ;;  %v2952_v41 = vadd.f32 %v2951_v62, %v2826_v56  ;;  %v2953_v53 = vpop.f32.mrb[31].mxu0 }
 0xe86   : > { %v2957_v26 = vmul.f32 %v2950_v61, %v2950_v61  ;;  %v2954_v27 = vadd.f32 %v2953_v53, %v2830_v57 }
 0xe87   : > { %v2960_v0 = vmul.f32 %v2956_v63, %v2948_v59  ;;  %v2958_v1 = vmul.f32 %v2952_v41, %v2952_v41 }
 0xe88   : > { %v2961_v2 = vmul.f32 %v2957_v26, %v2950_v61  ;;  %v2959_v3 = vmul.f32 %v2954_v27, %v2954_v27  ;;  %v3681_v26 = vld [vmem:[%s5503_s21] ss:$0 sm:$0xff] }
 0xe89   : > { %v2964_v4 = vmul.f32 0.044715, %v2960_v0  ;;  %v2962_v7 = vmul.f32 %v2958_v1, %v2952_v41  ;;  %v3682_v0 = vld [vmem:[%s760_s16] ss:$0 sm:$0xff] }
 0xe8a   : > { %v2965_v36 = vmul.f32 0.044715, %v2961_v2  ;;  %v2963_v8 = vmul.f32 %v2959_v3, %v2954_v27 }
 0xe8b   : > { %v2968_v33 = vadd.f32 %v2964_v4, %v2948_v59  ;;  %v2966_v34 = vmul.f32 0.044715, %v2962_v7 }
 0xe8c   : > { %v2969_v9 = vadd.f32 %v2965_v36, %v2950_v61  ;;  %v2967_v10 = vmul.f32 0.044715, %v2963_v8 }
 0xe8d   : > { %v2972_v11 = vmul.f32 0.7978846, %v2968_v33  ;;  %v2970_v12 = vadd.f32 %v2966_v34, %v2952_v41 }
 0xe8e   : > { %v2973_v13 = vmul.f32 0.7978846, %v2969_v9  ;;  %v2971_v14 = vadd.f32 %v2967_v10, %v2954_v27 }
 0xe8f   : > { %4151 = vtanh.f32 %v2972_v11  ;;  %v2974_v15 = vmul.f32 0.7978846, %v2970_v12 }
 0xe90   : > { %4153 = vtanh.f32 %v2973_v13  ;;  %v2975_v16 = vmul.f32 0.7978846, %v2971_v14 }
 0xe91   : > { %4155 = vtanh.f32 %v2974_v15 }
 0xe92   : > { %4157 = vtanh.f32 %v2975_v16 }
 0xe99   : > { %v4152_v17 = vpop.eup %4151 }
 0xe9a   : > { %v4154_v18 = vpop.eup %4153  ;;  %v2980_v19 = vadd.f32 1.0, %v4152_v17 }
 0xe9b   : > { %v4156_v20 = vpop.eup %4155  ;;  %v2981_v21 = vadd.f32 1.0, %v4154_v18 }
 0xe9c   : > { %v4158_v22 = vpop.eup %4157  ;;  %v2984_v23 = vmul.f32 0.5, %v2980_v19  ;;  %v2982_v24 = vadd.f32 1.0, %v4156_v20 }
 0xe9d   : > { %v2983_v25 = vadd.f32 1.0, %v4158_v22  ;;  %v2985_v50 = vmul.f32 0.5, %v2981_v21 }
 0xe9e   : > { %v2986_v28 = vmul.f32 0.5, %v2982_v24  ;;  %v2988_v30 = vmul.f32 %v2984_v23, %v2948_v59 }
 0xe9f   : > { %v2987_v29 = vmul.f32 0.5, %v2983_v25  ;;  %v2989_v37 = vmul.f32 %v2985_v50, %v2950_v61 }
 0xea0   : > { %v2990_v47 = vmul.f32 %v2986_v28, %v2952_v41 }
 0xea1   : > { %v2991_v38 = vmul.f32 %v2987_v29, %v2954_v27 }
 0xea2   : > { %v3024_v39 = vpack.c.bf16 %v2990_v47, %v2988_v30 }
 0xea3   : > { %v3025_v40 = vpack.c.bf16 %v2991_v38, %v2989_v37 }
 0xea5   : > { %3161 = vmatprep.mubr.bf16.mxu1 %v3025_v40 }
 0xea6   : > { %3162 = vmatmul.mubr.bf16.vlgmr.msra.gmra.mrb[32].mxu1 %v3024_v39 }
 0xf79   : > { %v3769_v42 = vpop.f32.mrb[32].mxu1 }
 0xf7a   : > { %v3770_v45 = vpop.f32.mrb[33].mxu1 }
 0xf7b   : > { %v3771_v44 = vadd.f32 %v3770_v45, %v3769_v42  ;;  %v3772_v48 = vpop.f32.mrb[34].mxu1 }
 0xf7c   : > { %v3773_v5 = vpop.f32.mrb[35].mxu1 }
 0xf7d   : > { %v3164_v6 = vadd.f32 %v3771_v44, %v3664_v43  ;;  %v3774_v49 = vadd.f32 %v3773_v5, %v3772_v48 }
 0xf7f   : > { %v3167_v51 = vadd.f32 %v3774_v49, %v3664_v43  ;;  %v3170_v46 = vadd.f32 %v3164_v6, %v5336_v32 }
 0xf81   : > { %3174 = vadd.xlane.f32.xlu0 %v3170_v46  ;;  %v3171_v52 = vadd.f32 %v3167_v51, %v5338_v35 }
 0xf85   : > { %3176 = vadd.xlane.f32.xlu0 %v3171_v52 }
0x100e   : > { %v3175_v54 = vpop.xlane.xlu0 %3174 }
0x100f   : > { %v3178_v31 = vmul.f32 0.0078125, %v3175_v54 }
0x1011   : > { %v3180_v55 = vsub.f32 %v3170_v46, %v3178_v31 }
0x1012   : > { %v3177_v56 = vpop.xlane.xlu0 %3176 }
0x1013   : > { %v3179_v57 = vmul.f32 0.0078125, %v3177_v56  ;;  %v3182_v58 = vmul.f32 %v3180_v55, %v3180_v55 }
0x1015   : > { %v3181_v59 = vsub.f32 %v3171_v52, %v3179_v57  ;;  %3184 = vadd.xlane.f32.xlu0 %v3182_v58 }
0x1017   : > { %v3183_v60 = vmul.f32 %v3181_v59, %v3181_v59 }
0x1019   : > { %3186 = vadd.xlane.f32.xlu1 %v3183_v60 }
0x10a2   : > { %v3185_v61 = vpop.xlane.xlu0 %3184 }
0x10a3   : > { %v3188_v62 = vmul.f32 0.0078125, %v3185_v61 }
0x10a5   : > { %v3190_v63 = vadd.f32 1e-12, %v3188_v62 }
0x10a6   : > { %v3187_v32 = vpop.xlane.xlu1 %3186 }
0x10a7   : > { %4159 = vrsqrt.f32 %v3190_v63  ;;  %v3189_v41 = vmul.f32 0.0078125, %v3187_v32 }
0x10a9   : > { %v3191_v35 = vadd.f32 1e-12, %v3189_v41 }
0x10ab   : > { %4161 = vrsqrt.f32 %v3191_v35 }
0x10b1   : > { %v4160_v53 = vpop.eup %4159 }
0x10b2   : > { %v3194_v27 = vmul.f32 %v4160_v53, %v3180_v55 }
0x10b4   : > { %v3202_v1 = vmul.f32 %v3681_v26, %v3194_v27 }
0x10b5   : > { %v4162_v2 = vpop.eup %4161 }
0x10b6   : > { %v3210_v3 = vadd.f32 %v3682_v0, %v3202_v1  ;;  %v3195_v4 = vmul.f32 %v4162_v2, %v3181_v59 }
0x10b8   : > { %3212 = vst [vmem:[#allocation2] sm:$0xff] %v3210_v3  ;;  %v3203_v7 = vmul.f32 %v3681_v26, %v3195_v4 }
0x10ba   : > { %v3211_v36 = vadd.f32 %v3682_v0, %v3203_v7 }
0x10bc   : > { %3213 = vst [vmem:[#allocation2 + $0x8] sm:$0xff] %v3211_v36  ;;  %v3698_v8 = vpack.c.bf16 %v3211_v36, %v3210_v3 }
0x10be   : > { %3699 = vst [vmem:[%s5059_s24] sm:$0xff] %v3698_v8  }
0x10bf PF: > { %s5504_s10 = sld [smem:[#allocation31_spill]]  ;;  %s5505_s23 = sld [smem:[#allocation25_spill]] }
0x10c0   : > { %s5506_s24 = sld [smem:[#allocation26_spill]]  ;;  %s5507_s25 = sld [smem:[#allocation34_spill]] }
0x10c1   : > { %s5508_s0 = sld [smem:[#allocation29_spill]]  ;;  %s5509_s26 = sld [smem:[#allocation30_spill]] }
0x10c2   : > { %s5510_s27 = sld [smem:[#allocation32_spill]]  ;;  %s5511_s28 = sld [smem:[#allocation33_spill]] }
0x10c5   : > { %s43_s29 = sadd.s32 1, %s5504_s10  }
0x10c6   : > { %p40_p3 = scmp.ge.s32.totalorder %s43_s29, 6  }
0x10c8   :  { %42 = sbr.rel (!%p40_p3) target bundleno = 34 (0x22), region = 228 }
0x10cf   :  { %3245 = vsyncpa [#allocation6], 1 }
0x10d0   :  { %3247 = vsyncpa [#allocation6 + $0x1], 1 }
0x10d1   :  { %3248 = vsyncpa [#allocation8], 1 }
0x10d2   :  { %3250 = vsyncpa [#allocation8 + $0x1], 1 }
0x10d3   :  { %3251 = vsyncpa [#allocation11], 1 }
0x10d4   :  { %3253 = vsyncpa [#allocation11 + $0x1], 1 }
0x10d5   :  { %3254 = vsyncpa [#allocation14], 1 }
0x10d6   :  { %3256 = vsyncpa [#allocation14 + $0x1], 1 }
0x10d7   :  { %3257 = vsyncpa [#allocation17], 1 }
0x10d8   :  { %3259 = vsyncpa [#allocation17 + $0x1], 1 }

// kernel: lxmert_meme_forward.6
= control target key start
LH: loop header
LB: loop body
LE: loop exit
PB: predicated region body
PF: predicated region fallthrough
CT: control target
= control target key end

     0   :  { %v3956_v1 = vmov 0   ;;  %v3957_v29 = vmov 0.0   ;;  %vm3958_vm0 = vmmov 0   ;;  %v198_v30 = vlaneseq  ;;  %s3961_s30 = smov 32   ;;  %s4484_s4 = inlined_call_operand.vmem [shape: bf16[128,256], index: 4, kind: input, shape index: {}]   ;;  %s4485_s2 = inlined_call_operand.vmem [shape: bf16[128,128], index: 2, kind: input, shape index: {}]   ;;  %s4486_s0 = inlined_call_operand.vmem [shape: bf16[32,128], index: 0, kind: input, shape index: {}]   ;;  %s4487_s1 = inlined_call_operand.vmem [shape: bf16[32,128], index: 1, kind: input, shape index: {}]   ;;  %s4488_s5 = inlined_call_operand.vmem [shape: f32[1,256], index: 5, kind: input, shape index: {}]   ;;  %s4489_s3 = inlined_call_operand.vmem [shape: f32[1,128], index: 3, kind: input, shape index: {}]   ;;  %s4490_s6 = inlined_call_operand.vmem [shape: bf16[128,128], index: 6, kind: input, shape index: {}]   ;;  %s4491_s7 = inlined_call_operand.vmem [shape: f32[1,128], index: 7, kind: input, shape index: {}]   ;;  %s4492_s8 = inlined_call_operand.vmem [shape: f32[1,128], index: 8, kind: input, shape index: {}]   ;;  %s4493_s9 = inlined_call_operand.vmem [shape: f32[1,128], index: 9, kind: input, shape index: {}]   ;;  %s4494_s10 = inlined_call_operand.vmem [shape: bf16[32,128], index: 10, kind: output, shape index: {}]  }
   0x1   :  { %v3836_v0 = vld [vmem:[%s4484_s4 + $0x4] ss:$8 sps:$4 sm:$0xff]   ;;  %332 = vmatprep.mubr.bf16.mxu1 %v3956_v1  ;;  %v3838_v2 = vld [vmem:[%s4484_s4] ss:$8 sps:$4 sm:$0xff]   ;;  %v3840_v4 = vld [vmem:[%s4484_s4 + $0x14] ss:$8 sps:$4 sm:$0xff]  }
   0x2   :  { %300 = vmatprep.subr.bf16.mxu1 %v3836_v0  ;;  %v3839_v3 = vld [vmem:[%s4485_s2] sm:$0xff]   ;;  %v3842_v5 = vld [vmem:[%s4484_s4 + $0x10] ss:$8 sps:$4 sm:$0xff]   ;;  %v3843_v6 = vld [vmem:[%s4485_s2 + $0x8] sm:$0xff]   ;;  %v199_v31 = vshrl.u32 %v198_v30, 7  ;;  %vm369_vm1 = vcmask 261120  }
   0x3   :  { %301 = vmatpush1.bf16.msra.mxu1 %v3838_v2  ;;  %3606 = vmatprep.subr.bf16.mxu0 %v3839_v3  ;;  %v3844_v7 = vld [vmem:[%s4484_s4 + $0x24] ss:$8 sps:$4 sm:$0xff]   ;;  %v3847_v8 = vld [vmem:[%s4485_s2 + $0x10] sm:$0xff]   ;;  %v3846_v9 = vld [vmem:[%s4484_s4 + $0x20] ss:$8 sps:$4 sm:$0xff]   ;;  %vm678_vm2 = vcmask 64512  }
   0x4   :  { %3607 = vmatpush3.bf16.msra.mxu0 %v3839_v3  ;;  %302 = vmatprep.subr.bf16.mxu1 %v3840_v4  ;;  %v3848_v10 = vld [vmem:[%s4484_s4 + $0x34] ss:$8 sps:$4 sm:$0xff]   ;;  %v3850_v12 = vld [vmem:[%s4484_s4 + $0x30] ss:$8 sps:$4 sm:$0xff]   ;;  %v3852_v13 = vld [vmem:[%s4484_s4 + $0x44] ss:$8 sps:$4 sm:$0xff]  }
   0x5   :  { %3608 = vmatprep.subr.bf16.mxu0 %v3843_v6  ;;  %v3851_v11 = vld [vmem:[%s4485_s2 + $0x18] sm:$0xff]   ;;  %v3855_v14 = vld [vmem:[%s4485_s2 + $0x20] sm:$0xff]   ;;  %v3859_v17 = vld [vmem:[%s4485_s2 + $0x28] sm:$0xff]   ;;  %v200_v32 = vsub.s32 0, %v199_v31  ;;  %v204_v44 = vsub.s32 1, %v199_v31 }
   0x6   :  { %v3854_v15 = vld [vmem:[%s4484_s4 + $0x40] ss:$8 sps:$4 sm:$0xff]   ;;  %v3856_v16 = vld [vmem:[%s4484_s4 + $0x54] ss:$8 sps:$4 sm:$0xff]   ;;  %v3858_v18 = vld [vmem:[%s4484_s4 + $0x50] ss:$8 sps:$4 sm:$0xff]  }
   0x7   :  { %303 = vmatpush1.bf16.msra.mxu1 %v3842_v5  ;;  %v36_v19 = vld [vmem:[%s4486_s0] sm:$0xff]   ;;  %v3863_v21 = vld [vmem:[%s4485_s2 + $0x30] sm:$0xff]   ;;  %v3867_v24 = vld [vmem:[%s4485_s2 + $0x38] sm:$0xff]  }
   0x8   :  { %304 = vmatprep.subr.bf16.mxu1 %v3844_v7  ;;  %3609 = vmatpush3.bf16.msra.mxu0 %v3843_v6  ;;  %v3860_v20 = vld [vmem:[%s4484_s4 + $0x64] ss:$8 sps:$4 sm:$0xff]   ;;  %v3862_v22 = vld [vmem:[%s4484_s4 + $0x60] ss:$8 sps:$4 sm:$0xff]   ;;  %v3864_v23 = vld [vmem:[%s4484_s4 + $0x74] ss:$8 sps:$4 sm:$0xff]  }
   0x9   :  { %3610 = vmatprep.subr.bf16.mxu0 %v3847_v8  ;;  %3622 = vmatprep.mubr.bf16.mxu0 %v36_v19  ;;  %v3866_v25 = vld [vmem:[%s4484_s4 + $0x70] ss:$8 sps:$4 sm:$0xff]   ;;  %v38_v26 = vld [vmem:[%s4486_s0 + $0x8] sm:$0xff]   ;;  %v3868_v27 = vld [vmem:[%s4487_s1] sm:$0xff]  }
   0xa   :  { %v3871_v28 = vld [vmem:[%s4487_s1 + $0x8] sm:$0xff]   ;;  %v196_v33 = vld [vmem:[%s4488_s5] sm:$0x3]  ;;  %s3960_s5 = smov 64  }
   0xb   :  { %305 = vmatpush1.bf16.msra.mxu1 %v3846_v9  ;;  %v201_v34 = vrot.slane %v196_v33, %v200_v32  ;;  %v3401_v38 = vld [vmem:[%s4489_s3] ss:$0 sm:$0xff]  ;;  %v205_v49 = vrot.slane %v196_v33, %v204_v44  ;;  %s3959_s3 = smov 96  }
   0xc   :  { %306 = vmatprep.subr.bf16.mxu1 %v3848_v10  ;;  %3611 = vmatpush3.bf16.msra.mxu0 %v3847_v8 }
   0xd   :  { %3612 = vmatprep.subr.bf16.mxu0 %v3851_v11 }
   0xf   :  { %307 = vmatpush1.bf16.msra.mxu1 %v3850_v12 }
  0x10   :  { %308 = vmatprep.subr.bf16.mxu1 %v3852_v13  ;;  %3613 = vmatpush3.bf16.msra.mxu0 %v3851_v11 }
  0x11   :  { %3614 = vmatprep.subr.bf16.mxu0 %v3855_v14 }
  0x13   :  { %309 = vmatpush1.bf16.msra.mxu1 %v3854_v15 }
  0x14   :  { %310 = vmatprep.subr.bf16.mxu1 %v3856_v16  ;;  %3615 = vmatpush3.bf16.msra.mxu0 %v3855_v14 }
  0x15   :  { %3616 = vmatprep.subr.bf16.mxu0 %v3859_v17 }
  0x17   :  { %311 = vmatpush1.bf16.msra.mxu1 %v3858_v18 }
  0x18   :  { %312 = vmatprep.subr.bf16.mxu1 %v3860_v20  ;;  %3617 = vmatpush3.bf16.msra.mxu0 %v3859_v17 }
  0x19   :  { %3618 = vmatprep.subr.bf16.mxu0 %v3863_v21 }
  0x1b   :  { %313 = vmatpush1.bf16.msra.mxu1 %v3862_v22 }
  0x1c   :  { %314 = vmatprep.subr.bf16.mxu1 %v3864_v23  ;;  %3619 = vmatpush3.bf16.msra.mxu0 %v3863_v21 }
  0x1d   :  { %3620 = vmatprep.subr.bf16.mxu0 %v3867_v24 }
  0x1f   :  { %315 = vmatpush1.bf16.msra.mxu1 %v3866_v25 }
  0x20   :  { %3621 = vmatpush3.bf16.msra.mxu0 %v3867_v24  ;;  %3626 = vmatprep.subr.mxu1 %v3957_v29 }
  0x21   :  { %3631 = vmatprep.subr.mxu0 %v3957_v29 }
  0x22   :  { %333 = vmatmul.mubr.bf16.vlgmr.msra.gmra.mrb[0].mxu1 %v3868_v27 }
  0x23   :  { %342 = vmatprep.mubr.bf16.mxu1 %v3956_v1  ;;  %3623 = vmatmul.mubr.bf16.vlgmr.msra.gmra.mrb[0].mxu0 %v38_v26 }
  0x24   :  { %3633 = vmatprep.mubr.msk.f32.mxu0 %vm3958_vm0, %v3957_v29 }
  0x2a   :  { %343 = vmatmul.mubr.bf16.gmra.mrb[4].mxu1 %v3871_v28 }
  0x2b   :  { %3628 = vmatprep.mubr.msk.f32.mxu1 %vm3958_vm0, %v3957_v29 }
  0xf5   :  { %v334_v35 = vpop.f32.mrb[0].mxu1 }
  0xf6   :  { %v4112_v36 = vadd.f32 %v334_v35, %v201_v34  ;;  %v336_v37 = vpop.f32.mrb[1].mxu1  ;;  %v3624_v39 = vpop.f32.mrb[0].mxu0 }
  0xf7   :  { %v338_v40 = vpop.f32.mrb[2].mxu1  ;;  %v161_v42 = vpop.f32.mrb[1].mxu0  ;;  %v4147_v57 = vadd.f32 %v3624_v39, %v3401_v38  ;;  %v4152_v59 = vadd.f32 %v336_v37, %v205_v49 }
  0xf8   :  { %v4117_v41 = vadd.f32 %v338_v40, %v201_v34  ;;  %v340_v43 = vpop.f32.mrb[3].mxu1  ;;  %3627 = vmatpush3.xpose.msk.msra.mxu1 %vm369_vm1, %v4112_v36  ;;  %v4121_v45 = vadd.f32 %v3401_v38, %v161_v42  ;;  %v3625_v46 = vpop.f32.mrb[2].mxu0 }
  0xf9   :  { %3641 = vmatprep.subr.mxu1 %v3957_v29  ;;  %v164_v47 = vpop.f32.mrb[3].mxu0  ;;  %v4156_v60 = vadd.f32 %v3625_v46, %v3401_v38  ;;  %v4161_v61 = vadd.f32 %v340_v43, %v205_v49 }
  0xfa   :  { %3632 = vmatpush3.xpose.msk.msra.mxu0 %vm369_vm1, %v4117_v41  ;;  %v4126_v48 = vadd.f32 %v3401_v38, %v164_v47 }
  0xfb   :  { %3636 = vmatprep.subr.mxu0 %v3957_v29  ;;  %3629 = vmatmul.mubr.msk.f32.vlgmr.msra.gmra.mrb[8].mxu1 %vm369_vm1, %v4121_v45 }
  0xfc   :  { %3643 = vmatprep.mubr.msk.f32.mxu1 %vm3958_vm0, %v3957_v29  ;;  %1095 = vrot.lane.b32.xlu1 %v4126_v48, %s3959_s3 }
  0xfd   :  { %v344_v50 = vpop.f32.mrb[4].mxu1  ;;  %3634 = vmatmul.mubr.msk.f32.vlgmr.msra.gmra.mrb[4].mxu0 %vm369_vm1, %v4126_v48 }
  0xfe   :  { %v4137_v51 = vadd.f32 %v344_v50, %v201_v34  ;;  %v346_v52 = vpop.f32.mrb[5].mxu1  ;;  %3638 = vmatprep.mubr.msk.f32.mxu0 %vm3958_vm0, %v3957_v29 }
  0xff   :  { %v4141_v53 = vadd.f32 %v346_v52, %v205_v49  ;;  %v348_v54 = vpop.f32.mrb[6].mxu1 }
 0x100   :  { %v4143_v55 = vadd.f32 %v348_v54, %v201_v34  ;;  %3637 = vmatpush3.xpose.msk.msra.mxu0 %vm369_vm1, %v4137_v51  ;;  %v350_v56 = vpop.f32.mrb[7].mxu1 }
 0x101   :  { %v4149_v58 = vadd.f32 %v350_v56, %v205_v49  ;;  %3646 = vmatprep.subr.mxu0 %v3957_v29 }
 0x102   :  { %3642 = vmatpush3.xpose.msk.msra.mxu1 %vm369_vm1, %v4143_v55 }
 0x103   :  { %3639 = vmatmul.mubr.msk.f32.vlgmr.msra.gmra.mrb[6].mxu0 %vm369_vm1, %v4147_v57  ;;  %3651 = vmatprep.subr.mxu1 %v3957_v29 }
 0x104   :  { %3647 = vmatpush3.msra.mxu0 %v4152_v59  ;;  %3648 = vmatprep.mubr.msk.f32.mxu0 %vm3958_vm0, %v3957_v29 }
 0x105   :  { %3644 = vmatmul.mubr.msk.f32.vlgmr.msra.gmra.mrb[10].mxu1 %vm369_vm1, %v4156_v60  ;;  %3656 = vmatprep.subr.mxu0 %v3957_v29 }
 0x106   :  { %3652 = vmatpush3.msra.mxu1 %v4161_v61  ;;  %3653 = vmatprep.mubr.msk.f32.mxu1 %vm3958_vm0, %v3957_v29 }
 0x107   :  { %3661 = vmatprep.subr.mxu1 %v3957_v29 }
 0x16e   :  { %v1096_v24 = vpop.permute.xlu1 %1095 }
 0x1ce   :  { %v442_v62 = vpop.f32.mrb[8].mxu1 }
 0x1cf   :  { %v3630_v63 = vpop.f32.mrb[9].mxu1  ;;  %v4177_v10 = vmul.f32 0.17677669, %v442_v62 }
 0x1d0   :  { %v518_v0 = vpop.f32.mrb[4].mxu0 }
 0x1d1   :  { %v675_v1 = vmul.f32 0.17677669, %v518_v0  ;;  %v3635_v2 = vpop.f32.mrb[5].mxu0  ;;  %v679_v11 = vsel %vm678_vm2, %v4177_v10, -inf }
 0x1d3   :  { %v682_v3 = vsel %vm678_vm2, %v675_v1, -inf }
 0x1d4   :  { %683 = vmax.xlane.f32.xlu0 %v682_v3 }
 0x1d6   :  { %v594_v4 = vpop.f32.mrb[6].mxu0 }
 0x1d7   :  { %v3640_v5 = vpop.f32.mrb[7].mxu0  ;;  %v676_v22 = vmul.f32 0.17677669, %v594_v4 }
 0x1d8   :  { %v670_v6 = vpop.f32.mrb[10].mxu1 }
 0x1d9   :  { %v677_v7 = vmul.f32 0.17677669, %v670_v6  ;;  %v3645_v8 = vpop.f32.mrb[11].mxu1  ;;  %v685_v23 = vsel %vm678_vm2, %v676_v22, -inf }
 0x1db   :  { %v688_v9 = vsel %vm678_vm2, %v677_v7, -inf }
 0x1dc   :  { %689 = vmax.xlane.f32.xlu0 %v688_v9 }
 0x1f2   :  { %1097 = vrot.lane.b32.xlu0 %v4117_v41, %s3959_s3 }
 0x211   :  { %680 = vmax.xlane.f32.xlu0 %v679_v11 }
 0x261   :  { %v684_v12 = vpop.xlane.xlu0 %683 }
 0x262   :  { %v692_v13 = vsub.f32 %v675_v1, %v684_v12 }
 0x264   :  { %v697_v14 = vmul.f32 1.442695, %v692_v13 }
 0x266   :  { %3882 = vpow2.f32 %v697_v14 }
 0x269   :  { %v690_v15 = vpop.xlane.xlu0 %689 }
 0x26a   :  { %v694_v16 = vsub.f32 %v677_v7, %v690_v15 }
 0x26c   :  { %v701_v17 = vmul.f32 1.442695, %v694_v16 }
 0x26d   :  { %v1098_v32 = vpop.permute.xlu0 %1097 }
 0x26e   :  { %3884 = vpow2.f32 %v701_v17 }
 0x270   :  { %v3883_v18 = vpop.eup %3882 }
 0x271   :  { %v706_v19 = vsel %vm678_vm2, %v3883_v18, 0.0 }
 0x272   :  { %707 = vadd.xlane.f32.xlu1 %v706_v19 }
 0x278   :  { %v3885_v20 = vpop.eup %3884 }
 0x279   :  { %v712_v21 = vsel %vm678_vm2, %v3885_v20, 0.0 }
 0x27a   :  { %713 = vadd.xlane.f32.xlu1 %v712_v21 }
 0x28b   :  { %1253 = vrot.lane.b32.xlu1 %v4143_v55, %s3959_s3 }
 0x28f   :  { %1251 = vrot.lane.b32.xlu1 %v4156_v60, %s3959_s3 }
 0x29e   :  { %v681_v42 = vpop.xlane.xlu0 %680 }
 0x29f   :  { %v691_v46 = vsub.f32 %v4177_v10, %v681_v42 }
 0x2a1   :  { %v695_v47 = vmul.f32 1.442695, %v691_v46 }
 0x2b3   :  { %686 = vmax.xlane.f32.xlu1 %v685_v23 }
 0x2ff   :  { %v708_v25 = vpop.xlane.xlu1 %707 }
 0x300   :  { %3886 = vrcp.f32 %v708_v25 }
 0x307   :  { %v714_v26 = vpop.xlane.xlu1 %713 }
 0x308   :  { %3888 = vrcp.f32 %v714_v26 }
 0x30a   :  { %v3887_v27 = vpop.eup %3886 }
 0x30b   :  { %v718_v28 = vmul.f32 %v3887_v27, %v3883_v18  ;;  %v1254_v33 = vpop.permute.xlu1 %1253 }
 0x30d   :  { %3654 = vmatmul.mubr.msk.f32.vlgmr.msra.gmra.mrb[12].mxu1 %vm678_vm2, %v718_v28 }
 0x30e   :  { %3662 = vmatpush3.msra.mxu1 %v4149_v58  ;;  %3663 = vmatprep.mubr.msk.f32.mxu1 %vm3958_vm0, %v3957_v29 }
 0x30f   :  { %3671 = vmatprep.subr.mxu1 %v3957_v29  ;;  %v1252_v34 = vpop.permute.xlu1 %1251 }
 0x312   :  { %v3889_v30 = vpop.eup %3888 }
 0x313   :  { %v722_v31 = vmul.f32 %v3889_v30, %v3885_v20 }
 0x315   :  { %3664 = vmatmul.mubr.msk.f32.vlgmr.msra.gmra.mrb[14].mxu1 %vm678_vm2, %v722_v31 }
 0x316   :  { %3672 = vmatpush3.xpose.msk.msra.mxu1 %vm369_vm1, %v1098_v32  ;;  %3673 = vmatprep.mubr.msk.f32.mxu1 %vm3958_vm0, %v3957_v29 }
 0x317   :  { %3681 = vmatprep.subr.mxu1 %v3957_v29 }
 0x319   :  { %3674 = vmatmul.mubr.msk.f32.vlgmr.msra.gmra.mrb[16].mxu1 %vm369_vm1, %v1096_v24 }
 0x31a   :  { %3682 = vmatpush3.xpose.msk.msra.mxu1 %vm369_vm1, %v1254_v33  ;;  %3683 = vmatprep.mubr.msk.f32.mxu1 %vm3958_vm0, %v3957_v29 }
 0x31b   :  { %3691 = vmatprep.subr.mxu1 %v3957_v29 }
 0x31d   :  { %3684 = vmatmul.mubr.msk.f32.vlgmr.msra.gmra.mrb[18].mxu1 %vm369_vm1, %v1252_v34 }
 0x31e   :  { %3693 = vmatprep.mubr.msk.f32.mxu1 %vm3958_vm0, %v3957_v29 }
 0x340   :  { %v687_v35 = vpop.xlane.xlu1 %686 }
 0x341   :  { %v693_v37 = vsub.f32 %v676_v22, %v687_v35 }
 0x343   :  { %v699_v38 = vmul.f32 1.442695, %v693_v37 }
 0x345   :  { %3890 = vpow2.f32 %v699_v38 }
 0x346   :  { %3892 = vpow2.f32 %v695_v47 }
 0x34f   :  { %v3891_v39 = vpop.eup %3890 }
 0x350   :  { %v709_v40 = vsel %vm678_vm2, %v3891_v39, 0.0  ;;  %v3893_v3 = vpop.eup %3892 }
 0x351   :  { %710 = vadd.xlane.f32.xlu1 %v709_v40  ;;  %v703_v4 = vsel %vm678_vm2, %v3893_v3, 0.0 }
 0x362   :  { %1017 = vrot.lane.b32.xlu1 %v4121_v45, %s3959_s3 }
 0x366   :  { %1175 = vrot.lane.b32.xlu1 %v4137_v51, %s3959_s3 }
 0x36a   :  { %1173 = vrot.lane.b32.xlu1 %v4147_v57, %s3959_s3 }
 0x36e   :  { %1609 = vrot.lane.b32.xlu1 %v4149_v58, %s3959_s3 }
 0x372   :  { %1821 = vrot.lane.b32.xlu1 %v4121_v45, %s3960_s5 }
 0x3de   :  { %v711_v12 = vpop.xlane.xlu1 %710 }
 0x3e0   :  { %v4217_v43 = vpop.f32.mrb[12].mxu1 }
 0x3e1   :  { %v3655_v44 = vpop.f32.mrb[13].mxu1 }
 0x3e2   :  { %v1018_v21 = vpop.permute.xlu1 %1017 }
 0x3e6   :  { %v1176_v23 = vpop.permute.xlu1 %1175 }
 0x3e8   :  { %v4220_v49 = vpop.f32.mrb[14].mxu1 }
 0x3e9   :  { %v3665_v50 = vpop.f32.mrb[15].mxu1 }
 0x3ea   :  { %v1174_v24 = vpop.permute.xlu1 %1173 }
 0x3ec   :  { %v1169_v52 = vpop.f32.mrb[16].mxu1 }
 0x3ed   :  { %v1330_v54 = vmul.f32 0.17677669, %v1169_v52  ;;  %v3675_v56 = vpop.f32.mrb[17].mxu1 }
 0x3ee   :  { %v1610_v25 = vpop.permute.xlu1 %1609 }
 0x3ef   :  { %v1336_v62 = vsel %vm678_vm2, %v1330_v54, -inf }
 0x3f0   :  { %1337 = vmax.xlane.f32.xlu0 %v1336_v62  ;;  %v1325_v63 = vpop.f32.mrb[18].mxu1 }
 0x3f1   :  { %v1332_v0 = vmul.f32 0.17677669, %v1325_v63  ;;  %v3685_v1 = vpop.f32.mrb[19].mxu1 }
 0x3f2   :  { %v1822_v26 = vpop.permute.xlu1 %1821 }
 0x3f3   :  { %v1342_v2 = vsel %vm678_vm2, %v1332_v0, -inf }
 0x3f4   :  { %1343 = vmax.xlane.f32.xlu0 %v1342_v2 }
 0x3f8   :  { %704 = vadd.xlane.f32.xlu0 %v703_v4 }
 0x40e   :  { %1019 = vrot.lane.b32.xlu0 %v4112_v36, %s3959_s3 }
 0x47d   :  { %v1338_v5 = vpop.xlane.xlu0 %1337 }
 0x47e   :  { %v1346_v6 = vsub.f32 %v1330_v54, %v1338_v5 }
 0x480   :  { %v1351_v7 = vmul.f32 1.442695, %v1346_v6 }
 0x481   :  { %v1344_v8 = vpop.xlane.xlu0 %1343 }
 0x482   :  { %3894 = vpow2.f32 %v1351_v7  ;;  %v1348_v9 = vsub.f32 %v1332_v0, %v1344_v8 }
 0x484   :  { %v1355_v10 = vmul.f32 1.442695, %v1348_v9 }
 0x485   :  { %v705_v11 = vpop.xlane.xlu0 %704 }
 0x486   :  { %3896 = vpow2.f32 %v1355_v10 }
 0x487   :  { %3898 = vrcp.f32 %v705_v11 }
 0x488   :  { %3900 = vrcp.f32 %v711_v12 }
 0x489   :  { %v1020_v22 = vpop.permute.xlu0 %1019 }
 0x48c   :  { %v3895_v13 = vpop.eup %3894 }
 0x48d   :  { %v1360_v14 = vsel %vm678_vm2, %v3895_v13, 0.0 }
 0x48e   :  { %1361 = vadd.xlane.f32.xlu0 %v1360_v14 }
 0x490   :  { %v3897_v15 = vpop.eup %3896 }
 0x491   :  { %v3899_v16 = vpop.eup %3898  ;;  %v1366_v17 = vsel %vm678_vm2, %v3897_v15, 0.0 }
 0x492   :  { %v716_v18 = vmul.f32 %v3899_v16, %v3893_v3  ;;  %1367 = vadd.xlane.f32.xlu1 %v1366_v17  ;;  %v3901_v19 = vpop.eup %3900 }
 0x493   :  { %v720_v20 = vmul.f32 %v3901_v19, %v3891_v39 }
 0x494   :  { %3649 = vmatmul.mubr.msk.f32.vlgmr.msra.gmra.mrb[8].mxu0 %vm678_vm2, %v716_v18 }
 0x495   :  { %3657 = vmatpush3.msra.mxu0 %v4141_v53  ;;  %3658 = vmatprep.mubr.msk.f32.mxu0 %vm3958_vm0, %v3957_v29 }
 0x496   :  { %3666 = vmatprep.subr.mxu0 %v3957_v29 }
 0x498   :  { %3659 = vmatmul.mubr.msk.f32.vlgmr.msra.gmra.mrb[10].mxu0 %vm678_vm2, %v720_v20 }
 0x499   :  { %3668 = vmatprep.mubr.msk.f32.mxu0 %vm3958_vm0, %v3957_v29 }
 0x49c   :  { %3667 = vmatpush3.xpose.msk.msra.mxu0 %vm369_vm1, %v1020_v22 }
 0x49d   :  { %3676 = vmatprep.subr.mxu0 %v3957_v29 }
 0x49f   :  { %3669 = vmatmul.mubr.msk.f32.vlgmr.msra.gmra.mrb[12].mxu0 %vm369_vm1, %v1018_v21 }
 0x4a0   :  { %3677 = vmatpush3.xpose.msk.msra.mxu0 %vm369_vm1, %v1176_v23  ;;  %3678 = vmatprep.mubr.msk.f32.mxu0 %vm3958_vm0, %v3957_v29 }
 0x4a1   :  { %3686 = vmatprep.subr.mxu0 %v3957_v29 }
 0x4a3   :  { %3679 = vmatmul.mubr.msk.f32.vlgmr.msra.gmra.mrb[14].mxu0 %vm369_vm1, %v1174_v24  ;;  %1899 = vrot.lane.b32.xlu1 %v4126_v48, %s3960_s5 }
 0x4a4   :  { %1455 = vrot.lane.b32.xlu0 %v4161_v61, %s3959_s3  ;;  %3688 = vmatprep.mubr.msk.f32.mxu0 %vm3958_vm0, %v3957_v29 }
 0x4a7   :  { %1977 = vrot.lane.b32.xlu1 %v4147_v57, %s3960_s5 }
 0x4a8   :  { %1823 = vrot.lane.b32.xlu0 %v4112_v36, %s3960_s5 }
 0x4ab   :  { %2055 = vrot.lane.b32.xlu1 %v4156_v60, %s3960_s5 }
 0x4ac   :  { %1901 = vrot.lane.b32.xlu0 %v4117_v41, %s3960_s5 }
 0x4b0   :  { %1979 = vrot.lane.b32.xlu0 %v4137_v51, %s3960_s5 }
 0x4b4   :  { %2057 = vrot.lane.b32.xlu0 %v4143_v55, %s3960_s5 }
 0x51b   :  { %v1362_v27 = vpop.xlane.xlu0 %1361 }
 0x51c   :  { %3902 = vrcp.f32 %v1362_v27 }
 0x51f   :  { %v1368_v28 = vpop.xlane.xlu1 %1367  ;;  %v1456_v30 = vpop.permute.xlu0 %1455 }
 0x520   :  { %3904 = vrcp.f32 %v1368_v28  ;;  %3692 = vmatpush3.msra.mxu1 %v1456_v30 }
 0x521   :  { %3701 = vmatprep.subr.mxu1 %v3957_v29 }
 0x523   :  { %v1824_v34 = vpop.permute.xlu0 %1823  ;;  %v1900_v38 = vpop.permute.xlu1 %1899 }
 0x526   :  { %v3903_v31 = vpop.eup %3902 }
 0x527   :  { %v1372_v32 = vmul.f32 %v3903_v31, %v3895_v13  ;;  %v1902_v37 = vpop.permute.xlu0 %1901  ;;  %v1978_v40 = vpop.permute.xlu1 %1977 }
 0x529   :  { %3694 = vmatmul.mubr.msk.f32.vlgmr.msra.gmra.mrb[20].mxu1 %vm678_vm2, %v1372_v32 }
 0x52a   :  { %v3905_v33 = vpop.eup %3904  ;;  %3702 = vmatpush3.msra.mxu1 %v1610_v25  ;;  %3703 = vmatprep.mubr.msk.f32.mxu1 %vm3958_vm0, %v3957_v29 }
 0x52b   :  { %v1376_v35 = vmul.f32 %v3905_v33, %v3897_v15  ;;  %3722 = vmatprep.subr.mxu1 %v3957_v29  ;;  %v1980_v39 = vpop.permute.xlu0 %1979  ;;  %v2056_v44 = vpop.permute.xlu1 %2055 }
 0x52d   :  { %3704 = vmatmul.mubr.msk.f32.vlgmr.msra.gmra.mrb[22].mxu1 %vm678_vm2, %v1376_v35 }
 0x52e   :  { %3724 = vmatprep.mubr.msk.f32.mxu1 %vm3958_vm0, %v3957_v29 }
 0x52f   :  { %v2058_v42 = vpop.permute.xlu0 %2057 }
 0x531   :  { %3723 = vmatpush3.xpose.msk.msra.mxu1 %vm369_vm1, %v1824_v34 }
 0x532   :  { %3727 = vmatprep.subr.mxu1 %v3957_v29 }
 0x534   :  { %3725 = vmatmul.mubr.msk.f32.vlgmr.msra.gmra.mrb[24].mxu1 %vm369_vm1, %v1822_v26 }
 0x535   :  { %3728 = vmatpush3.xpose.msk.msra.mxu1 %vm369_vm1, %v1902_v37  ;;  %3729 = vmatprep.mubr.msk.f32.mxu1 %vm3958_vm0, %v3957_v29 }
 0x536   :  { %3732 = vmatprep.subr.mxu1 %v3957_v29 }
 0x538   :  { %3730 = vmatmul.mubr.msk.f32.vlgmr.msra.gmra.mrb[26].mxu1 %vm369_vm1, %v1900_v38 }
 0x539   :  { %3733 = vmatpush3.xpose.msk.msra.mxu1 %vm369_vm1, %v1980_v39  ;;  %3734 = vmatprep.mubr.msk.f32.mxu1 %vm3958_vm0, %v3957_v29 }
 0x53a   :  { %3737 = vmatprep.subr.mxu1 %v3957_v29 }
 0x53c   :  { %3735 = vmatmul.mubr.msk.f32.vlgmr.msra.gmra.mrb[28].mxu1 %vm369_vm1, %v1978_v40 }
 0x53d   :  { %3738 = vmatpush3.xpose.msk.msra.mxu1 %vm369_vm1, %v2058_v42  ;;  %3739 = vmatprep.mubr.msk.f32.mxu1 %vm3958_vm0, %v3957_v29 }
 0x53e   :  { %3742 = vmatprep.subr.mxu1 %v3957_v29 }
 0x540   :  { %3740 = vmatmul.mubr.msk.f32.vlgmr.msra.gmra.mrb[30].mxu1 %vm369_vm1, %v2056_v44 }
 0x541   :  { %3744 = vmatprep.mubr.msk.f32.mxu1 %vm3958_vm0, %v3957_v29 }
 0x567   :  { %v4291_v46 = vpop.f32.mrb[8].mxu0 }
 0x568   :  { %v1015_v47 = vpack.c.bf16 %v4217_v43, %v4291_v46  ;;  %v3650_v50 = vpop.f32.mrb[9].mxu0 }
 0x56b   :  { %v4295_v52 = vpop.f32.mrb[10].mxu0 }
 0x56c   :  { %v1016_v54 = vpack.c.bf16 %v4220_v49, %v4295_v52  ;;  %v3660_v56 = vpop.f32.mrb[11].mxu0 }
 0x572   :  { %v1091_v62 = vpop.f32.mrb[12].mxu0 }
 0x573   :  { %v1329_v63 = vmul.f32 0.17677669, %v1091_v62  ;;  %v3670_v0 = vpop.f32.mrb[13].mxu0 }
 0x575   :  { %v1333_v1 = vsel %vm678_vm2, %v1329_v63, -inf }
 0x576   :  { %1334 = vmax.xlane.f32.xlu0 %v1333_v1  ;;  %v1247_v2 = vpop.f32.mrb[14].mxu0 }
 0x577   :  { %v1331_v3 = vmul.f32 0.17677669, %v1247_v2  ;;  %v3680_v4 = vpop.f32.mrb[15].mxu0 }
 0x579   :  { %v1339_v5 = vsel %vm678_vm2, %v1331_v3, -inf }
 0x57a   :  { %1340 = vmax.xlane.f32.xlu1 %v1339_v5 }
 0x5fc   :  { %v4301_v6 = vpop.f32.mrb[20].mxu1 }
 0x5fd   :  { %v3695_v7 = vpop.f32.mrb[21].mxu1 }
 0x600   :  { %v4303_v8 = vpop.f32.mrb[22].mxu1 }
 0x601   :  { %v3705_v9 = vpop.f32.mrb[23].mxu1 }
 0x603   :  { %v1335_v10 = vpop.xlane.xlu0 %1334 }
 0x604   :  { %v1345_v11 = vsub.f32 %v1329_v63, %v1335_v10 }
 0x606   :  { %v1349_v12 = vmul.f32 1.442695, %v1345_v11 }
 0x607   :  { %v1341_v13 = vpop.xlane.xlu1 %1340  ;;  %v1895_v14 = vpop.f32.mrb[24].mxu1 }
 0x608   :  { %v1347_v15 = vsub.f32 %v1331_v3, %v1341_v13  ;;  %v2133_v16 = vmul.f32 0.17677669, %v1895_v14  ;;  %v3726_v17 = vpop.f32.mrb[25].mxu1  ;;  %3906 = vpow2.f32 %v1349_v12 }
 0x60a   :  { %v1353_v18 = vmul.f32 1.442695, %v1347_v15  ;;  %v2137_v19 = vsel %vm678_vm2, %v2133_v16, -inf }
 0x60b   :  { %2138 = vmax.xlane.f32.xlu0 %v2137_v19  ;;  %v1973_v20 = vpop.f32.mrb[26].mxu1 }
 0x60c   :  { %3908 = vpow2.f32 %v1353_v18  ;;  %v3731_v21 = vpop.f32.mrb[27].mxu1 }
 0x60f   :  { %v2051_v22 = vpop.f32.mrb[28].mxu1 }
 0x610   :  { %v2135_v23 = vmul.f32 0.17677669, %v2051_v22  ;;  %v3736_v24 = vpop.f32.mrb[29].mxu1 }
 0x612   :  { %v2143_v25 = vsel %vm678_vm2, %v2135_v23, -inf  ;;  %v3907_v26 = vpop.eup %3906 }
 0x613   :  { %2144 = vmax.xlane.f32.xlu0 %v2143_v25  ;;  %v2129_v27 = vpop.f32.mrb[30].mxu1  ;;  %v1357_v31 = vsel %vm678_vm2, %v3907_v26, 0.0 }
 0x614   :  { %v3741_v28 = vpop.f32.mrb[31].mxu1 }
 0x616   :  { %v3909_v30 = vpop.eup %3908 }
 0x617   :  { %v1363_v32 = vsel %vm678_vm2, %v3909_v30, 0.0  ;;  %1358 = vadd.xlane.f32.xlu0 %v1357_v31 }
 0x618   :  { %1364 = vadd.xlane.f32.xlu1 %v1363_v32 }
 0x629   :  { %1532 = vrot.lane.b32.xlu1 %v4141_v53, %s3959_s3 }
 0x62d   :  { %1378 = vrot.lane.b32.xlu0 %v4152_v59, %s3959_s3 }
 0x698   :  { %v2139_v33 = vpop.xlane.xlu0 %2138 }
 0x699   :  { %v2149_v34 = vsub.f32 %v2133_v16, %v2139_v33 }
 0x69b   :  { %v2153_v35 = vmul.f32 1.442695, %v2149_v34 }
 0x69d   :  { %3910 = vpow2.f32 %v2153_v35  ;;  %v3875_v35 = vld [vmem:[%s4490_s6 + $0x8] sm:$0xff]  }
 0x6a0   :  { %v2145_v37 = vpop.xlane.xlu0 %2144 }
 0x6a1   :  { %v2151_v38 = vsub.f32 %v2135_v23, %v2145_v37 }
 0x6a3   :  { %v2157_v39 = vmul.f32 1.442695, %v2151_v38 }
 0x6a4   :  { %v1359_v40 = vpop.xlane.xlu0 %1358 }
 0x6a5   :  { %3912 = vpow2.f32 %v2157_v39  ;;  %v1365_v42 = vpop.xlane.xlu1 %1364 }
 0x6a6   :  { %3914 = vrcp.f32 %v1359_v40 }
 0x6a7   :  { %v3911_v44 = vpop.eup %3910  ;;  %3916 = vrcp.f32 %v1365_v42 }
 0x6a8   :  { %v1379_v50 = vpop.permute.xlu0 %1378  ;;  %v2161_v56 = vsel %vm678_vm2, %v3911_v44, 0.0 }
 0x6a9   :  { %2162 = vadd.xlane.f32.xlu1 %v2161_v56  ;;  %3687 = vmatpush3.msra.mxu0 %v1379_v50  ;;  %v1533_v3 = vpop.permute.xlu1 %1532 }
 0x6aa   :  { %3696 = vmatprep.subr.mxu0 %v3957_v29 }
 0x6af   :  { %v3913_v62 = vpop.eup %3912 }
 0x6b0   :  { %v2167_v63 = vsel %vm678_vm2, %v3913_v62, 0.0  ;;  %v3915_v0 = vpop.eup %3914 }
 0x6b1   :  { %2168 = vadd.xlane.f32.xlu0 %v2167_v63  ;;  %v1370_v1 = vmul.f32 %v3915_v0, %v3907_v26  ;;  %v3917_v2 = vpop.eup %3916 }
 0x6b2   :  { %v1374_v4 = vmul.f32 %v3917_v2, %v3909_v30 }
 0x6b3   :  { %3689 = vmatmul.mubr.msk.f32.vlgmr.msra.gmra.mrb[16].mxu0 %vm678_vm2, %v1370_v1 }
 0x6b4   :  { %3697 = vmatpush3.msra.mxu0 %v1533_v3  ;;  %3698 = vmatprep.mubr.msk.f32.mxu0 %vm3958_vm0, %v3957_v29 }
 0x6b7   :  { %3699 = vmatmul.mubr.msk.f32.vlgmr.msra.gmra.mrb[18].mxu0 %vm678_vm2, %v1374_v4 }
 0x6ba   :  { %2333 = vrot.lane.b32.xlu1 %v4141_v53, %s3960_s5 }
 0x6be   :  { %2560 = vrot.lane.b32.xlu1 %v4112_v36, %s3961_s30  ;;  %v2134_v36 = vmul.f32 0.17677669, %v1973_v20 }
 0x6c2   :  { %2558 = vrot.lane.b32.xlu1 %v4121_v45, %s3961_s30  ;;  %v2136_v45 = vmul.f32 0.17677669, %v2129_v27 }
 0x6c4   :  { %v2146_v5 = vsel %vm678_vm2, %v2136_v45, -inf }
 0x6c6   :  { %2636 = vrot.lane.b32.xlu1 %v4126_v48, %s3961_s30  ;;  %v2140_v48 = vsel %vm678_vm2, %v2134_v36, -inf }
 0x6c7   :  { %2181 = vrot.lane.b32.xlu0 %v4152_v59, %s3960_s5 }
 0x6ca   :  { %2714 = vrot.lane.b32.xlu1 %v4147_v57, %s3961_s30 }
 0x6cb   :  { %2638 = vrot.lane.b32.xlu0 %v4117_v41, %s3961_s30  ;;  %v3872_v41 = vld [vmem:[%s4490_s6 + $0x10] sm:$0xff]  }
 0x6cc   :  { %3706 = vmatprep.subr.bf16.mxu0 %v3872_v41 }
 0x6cd   :  { %3707 = vmatpush3.bf16.msra.mxu0 %v3872_v41 }
 0x6ce   :  { %2792 = vrot.lane.b32.xlu1 %v4156_v60, %s3961_s30 }
 0x6cf   :  { %2716 = vrot.lane.b32.xlu0 %v4137_v51, %s3961_s30  ;;  %v3873_v51 = vld [vmem:[%s4490_s6 + $0x18] sm:$0xff]  }
 0x6d0   :  { %3708 = vmatprep.subr.bf16.mxu0 %v3873_v51 }
 0x6d1   :  { %3709 = vmatpush3.bf16.msra.mxu0 %v3873_v51 }
 0x6d3   :  { %2794 = vrot.lane.b32.xlu0 %v4143_v55, %s3961_s30  ;;  %v4353_v55 = vld [vmem:[%s4490_s6] sm:$0xff]  }
 0x6d4   :  { %3714 = vmatprep.subr.bf16.mxu0 %v4353_v55 }
 0x6f2   :  { %2141 = vmax.xlane.f32.xlu0 %v2140_v48  ;;  %2147 = vmax.xlane.f32.xlu1 %v2146_v5 }
 0x703   :  { %2409 = vrot.lane.b32.xlu1 %v4149_v58, %s3960_s5 }
 0x736   :  { %v2163_v57 = vpop.xlane.xlu1 %2162 }
 0x737   :  { %3918 = vrcp.f32 %v2163_v57 }
 0x73a   :  { %v2334_v60 = vpop.permute.xlu1 %2333 }
 0x73e   :  { %v2169_v7 = vpop.xlane.xlu0 %2168  ;;  %v2561_v12 = vpop.permute.xlu1 %2560 }
 0x73f   :  { %3920 = vrcp.f32 %v2169_v7  ;;  %v3876_v7 = vld [vmem:[%s4490_s6 + $0x20] sm:$0xff]  }
 0x741   :  { %v3919_v9 = vpop.eup %3918 }
 0x742   :  { %v2174_v10 = vmul.f32 %v3919_v9, %v3911_v44  ;;  %v2182_v11 = vpop.permute.xlu0 %2181  ;;  %v2559_v14 = vpop.permute.xlu1 %2558  ;;  %v3877_v9 = vld [vmem:[%s4490_s6 + $0x28] sm:$0xff]  }
 0x743   :  { %3743 = vmatpush3.msra.mxu1 %v2182_v11 }
 0x744   :  { %3745 = vmatmul.mubr.msk.f32.vlgmr.msra.gmra.mrb[32].mxu1 %vm678_vm2, %v2174_v10  ;;  %3752 = vmatprep.subr.mxu1 %v3957_v29 }
 0x745   :  { %3753 = vmatpush3.msra.mxu1 %v2334_v60  ;;  %3754 = vmatprep.mubr.msk.f32.mxu1 %vm3958_vm0, %v3957_v29 }
 0x746   :  { %3770 = vmatprep.subr.mxu1 %v3957_v29  ;;  %v2639_v16 = vpop.permute.xlu0 %2638  ;;  %v2637_v17 = vpop.permute.xlu1 %2636 }
 0x749   :  { %v3921_v13 = vpop.eup %3920 }
 0x74a   :  { %v2178_v15 = vmul.f32 %v3921_v13, %v3913_v62  ;;  %v2717_v18 = vpop.permute.xlu0 %2716  ;;  %v2715_v19 = vpop.permute.xlu1 %2714 }
 0x74c   :  { %3755 = vmatmul.mubr.msk.f32.vlgmr.msra.gmra.mrb[34].mxu1 %vm678_vm2, %v2178_v15 }
 0x74d   :  { %3771 = vmatpush3.xpose.msk.msra.mxu1 %vm369_vm1, %v2561_v12  ;;  %3772 = vmatprep.mubr.msk.f32.mxu1 %vm3958_vm0, %v3957_v29 }
 0x74e   :  { %3775 = vmatprep.subr.mxu1 %v3957_v29  ;;  %v2795_v20 = vpop.permute.xlu0 %2794  ;;  %v2793_v21 = vpop.permute.xlu1 %2792 }
 0x750   :  { %3773 = vmatmul.mubr.msk.f32.vlgmr.msra.gmra.mrb[36].mxu1 %vm369_vm1, %v2559_v14 }
 0x751   :  { %3776 = vmatpush3.xpose.msk.msra.mxu1 %vm369_vm1, %v2639_v16  ;;  %3777 = vmatprep.mubr.msk.f32.mxu1 %vm3958_vm0, %v3957_v29 }
 0x752   :  { %3780 = vmatprep.subr.mxu1 %v3957_v29 }
 0x754   :  { %3778 = vmatmul.mubr.msk.f32.vlgmr.msra.gmra.mrb[38].mxu1 %vm369_vm1, %v2637_v17 }
 0x755   :  { %3781 = vmatpush3.xpose.msk.msra.mxu1 %vm369_vm1, %v2717_v18  ;;  %3782 = vmatprep.mubr.msk.f32.mxu1 %vm3958_vm0, %v3957_v29 }
 0x756   :  { %3785 = vmatprep.subr.mxu1 %v3957_v29 }
 0x758   :  { %3783 = vmatmul.mubr.msk.f32.vlgmr.msra.gmra.mrb[40].mxu1 %vm369_vm1, %v2715_v19 }
 0x759   :  { %3786 = vmatpush3.xpose.msk.msra.mxu1 %vm369_vm1, %v2795_v20  ;;  %3787 = vmatprep.mubr.msk.f32.mxu1 %vm3958_vm0, %v3957_v29 }
 0x75a   :  { %3795 = vmatprep.subr.mxu1 %v3957_v29 }
 0x75c   :  { %3788 = vmatmul.mubr.msk.f32.vlgmr.msra.gmra.mrb[42].mxu1 %vm369_vm1, %v2793_v21 }
 0x75d   :  { %3797 = vmatprep.mubr.msk.f32.mxu1 %vm3958_vm0, %v3957_v29 }
 0x77f   :  { %v2142_v22 = vpop.xlane.xlu0 %2141  ;;  %v2148_v23 = vpop.xlane.xlu1 %2147 }
 0x780   :  { %v2150_v24 = vsub.f32 %v2134_v36, %v2142_v22  ;;  %v2152_v25 = vsub.f32 %v2136_v45, %v2148_v23 }
 0x782   :  { %v2155_v26 = vmul.f32 1.442695, %v2150_v24  ;;  %v2159_v27 = vmul.f32 1.442695, %v2152_v25 }
 0x783   :  { %v2410_v3 = vpop.permute.xlu1 %2409 }
 0x784   :  { %3922 = vpow2.f32 %v2155_v26 }
 0x785   :  { %3924 = vpow2.f32 %v2159_v27 }
 0x786   :  { %v1450_v28 = vpop.f32.mrb[16].mxu0 }
 0x787   :  { %v1685_v30 = vpack.c.bf16 %v4301_v6, %v1450_v28  ;;  %v3690_v31 = vpop.f32.mrb[17].mxu0 }
 0x789   :  { %3710 = vmatprep.mubr.msk.bf16.mxu0 %vm369_vm1, %v1685_v30 }
 0x78a   :  { %v1604_v32 = vpop.f32.mrb[18].mxu0 }
 0x78b   :  { %v1686_v33 = vpack.c.bf16 %v4303_v8, %v1604_v32  ;;  %v3700_v34 = vpop.f32.mrb[19].mxu0 }
 0x78d   :  { %3711 = vmatmul.mubr.msk.bf16.vlgmr.msra.gmra.mrb[20].mxu0 %vm369_vm1, %v1686_v33 }
 0x78e   :  { %v3923_v37 = vpop.eup %3922  ;;  %3718 = vmatprep.mubr.msk.bf16.mxu0 %vm369_vm1, %v1015_v47  ;;  %3715 = vmatpush3.bf16.msra.mxu0 %v4353_v55 }
 0x78f   :  { %v2164_v6 = vsel %vm678_vm2, %v3923_v37, 0.0  ;;  %v3925_v38 = vpop.eup %3924  ;;  %3716 = vmatprep.subr.bf16.mxu0 %v3875_v35 }
 0x790   :  { %2165 = vadd.xlane.f32.xlu0 %v2164_v6  ;;  %v2170_v8 = vsel %vm678_vm2, %v3925_v38, 0.0 }
 0x792   :  { %3717 = vmatpush3.bf16.msra.mxu0 %v3875_v35 }
 0x793   :  { %3747 = vmatprep.subr.mxu0 %v3957_v29 }
 0x794   :  { %2171 = vadd.xlane.f32.xlu0 %v2170_v8 }
 0x799   :  { %3719 = vmatmul.mubr.msk.bf16.vlgmr.msra.gmra.mrb[20].mxu0 %vm369_vm1, %v1016_v54 }
 0x79a   :  { %3749 = vmatprep.mubr.msk.f32.mxu0 %vm3958_vm0, %v3957_v29 }
 0x7aa   :  { %2257 = vrot.lane.b32.xlu0 %v4161_v61, %s3960_s5 }
 0x817   :  { %v4407_v43 = vpop.f32.mrb[32].mxu1 }
 0x818   :  { %v3746_v46 = vpop.f32.mrb[33].mxu1 }
 0x81d   :  { %v2166_v47 = vpop.xlane.xlu0 %2165 }
 0x81e   :  { %3926 = vrcp.f32 %v2166_v47 }
 0x81f   :  { %v4409_v39 = vpop.f32.mrb[34].mxu1 }
 0x820   :  { %v3756_v40 = vpop.f32.mrb[35].mxu1 }
 0x821   :  { %v2172_v42 = vpop.xlane.xlu0 %2171 }
 0x822   :  { %3928 = vrcp.f32 %v2172_v42 }
 0x823   :  { %v2632_v44 = vpop.f32.mrb[36].mxu1 }
 0x824   :  { %v2870_v49 = vmul.f32 0.17677669, %v2632_v44  ;;  %v3774_v52 = vpop.f32.mrb[37].mxu1 }
 0x825   :  { %v2258_v54 = vpop.permute.xlu0 %2257 }
 0x826   :  { %3748 = vmatpush3.msra.mxu0 %v2258_v54  ;;  %v2874_v50 = vsel %vm678_vm2, %v2870_v49, -inf  ;;  %v3878_v54 = vld [vmem:[%s4490_s6 + $0x30] sm:$0xff]  }
 0x827   :  { %2875 = vmax.xlane.f32.xlu1 %v2874_v50  ;;  %v2710_v56 = vpop.f32.mrb[38].mxu1  ;;  %3757 = vmatprep.subr.mxu0 %v3957_v29  ;;  %v3879_v50 = vld [vmem:[%s4490_s6 + $0x38] sm:$0xff]  }
 0x828   :  { %v3927_v62 = vpop.eup %3926  ;;  %v2871_v63 = vmul.f32 0.17677669, %v2710_v56  ;;  %v3779_v0 = vpop.f32.mrb[39].mxu1 }
 0x829   :  { %v2176_v1 = vmul.f32 %v3927_v62, %v3923_v37 }
 0x82a   :  { %v2877_v2 = vsel %vm678_vm2, %v2871_v63, -inf }
 0x82b   :  { %3750 = vmatmul.mubr.msk.f32.vlgmr.msra.gmra.mrb[24].mxu0 %vm678_vm2, %v2176_v1  ;;  %2878 = vmax.xlane.f32.xlu0 %v2877_v2  ;;  %v2788_v4 = vpop.f32.mrb[40].mxu1 }
 0x82c   :  { %v3929_v36 = vpop.eup %3928  ;;  %3758 = vmatpush3.msra.mxu0 %v2410_v3  ;;  %v2872_v45 = vmul.f32 0.17677669, %v2788_v4  ;;  %v3784_v48 = vpop.f32.mrb[41].mxu1  ;;  %3759 = vmatprep.mubr.msk.f32.mxu0 %vm3958_vm0, %v3957_v29 }
 0x82d   :  { %v2180_v5 = vmul.f32 %v3929_v36, %v3925_v38  ;;  %3762 = vmatprep.subr.bf16.mxu0 %v3876_v7  ;;  %v3954_v48 = vld [vmem:[%s4486_s0] sm:$0xff]  }
 0x82e   :  { %v2880_v41 = vsel %vm678_vm2, %v2872_v45, -inf }
 0x82f   :  { %3760 = vmatmul.mubr.msk.f32.vlgmr.msra.gmra.mrb[26].mxu0 %vm678_vm2, %v2180_v5  ;;  %2881 = vmax.xlane.f32.xlu0 %v2880_v41  ;;  %v2866_v51 = vpop.f32.mrb[42].mxu1  ;;  %v40_v5 = vunpack.c.l.bf16 %v3954_v48 }
 0x830   :  { %v2873_v55 = vmul.f32 0.17677669, %v2866_v51  ;;  %v3789_v57 = vpop.f32.mrb[43].mxu1  ;;  %3763 = vmatpush3.bf16.msra.mxu0 %v3876_v7 }
 0x831   :  { %3764 = vmatprep.subr.bf16.mxu0 %v3877_v9 }
 0x832   :  { %v2883_v60 = vsel %vm678_vm2, %v2873_v55, -inf }
 0x833   :  { %2884 = vmax.xlane.f32.xlu1 %v2883_v60 }
 0x834   :  { %3765 = vmatpush3.bf16.msra.mxu0 %v3877_v9 }
 0x835   :  { %3790 = vmatprep.subr.mxu0 %v3957_v29 }
 0x8b4   :  { %v2876_v10 = vpop.xlane.xlu1 %2875 }
 0x8b5   :  { %v2886_v11 = vsub.f32 %v2870_v49, %v2876_v10 }
 0x8b7   :  { %v2890_v12 = vmul.f32 1.442695, %v2886_v11 }
 0x8b8   :  { %v2879_v13 = vpop.xlane.xlu0 %2878 }
 0x8b9   :  { %3930 = vpow2.f32 %v2890_v12  ;;  %v2887_v14 = vsub.f32 %v2871_v63, %v2879_v13  ;;  %v3955_v12 = vld [vmem:[%s4486_s0 + $0x8] sm:$0xff]  }
 0x8ba   :  { %v42_v13 = vunpack.c.l.bf16 %v3955_v12 }
 0x8bb   :  { %v2892_v15 = vmul.f32 1.442695, %v2887_v14 }
 0x8bc   :  { %v2882_v16 = vpop.xlane.xlu0 %2881 }
 0x8bd   :  { %3932 = vpow2.f32 %v2892_v15  ;;  %v2888_v17 = vsub.f32 %v2872_v45, %v2882_v16  ;;  %v3494_v45 = vld [vmem:[%s4491_s7] ss:$0 sm:$0xff] }
 0x8bf   :  { %v2894_v18 = vmul.f32 1.442695, %v2888_v17  ;;  %v43_v17 = vunpack.c.h.bf16 %v3955_v12 }
 0x8c0   :  { %v2885_v25 = vpop.xlane.xlu1 %2884 }
 0x8c1   :  { %3934 = vpow2.f32 %v2894_v18  ;;  %v2889_v26 = vsub.f32 %v2873_v55, %v2885_v25  ;;  %v41_v55 = vunpack.c.h.bf16 %v3954_v48 }
 0x8c3   :  { %v3931_v19 = vpop.eup %3930  ;;  %v2896_v27 = vmul.f32 1.442695, %v2889_v26 }
 0x8c4   :  { %v2898_v20 = vsel %vm678_vm2, %v3931_v19, 0.0 }
 0x8c5   :  { %2899 = vadd.xlane.f32.xlu0 %v2898_v20  ;;  %3936 = vpow2.f32 %v2896_v27 }
 0x8c7   :  { %v3933_v21 = vpop.eup %3932 }
 0x8c8   :  { %v2901_v22 = vsel %vm678_vm2, %v3933_v21, 0.0 }
 0x8c9   :  { %2902 = vadd.xlane.f32.xlu1 %v2901_v22 }
 0x8cb   :  { %v3935_v23 = vpop.eup %3934 }
 0x8cc   :  { %v2904_v24 = vsel %vm678_vm2, %v3935_v23, 0.0 }
 0x8cd   :  { %2905 = vadd.xlane.f32.xlu0 %v2904_v24 }
 0x8cf   :  { %v3937_v28 = vpop.eup %3936 }
 0x8d0   :  { %v2907_v33 = vsel %vm678_vm2, %v3937_v28, 0.0 }
 0x8da   :  { %2994 = vrot.lane.b32.xlu1 %v4161_v61, %s3961_s30 }
 0x8de   :  { %3070 = vrot.lane.b32.xlu1 %v4141_v53, %s3961_s30 }
 0x8e3   :  { %2918 = vrot.lane.b32.xlu0 %v4152_v59, %s3961_s30 }
 0x8fe   :  { %v2329_v30 = vpop.f32.mrb[24].mxu0 }
 0x8ff   :  { %v2485_v31 = vpack.c.bf16 %v2329_v30, %v4407_v43  ;;  %v3751_v32 = vpop.f32.mrb[25].mxu0 }
 0x901   :  { %3766 = vmatprep.mubr.msk.bf16.mxu0 %vm369_vm1, %v2485_v31 }
 0x902   :  { %v2481_v61 = vpop.f32.mrb[26].mxu0  ;;  %2908 = vadd.xlane.f32.xlu1 %v2907_v33 }
 0x903   :  { %v2486_v53 = vpack.c.bf16 %v2481_v61, %v4409_v39  ;;  %v3761_v34 = vpop.f32.mrb[27].mxu0 }
 0x905   :  { %3767 = vmatmul.mubr.msk.bf16.vlgmr.msra.gmra.mrb[20].mxu0 %vm369_vm1, %v2486_v53 }
 0x906   :  { %3792 = vmatprep.mubr.msk.f32.mxu0 %vm3958_vm0, %v3957_v29 }
 0x913   :  { %3146 = vrot.lane.b32.xlu1 %v4149_v58, %s3961_s30 }
 0x952   :  { %v2900_v59 = vpop.xlane.xlu0 %2899 }
 0x953   :  { %3938 = vrcp.f32 %v2900_v59 }
 0x956   :  { %v2903_v35 = vpop.xlane.xlu1 %2902 }
 0x957   :  { %3940 = vrcp.f32 %v2903_v35 }
 0x95a   :  { %v2906_v37 = vpop.xlane.xlu0 %2905  ;;  %v2995_v6 = vpop.permute.xlu1 %2994 }
 0x95b   :  { %3942 = vrcp.f32 %v2906_v37  ;;  %3796 = vmatpush3.msra.mxu1 %v2995_v6 }
 0x95c   :  { %3805 = vmatprep.subr.mxu1 %v3957_v29 }
 0x95d   :  { %v3939_v38 = vpop.eup %3938 }
 0x95e   :  { %v2911_v8 = vmul.f32 %v3939_v38, %v3931_v19  ;;  %v2919_v43 = vpop.permute.xlu0 %2918  ;;  %v3071_v46 = vpop.permute.xlu1 %3070 }
 0x95f   :  { %3791 = vmatpush3.msra.mxu0 %v2919_v43 }
 0x960   :  { %3793 = vmatmul.mubr.msk.f32.vlgmr.msra.gmra.mrb[28].mxu0 %vm678_vm2, %v2911_v8  ;;  %3800 = vmatprep.subr.mxu0 %v3957_v29 }
 0x961   :  { %v3941_v58 = vpop.eup %3940  ;;  %3801 = vmatpush3.msra.mxu0 %v3071_v46  ;;  %3802 = vmatprep.mubr.msk.f32.mxu0 %vm3958_vm0, %v3957_v29 }
 0x962   :  { %v2913_v47 = vmul.f32 %v3941_v58, %v3933_v21  ;;  %3810 = vmatprep.subr.bf16.mxu0 %v3878_v54 }
 0x964   :  { %3798 = vmatmul.mubr.msk.f32.vlgmr.msra.gmra.mrb[44].mxu1 %vm678_vm2, %v2913_v47 }
 0x965   :  { %v3943_v39 = vpop.eup %3942  ;;  %3807 = vmatprep.mubr.msk.f32.mxu1 %vm3958_vm0, %v3957_v29 }
 0x966   :  { %v2915_v40 = vmul.f32 %v3943_v39, %v3935_v23 }
 0x968   :  { %3803 = vmatmul.mubr.msk.f32.vlgmr.msra.gmra.mrb[30].mxu0 %vm678_vm2, %v2915_v40 }
 0x969   :  { %3811 = vmatpush3.bf16.msra.mxu0 %v3878_v54 }
 0x96a   :  { %3812 = vmatprep.subr.bf16.mxu0 %v3879_v50 }
 0x96d   :  { %3813 = vmatpush3.bf16.msra.mxu0 %v3879_v50 }
 0x98f   :  { %v2909_v42 = vpop.xlane.xlu1 %2908 }
 0x990   :  { %3944 = vrcp.f32 %v2909_v42  ;;  %v3495_v42 = vld [vmem:[%s4492_s8] ss:$0 sm:$0xff] }
 0x993   :  { %v3147_v44 = vpop.permute.xlu1 %3146 }
 0x994   :  { %3806 = vmatpush3.msra.mxu1 %v3147_v44 }
 0x99a   :  { %v3945_v49 = vpop.eup %3944 }
 0x99b   :  { %v2917_v52 = vmul.f32 %v3945_v49, %v3937_v28 }
 0x99d   :  { %3808 = vmatmul.mubr.msk.f32.vlgmr.msra.gmra.mrb[46].mxu1 %vm678_vm2, %v2917_v52 }
 0xa33   :  { %v2990_v29 = vpop.f32.mrb[28].mxu0 }
 0xa34   :  { %v3794_v56 = vpop.f32.mrb[29].mxu0 }
 0xa37   :  { %v3066_v62 = vpop.f32.mrb[44].mxu1 }
 0xa38   :  { %v3222_v63 = vpack.c.bf16 %v3066_v62, %v2990_v29  ;;  %v3799_v0 = vpop.f32.mrb[45].mxu1  ;;  %v3496_v29 = vld [vmem:[%s4493_s9] ss:$0 sm:$0xff] }
 0xa3a   :  { %3814 = vmatprep.mubr.msk.bf16.mxu0 %vm369_vm1, %v3222_v63 }
 0xa3b   :  { %v3142_v1 = vpop.f32.mrb[30].mxu0 }
 0xa3c   :  { %v3804_v2 = vpop.f32.mrb[31].mxu0 }
 0xa70   :  { %v3218_v3 = vpop.f32.mrb[46].mxu1 }
 0xa71   :  { %v3223_v4 = vpack.c.bf16 %v3218_v3, %v3142_v1  ;;  %v3809_v36 = vpop.f32.mrb[47].mxu1 }
 0xa73   :  { %3815 = vmatmul.mubr.msk.bf16.vlgmr.msra.gmra.mrb[20].mxu0 %vm369_vm1, %v3223_v4 }
 0xb46   :  { %v3816_v41 = vpop.f32.mrb[20].mxu0 }
 0xb47   :  { %v3276_v51 = vpop.f32.mrb[21].mxu0  ;;  %v3304_v9 = vadd.f32 %v3816_v41, %v3494_v45 }
 0xb48   :  { %v3302_v57 = vadd.f32 %v3494_v45, %v3276_v51  ;;  %v3817_v60 = vpop.f32.mrb[22].mxu0 }
 0xb49   :  { %v3279_v7 = vpop.f32.mrb[23].mxu0  ;;  %v3305_v15 = vadd.f32 %v3817_v60, %v3494_v45  ;;  %v3308_v16 = vadd.f32 %v3304_v9, %v42_v13 }
 0xb4a   :  { %v3303_v10 = vadd.f32 %v3494_v45, %v3279_v7  ;;  %v3306_v11 = vadd.f32 %v3302_v57, %v40_v5 }
 0xb4b   :  { %v3309_v18 = vadd.f32 %v3305_v15, %v43_v17 }
 0xb4c   :  { %3312 = vadd.xlane.f32.xlu0 %v3306_v11  ;;  %v3307_v14 = vadd.f32 %v3303_v10, %v41_v55 }
 0xb4e   :  { %3314 = vadd.xlane.f32.xlu1 %v3307_v14 }
 0xb50   :  { %3316 = vadd.xlane.f32.xlu0 %v3308_v16 }
 0xb54   :  { %3318 = vadd.xlane.f32.xlu0 %v3309_v18 }
 0xbd9   :  { %v3313_v19 = vpop.xlane.xlu0 %3312 }
 0xbda   :  { %v3321_v20 = vmul.f32 0.0078125, %v3313_v19 }
 0xbdb   :  { %v3315_v21 = vpop.xlane.xlu1 %3314 }
 0xbdc   :  { %v3325_v22 = vsub.f32 %v3306_v11, %v3321_v20  ;;  %v3322_v23 = vmul.f32 0.0078125, %v3315_v21 }
 0xbdd   :  { %v3317_v24 = vpop.xlane.xlu0 %3316 }
 0xbde   :  { %v3326_v25 = vsub.f32 %v3307_v14, %v3322_v23  ;;  %v3323_v26 = vmul.f32 0.0078125, %v3317_v24  ;;  %v3329_v27 = vmul.f32 %v3325_v22, %v3325_v22 }
 0xbe0   :  { %v3327_v28 = vsub.f32 %v3308_v16, %v3323_v26  ;;  %3333 = vadd.xlane.f32.xlu0 %v3329_v27  ;;  %v3330_v30 = vmul.f32 %v3326_v25, %v3326_v25 }
 0xbe1   :  { %v3319_v31 = vpop.xlane.xlu0 %3318 }
 0xbe2   :  { %v3324_v32 = vmul.f32 0.0078125, %v3319_v31  ;;  %3335 = vadd.xlane.f32.xlu1 %v3330_v30  ;;  %v3331_v33 = vmul.f32 %v3327_v28, %v3327_v28 }
 0xbe4   :  { %v3328_v61 = vsub.f32 %v3309_v18, %v3324_v32  ;;  %3337 = vadd.xlane.f32.xlu0 %v3331_v33 }
 0xbe6   :  { %v3332_v53 = vmul.f32 %v3328_v61, %v3328_v61 }
 0xbe8   :  { %3339 = vadd.xlane.f32.xlu1 %v3332_v53 }
 0xc6d   :  { %v3334_v34 = vpop.xlane.xlu0 %3333 }
 0xc6e   :  { %v3341_v59 = vmul.f32 0.0078125, %v3334_v34 }
 0xc6f   :  { %v3336_v35 = vpop.xlane.xlu1 %3335 }
 0xc70   :  { %v3345_v37 = vadd.f32 1e-12, %v3341_v59  ;;  %v3342_v6 = vmul.f32 0.0078125, %v3336_v35 }
 0xc71   :  { %v3338_v38 = vpop.xlane.xlu0 %3337 }
 0xc72   :  { %3946 = vrsqrt.f32 %v3345_v37  ;;  %v3346_v8 = vadd.f32 1e-12, %v3342_v6  ;;  %v3343_v43 = vmul.f32 0.0078125, %v3338_v38 }
 0xc74   :  { %3948 = vrsqrt.f32 %v3346_v8  ;;  %v3347_v46 = vadd.f32 1e-12, %v3343_v43 }
 0xc75   :  { %v3340_v58 = vpop.xlane.xlu1 %3339 }
 0xc76   :  { %3950 = vrsqrt.f32 %v3347_v46  ;;  %v3344_v47 = vmul.f32 0.0078125, %v3340_v58 }
 0xc78   :  { %v3348_v39 = vadd.f32 1e-12, %v3344_v47 }
 0xc7a   :  { %3952 = vrsqrt.f32 %v3348_v39 }
 0xc7c   :  { %v3947_v40 = vpop.eup %3946 }
 0xc7d   :  { %v3353_v44 = vmul.f32 %v3947_v40, %v3325_v22 }
 0xc7e   :  { %v3949_v49 = vpop.eup %3948 }
 0xc7f   :  { %v3363_v52 = vmul.f32 %v3495_v42, %v3353_v44  ;;  %v3354_v54 = vmul.f32 %v3949_v49, %v3326_v25 }
 0xc80   :  { %v3951_v50 = vpop.eup %3950 }
 0xc81   :  { %v3364_v56 = vmul.f32 %v3495_v42, %v3354_v54  ;;  %v3355_v62 = vmul.f32 %v3951_v50, %v3327_v28  ;;  %v3373_v63 = vadd.f32 %v3496_v29, %v3363_v52 }
 0xc83   :  { %v3374_v0 = vadd.f32 %v3496_v29, %v3364_v56  ;;  %v3365_v3 = vmul.f32 %v3495_v42, %v3355_v62 }
 0xc84   :  { %v3953_v1 = vpop.eup %3952 }
 0xc85   :  { %v3508_v2 = vpack.c.bf16 %v3374_v0, %v3373_v63  ;;  %v3356_v4 = vmul.f32 %v3953_v1, %v3328_v61  ;;  %v3375_v45 = vadd.f32 %v3496_v29, %v3365_v3 }
 0xc87   :  { %3509 = vst [vmem:[%s4494_s10] sm:$0xff] %v3508_v2   ;;  %v3366_v36 = vmul.f32 %v3495_v42, %v3356_v4 }
 0xc89   :  { %v3376_v48 = vadd.f32 %v3496_v29, %v3366_v36 }
 0xc8b   :  { %v3513_v5 = vpack.c.bf16 %v3376_v48, %v3375_v45 }
 0xc8d   :  { %3515 = vst [vmem:[%s4494_s10 + $0x8] sm:$0xff] %v3513_v5  }

// kernel: lxmert_meme_forward.7
= control target key start
LH: loop header
LB: loop body
LE: loop exit
PB: predicated region body
PF: predicated region fallthrough
CT: control target
= control target key end

     0   :  { %s4425_s0 = inlined_call_operand.vmem [shape: s32[2], index: 0, kind: input, shape index: {}]   ;;  %s4426_s1 = inlined_call_operand.vmem [shape: bf16[2,16,128], index: 1, kind: input, shape index: {}]   ;;  %s4427_s2 = inlined_call_operand.vmem [shape: bf16[2,1,128,384], index: 2, kind: input, shape index: {}]   ;;  %s4428_s3 = inlined_call_operand.vmem [shape: f32[2,1,1,384], index: 3, kind: input, shape index: {}]   ;;  %s4429_s4 = inlined_call_operand.vmem [shape: bf16[2,1,128,128], index: 4, kind: input, shape index: {}]   ;;  %s4430_s5 = inlined_call_operand.vmem [shape: f32[2,1,1,128], index: 5, kind: input, shape index: {}]   ;;  %s4431_s6 = inlined_call_operand.vmem [shape: f32[2,1,1,128], index: 6, kind: input, shape index: {}]   ;;  %s4432_s7 = inlined_call_operand.vmem [shape: f32[2,1,1,128], index: 7, kind: input, shape index: {}]   ;;  %s4433_s8 = inlined_call_operand.vmem [shape: bf16[2,1,128,256], index: 8, kind: input, shape index: {}]   ;;  %s4434_s9 = inlined_call_operand.vmem [shape: f32[2,1,1,256], index: 9, kind: input, shape index: {}]   ;;  %s4435_s10 = inlined_call_operand.vmem [shape: bf16[2,1,256,128], index: 10, kind: input, shape index: {}]   ;;  %s4436_s11 = inlined_call_operand.vmem [shape: f32[2,1,1,128], index: 11, kind: input, shape index: {}]   ;;  %s4437_s12 = inlined_call_operand.vmem [shape: f32[2,1,1,128], index: 12, kind: input, shape index: {}]   ;;  %s4438_s13 = inlined_call_operand.vmem [shape: f32[2,1,1,128], index: 13, kind: input, shape index: {}]   ;;  %s4439_s14 = inlined_call_operand.vmem [shape: bf16[2,16,128], index: 14, kind: output, shape index: {}]  }
   0x1   :  { %4442 = sst [smem:[#allocation9_spill]] %s4426_s1  ;;  %s19_s15 = sshll.u32 %s4425_s0, 4  ;;  %s20_s15 = int_to_ptr.vmem [resolvable:$true] %s19_s15 }
   0x2   :  { %4443 = sst [smem:[#allocation10_spill]] %s4427_s2  ;;  %s3890_s16 = scalar_lea.vmem %s20_s15, 16 }
   0x3   :  { %4444 = sst [smem:[#allocation11_spill]] %s4428_s3  ;;  %p3891_p0 = scmp.ne.s32.totalorder %s20_s15, %s3890_s16 }
   0x4   :  { %4445 = sst [smem:[#allocation12_spill]] %s4429_s4  ;;  %p3895_p1 = scmp.lt.s32.totalorder %s20_s15, %s20_s15 }
   0x5   :  { %4446 = sst [smem:[#allocation13_spill]] %s4431_s6  ;;  %p3896_p2 = scmp.lt.s32.totalorder %s3890_s16, %s3890_s16 }
   0x6   :  { %4447 = sst [smem:[#allocation14_spill]] %s4432_s7 }
   0x7   :  { %4448 = sst [smem:[#allocation15_spill]] %s4433_s8  ;;  %p3897_p3 = por %p3896_p2, %p3895_p1 }
   0x9   :  { %p3898_p4 = pnand %p3897_p3, %p3891_p0 }
   0xb   :  { %3901 = shalt.err (!%p3898_p4)  }
   0xc   :  { %s3928_s17 = smov [#allocation4]  }
   0xd   :  { %22 = dma.vmem_to_smem %s20_s15, 16, %s3928_s17, [#allocation3] }
   0xe   :  { %3914 = dma.done.wait [#allocation3], 16 }
   0xf   :  { %3915 = vsyncadd [#allocation3], 4294967280 }
  0x10   :  { %24 = sfence }
  0x11   :  { %s4013_s18 = smov 0   ;;  %s4015_s19 = smov 0  }
  0x12   :  { %s4017_s20 = smov 0  }
  0x13 LB: > { %4449 = sst [smem:[#allocation6_spill]] %s3922_s19  ;;  %s42_s0 = sadd.s32 1, %s3922_s19  ;;  %s3926_s20 = sphi %s4017_s20, %s30_s20   ;;  %s3922_s19 = sphi %s4015_s19, %s4466_s19   ;;  %s3918_s18 = sphi %s4013_s18, %s4465_s18  }
  0x14   : > { %4450 = sst [smem:[#allocation7_spill]] %s3926_s20  ;;  %p3389_p5 = scmp.ge.s32.totalorder %s3926_s20, 1 }
  0x15   : > { %p44_p6 = scmp.ge.s32.totalorder %s42_s0, 2  ;;  %p578_p7 = scmp.lt.s32.totalorder %s3926_s20, 3 }
  0x17   : > { %s4468_s0 = smov (%p44_p6, %s42_s0), 0  ;;  %p579_p8 = pnand %p3389_p5, %p578_p7 }
  0x18   : > { %4451 = sst [smem:[#allocation8_spill]] %s4468_s0  ;;  %p710_p9 = scmp.lt.s32.totalorder (!%p579_p8), %s3918_s18, 1 }
  0x19   : > { %582 = sbr.rel (%p579_p8) target bundleno = 3965 (0xf7d), region = 72  ;;  %s809_s21 = sld [smem:[#allocation4 + %s3918_s18]] (!%p579_p8) }
  0x1a   : > { %s4452_s1 = sld [smem:[#allocation9_spill]] (!%p579_p8)  ;;  %s4453_s2 = sld [smem:[#allocation10_spill]] (!%p579_p8) }
  0x1b   : > { %s4454_s3 = sld [smem:[#allocation11_spill]] (!%p579_p8)  ;;  %s4455_s4 = sld [smem:[#allocation12_spill]] (!%p579_p8) }
  0x1c   : > { %s4458_s8 = sld [smem:[#allocation15_spill]] (!%p579_p8) }
  0x1f   : > { %p3403_p10 = scmp.le.s32.totalorder (!%p579_p8), %s809_s21, 0 }
  0x20   : > { %s4470_s18 = smov (!%p710_p9, %s3918_s18), 1  ;;  %v3929_v5 = vmov (!%p3403_p10), 0   ;;  %v3930_v6 = vmov (!%p3403_p10), 0.0   ;;  %vm3931_vm0 = vmmov (!%p3403_p10), 0   ;;  %v861_v32 = vlaneseq (!%p3403_p10)  ;;  %s3933_s7 = smov (!%p3403_p10), 64  }
  0x21   : > { %s3506_s22 = sshll.u32 %s4470_s18, 3  ;;  %s3729_s23 = smul.u32 192, %s4470_s18  ;;  %1036 = vmatprep.mubr.bf16.mxu0 (!%p3403_p10), %v3929_v5  ;;  %3597 = vmatprep.subr.bf16.mxu1 (!%p3403_p10), %v3930_v6  ;;  %vm1104_vm1 = vcmask (!%p3403_p10), 261120   ;;  %vm1259_vm2 = vcmask (!%p3403_p10), 64512  }
  0x22   : > { %s714_s26 = scalar_lea.vmem %s4452_s1, %s3506_s22  ;;  %s3730_s27 = smul.u32 3, %s4470_s18  ;;  %3613 = vmatprep.mubr.msk.bf16.mxu1 (!%p3403_p10), %vm3931_vm0, %v3930_v6  ;;  %v4148_v33 = vshrl.u32 (!%p3403_p10), %v861_v32, 7 }
  0x23   : > { %s4042_s30 = scalar_lea.vmem %s4453_s2, %s3729_s23  ;;  %s3507_s15 = sshll.u32 %s4470_s18, 6  ;;  %v3514_v0 = vld [vmem:[%s714_s26] sm:$0xff]  }
  0x24   : > { %s4048_s0 = scalar_lea.vmem %s4454_s3, %s3730_s27  ;;  %s4053_s24 = scalar_lea.vmem %s4455_s4, %s3507_s15  ;;  %v3515_v1 = vunpack.c.l.bf16 %v3514_v0  ;;  %v3516_v2 = vunpack.c.h.bf16 %v3514_v0  ;;  %v3762_v3 = vld [vmem:[%s4042_s30 + $0x4] ss:$12 sps:$4 sm:$0xff] (!%p3403_p10)   ;;  %v3764_v4 = vld [vmem:[%s4042_s30] ss:$12 sps:$4 sm:$0xff] (!%p3403_p10)   ;;  %v3765_v7 = vld [vmem:[%s4042_s30 + $0x1c] ss:$12 sps:$4 sm:$0xff] (!%p3403_p10)  }
  0x25   : > { %s3508_s2 = sshll.u32 %s4470_s18, 7  ;;  %s3397_s3 = sshll.u32 %s4470_s18, 1  ;;  %1004 = vmatprep.subr.bf16.mxu0 (!%p3403_p10), %v3762_v3  ;;  %v3767_v8 = vld [vmem:[%s4042_s30 + $0x18] ss:$12 sps:$4 sm:$0xff] (!%p3403_p10)   ;;  %v3768_v9 = vld [vmem:[%s4042_s30 + $0x34] ss:$12 sps:$4 sm:$0xff] (!%p3403_p10)  }
  0x26   : > { %818 = vst [vmem:[#allocation2] sm:$0xff] %v3515_v1  ;;  %819 = vst [vmem:[#allocation2 + $0x8] sm:$0xff] %v3516_v2  ;;  %s4071_s15 = scalar_lea.vmem %s4458_s8, %s3508_s2  ;;  %s4077_s23 = scalar_lea.vmem %s4434_s9, %s3397_s3  ;;  %1005 = vmatpush1.bf16.msra.mxu0 (!%p3403_p10), %v3764_v4  ;;  %v3770_v10 = vld [vmem:[%s4042_s30 + $0x30] ss:$12 sps:$4 sm:$0xff] (!%p3403_p10)   ;;  %v3771_v11 = vld [vmem:[%s4042_s30 + $0x4c] ss:$12 sps:$4 sm:$0xff] (!%p3403_p10)  }
  0x27   : > { %s4082_s1 = scalar_lea.vmem %s4435_s10, %s3508_s2  ;;  %s790_s27 = scalar_lea.vmem %s4436_s11, %s4470_s18  ;;  %1006 = vmatprep.subr.bf16.mxu0 (!%p3403_p10), %v3765_v7  ;;  %v3773_v12 = vld [vmem:[%s4042_s30 + $0x48] ss:$12 sps:$4 sm:$0xff] (!%p3403_p10)   ;;  %v3774_v13 = vld [vmem:[%s4042_s30 + $0x64] ss:$12 sps:$4 sm:$0xff] (!%p3403_p10)   ;;  %v3787_v15 = vld [vmem:[%s4042_s30 + $0x20] ss:$12 sps:$4 sm:$0xff] (!%p3403_p10)  }
  0x28   : > { %s796_s19 = scalar_lea.vmem %s4437_s12, %s4470_s18  ;;  %s802_s6 = scalar_lea.vmem %s4438_s13, %s4470_s18  ;;  %v3786_v14 = vld [vmem:[%s4042_s30 + $0x8] ss:$12 sps:$4 sm:$0xff] (!%p3403_p10)   ;;  %v3776_v16 = vld [vmem:[%s4042_s30 + $0x60] ss:$12 sps:$4 sm:$0xff] (!%p3403_p10)   ;;  %v3788_v18 = vld [vmem:[%s4042_s30 + $0x38] ss:$12 sps:$4 sm:$0xff] (!%p3403_p10)  }
  0x29   : > { %s4099_s25 = scalar_lea.vmem %s4439_s14, %s3506_s22  ;;  %823 = sbr.rel (%p3403_p10) target bundleno = 3965 (0xf7d), region = 80  ;;  %3598 = vmatpush3.bf16.msra.mxu1 (!%p3403_p10), %v3786_v14  ;;  %v3777_v17 = vld [vmem:[%s4042_s30 + $0x7c] ss:$12 sps:$4 sm:$0xff] (!%p3403_p10)   ;;  %v3779_v19 = vld [vmem:[%s4042_s30 + $0x78] ss:$12 sps:$4 sm:$0xff] (!%p3403_p10)   ;;  %v867_v34 = vsub.s32 (!%p3403_p10), 1, %v4148_v33 }
  0x2a   : > { %1007 = vmatpush1.bf16.msra.mxu0 (!%p3403_p10), %v3767_v8  ;;  %3599 = vmatprep.subr.bf16.mxu1 (!%p3403_p10), %v3930_v6  ;;  %v3780_v20 = vld [vmem:[%s4042_s30 + $0x94] ss:$12 sps:$4 sm:$0xff] (!%p3403_p10)   ;;  %v3789_v21 = vld [vmem:[%s4042_s30 + $0x50] ss:$12 sps:$4 sm:$0xff] (!%p3403_p10)   ;;  %v3783_v23 = vld [vmem:[%s4042_s30 + $0xac] ss:$12 sps:$4 sm:$0xff] (!%p3403_p10)   ;;  %s4459_s22 = scalar_lea.vmem (!%p3403_p10), %s4430_s5, %s4470_s18 }
  0x2b   : > { %1008 = vmatprep.subr.bf16.mxu0 (!%p3403_p10), %v3768_v9  ;;  %v3782_v22 = vld [vmem:[%s4042_s30 + $0x90] ss:$12 sps:$4 sm:$0xff] (!%p3403_p10)   ;;  %v3790_v24 = vld [vmem:[%s4042_s30 + $0x68] ss:$12 sps:$4 sm:$0xff] (!%p3403_p10)   ;;  %v3791_v28 = vld [vmem:[%s4042_s30 + $0x80] ss:$12 sps:$4 sm:$0xff] (!%p3403_p10)  }
  0x2c   : > { %v3785_v25 = vld [vmem:[%s4042_s30 + $0xa8] ss:$12 sps:$4 sm:$0xff] (!%p3403_p10)   ;;  %v3792_v30 = vld [vmem:[%s4042_s30 + $0x98] ss:$12 sps:$4 sm:$0xff] (!%p3403_p10)   ;;  %v3793_v31 = vld [vmem:[%s4042_s30 + $0xb0] ss:$12 sps:$4 sm:$0xff] (!%p3403_p10)  }
  0x2d   : > { %3600 = vmatpush3.bf16.msra.mxu1 (!%p3403_p10), %v3787_v15  ;;  %v4129_v26 = vld [vmem:[#allocation2] sm:$0xff] (!%p3403_p10)  ;;  %v4131_v27 = vld [vmem:[#allocation2 + $0x8] sm:$0xff] (!%p3403_p10)  ;;  %v863_v36 = vsub.s32 (!%p3403_p10), 0, %v4148_v33  ;;  %v871_v45 = vsub.s32 (!%p3403_p10), 2, %v4148_v33  ;;  %s3932_s2 = smov (!%p3403_p10), 96   ;;  %s3934_s8 = smov (!%p3403_p10), 32  }
  0x2e   : > { %1009 = vmatpush1.bf16.msra.mxu0 (!%p3403_p10), %v3770_v10  ;;  %3601 = vmatprep.subr.bf16.mxu1 (!%p3403_p10), %v3930_v6  ;;  %v858_v29 = vpack.c.bf16 (!%p3403_p10), %v4131_v27, %v4129_v26  ;;  %v859_v35 = vld [vmem:[%s4048_s0] sm:$0x7] (!%p3403_p10)  ;;  %s4460_s28 = sld [smem:[#allocation13_spill]] (!%p3403_p10)  ;;  %s4462_s16 = sld [smem:[#allocation14_spill]] (!%p3403_p10) }
  0x2f   : > { %1010 = vmatprep.subr.bf16.mxu0 (!%p3403_p10), %v3771_v11  ;;  %v868_v37 = vrot.slane (!%p3403_p10), %v859_v35, %v867_v34  ;;  %v864_v39 = vrot.slane (!%p3403_p10), %v859_v35, %v863_v36  ;;  %v872_v48 = vrot.slane (!%p3403_p10), %v859_v35, %v871_v45 }
  0x31   : > { %3602 = vmatpush3.bf16.msra.mxu1 %v3788_v18 }
  0x32   : > { %1011 = vmatpush1.bf16.msra.mxu0 %v3773_v12  ;;  %3603 = vmatprep.subr.bf16.mxu1 %v3930_v6 }
  0x33   : > { %1012 = vmatprep.subr.bf16.mxu0 %v3774_v13 }
  0x34   : > { %s4463_s17 = scalar_lea.vmem %s4462_s16, %s4470_s18 }
  0x35   : > { %3604 = vmatpush3.bf16.msra.mxu1 %v3789_v21 }
  0x36   : > { %1013 = vmatpush1.bf16.msra.mxu0 %v3776_v16  ;;  %3605 = vmatprep.subr.bf16.mxu1 %v3930_v6 }
  0x37   : > { %1014 = vmatprep.subr.bf16.mxu0 %v3777_v17 }
  0x39   : > { %3606 = vmatpush3.bf16.msra.mxu1 %v3790_v24 }
  0x3a   : > { %1015 = vmatpush1.bf16.msra.mxu0 %v3779_v19  ;;  %3607 = vmatprep.subr.bf16.mxu1 %v3930_v6 }
  0x3b   : > { %1016 = vmatprep.subr.bf16.mxu0 %v3780_v20 }
  0x3d   : > { %3608 = vmatpush3.bf16.msra.mxu1 %v3791_v28 }
  0x3e   : > { %1017 = vmatpush1.bf16.msra.mxu0 %v3782_v22  ;;  %3609 = vmatprep.subr.bf16.mxu1 %v3930_v6 }
  0x3f   : > { %1018 = vmatprep.subr.bf16.mxu0 %v3783_v23 }
  0x41   : > { %3610 = vmatpush3.bf16.msra.mxu1 %v3792_v30 }
  0x42   : > { %1019 = vmatpush1.bf16.msra.mxu0 %v3785_v25  ;;  %3611 = vmatprep.subr.bf16.mxu1 %v3930_v6 }
  0x43   : > { %3617 = vmatprep.subr.mxu0 %v3930_v6 }
  0x45   : > { %1037 = vmatmul.mubr.bf16.vlgmr.msra.gmra.mrb[0].mxu0 %v858_v29  ;;  %3612 = vmatpush3.bf16.msra.mxu1 %v3793_v31 }
  0x46   : > { %3619 = vmatprep.mubr.msk.f32.mxu0 %vm3931_vm0, %v3930_v6  ;;  %3622 = vmatprep.subr.mxu1 %v3930_v6 }
  0x48   : > { %3614 = vmatmul.mubr.bf16.vlgmr.msra.gmra.mrb[0].mxu1 %v858_v29 }
  0x49   : > { %3624 = vmatprep.mubr.msk.f32.mxu1 %vm3931_vm0, %v3930_v6 }
 0x118   : > { %v1038_v38 = vpop.f32.mrb[0].mxu0 }
 0x119   : > { %v1040_v40 = vpop.f32.mrb[1].mxu0  ;;  %v4164_v46 = vadd.f32 %v1038_v38, %v864_v39 }
 0x11a   : > { %v4157_v41 = vadd.f32 %v1040_v40, %v868_v37  ;;  %v1042_v42 = vpop.f32.mrb[2].mxu0 }
 0x11b   : > { %v1044_v43 = vpop.f32.mrb[3].mxu0  ;;  %v4171_v47 = vadd.f32 %v1042_v42, %v864_v39  ;;  %v1081_v49 = vpop.f32.mrb[0].mxu1 }
 0x11c   : > { %v4159_v44 = vadd.f32 %v1044_v43, %v868_v37  ;;  %3618 = vmatpush3.xpose.msk.msra.mxu0 %vm1104_vm1, %v4157_v41  ;;  %v4184_v50 = vadd.f32 %v1081_v49, %v872_v48  ;;  %v3615_v51 = vpop.f32.mrb[1].mxu1 }
 0x11d   : > { %3627 = vmatprep.subr.mxu0 %v3930_v6  ;;  %v1084_v52 = vpop.f32.mrb[2].mxu1 }
 0x11e   : > { %1509 = vrot.lane.b32.xlu1 %v4159_v44, %s3932_s2  ;;  %3623 = vmatpush3.xpose.msk.msra.mxu1 %vm1104_vm1, %v4159_v44  ;;  %v4186_v53 = vadd.f32 %v1084_v52, %v872_v48  ;;  %v3616_v54 = vpop.f32.mrb[3].mxu1 }
 0x11f   : > { %3620 = vmatmul.mubr.msk.f32.vlgmr.msra.gmra.mrb[4].mxu0 %vm1104_vm1, %v4164_v46  ;;  %3632 = vmatprep.subr.mxu1 %v3930_v6 }
 0x120   : > { %3629 = vmatprep.mubr.msk.f32.mxu0 %vm3931_vm0, %v3930_v6  ;;  %3628 = vmatpush3.msra.mxu0 %v4184_v50 }
 0x121   : > { %3625 = vmatmul.mubr.msk.f32.vlgmr.msra.gmra.mrb[4].mxu1 %vm1104_vm1, %v4171_v47  ;;  %3637 = vmatprep.subr.mxu0 %v3930_v6 }
 0x122   : > { %1429 = vrot.lane.b32.xlu1 %v4164_v46, %s3932_s2  ;;  %3634 = vmatprep.mubr.msk.f32.mxu1 %vm3931_vm0, %v3930_v6 }
 0x123   : > { %3633 = vmatpush3.msra.mxu1 %v4186_v53 }
 0x124   : > { %3642 = vmatprep.subr.mxu1 %v3930_v6 }
 0x190   : > { %v1510_v11 = vpop.permute.xlu1 %1509 }
 0x194   : > { %v1430_v12 = vpop.permute.xlu1 %1429 }
 0x1f2   : > { %v1177_v55 = vpop.f32.mrb[4].mxu0 }
 0x1f3   : > { %v1257_v56 = vmul.f32 0.17677669, %v1177_v55  ;;  %v3621_v57 = vpop.f32.mrb[5].mxu0 }
 0x1f4   : > { %v1253_v58 = vpop.f32.mrb[4].mxu1 }
 0x1f5   : > { %v1258_v59 = vmul.f32 0.17677669, %v1253_v58  ;;  %v3626_v60 = vpop.f32.mrb[5].mxu1  ;;  %v1260_v61 = vsel %vm1259_vm2, %v1257_v56, -inf }
 0x1f6   : > { %1261 = vmax.xlane.f32.xlu0 %v1260_v61  ;;  %v3796_v60 = vld [vmem:[%s4053_s24 + $0x10] sm:$0xff]  }
 0x1f7   : > { %v1263_v62 = vsel %vm1259_vm2, %v1258_v59, -inf }
 0x1fa   : > { %1264 = vmax.xlane.f32.xlu0 %v1263_v62 }
 0x210   : > { %1431 = vrot.lane.b32.xlu0 %v4157_v41, %s3932_s2 }
 0x283   : > { %v1262_v63 = vpop.xlane.xlu0 %1261 }
 0x284   : > { %v1266_v0 = vsub.f32 %v1257_v56, %v1262_v63  ;;  %v3794_v63 = vld [vmem:[%s4053_s24] sm:$0xff]  }
 0x286   : > { %v1268_v1 = vmul.f32 1.442695, %v1266_v0  ;;  %v3797_v0 = vld [vmem:[%s4053_s24 + $0x18] sm:$0xff]  }
 0x287   : > { %v1265_v2 = vpop.xlane.xlu0 %1264 }
 0x288   : > { %3842 = vpow2.f32 %v1268_v1  ;;  %v1267_v3 = vsub.f32 %v1258_v59, %v1265_v2  ;;  %v3795_v1 = vld [vmem:[%s4053_s24 + $0x8] sm:$0xff]  }
 0x28a   : > { %v1270_v4 = vmul.f32 1.442695, %v1267_v3 }
 0x28b   : > { %v1432_v17 = vpop.permute.xlu0 %1431 }
 0x28c   : > { %3844 = vpow2.f32 %v1270_v4 }
 0x292   : > { %v3843_v7 = vpop.eup %3842 }
 0x293   : > { %v1272_v8 = vsel %vm1259_vm2, %v3843_v7, 0.0 }
 0x294   : > { %1273 = vadd.xlane.f32.xlu1 %v1272_v8 }
 0x296   : > { %v3845_v9 = vpop.eup %3844 }
 0x297   : > { %v1275_v10 = vsel %vm1259_vm2, %v3845_v9, 0.0 }
 0x298   : > { %1276 = vadd.xlane.f32.xlu1 %v1275_v10 }
 0x2a9   : > { %1507 = vrot.lane.b32.xlu1 %v4171_v47, %s3932_s2 }
 0x321   : > { %v1274_v13 = vpop.xlane.xlu1 %1273 }
 0x322   : > { %3846 = vrcp.f32 %v1274_v13 }
 0x325   : > { %v1277_v14 = vpop.xlane.xlu1 %1276 }
 0x326   : > { %3848 = vrcp.f32 %v1277_v14 }
 0x329   : > { %v1508_v20 = vpop.permute.xlu1 %1507 }
 0x32c   : > { %v3847_v15 = vpop.eup %3846 }
 0x32d   : > { %v1279_v16 = vmul.f32 %v3847_v15, %v3843_v7 }
 0x32f   : > { %3630 = vmatmul.mubr.msk.f32.vlgmr.msra.gmra.mrb[6].mxu0 %vm1259_vm2, %v1279_v16 }
 0x330   : > { %v3849_v18 = vpop.eup %3848  ;;  %3638 = vmatpush3.xpose.msk.msra.mxu0 %vm1104_vm1, %v1432_v17  ;;  %3639 = vmatprep.mubr.msk.f32.mxu0 %vm3931_vm0, %v3930_v6 }
 0x331   : > { %v1281_v19 = vmul.f32 %v3849_v18, %v3845_v9  ;;  %3647 = vmatprep.subr.mxu0 %v3930_v6 }
 0x333   : > { %3635 = vmatmul.mubr.msk.f32.vlgmr.msra.gmra.mrb[6].mxu1 %vm1259_vm2, %v1281_v19  ;;  %3640 = vmatmul.mubr.msk.f32.vlgmr.msra.gmra.mrb[8].mxu0 %vm1104_vm1, %v1430_v12 }
 0x334   : > { %3643 = vmatpush3.xpose.msk.msra.mxu1 %vm1104_vm1, %v1510_v11  ;;  %3644 = vmatprep.mubr.msk.f32.mxu1 %vm3931_vm0, %v3930_v6 }
 0x335   : > { %3652 = vmatprep.subr.mxu1 %v3930_v6  ;;  %3649 = vmatprep.mubr.msk.f32.mxu0 %vm3931_vm0, %v3930_v6 }
 0x337   : > { %3645 = vmatmul.mubr.msk.f32.vlgmr.msra.gmra.mrb[8].mxu1 %vm1104_vm1, %v1508_v20 }
 0x338   : > { %3654 = vmatprep.mubr.msk.f32.mxu1 %vm3931_vm0, %v3930_v6 }
 0x402   : > { %v4216_v21 = vpop.f32.mrb[6].mxu0 }
 0x403   : > { %v3631_v22 = vpop.f32.mrb[7].mxu0 }
 0x406   : > { %v4218_v23 = vpop.f32.mrb[6].mxu1  ;;  %v1503_v24 = vpop.f32.mrb[8].mxu0 }
 0x407   : > { %v1428_v25 = vpack.c.bf16 %v4218_v23, %v4216_v21  ;;  %v1585_v28 = vmul.f32 0.17677669, %v1503_v24  ;;  %v3636_v29 = vpop.f32.mrb[7].mxu1  ;;  %v3641_v30 = vpop.f32.mrb[9].mxu0 }
 0x409   : > { %v1587_v31 = vsel %vm1259_vm2, %v1585_v28, -inf }
 0x40a   : > { %v1581_v32 = vpop.f32.mrb[8].mxu1  ;;  %1588 = vmax.xlane.f32.xlu0 %v1587_v31 }
 0x40b   : > { %v1586_v35 = vmul.f32 0.17677669, %v1581_v32  ;;  %v3646_v37 = vpop.f32.mrb[9].mxu1 }
 0x40d   : > { %v1590_v38 = vsel %vm1259_vm2, %v1586_v35, -inf }
 0x40e   : > { %1591 = vmax.xlane.f32.xlu1 %v1590_v38 }
 0x41f   : > { %1687 = vrot.lane.b32.xlu1 %v4186_v53, %s3932_s2 }
 0x423   : > { %1956 = vrot.lane.b32.xlu1 %v4159_v44, %s3933_s7 }
 0x427   : > { %1954 = vrot.lane.b32.xlu1 %v4171_v47, %s3933_s7 }
 0x42b   : > { %1876 = vrot.lane.b32.xlu1 %v4164_v46, %s3933_s7 }
 0x42f   : > { %2269 = vrot.lane.b32.xlu1 %v4157_v41, %s3934_s8 }
 0x497   : > { %v1589_v39 = vpop.xlane.xlu0 %1588 }
 0x498   : > { %v1593_v40 = vsub.f32 %v1585_v28, %v1589_v39 }
 0x49a   : > { %v1595_v42 = vmul.f32 1.442695, %v1593_v40 }
 0x49b   : > { %v1592_v43 = vpop.xlane.xlu1 %1591 }
 0x49c   : > { %3850 = vpow2.f32 %v1595_v42  ;;  %v1594_v45 = vsub.f32 %v1586_v35, %v1592_v43 }
 0x49e   : > { %v1597_v48 = vmul.f32 1.442695, %v1594_v45 }
 0x49f   : > { %v1688_v49 = vpop.permute.xlu1 %1687 }
 0x4a0   : > { %3852 = vpow2.f32 %v1597_v48  ;;  %3653 = vmatpush3.msra.mxu1 %v1688_v49 }
 0x4a1   : > { %3665 = vmatprep.subr.bf16.mxu1 %v3930_v6 }
 0x4a3   : > { %v1957_v2 = vpop.permute.xlu1 %1956 }
 0x4a6   : > { %v3851_v51 = vpop.eup %3850 }
 0x4a7   : > { %v1599_v52 = vsel %vm1259_vm2, %v3851_v51, 0.0  ;;  %v1955_v3 = vpop.permute.xlu1 %1954 }
 0x4a8   : > { %1600 = vadd.xlane.f32.xlu0 %v1599_v52 }
 0x4aa   : > { %v3853_v54 = vpop.eup %3852 }
 0x4ab   : > { %v1602_v55 = vsel %vm1259_vm2, %v3853_v54, 0.0  ;;  %v1877_v14 = vpop.permute.xlu1 %1876 }
 0x4ac   : > { %1603 = vadd.xlane.f32.xlu0 %v1602_v55 }
 0x4af   : > { %v2270_v40 = vpop.permute.xlu1 %2269 }
 0x4c2   : > { %1610 = vrot.lane.b32.xlu0 %v4184_v50, %s3932_s2 }
 0x4c6   : > { %1878 = vrot.lane.b32.xlu0 %v4157_v41, %s3933_s7 }
 0x535   : > { %v1601_v56 = vpop.xlane.xlu0 %1600 }
 0x536   : > { %3854 = vrcp.f32 %v1601_v56 }
 0x539   : > { %v1604_v57 = vpop.xlane.xlu0 %1603 }
 0x53a   : > { %3856 = vrcp.f32 %v1604_v57 }
 0x53d   : > { %v1611_v58 = vpop.permute.xlu0 %1610 }
 0x53e   : > { %3648 = vmatpush3.msra.mxu0 %v1611_v58 }
 0x53f   : > { %3657 = vmatprep.subr.bf16.mxu0 %v3930_v6 }
 0x540   : > { %v3855_v59 = vpop.eup %3854 }
 0x541   : > { %v1606_v61 = vmul.f32 %v3855_v59, %v3851_v51  ;;  %v1879_v11 = vpop.permute.xlu0 %1878 }
 0x543   : > { %3650 = vmatmul.mubr.msk.f32.vlgmr.msra.gmra.mrb[10].mxu0 %vm1259_vm2, %v1606_v61 }
 0x544   : > { %v3857_v62 = vpop.eup %3856  ;;  %3658 = vmatpush3.bf16.msra.mxu0 %v3796_v60  ;;  %3661 = vmatprep.mubr.msk.bf16.mxu0 %vm3931_vm0, %v3930_v6 }
 0x545   : > { %v1608_v41 = vmul.f32 %v3857_v62, %v3853_v54  ;;  %3659 = vmatprep.subr.bf16.mxu0 %v3930_v6 }
 0x547   : > { %3655 = vmatmul.mubr.msk.f32.vlgmr.msra.gmra.mrb[10].mxu1 %vm1259_vm2, %v1608_v41 }
 0x548   : > { %3666 = vmatpush3.bf16.msra.mxu1 %v3794_v63  ;;  %3669 = vmatprep.mubr.msk.bf16.mxu1 %vm3931_vm0, %v3930_v6 }
 0x549   : > { %3667 = vmatprep.subr.bf16.mxu1 %v3930_v6  ;;  %3660 = vmatpush3.bf16.msra.mxu0 %v3797_v0 }
 0x54a   : > { %3673 = vmatprep.subr.mxu0 %v3930_v6 }
 0x54c   : > { %3668 = vmatpush3.bf16.msra.mxu1 %v3795_v1 }
 0x54d   : > { %3678 = vmatprep.subr.mxu1 %v3930_v6 }
 0x54f   : > { %3670 = vmatmul.mubr.msk.bf16.vlgmr.msra.gmra.mrb[12].mxu1 %vm1104_vm1, %v1428_v25 }
 0x550   : > { %3680 = vmatprep.mubr.msk.f32.mxu1 %vm3931_vm0, %v3930_v6 }
 0x555   : > { %3679 = vmatpush3.xpose.msk.msra.mxu1 %vm1104_vm1, %v1957_v2 }
 0x556   : > { %3688 = vmatprep.subr.mxu1 %v3930_v6 }
 0x558   : > { %3681 = vmatmul.mubr.msk.f32.vlgmr.msra.gmra.mrb[16].mxu1 %vm1104_vm1, %v1955_v3 }
 0x559   : > { %3690 = vmatprep.mubr.msk.f32.mxu1 %vm3931_vm0, %v3930_v6 }
 0x616   : > { %v1682_v4 = vpop.f32.mrb[10].mxu0 }
 0x617   : > { %v3651_v7 = vpop.f32.mrb[11].mxu0 }
 0x618   : > { %v3798_v7 = vld [vmem:[%s4053_s24 + $0x20] sm:$0xff]  }
 0x61a   : > { %v1759_v8 = vpop.f32.mrb[10].mxu1 }
 0x61b   : > { %v1763_v9 = vpack.c.bf16 %v1759_v8, %v1682_v4  ;;  %v3656_v10 = vpop.f32.mrb[11].mxu1  ;;  %v3799_v8 = vld [vmem:[%s4053_s24 + $0x28] sm:$0xff]  }
 0x61d   : > { %3662 = vmatmul.mubr.msk.bf16.vlgmr.msra.gmra.mrb[12].mxu0 %vm1104_vm1, %v1763_v9 }
 0x61e   : > { %3674 = vmatpush3.xpose.msk.msra.mxu0 %vm1104_vm1, %v1879_v11  ;;  %3675 = vmatprep.mubr.msk.f32.mxu0 %vm3931_vm0, %v3930_v6 }
 0x61f   : > { %3683 = vmatprep.subr.mxu0 %v3930_v6 }
 0x622   : > { %v1869_v12 = vpop.f32.mrb[12].mxu1 }
 0x623   : > { %v3671_v13 = vpop.f32.mrb[13].mxu1 }
 0x624   : > { %v1872_v15 = vpop.f32.mrb[14].mxu1 }
 0x625   : > { %v3672_v16 = vpop.f32.mrb[15].mxu1  ;;  %3676 = vmatmul.mubr.msk.f32.vlgmr.msra.gmra.mrb[16].mxu0 %vm1104_vm1, %v1877_v14 }
 0x626   : > { %3685 = vmatprep.mubr.msk.f32.mxu0 %vm3931_vm0, %v3930_v6 }
 0x62b   : > { %v2028_v17 = vpop.f32.mrb[16].mxu1 }
 0x62c   : > { %v2033_v18 = vmul.f32 0.17677669, %v2028_v17  ;;  %v3682_v19 = vpop.f32.mrb[17].mxu1 }
 0x62e   : > { %v2037_v20 = vsel %vm1259_vm2, %v2033_v18, -inf }
 0x62f   : > { %2038 = vmax.xlane.f32.xlu0 %v2037_v20 }
 0x645   : > { %2132 = vrot.lane.b32.xlu0 %v4186_v53, %s3933_s7 }
 0x649   : > { %2267 = vrot.lane.b32.xlu0 %v4164_v46, %s3934_s8 }
 0x64d   : > { %2345 = vrot.lane.b32.xlu0 %v4171_v47, %s3934_s8 }
 0x6bc   : > { %v2039_v21 = vpop.xlane.xlu0 %2038 }
 0x6bd   : > { %v2041_v22 = vsub.f32 %v2033_v18, %v2039_v21 }
 0x6bf   : > { %v2044_v23 = vmul.f32 1.442695, %v2041_v22 }
 0x6c0   : > { %v2133_v24 = vpop.permute.xlu0 %2132 }
 0x6c1   : > { %3858 = vpow2.f32 %v2044_v23  ;;  %3689 = vmatpush3.msra.mxu1 %v2133_v24 }
 0x6c2   : > { %3701 = vmatprep.subr.mxu1 %v3930_v6 }
 0x6cb   : > { %v3859_v25 = vpop.eup %3858 }
 0x6cc   : > { %v2049_v28 = vsel %vm1259_vm2, %v3859_v25, 0.0 }
 0x6cd   : > { %2050 = vadd.xlane.f32.xlu1 %v2049_v28 }
 0x6de   : > { %2347 = vrot.lane.b32.xlu1 %v4159_v44, %s3934_s8  ;;  %v2268_v44 = vpop.permute.xlu0 %2267 }
 0x6e2   : > { %v2346_v49 = vpop.permute.xlu0 %2345 }
 0x6f0   : > { %v1813_v29 = vpop.f32.mrb[12].mxu0 }
 0x6f1   : > { %v4286_v46 = vadd.f32 %v1869_v12, %v1813_v29  ;;  %v3663_v30 = vpop.f32.mrb[13].mxu0 }
 0x6f2   : > { %v1816_v47 = vpop.f32.mrb[14].mxu0 }
 0x6f3   : > { %v4288_v31 = vadd.f32 %v1872_v15, %v1816_v47  ;;  %v3664_v32 = vpop.f32.mrb[15].mxu0  ;;  %v3800_v47 = vld [vmem:[%s4053_s24 + $0x30] sm:$0xff]  }
 0x6f4   : > { %v3801_v32 = vld [vmem:[%s4053_s24 + $0x38] sm:$0xff]  }
 0x6f8   : > { %v1950_v35 = vpop.f32.mrb[16].mxu0 }
 0x6f9   : > { %v3677_v37 = vpop.f32.mrb[17].mxu0  ;;  %v2032_v38 = vmul.f32 0.17677669, %v1950_v35 }
 0x6fb   : > { %v2034_v39 = vsel %vm1259_vm2, %v2032_v38, -inf }
 0x702   : > { %2035 = vmax.xlane.f32.xlu1 %v2034_v39 }
 0x75a   : > { %v2051_v42 = vpop.xlane.xlu1 %2050 }
 0x75b   : > { %3860 = vrcp.f32 %v2051_v42 }
 0x75e   : > { %v2348_v48 = vpop.permute.xlu1 %2347 }
 0x765   : > { %v3861_v43 = vpop.eup %3860 }
 0x766   : > { %v2055_v45 = vmul.f32 %v3861_v43, %v3859_v25 }
 0x768   : > { %3691 = vmatmul.mubr.msk.f32.vlgmr.msra.gmra.mrb[18].mxu1 %vm1259_vm2, %v2055_v45 }
 0x769   : > { %3702 = vmatpush3.xpose.msk.msra.mxu1 %vm1104_vm1, %v2270_v40  ;;  %3703 = vmatprep.mubr.msk.f32.mxu1 %vm3931_vm0, %v3930_v6 }
 0x76a   : > { %3706 = vmatprep.subr.mxu1 %v3930_v6 }
 0x76c   : > { %3704 = vmatmul.mubr.msk.f32.vlgmr.msra.gmra.mrb[20].mxu1 %vm1104_vm1, %v2268_v44 }
 0x76d   : > { %3707 = vmatpush3.xpose.msk.msra.mxu1 %vm1104_vm1, %v2348_v48  ;;  %3708 = vmatprep.mubr.msk.f32.mxu1 %vm3931_vm0, %v3930_v6 }
 0x76e   : > { %3711 = vmatprep.subr.mxu1 %v3930_v6 }
 0x770   : > { %3709 = vmatmul.mubr.msk.f32.vlgmr.msra.gmra.mrb[22].mxu1 %vm1104_vm1, %v2346_v49 }
 0x771   : > { %3713 = vmatprep.mubr.msk.f32.mxu1 %vm3931_vm0, %v3930_v6 }
 0x78f   : > { %v2036_v51 = vpop.xlane.xlu1 %2035 }
 0x790   : > { %v2040_v52 = vsub.f32 %v2032_v38, %v2036_v51 }
 0x792   : > { %v2042_v54 = vmul.f32 1.442695, %v2040_v52 }
 0x794   : > { %3862 = vpow2.f32 %v2042_v54 }
 0x79e   : > { %v3863_v55 = vpop.eup %3862 }
 0x79f   : > { %v2046_v56 = vsel %vm1259_vm2, %v3863_v55, 0.0 }
 0x7a0   : > { %2047 = vadd.xlane.f32.xlu0 %v2046_v56 }
 0x7b6   : > { %2056 = vrot.lane.b32.xlu0 %v4184_v50, %s3933_s7 }
 0x7ba   : > { %2523 = vrot.lane.b32.xlu0 %v4186_v53, %s3934_s8 }
 0x82d   : > { %v2048_v57 = vpop.xlane.xlu0 %2047 }
 0x82e   : > { %3864 = vrcp.f32 %v2048_v57 }
 0x831   : > { %v2057_v58 = vpop.permute.xlu0 %2056 }
 0x832   : > { %3684 = vmatpush3.msra.mxu0 %v2057_v58 }
 0x833   : > { %3693 = vmatprep.subr.bf16.mxu0 %v3930_v6 }
 0x835   : > { %v2524_v22 = vpop.permute.xlu0 %2523 }
 0x838   : > { %v3865_v59 = vpop.eup %3864 }
 0x839   : > { %v2053_v60 = vmul.f32 %v3865_v59, %v3863_v55  ;;  %v3802_v59 = vld [vmem:[%s4071_s15] ss:$8 sps:$4 sm:$0xff]  }
 0x83b   : > { %3686 = vmatmul.mubr.msk.f32.vlgmr.msra.gmra.mrb[18].mxu0 %vm1259_vm2, %v2053_v60  ;;  %v2204_v61 = vpop.f32.mrb[18].mxu1  ;;  %v3804_v60 = vld [vmem:[%s4071_s15 + $0x4] ss:$8 sps:$4 sm:$0xff]  }
 0x83c   : > { %v3692_v62 = vpop.f32.mrb[19].mxu1  ;;  %3697 = vmatprep.mubr.msk.bf16.mxu0 %vm3931_vm0, %v3930_v6  ;;  %3694 = vmatpush3.bf16.msra.mxu0 %v3798_v7  ;;  %v3813_v7 = vld [vmem:[%s4071_s15 + $0x34] ss:$8 sps:$4 sm:$0xff]  }
 0x83d   : > { %3695 = vmatprep.subr.bf16.mxu0 %v3930_v6  ;;  %v3805_v62 = vld [vmem:[%s4071_s15 + $0x10] ss:$8 sps:$4 sm:$0xff]  }
 0x83f   : > { %v2341_v63 = vpop.f32.mrb[20].mxu1 }
 0x840   : > { %v2423_v41 = vmul.f32 0.17677669, %v2341_v63  ;;  %v3705_v53 = vpop.f32.mrb[21].mxu1  ;;  %3696 = vmatpush3.bf16.msra.mxu0 %v3799_v8  ;;  %v3811_v8 = vld [vmem:[%s4071_s15 + $0x30] ss:$8 sps:$4 sm:$0xff]  }
 0x841   : > { %3716 = vmatprep.subr.mxu0 %v3930_v6 }
 0x842   : > { %v2425_v0 = vsel %vm1259_vm2, %v2423_v41, -inf }
 0x843   : > { %v2419_v1 = vpop.f32.mrb[22].mxu1  ;;  %2426 = vmax.xlane.f32.xlu1 %v2425_v0 }
 0x844   : > { %v2424_v2 = vmul.f32 0.17677669, %v2419_v1  ;;  %v3710_v3 = vpop.f32.mrb[23].mxu1 }
 0x845   : > { %v3810_v3 = vld [vmem:[%s4071_s15 + $0x24] ss:$8 sps:$4 sm:$0xff]  }
 0x846   : > { %v2428_v4 = vsel %vm1259_vm2, %v2424_v2, -inf }
 0x847   : > { %2429 = vmax.xlane.f32.xlu1 %v2428_v4  ;;  %v3808_v4 = vld [vmem:[%s4071_s15 + $0x20] ss:$8 sps:$4 sm:$0xff]  }
 0x8d0   : > { %v2427_v9 = vpop.xlane.xlu1 %2426 }
 0x8d1   : > { %v2431_v10 = vsub.f32 %v2423_v41, %v2427_v9  ;;  %v3816_v9 = vld [vmem:[%s4071_s15 + $0x44] ss:$8 sps:$4 sm:$0xff]  }
 0x8d3   : > { %v2433_v11 = vmul.f32 1.442695, %v2431_v10  ;;  %v3814_v10 = vld [vmem:[%s4071_s15 + $0x40] ss:$8 sps:$4 sm:$0xff]  }
 0x8d4   : > { %v2430_v12 = vpop.xlane.xlu1 %2429 }
 0x8d5   : > { %3866 = vpow2.f32 %v2433_v11  ;;  %v2432_v13 = vsub.f32 %v2424_v2, %v2430_v12  ;;  %v3819_v11 = vld [vmem:[%s4071_s15 + $0x54] ss:$8 sps:$4 sm:$0xff]   ;;  %v3817_v12 = vld [vmem:[%s4071_s15 + $0x50] ss:$8 sps:$4 sm:$0xff]  }
 0x8d7   : > { %v2435_v14 = vmul.f32 1.442695, %v2432_v13  ;;  %v3822_v13 = vld [vmem:[%s4071_s15 + $0x64] ss:$8 sps:$4 sm:$0xff]  }
 0x8d9   : > { %3868 = vpow2.f32 %v2435_v14  ;;  %v3820_v14 = vld [vmem:[%s4071_s15 + $0x60] ss:$8 sps:$4 sm:$0xff]  }
 0x8df   : > { %v3867_v15 = vpop.eup %3866 }
 0x8e0   : > { %v2437_v16 = vsel %vm1259_vm2, %v3867_v15, 0.0 }
 0x8e1   : > { %2438 = vadd.xlane.f32.xlu1 %v2437_v16  ;;  %v3823_v16 = vld [vmem:[%s4071_s15 + $0x70] ss:$8 sps:$4 sm:$0xff]  }
 0x8e3   : > { %v3869_v17 = vpop.eup %3868 }
 0x8e4   : > { %v2440_v18 = vsel %vm1259_vm2, %v3869_v17, 0.0 }
 0x8e5   : > { %2441 = vadd.xlane.f32.xlu1 %v2440_v18 }
 0x8f6   : > { %2447 = vrot.lane.b32.xlu1 %v4184_v50, %s3934_s8 }
 0x90e   : > { %v2128_v19 = vpop.f32.mrb[18].mxu0 }
 0x90f   : > { %v2208_v20 = vpack.c.bf16 %v2204_v61, %v2128_v19  ;;  %v3687_v21 = vpop.f32.mrb[19].mxu0  ;;  %v3807_v61 = vld [vmem:[%s4071_s15 + $0x14] ss:$8 sps:$4 sm:$0xff]  }
 0x911   : > { %3698 = vmatmul.mubr.msk.bf16.vlgmr.msra.gmra.mrb[20].mxu0 %vm1104_vm1, %v2208_v20 }
 0x912   : > { %3717 = vmatpush3.msra.mxu0 %v2524_v22  ;;  %3718 = vmatprep.mubr.msk.f32.mxu0 %vm3931_vm0, %v3930_v6 }
 0x913   : > { %2819 = vmatprep.subr.bf16.mxu0 %v3804_v60 }
 0x96e   : > { %v2439_v23 = vpop.xlane.xlu1 %2438 }
 0x96f   : > { %3870 = vrcp.f32 %v2439_v23 }
 0x972   : > { %v2442_v24 = vpop.xlane.xlu1 %2441 }
 0x973   : > { %3872 = vrcp.f32 %v2442_v24 }
 0x976   : > { %v2448_v25 = vpop.permute.xlu1 %2447 }
 0x977   : > { %3712 = vmatpush3.msra.mxu1 %v2448_v25 }
 0x978   : > { %3721 = vmatprep.subr.bf16.mxu1 %v3930_v6 }
 0x979   : > { %v3871_v50 = vpop.eup %3870 }
 0x97a   : > { %v2444_v28 = vmul.f32 %v3871_v50, %v3867_v15  ;;  %v3825_v15 = vld [vmem:[%s4071_s15 + $0x74] ss:$8 sps:$4 sm:$0xff]   ;;  %s4461_s15 = scalar_lea.vmem %s4460_s28, %s4470_s18 }
 0x97b   : > { %v3465_v25 = vld [vmem:[%s4461_s15] ss:$0 sm:$0xff] }
 0x97c   : > { %3714 = vmatmul.mubr.msk.f32.vlgmr.msra.gmra.mrb[24].mxu1 %vm1259_vm2, %v2444_v28 }
 0x97d   : > { %v3873_v29 = vpop.eup %3872  ;;  %3725 = vmatprep.mubr.msk.bf16.mxu1 %vm3931_vm0, %v3930_v6  ;;  %3722 = vmatpush3.bf16.msra.mxu1 %v3800_v47 }
 0x97e   : > { %v2446_v30 = vmul.f32 %v3873_v29, %v3869_v17  ;;  %3723 = vmatprep.subr.bf16.mxu1 %v3930_v6 }
 0x980   : > { %3719 = vmatmul.mubr.msk.f32.vlgmr.msra.gmra.mrb[24].mxu0 %vm1259_vm2, %v2446_v30  ;;  %v3466_v30 = vld [vmem:[%s4463_s17] ss:$0 sm:$0xff] }
 0x981   : > { %2851 = vmatprep.mubr.bf16.mxu0 %v3929_v5  ;;  %3724 = vmatpush3.bf16.msra.mxu1 %v3801_v32 }
 0x982   : > { %2820 = vmatpush1.bf16.msra.mxu0 %v3802_v59 }
 0x983   : > { %2821 = vmatprep.subr.bf16.mxu0 %v3807_v61 }
 0x986   : > { %2822 = vmatpush1.bf16.msra.mxu0 %v3805_v62 }
 0x987   : > { %2823 = vmatprep.subr.bf16.mxu0 %v3810_v3 }
 0x98a   : > { %2824 = vmatpush1.bf16.msra.mxu0 %v3808_v4 }
 0x98b   : > { %2825 = vmatprep.subr.bf16.mxu0 %v3813_v7 }
 0x98e   : > { %2826 = vmatpush1.bf16.msra.mxu0 %v3811_v8 }
 0x98f   : > { %2827 = vmatprep.subr.bf16.mxu0 %v3816_v9 }
 0x992   : > { %2828 = vmatpush1.bf16.msra.mxu0 %v3814_v10 }
 0x993   : > { %2829 = vmatprep.subr.bf16.mxu0 %v3819_v11 }
 0x996   : > { %2830 = vmatpush1.bf16.msra.mxu0 %v3817_v12 }
 0x997   : > { %2831 = vmatprep.subr.bf16.mxu0 %v3822_v13 }
 0x99a   : > { %2832 = vmatpush1.bf16.msra.mxu0 %v3820_v14 }
 0x99b   : > { %2833 = vmatprep.subr.bf16.mxu0 %v3825_v15 }
 0x99e   : > { %2834 = vmatpush1.bf16.msra.mxu0 %v3823_v16 }
 0x9e4   : > { %v2258_v35 = vpop.f32.mrb[20].mxu0 }
 0x9e5   : > { %v2265_v37 = vadd.f32 %v2258_v35, %v4286_v46  ;;  %v3699_v38 = vpop.f32.mrb[21].mxu0  ;;  %v3464_v46 = vld [vmem:[%s4459_s22] ss:$0 sm:$0xff] }
 0x9e6   : > { %v2261_v39 = vpop.f32.mrb[22].mxu0  ;;  %v3826_v38 = vld [vmem:[%s4082_s1 + $0x40] sm:$0xff]  }
 0x9e7   : > { %v2266_v40 = vadd.f32 %v2261_v39, %v4288_v31  ;;  %v3700_v42 = vpop.f32.mrb[23].mxu0  ;;  %v3827_v39 = vld [vmem:[%s4082_s1] sm:$0xff]   ;;  %3575 = vmatprep.subr.bf16.mxu1 %v3826_v38 }
 0x9e8   : > { %v3829_v42 = vld [vmem:[%s4082_s1 + $0x8] sm:$0xff]  }
 0xa4f   : > { %v2519_v43 = vpop.f32.mrb[24].mxu1 }
 0xa50   : > { %v3715_v45 = vpop.f32.mrb[25].mxu1 }
 0xa51   : > { %v3831_v45 = vld [vmem:[%s4082_s1 + $0x10] sm:$0xff]  }
 0xa53   : > { %v2595_v44 = vpop.f32.mrb[24].mxu0 }
 0xa54   : > { %v2599_v48 = vpack.c.bf16 %v2595_v44, %v2519_v43  ;;  %v3720_v5 = vpop.f32.mrb[25].mxu0  ;;  %v3830_v43 = vld [vmem:[%s4082_s1 + $0x50] sm:$0xff]   ;;  %v3832_v44 = vld [vmem:[%s4082_s1 + $0x58] sm:$0xff]  }
 0xa55   : > { %v3834_v5 = vld [vmem:[%s4082_s1 + $0x60] sm:$0xff]  }
 0xa56   : > { %3726 = vmatmul.mubr.msk.bf16.vlgmr.msra.gmra.mrb[28].mxu1 %vm1104_vm1, %v2599_v48  ;;  %v3833_v48 = vld [vmem:[%s4082_s1 + $0x18] sm:$0xff]  }
 0xa57   : > { %3576 = vmatpush3.bf16.msra.mxu1 %v3827_v39 }
 0xb29   : > { %v2649_v6 = vpop.f32.mrb[28].mxu1 }
 0xb2a   : > { %v2656_v49 = vadd.f32 %v2649_v6, %v2265_v37  ;;  %v3727_v31 = vpop.f32.mrb[29].mxu1  ;;  %v3835_v6 = vld [vmem:[%s4082_s1 + $0x20] sm:$0xff]  }
 0xb2b   : > { %v2652_v51 = vpop.f32.mrb[30].mxu1  ;;  %v3838_v31 = vld [vmem:[%s4082_s1 + $0x70] sm:$0xff]  }
 0xb2c   : > { %v2665_v52 = vadd.f32 %v3464_v46, %v2656_v49  ;;  %v2657_v54 = vadd.f32 %v2652_v51, %v2266_v40  ;;  %v3728_v55 = vpop.f32.mrb[31].mxu1  ;;  %v3828_v40 = vld [vmem:[%s4082_s1 + $0x48] sm:$0xff]   ;;  %v3839_v51 = vld [vmem:[%s4082_s1 + $0x30] sm:$0xff]  }
 0xb2d   : > { %3577 = vmatprep.subr.bf16.mxu1 %v3828_v40  ;;  %v3837_v49 = vld [vmem:[%s4082_s1 + $0x28] sm:$0xff]   ;;  %v2727_v55 = vld [vmem:[%s4077_s23] sm:$0x3] }
 0xb2e   : > { %v2666_v56 = vadd.f32 %v3464_v46, %v2657_v54  ;;  %v2667_v57 = vadd.f32 %v2665_v52, %v4129_v26  ;;  %3578 = vmatpush3.bf16.msra.mxu1 %v3829_v42  ;;  %v3836_v46 = vld [vmem:[%s4082_s1 + $0x68] sm:$0xff]   ;;  %v3840_v52 = vld [vmem:[%s4082_s1 + $0x78] sm:$0xff]  }
 0xb2f   : > { %3579 = vmatprep.subr.bf16.mxu1 %v3830_v43  ;;  %v3841_v54 = vld [vmem:[%s4082_s1 + $0x38] sm:$0xff]   ;;  %v3483_v43 = vld [vmem:[%s790_s27] ss:$0 sm:$0xff] }
 0xb30   : > { %2671 = vadd.xlane.f32.xlu0 %v2667_v57  ;;  %v2668_v58 = vadd.f32 %v2666_v56, %v4131_v27  ;;  %v2732_v56 = vrot.slane %v2727_v55, %v863_v36 }
 0xb32   : > { %2673 = vadd.xlane.f32.xlu1 %v2668_v58  ;;  %3580 = vmatpush3.bf16.msra.mxu1 %v3831_v45 }
 0xb33   : > { %3581 = vmatprep.subr.bf16.mxu1 %v3832_v44 }
 0xb36   : > { %3582 = vmatpush3.bf16.msra.mxu1 %v3833_v48 }
 0xb37   : > { %3583 = vmatprep.subr.bf16.mxu1 %v3834_v5 }
 0xb3a   : > { %3584 = vmatpush3.bf16.msra.mxu1 %v3835_v6 }
 0xb3b   : > { %3585 = vmatprep.subr.bf16.mxu1 %v3836_v46 }
 0xb3e   : > { %3586 = vmatpush3.bf16.msra.mxu1 %v3837_v49 }
 0xb3f   : > { %3587 = vmatprep.subr.bf16.mxu1 %v3838_v31 }
 0xb42   : > { %3588 = vmatpush3.bf16.msra.mxu1 %v3839_v51 }
 0xb43   : > { %3589 = vmatprep.subr.bf16.mxu1 %v3840_v52 }
 0xb46   : > { %3590 = vmatpush3.bf16.msra.mxu1 %v3841_v54 }
 0xbbd   : > { %v2672_v63 = vpop.xlane.xlu0 %2671 }
 0xbbe   : > { %v2676_v41 = vmul.f32 0.0078125, %v2672_v63 }
 0xbbf   : > { %v2674_v53 = vpop.xlane.xlu1 %2673 }
 0xbc0   : > { %v2678_v26 = vsub.f32 %v2667_v57, %v2676_v41  ;;  %v2677_v27 = vmul.f32 0.0078125, %v2674_v53  ;;  %v2736_v57 = vrot.slane %v2727_v55, %v867_v34 }
 0xbc2   : > { %v2679_v0 = vsub.f32 %v2668_v58, %v2677_v27  ;;  %v2680_v1 = vmul.f32 %v2678_v26, %v2678_v26 }
 0xbc4   : > { %2682 = vadd.xlane.f32.xlu0 %v2680_v1  ;;  %v2681_v2 = vmul.f32 %v2679_v0, %v2679_v0 }
 0xbc8   : > { %2684 = vadd.xlane.f32.xlu0 %v2681_v2 }
 0xc51   : > { %v2683_v17 = vpop.xlane.xlu0 %2682 }
 0xc52   : > { %v2686_v18 = vmul.f32 0.0078125, %v2683_v17 }
 0xc54   : > { %v2688_v19 = vadd.f32 1e-12, %v2686_v18 }
 0xc55   : > { %v2685_v20 = vpop.xlane.xlu0 %2684 }
 0xc56   : > { %3874 = vrsqrt.f32 %v2688_v19  ;;  %v2687_v21 = vmul.f32 0.0078125, %v2685_v20 }
 0xc58   : > { %v2689_v22 = vadd.f32 1e-12, %v2687_v21 }
 0xc5a   : > { %3876 = vrsqrt.f32 %v2689_v22 }
 0xc60   : > { %v3875_v23 = vpop.eup %3874 }
 0xc61   : > { %v2692_v24 = vmul.f32 %v3875_v23, %v2678_v26 }
 0xc63   : > { %v2700_v29 = vmul.f32 %v3465_v25, %v2692_v24 }
 0xc64   : > { %v3877_v50 = vpop.eup %3876 }
 0xc65   : > { %v2693_v28 = vmul.f32 %v3877_v50, %v2679_v0  ;;  %v4371_v32 = vadd.f32 %v3466_v30, %v2700_v29 }
 0xc67   : > { %v2701_v47 = vmul.f32 %v3465_v25, %v2693_v28 }
 0xc69   : > { %v4373_v35 = vadd.f32 %v3466_v30, %v2701_v47 }
 0xc6b   : > { %v2726_v37 = vpack.c.bf16 %v4373_v35, %v4371_v32 }
 0xc6d   : > { %2852 = vmatmul.mubr.bf16.vlgmr.msra.gmra.mrb[28].mxu0 %v2726_v37 }
 0xd40   : > { %v2853_v58 = vpop.f32.mrb[28].mxu0 }
 0xd41   : > { %v2854_v59 = vadd.f32 %v2853_v58, %v2732_v56  ;;  %v2855_v60 = vpop.f32.mrb[29].mxu0 }
 0xd42   : > { %v2856_v61 = vadd.f32 %v2855_v60, %v2736_v57  ;;  %v2857_v62 = vpop.f32.mrb[30].mxu0 }
 0xd43   : > { %v2862_v63 = vmul.f32 %v2854_v59, %v2854_v59  ;;  %v2858_v41 = vadd.f32 %v2857_v62, %v2732_v56  ;;  %v2859_v53 = vpop.f32.mrb[31].mxu0 }
 0xd44   : > { %v2863_v26 = vmul.f32 %v2856_v61, %v2856_v61  ;;  %v2860_v27 = vadd.f32 %v2859_v53, %v2736_v57 }
 0xd45   : > { %v2866_v0 = vmul.f32 %v2862_v63, %v2854_v59  ;;  %v2864_v1 = vmul.f32 %v2858_v41, %v2858_v41 }
 0xd46   : > { %v2867_v2 = vmul.f32 %v2863_v26, %v2856_v61  ;;  %v2865_v3 = vmul.f32 %v2860_v27, %v2860_v27  ;;  %v3500_v26 = vld [vmem:[%s796_s19] ss:$0 sm:$0xff] }
 0xd47   : > { %v2870_v4 = vmul.f32 0.044715, %v2866_v0  ;;  %v2868_v7 = vmul.f32 %v2864_v1, %v2858_v41  ;;  %v3501_v0 = vld [vmem:[%s802_s6] ss:$0 sm:$0xff] }
 0xd48   : > { %v2871_v36 = vmul.f32 0.044715, %v2867_v2  ;;  %v2869_v8 = vmul.f32 %v2865_v3, %v2860_v27 }
 0xd49   : > { %v2874_v33 = vadd.f32 %v2870_v4, %v2854_v59  ;;  %v2872_v34 = vmul.f32 0.044715, %v2868_v7 }
 0xd4a   : > { %v2875_v9 = vadd.f32 %v2871_v36, %v2856_v61  ;;  %v2873_v10 = vmul.f32 0.044715, %v2869_v8 }
 0xd4b   : > { %v2878_v11 = vmul.f32 0.7978846, %v2874_v33  ;;  %v2876_v12 = vadd.f32 %v2872_v34, %v2858_v41 }
 0xd4c   : > { %v2879_v13 = vmul.f32 0.7978846, %v2875_v9  ;;  %v2877_v14 = vadd.f32 %v2873_v10, %v2860_v27 }
 0xd4d   : > { %3878 = vtanh.f32 %v2878_v11  ;;  %v2880_v15 = vmul.f32 0.7978846, %v2876_v12 }
 0xd4e   : > { %3880 = vtanh.f32 %v2879_v13  ;;  %v2881_v16 = vmul.f32 0.7978846, %v2877_v14 }
 0xd4f   : > { %3882 = vtanh.f32 %v2880_v15 }
 0xd50   : > { %3884 = vtanh.f32 %v2881_v16 }
 0xd57   : > { %v3879_v17 = vpop.eup %3878 }
 0xd58   : > { %v3881_v18 = vpop.eup %3880  ;;  %v2886_v19 = vadd.f32 1.0, %v3879_v17 }
 0xd59   : > { %v3883_v20 = vpop.eup %3882  ;;  %v2887_v21 = vadd.f32 1.0, %v3881_v18 }
 0xd5a   : > { %v3885_v22 = vpop.eup %3884  ;;  %v2890_v23 = vmul.f32 0.5, %v2886_v19  ;;  %v2888_v24 = vadd.f32 1.0, %v3883_v20 }
 0xd5b   : > { %v2889_v25 = vadd.f32 1.0, %v3885_v22  ;;  %v2891_v50 = vmul.f32 0.5, %v2887_v21 }
 0xd5c   : > { %v2892_v28 = vmul.f32 0.5, %v2888_v24  ;;  %v2894_v30 = vmul.f32 %v2890_v23, %v2854_v59 }
 0xd5d   : > { %v2893_v29 = vmul.f32 0.5, %v2889_v25  ;;  %v2895_v37 = vmul.f32 %v2891_v50, %v2856_v61 }
 0xd5e   : > { %v2896_v47 = vmul.f32 %v2892_v28, %v2858_v41 }
 0xd5f   : > { %v2897_v38 = vmul.f32 %v2893_v29, %v2860_v27 }
 0xd60   : > { %v2930_v39 = vpack.c.bf16 %v2896_v47, %v2894_v30 }
 0xd61   : > { %v2931_v40 = vpack.c.bf16 %v2897_v38, %v2895_v37 }
 0xd63   : > { %3067 = vmatprep.mubr.bf16.mxu1 %v2931_v40 }
 0xd64   : > { %3068 = vmatmul.mubr.bf16.vlgmr.msra.gmra.mrb[32].mxu1 %v2930_v39 }
 0xe37   : > { %v3591_v42 = vpop.f32.mrb[32].mxu1 }
 0xe38   : > { %v3592_v45 = vpop.f32.mrb[33].mxu1 }
 0xe39   : > { %v3593_v44 = vadd.f32 %v3592_v45, %v3591_v42  ;;  %v3594_v48 = vpop.f32.mrb[34].mxu1 }
 0xe3a   : > { %v3595_v5 = vpop.f32.mrb[35].mxu1 }
 0xe3b   : > { %v3070_v6 = vadd.f32 %v3593_v44, %v3483_v43  ;;  %v3596_v46 = vadd.f32 %v3595_v5, %v3594_v48 }
 0xe3d   : > { %v3073_v49 = vadd.f32 %v3596_v46, %v3483_v43  ;;  %v3076_v31 = vadd.f32 %v3070_v6, %v4371_v32 }
 0xe3f   : > { %3080 = vadd.xlane.f32.xlu0 %v3076_v31  ;;  %v3077_v51 = vadd.f32 %v3073_v49, %v4373_v35 }
 0xe43   : > { %3082 = vadd.xlane.f32.xlu0 %v3077_v51 }
 0xecc   : > { %v3081_v52 = vpop.xlane.xlu0 %3080 }
 0xecd   : > { %v3084_v54 = vmul.f32 0.0078125, %v3081_v52 }
 0xecf   : > { %v3086_v55 = vsub.f32 %v3076_v31, %v3084_v54 }
 0xed0   : > { %v3083_v56 = vpop.xlane.xlu0 %3082 }
 0xed1   : > { %v3085_v57 = vmul.f32 0.0078125, %v3083_v56  ;;  %v3088_v58 = vmul.f32 %v3086_v55, %v3086_v55 }
 0xed3   : > { %v3087_v59 = vsub.f32 %v3077_v51, %v3085_v57  ;;  %3090 = vadd.xlane.f32.xlu0 %v3088_v58 }
 0xed5   : > { %v3089_v60 = vmul.f32 %v3087_v59, %v3087_v59 }
 0xed7   : > { %3092 = vadd.xlane.f32.xlu1 %v3089_v60 }
 0xf60   : > { %v3091_v61 = vpop.xlane.xlu0 %3090 }
 0xf61   : > { %v3094_v62 = vmul.f32 0.0078125, %v3091_v61 }
 0xf63   : > { %v3096_v63 = vadd.f32 1e-12, %v3094_v62 }
 0xf64   : > { %v3093_v32 = vpop.xlane.xlu1 %3092 }
 0xf65   : > { %3886 = vrsqrt.f32 %v3096_v63  ;;  %v3095_v41 = vmul.f32 0.0078125, %v3093_v32 }
 0xf67   : > { %v3097_v35 = vadd.f32 1e-12, %v3095_v41 }
 0xf69   : > { %3888 = vrsqrt.f32 %v3097_v35 }
 0xf6f   : > { %v3887_v53 = vpop.eup %3886 }
 0xf70   : > { %v3100_v27 = vmul.f32 %v3887_v53, %v3086_v55 }
 0xf72   : > { %v3108_v1 = vmul.f32 %v3500_v26, %v3100_v27 }
 0xf73   : > { %v3889_v2 = vpop.eup %3888 }
 0xf74   : > { %v3116_v3 = vadd.f32 %v3501_v0, %v3108_v1  ;;  %v3101_v4 = vmul.f32 %v3889_v2, %v3087_v59 }
 0xf76   : > { %3118 = vst [vmem:[#allocation2] sm:$0xff] %v3116_v3  ;;  %v3109_v7 = vmul.f32 %v3500_v26, %v3101_v4 }
 0xf78   : > { %v3117_v36 = vadd.f32 %v3501_v0, %v3109_v7 }
 0xf7a   : > { %3119 = vst [vmem:[#allocation2 + $0x8] sm:$0xff] %v3117_v36  ;;  %v3520_v8 = vpack.c.bf16 %v3117_v36, %v3116_v3 }
 0xf7c   : > { %3521 = vst [vmem:[%s4099_s25] sm:$0xff] %v3520_v8  }
 0xf7d PF: > { %s4464_s2 = sld [smem:[#allocation7_spill]]  ;;  %s4465_s18 = sld [smem:[#allocation6_spill]] }
 0xf7e   : > { %s4466_s19 = sld [smem:[#allocation8_spill]] }
 0xf83   : > { %s30_s20 = sadd.s32 1, %s4464_s2  }
 0xf84   : > { %p27_p11 = scmp.ge.s32.totalorder %s30_s20, 4  }
 0xf86   :  { %29 = sbr.rel (!%p27_p11) target bundleno = 19 (0x13), region = 146 }

</bundles_post_ra>
